<compile_context>
chip_gen: v5e
topology: v5e:2x2
jax: 0.10.0
libtpu: 0.0.40
codegen_flags: <defaults>
</compile_context>

<pallas_src>
import jax
import jax.numpy as jnp
from jax import lax
from jax.experimental import pallas as pl
from jax.experimental.pallas import tpu as pltpu

EPS = 1e-05


def bn_relu_kernel(x_ref, gamma_ref, beta_ref, o_ref):
    # x_ref:     (N, Cb, HW) f32  -- channels on sublanes, HW on lanes
    # gamma_ref: (Cb, 1)     f32
    # beta_ref:  (Cb, 1)     f32
    # o_ref:     (N, Cb, HW) f32
    n, _, hw = x_ref.shape
    inv_count = 1.0 / float(n * hw)

    # Pass 1: per-channel mean (lane-axis reduce, then batch reduce).
    s1 = jnp.sum(jnp.sum(x_ref[...], axis=2, keepdims=True),
                 axis=0, keepdims=True)                        # (1, Cb, 1)
    mean = s1 * inv_count

    # Pass 2: centered sum of squares (biased variance, BN training
    # semantics).  x is re-read from VMEM; no full-block value stays live.
    s2 = jnp.sum(jnp.sum(jnp.square(x_ref[...] - mean), axis=2, keepdims=True),
                 axis=0, keepdims=True)                        # (1, Cb, 1)
    var = s2 * inv_count
    inv_std = lax.rsqrt(var + EPS)                             # EUP, per-channel

    # Fold affine into per-channel scale/bias -> apply pass is one FMA + ReLU.
    scale = gamma_ref[...] * inv_std                           # (1, Cb, 1)
    bias = beta_ref[...] - mean * scale                        # (1, Cb, 1)

    o_ref[...] = jnp.maximum(x_ref[...] * scale + bias, 0.0)


def _pick_channel_block(n, c, hw, budget_bytes=16 * 1024 * 1024):
    """VMEM-budget-driven channel-stripe width.

    Pallas double-buffers input and output blocks (~4 live block copies), so
    keep 4 * n*cb*hw*4 bytes within `budget_bytes` (well under the 32 MiB
    default scoped VMEM limit and v7x's 64 MiB physical VMEM).
    Prefer cb == C (single grid step) whenever it fits.
    """
    bytes_per_channel = n * hw * 4
    max_cb = max(8, (budget_bytes // (4 * bytes_per_channel)) // 8 * 8)
    if c <= max_cb:
        return c                      # whole tensor in one block -> grid=(1,)
    # Largest multiple of 8 that divides C and fits the budget.
    cb = (min(max_cb, c) // 8) * 8
    while cb >= 8:
        if c % cb == 0:
            return cb
        cb -= 8
    # Ragged-tail fallback: padded channels in the last block compute stats on
    # unspecified data (possible Inf/NaN through rsqrt), but those values land
    # only in discarded (masked) output rows -- do not read them elsewhere.
    return min(max_cb, c)


@jax.jit
def batchnorm_relu(x_nchw, gamma, beta):
    """x_nchw: (N, C, H, W) float32 -> (N, C, H, W) float32 (BN + ReLU)."""
    n, c, h, w = x_nchw.shape
    hw = h * w

    # Pure reshapes only -- no HBM transpose passes.
    x3d = x_nchw.reshape(n, c, hw).astype(jnp.float32)
    gamma2d = gamma.reshape(c, 1).astype(jnp.float32)
    beta2d = beta.reshape(c, 1).astype(jnp.float32)

    cb = _pick_channel_block(n, c, hw)
    grid = (pl.cdiv(c, cb),)

    cost = pl.CostEstimate(
        flops=7 * n * c * hw,              # 2 reduce passes + FMA/ReLU apply
        transcendentals=c,                 # one rsqrt per channel
        bytes_accessed=2 * n * c * hw * 4 + 2 * c * 4,
    )

    out3d = pl.pallas_call(
        bn_relu_kernel,
        out_shape=jax.ShapeDtypeStruct((n, c, hw), jnp.float32),
        grid_spec=pltpu.PrefetchScalarGridSpec(
            num_scalar_prefetch=0,
            grid=grid,
            in_specs=[
                pl.BlockSpec((n, cb, hw), lambda j: (0, j, 0)),
                pl.BlockSpec((cb, 1), lambda j: (j, 0)),
                pl.BlockSpec((cb, 1), lambda j: (j, 0)),
            ],
            out_specs=pl.BlockSpec((n, cb, hw), lambda j: (0, j, 0)),
        ),
        cost_estimate=cost,
        compiler_params=pltpu.CompilerParams(
            dimension_semantics=("parallel",)),
    )(x3d, gamma2d, beta2d)

    return out3d.reshape(n, c, h, w)


if __name__ == "__main__":
    key = jax.random.PRNGKey(0)
    kx, kg, kb = jax.random.split(key, 3)

    # Shapes implied by the module: BatchNorm2d(864) on [1, 864, 7, 7].
    N, C, H, W = 1, 864, 7, 7
    x = jax.random.normal(kx, (N, C, H, W), dtype=jnp.float32)
    # PyTorch default init is gamma=1, beta=0; perturb so the affine path is
    # actually exercised.
    gamma = 1.0 + 0.1 * jax.random.normal(kg, (C,), dtype=jnp.float32)
    beta = 0.1 * jax.random.normal(kb, (C,), dtype=jnp.float32)

    out = batchnorm_relu(x, gamma, beta)
    jax.block_until_ready(out)

    # Reference: PyTorch BatchNorm2d training-mode (biased batch stats) + ReLU.
    mean = jnp.mean(x, axis=(0, 2, 3), keepdims=True)
    var = jnp.mean((x - mean) ** 2, axis=(0, 2, 3), keepdims=True)
    g = gamma.reshape(1, C, 1, 1)
    b = beta.reshape(1, C, 1, 1)
    ref = jnp.maximum((x - mean) * lax.rsqrt(var + EPS) * g + b, 0.0)

    assert out.shape == (N, C, H, W)
    assert jnp.allclose(out, ref, atol=1e-4, rtol=1e-4), "mismatch vs reference"

    print("KERNEL_OK")
</pallas_src>

<mosaic_0001>
module attributes {stable_mosaic.version = 11 : i64} {
  func.func @bn_relu_kernel(%arg0: i32, %arg1: memref<1x864x49xf32, #tpu.memory_space<vmem>>, %arg2: memref<864x1xf32, #tpu.memory_space<vmem>>, %arg3: memref<864x1xf32, #tpu.memory_space<vmem>>, %arg4: memref<1x864x49xf32, #tpu.memory_space<vmem>>) attributes {dimension_semantics = [#tpu.dimension_semantics<parallel>], iteration_bounds = array<i64: 1>, scalar_prefetch = 0 : i64, scratch_operands = 0 : i64, tpu.core_type = #tpu.core_type<tc>, window_params = [{transform_indices = @transform_0, window_bounds = array<i64: 1, 864, 49>}, {transform_indices = @transform_1, window_bounds = array<i64: 864, 1>}, {transform_indices = @transform_2, window_bounds = array<i64: 864, 1>}, {transform_indices = @transform_3, window_bounds = array<i64: 1, 864, 49>}]} {
    %c0 = arith.constant 0 : index
    %c0_0 = arith.constant 0 : index
    %c0_1 = arith.constant 0 : index
    %0 = vector.load %arg1[%c0, %c0_0, %c0_1] : memref<1x864x49xf32, #tpu.memory_space<vmem>>, vector<1x864x49xf32>
    %cst = arith.constant dense<0.000000e+00> : vector<1x864xf32>
    %1 = vector.multi_reduction <add>, %0, %cst [2] : vector<1x864x49xf32> to vector<1x864xf32>
    %2 = vector.shape_cast %1 : vector<1x864xf32> to vector<1x864x1xf32>
    %cst_2 = arith.constant dense<0.000000e+00> : vector<864x1xf32>
    %3 = vector.multi_reduction <add>, %2, %cst_2 [0] : vector<1x864x1xf32> to vector<864x1xf32>
    %4 = vector.shape_cast %3 : vector<864x1xf32> to vector<1x864x1xf32>
    %cst_3 = arith.constant 0.0204081628 : f32
    %5 = vector.broadcast %cst_3 : f32 to vector<1x864x1xf32>
    %6 = arith.mulf %4, %5 : vector<1x864x1xf32>
    %c0_4 = arith.constant 0 : index
    %c0_5 = arith.constant 0 : index
    %c0_6 = arith.constant 0 : index
    %7 = vector.load %arg1[%c0_4, %c0_5, %c0_6] : memref<1x864x49xf32, #tpu.memory_space<vmem>>, vector<1x864x49xf32>
    %8 = vector.broadcast %6 : vector<1x864x1xf32> to vector<1x864x49xf32>
    %9 = arith.subf %7, %8 : vector<1x864x49xf32>
    %10 = arith.mulf %9, %9 : vector<1x864x49xf32>
    %cst_7 = arith.constant dense<0.000000e+00> : vector<1x864xf32>
    %11 = vector.multi_reduction <add>, %10, %cst_7 [2] : vector<1x864x49xf32> to vector<1x864xf32>
    %12 = vector.shape_cast %11 : vector<1x864xf32> to vector<1x864x1xf32>
    %cst_8 = arith.constant dense<0.000000e+00> : vector<864x1xf32>
    %13 = vector.multi_reduction <add>, %12, %cst_8 [0] : vector<1x864x1xf32> to vector<864x1xf32>
    %14 = vector.shape_cast %13 : vector<864x1xf32> to vector<1x864x1xf32>
    %cst_9 = arith.constant 0.0204081628 : f32
    %15 = vector.broadcast %cst_9 : f32 to vector<1x864x1xf32>
    %16 = arith.mulf %14, %15 : vector<1x864x1xf32>
    %cst_10 = arith.constant 9.99999974E-6 : f32
    %17 = vector.broadcast %cst_10 : f32 to vector<1x864x1xf32>
    %18 = arith.addf %16, %17 : vector<1x864x1xf32>
    %19 = math.rsqrt %18 : vector<1x864x1xf32>
    %c0_11 = arith.constant 0 : index
    %c0_12 = arith.constant 0 : index
    %20 = vector.load %arg2[%c0_11, %c0_12] : memref<864x1xf32, #tpu.memory_space<vmem>>, vector<864x1xf32>
    %21 = vector.shape_cast %20 : vector<864x1xf32> to vector<1x864x1xf32>
    %22 = arith.mulf %21, %19 : vector<1x864x1xf32>
    %c0_13 = arith.constant 0 : index
    %c0_14 = arith.constant 0 : index
    %23 = vector.load %arg3[%c0_13, %c0_14] : memref<864x1xf32, #tpu.memory_space<vmem>>, vector<864x1xf32>
    %24 = arith.mulf %6, %22 : vector<1x864x1xf32>
    %25 = vector.shape_cast %23 : vector<864x1xf32> to vector<1x864x1xf32>
    %26 = arith.subf %25, %24 : vector<1x864x1xf32>
    %c0_15 = arith.constant 0 : index
    %c0_16 = arith.constant 0 : index
    %c0_17 = arith.constant 0 : index
    %27 = vector.load %arg1[%c0_15, %c0_16, %c0_17] : memref<1x864x49xf32, #tpu.memory_space<vmem>>, vector<1x864x49xf32>
    %28 = vector.broadcast %22 : vector<1x864x1xf32> to vector<1x864x49xf32>
    %29 = arith.mulf %27, %28 : vector<1x864x49xf32>
    %30 = vector.broadcast %26 : vector<1x864x1xf32> to vector<1x864x49xf32>
    %31 = arith.addf %29, %30 : vector<1x864x49xf32>
    %cst_18 = arith.constant 0.000000e+00 : f32
    %32 = vector.broadcast %cst_18 : f32 to vector<1x864x49xf32>
    %33 = arith.maximumf %31, %32 : vector<1x864x49xf32>
    %c0_19 = arith.constant 0 : index
    %c0_20 = arith.constant 0 : index
    %c0_21 = arith.constant 0 : index
    %34 = vector.load %arg4[%c0_19, %c0_20, %c0_21] : memref<1x864x49xf32, #tpu.memory_space<vmem>>, vector<1x864x49xf32>
    tpu.vector_store %arg4[%c0_19, %c0_20, %c0_21], %33 {strides = array<i32>} : memref<1x864x49xf32, #tpu.memory_space<vmem>>, vector<1x864x49xf32>,
    return
  }
  func.func @transform_0(%arg0: i32) -> (i32, i32, i32) {
    %c0_i32 = arith.constant 0 : i32
    %c0_i32_0 = arith.constant 0 : i32
    %c0_i32_1 = arith.constant 0 : i32
    return %c0_i32, %arg0, %c0_i32_0 : i32, i32, i32
  }
  func.func @transform_1(%arg0: i32) -> (i32, i32) {
    %c0_i32 = arith.constant 0 : i32
    %c0_i32_0 = arith.constant 0 : i32
    return %arg0, %c0_i32 : i32, i32
  }
  func.func @transform_2(%arg0: i32) -> (i32, i32) {
    %c0_i32 = arith.constant 0 : i32
    %c0_i32_0 = arith.constant 0 : i32
    return %arg0, %c0_i32 : i32, i32
  }
  func.func @transform_3(%arg0: i32) -> (i32, i32, i32) {
    %c0_i32 = arith.constant 0 : i32
    %c0_i32_0 = arith.constant 0 : i32
    %c0_i32_1 = arith.constant 0 : i32
    return %c0_i32, %arg0, %c0_i32_0 : i32, i32, i32
  }
}

</mosaic_0001>

<bundles_post_ra>
// kernel: batchnorm_relu.1
= control target key start
LH: loop header
LB: loop body
LE: loop exit
PB: predicated region body
PF: predicated region fallthrough
CT: control target
= control target key end

     0   :  { %vm122_vm0 = vcmask 400384   ;;  %s11658_s0 = inlined_call_operand.vmem [shape: f32[1,864,49], index: 0, kind: input, shape index: {}]   ;;  %s11659_s1 = inlined_call_operand.vmem [shape: f32[864,1], index: 1, kind: input, shape index: {}]   ;;  %s11660_s2 = inlined_call_operand.vmem [shape: f32[864,1], index: 2, kind: input, shape index: {}]   ;;  %s11661_s3 = inlined_call_operand.vmem [shape: f32[1,864,49], index: 3, kind: output, shape index: {}]  }
   0x1   :  { %v5079_v0 = vld [vmem:[%s11658_s0 + $0x20] sm:$0xff]  ;;  %v5084_v1 = vld [vmem:[%s11658_s0 + $0x10] sm:$0xff]  ;;  %v5100_v6 = vld [vmem:[%s11658_s0 + $0x28] sm:$0xff] }
   0x2   :  { %v5089_v2 = vld [vmem:[%s11658_s0] sm:$0xff]  ;;  %v135_v3 = vsel %vm122_vm0, %v5079_v0, 0.0  ;;  %v129_v4 = vsel %vm122_vm0, %v5084_v1, 0.0  ;;  %v5105_v7 = vld [vmem:[%s11658_s0 + $0x18] sm:$0xff]  ;;  %v5110_v8 = vld [vmem:[%s11658_s0 + $0x8] sm:$0xff]  ;;  %v138_v9 = vsel %vm122_vm0, %v5100_v6, 0.0 }
   0x3   :  { %v123_v5 = vsel %vm122_vm0, %v5089_v2, 0.0  ;;  %136 = vadd.xlane.f32.xlu2 %v135_v3  ;;  %130 = vadd.xlane.f32.xlu1 %v129_v4  ;;  %v132_v10 = vsel %vm122_vm0, %v5105_v7, 0.0  ;;  %v126_v11 = vsel %vm122_vm0, %v5110_v8, 0.0  ;;  %v5121_v12 = vld [vmem:[%s11658_s0 + $0x40] sm:$0xff]  ;;  %v5126_v13 = vld [vmem:[%s11658_s0 + $0x38] sm:$0xff]  ;;  %v5131_v14 = vld [vmem:[%s11658_s0 + $0x30] sm:$0xff] }
   0x4   :  { %124 = vadd.xlane.f32.xlu0 %v123_v5  ;;  %v147_v15 = vsel %vm122_vm0, %v5121_v12, 0.0  ;;  %v144_v16 = vsel %vm122_vm0, %v5126_v13, 0.0  ;;  %v141_v17 = vsel %vm122_vm0, %v5131_v14, 0.0  ;;  %v5142_v18 = vld [vmem:[%s11658_s0 + $0x58] sm:$0xff]  ;;  %v5147_v19 = vld [vmem:[%s11658_s0 + $0x50] sm:$0xff]  ;;  %v5152_v20 = vld [vmem:[%s11658_s0 + $0x48] sm:$0xff] }
   0x5   :  { %v156_v21 = vsel %vm122_vm0, %v5142_v18, 0.0  ;;  %v153_v22 = vsel %vm122_vm0, %v5147_v19, 0.0  ;;  %v150_v23 = vsel %vm122_vm0, %v5152_v20, 0.0  ;;  %v5163_v24 = vld [vmem:[%s11658_s0 + $0x70] sm:$0xff]  ;;  %v5168_v25 = vld [vmem:[%s11658_s0 + $0x68] sm:$0xff]  ;;  %v5173_v26 = vld [vmem:[%s11658_s0 + $0x60] sm:$0xff] }
   0x6   :  { %v165_v27 = vsel %vm122_vm0, %v5163_v24, 0.0  ;;  %v162_v28 = vsel %vm122_vm0, %v5168_v25, 0.0  ;;  %v159_v29 = vsel %vm122_vm0, %v5173_v26, 0.0  ;;  %v5184_v30 = vld [vmem:[%s11658_s0 + $0x88] sm:$0xff]  ;;  %v5189_v31 = vld [vmem:[%s11658_s0 + $0x80] sm:$0xff]  ;;  %v5194_v32 = vld [vmem:[%s11658_s0 + $0x78] sm:$0xff] }
   0x7   :  { %v174_v33 = vsel %vm122_vm0, %v5184_v30, 0.0  ;;  %v171_v34 = vsel %vm122_vm0, %v5189_v31, 0.0  ;;  %v168_v35 = vsel %vm122_vm0, %v5194_v32, 0.0  ;;  %v5205_v36 = vld [vmem:[%s11658_s0 + $0xa0] sm:$0xff]  ;;  %v5210_v37 = vld [vmem:[%s11658_s0 + $0x98] sm:$0xff]  ;;  %v5215_v38 = vld [vmem:[%s11658_s0 + $0x90] sm:$0xff] }
   0x8   :  { %v183_v39 = vsel %vm122_vm0, %v5205_v36, 0.0  ;;  %v180_v40 = vsel %vm122_vm0, %v5210_v37, 0.0  ;;  %v177_v41 = vsel %vm122_vm0, %v5215_v38, 0.0  ;;  %v5226_v42 = vld [vmem:[%s11658_s0 + $0xb8] sm:$0xff]  ;;  %v5231_v43 = vld [vmem:[%s11658_s0 + $0xb0] sm:$0xff]  ;;  %v5236_v44 = vld [vmem:[%s11658_s0 + $0xa8] sm:$0xff] }
   0x9   :  { %v192_v45 = vsel %vm122_vm0, %v5226_v42, 0.0  ;;  %v189_v46 = vsel %vm122_vm0, %v5231_v43, 0.0  ;;  %v186_v47 = vsel %vm122_vm0, %v5236_v44, 0.0  ;;  %v5247_v48 = vld [vmem:[%s11658_s0 + $0xd0] sm:$0xff]  ;;  %v5252_v49 = vld [vmem:[%s11658_s0 + $0xc8] sm:$0xff]  ;;  %v5257_v50 = vld [vmem:[%s11658_s0 + $0xc0] sm:$0xff] }
   0xa   :  { %v201_v51 = vsel %vm122_vm0, %v5247_v48, 0.0  ;;  %v198_v52 = vsel %vm122_vm0, %v5252_v49, 0.0  ;;  %v195_v53 = vsel %vm122_vm0, %v5257_v50, 0.0  ;;  %v5268_v54 = vld [vmem:[%s11658_s0 + $0xe8] sm:$0xff]  ;;  %v5273_v55 = vld [vmem:[%s11658_s0 + $0xe0] sm:$0xff]  ;;  %v5278_v56 = vld [vmem:[%s11658_s0 + $0xd8] sm:$0xff] }
   0xb   :  { %139 = vadd.xlane.f32.xlu2 %v138_v9  ;;  %133 = vadd.xlane.f32.xlu1 %v132_v10  ;;  %11861 = vst [vmem:[#allocation2_spill] sm:$0xff] %v5268_v54  ;;  %v210_v57 = vsel %vm122_vm0, %v5268_v54, 0.0  ;;  %v207_v58 = vsel %vm122_vm0, %v5273_v55, 0.0  ;;  %v204_v59 = vsel %vm122_vm0, %v5278_v56, 0.0  ;;  %v5289_v60 = vld [vmem:[%s11658_s0 + $0x100] sm:$0xff]  ;;  %v5294_v61 = vld [vmem:[%s11658_s0 + $0xf8] sm:$0xff] }
   0xc   :  { %127 = vadd.xlane.f32.xlu0 %v126_v11  ;;  %11862 = vst [vmem:[#allocation3_spill] sm:$0xff] %v5273_v55  ;;  %v5299_v62 = vld [vmem:[%s11658_s0 + $0xf0] sm:$0xff]  ;;  %v219_v63 = vsel %vm122_vm0, %v5289_v60, 0.0  ;;  %v216_v3 = vsel %vm122_vm0, %v5294_v61, 0.0  ;;  %v5310_v5 = vld [vmem:[%s11658_s0 + $0x118] sm:$0xff]  ;;  %v5320_v10 = vld [vmem:[%s11658_s0 + $0x108] sm:$0xff] }
   0xd   :  { %11863 = vst [vmem:[#allocation4_spill] sm:$0xff] %v5278_v56  ;;  %v213_v4 = vsel %vm122_vm0, %v5299_v62, 0.0  ;;  %v5315_v9 = vld [vmem:[%s11658_s0 + $0x110] sm:$0xff]  ;;  %v228_v11 = vsel %vm122_vm0, %v5310_v5, 0.0  ;;  %v87_v56 = vld [vmem:[%s11658_s0 + $0x248] sm:$0xff] }
   0xe   :  { %11864 = vst [vmem:[#allocation5_spill] sm:$0xff] %v5289_v60 }
   0xf   :  { %11865 = vst [vmem:[#allocation6_spill] sm:$0xff] %v5294_v61 }
  0x10   :  { %11866 = vst [vmem:[#allocation7_spill] sm:$0xff] %v5299_v62  ;;  %v84_v62 = vld [vmem:[%s11658_s0 + $0x230] sm:$0xff] }
  0x11   :  { %11867 = vst [vmem:[#allocation8_spill] sm:$0xff] %v5310_v5 }
  0x12   :  { %11868 = vst [vmem:[#allocation9_spill] sm:$0xff] %v5315_v9 }
  0x13   :  { %148 = vadd.xlane.f32.xlu2 %v147_v15  ;;  %145 = vadd.xlane.f32.xlu1 %v144_v16  ;;  %11869 = vst [vmem:[#allocation10_spill] sm:$0xff] %v5320_v10  ;;  %v225_v15 = vsel %vm122_vm0, %v5315_v9, 0.0  ;;  %v222_v16 = vsel %vm122_vm0, %v5320_v10, 0.0  ;;  %v81_v10 = vld [vmem:[%s11658_s0 + $0x218] sm:$0xff] }
  0x14   :  { %142 = vadd.xlane.f32.xlu0 %v141_v17  ;;  %v5331_v17 = vld [vmem:[%s11658_s0 + $0x130] sm:$0xff] }
  0x15   :  { %11870 = vst [vmem:[#allocation11_spill] sm:$0xff] %v5331_v17 }
  0x1b   :  { %157 = vadd.xlane.f32.xlu2 %v156_v21  ;;  %154 = vadd.xlane.f32.xlu1 %v153_v22  ;;  %v5336_v21 = vld [vmem:[%s11658_s0 + $0x128] sm:$0xff]  ;;  %v5341_v22 = vld [vmem:[%s11658_s0 + $0x120] sm:$0xff] }
  0x1c   :  { %151 = vadd.xlane.f32.xlu0 %v150_v23  ;;  %11871 = vst [vmem:[#allocation12_spill] sm:$0xff] %v5336_v21  ;;  %v237_v23 = vsel %vm122_vm0, %v5331_v17, 0.0 }
  0x1d   :  { %11872 = vst [vmem:[#allocation13_spill] sm:$0xff] %v5341_v22 }
  0x23   :  { %166 = vadd.xlane.f32.xlu2 %v165_v27  ;;  %163 = vadd.xlane.f32.xlu1 %v162_v28  ;;  %v234_v27 = vsel %vm122_vm0, %v5336_v21, 0.0  ;;  %v231_v28 = vsel %vm122_vm0, %v5341_v22, 0.0  ;;  %v78_v22 = vld [vmem:[%s11658_s0 + $0x200] sm:$0xff] }
  0x24   :  { %160 = vadd.xlane.f32.xlu0 %v159_v29  ;;  %v5352_v29 = vld [vmem:[%s11658_s0 + $0x148] sm:$0xff] }
  0x25   :  { %11873 = vst [vmem:[#allocation14_spill] sm:$0xff] %v5352_v29 }
  0x2b   :  { %175 = vadd.xlane.f32.xlu2 %v174_v33  ;;  %172 = vadd.xlane.f32.xlu1 %v171_v34  ;;  %v5357_v33 = vld [vmem:[%s11658_s0 + $0x140] sm:$0xff]  ;;  %v5362_v34 = vld [vmem:[%s11658_s0 + $0x138] sm:$0xff] }
  0x2c   :  { %169 = vadd.xlane.f32.xlu0 %v168_v35  ;;  %11874 = vst [vmem:[#allocation15_spill] sm:$0xff] %v5357_v33  ;;  %v246_v35 = vsel %vm122_vm0, %v5352_v29, 0.0 }
  0x2d   :  { %11875 = vst [vmem:[#allocation16_spill] sm:$0xff] %v5362_v34 }
  0x33   :  { %184 = vadd.xlane.f32.xlu2 %v183_v39  ;;  %181 = vadd.xlane.f32.xlu1 %v180_v40  ;;  %v243_v39 = vsel %vm122_vm0, %v5357_v33, 0.0  ;;  %v240_v40 = vsel %vm122_vm0, %v5362_v34, 0.0  ;;  %v75_v34 = vld [vmem:[%s11658_s0 + $0x1e8] sm:$0xff] }
  0x34   :  { %178 = vadd.xlane.f32.xlu0 %v177_v41  ;;  %v5373_v41 = vld [vmem:[%s11658_s0 + $0x160] sm:$0xff] }
  0x35   :  { %11876 = vst [vmem:[#allocation17_spill] sm:$0xff] %v5373_v41 }
  0x3b   :  { %193 = vadd.xlane.f32.xlu2 %v192_v45  ;;  %190 = vadd.xlane.f32.xlu1 %v189_v46  ;;  %v5378_v45 = vld [vmem:[%s11658_s0 + $0x158] sm:$0xff]  ;;  %v56_v46 = vld [vmem:[%s11658_s0 + $0x150] sm:$0xff] }
  0x3c   :  { %187 = vadd.xlane.f32.xlu0 %v186_v47  ;;  %11877 = vst [vmem:[#allocation18_spill] sm:$0xff] %v5378_v45  ;;  %v255_v47 = vsel %vm122_vm0, %v5373_v41, 0.0 }
  0x43   :  { %202 = vadd.xlane.f32.xlu2 %v201_v51  ;;  %199 = vadd.xlane.f32.xlu1 %v198_v52  ;;  %v252_v51 = vsel %vm122_vm0, %v5378_v45, 0.0  ;;  %v249_v52 = vsel %vm122_vm0, %v56_v46, 0.0 }
  0x44   :  { %196 = vadd.xlane.f32.xlu0 %v195_v53  ;;  %v61_v53 = vld [vmem:[%s11658_s0 + $0x178] sm:$0xff] }
  0x4b   :  { %211 = vadd.xlane.f32.xlu2 %v210_v57  ;;  %208 = vadd.xlane.f32.xlu1 %v207_v58  ;;  %v60_v57 = vld [vmem:[%s11658_s0 + $0x170] sm:$0xff] }
  0x4c   :  { %205 = vadd.xlane.f32.xlu0 %v204_v59 }
  0x53   :  { %220 = vadd.xlane.f32.xlu2 %v219_v63  ;;  %217 = vadd.xlane.f32.xlu1 %v216_v3  ;;  %v59_v63 = vld [vmem:[%s11658_s0 + $0x168] sm:$0xff] }
  0x54   :  { %214 = vadd.xlane.f32.xlu0 %v213_v4  ;;  %v264_v4 = vsel %vm122_vm0, %v61_v53, 0.0 }
  0x5b   :  { %229 = vadd.xlane.f32.xlu2 %v228_v11  ;;  %226 = vadd.xlane.f32.xlu1 %v225_v15  ;;  %v261_v11 = vsel %vm122_vm0, %v60_v57, 0.0  ;;  %v258_v15 = vsel %vm122_vm0, %v59_v63, 0.0  ;;  %v65_v63 = vld [vmem:[%s11658_s0 + $0x198] sm:$0xff] }
  0x5c   :  { %223 = vadd.xlane.f32.xlu0 %v222_v16  ;;  %v64_v16 = vld [vmem:[%s11658_s0 + $0x190] sm:$0xff] }
  0x63   :  { %238 = vadd.xlane.f32.xlu2 %v237_v23  ;;  %235 = vadd.xlane.f32.xlu1 %v234_v27  ;;  %v63_v23 = vld [vmem:[%s11658_s0 + $0x188] sm:$0xff] }
  0x64   :  { %232 = vadd.xlane.f32.xlu0 %v231_v28  ;;  %v270_v46 = vsel %vm122_vm0, %v63_v23, 0.0  ;;  %v70_v23 = vld [vmem:[%s11658_s0 + $0x1c0] sm:$0xff] }
  0x6b   :  { %247 = vadd.xlane.f32.xlu2 %v246_v35  ;;  %244 = vadd.xlane.f32.xlu1 %v243_v39  ;;  %v62_v35 = vld [vmem:[%s11658_s0 + $0x180] sm:$0xff] }
  0x6c   :  { %241 = vadd.xlane.f32.xlu0 %v240_v40  ;;  %v273_v40 = vsel %vm122_vm0, %v64_v16, 0.0  ;;  %v276_v16 = vsel %vm122_vm0, %v65_v63, 0.0 }
  0x73   :  { %256 = vadd.xlane.f32.xlu2 %v255_v47  ;;  %253 = vadd.xlane.f32.xlu1 %v252_v51  ;;  %v267_v47 = vsel %vm122_vm0, %v62_v35, 0.0  ;;  %v67_v51 = vld [vmem:[%s11658_s0 + $0x1a8] sm:$0xff]  ;;  %v69_v35 = vld [vmem:[%s11658_s0 + $0x1b8] sm:$0xff] }
  0x74   :  { %250 = vadd.xlane.f32.xlu0 %v249_v52  ;;  %v66_v52 = vld [vmem:[%s11658_s0 + $0x1a0] sm:$0xff]  ;;  %v288_v63 = vsel %vm122_vm0, %v69_v35, 0.0 }
  0x76   :  { %v5394_v58 = vpop.xlane.xlu2 %136  ;;  %v5396_v59 = vpop.xlane.xlu1 %130 }
  0x77   :  { %v5401_v3 = vpop.xlane.xlu0 %124 }
  0x7b   :  { %265 = vadd.xlane.f32.xlu2 %v264_v4  ;;  %262 = vadd.xlane.f32.xlu1 %v261_v11  ;;  %v282_v11 = vsel %vm122_vm0, %v67_v51, 0.0 }
  0x7c   :  { %259 = vadd.xlane.f32.xlu0 %v258_v15  ;;  %v279_v15 = vsel %vm122_vm0, %v66_v52, 0.0  ;;  %v291_v52 = vsel %vm122_vm0, %v70_v23, 0.0  ;;  %v71_v23 = vld [vmem:[%s11658_s0 + $0x1c8] sm:$0xff] }
  0x7e   :  { %v5412_v27 = vpop.xlane.xlu2 %139  ;;  %v5414_v28 = vpop.xlane.xlu1 %133 }
  0x7f   :  { %v5419_v39 = vpop.xlane.xlu0 %127 }
  0x83   :  { %274 = vadd.xlane.f32.xlu2 %v273_v40  ;;  %271 = vadd.xlane.f32.xlu1 %v270_v46 }
  0x84   :  { %268 = vadd.xlane.f32.xlu0 %v267_v47  ;;  %v68_v47 = vld [vmem:[%s11658_s0 + $0x1b0] sm:$0xff] }
  0x86   :  { %v5430_v53 = vpop.xlane.xlu2 %148  ;;  %v5432_v57 = vpop.xlane.xlu1 %145 }
  0x87   :  { %v5437_v4 = vpop.xlane.xlu0 %142 }
  0x8b   :  { %283 = vadd.xlane.f32.xlu2 %v282_v11  ;;  %280 = vadd.xlane.f32.xlu1 %v279_v15  ;;  %v285_v11 = vsel %vm122_vm0, %v68_v47, 0.0  ;;  %v73_v15 = vld [vmem:[%s11658_s0 + $0x1d8] sm:$0xff] }
  0x8c   :  { %277 = vadd.xlane.f32.xlu0 %v276_v16  ;;  %v72_v16 = vld [vmem:[%s11658_s0 + $0x1d0] sm:$0xff]  ;;  %v300_v47 = vsel %vm122_vm0, %v73_v15, 0.0  ;;  %v74_v15 = vld [vmem:[%s11658_s0 + $0x1e0] sm:$0xff] }
  0x8e   :  { %v5448_v40 = vpop.xlane.xlu2 %157  ;;  %v5450_v46 = vpop.xlane.xlu1 %154 }
  0x8f   :  { %v5455_v51 = vpop.xlane.xlu0 %151 }
  0x93   :  { %292 = vadd.xlane.f32.xlu2 %v291_v52  ;;  %289 = vadd.xlane.f32.xlu1 %v288_v63  ;;  %v297_v52 = vsel %vm122_vm0, %v72_v16, 0.0  ;;  %v294_v63 = vsel %vm122_vm0, %v71_v23, 0.0 }
  0x94   :  { %286 = vadd.xlane.f32.xlu0 %v285_v11  ;;  %v76_v11 = vld [vmem:[%s11658_s0 + $0x1f0] sm:$0xff] }
  0x95   :  { %v309_v23 = vsel %vm122_vm0, %v76_v11, 0.0 }
  0x96   :  { %v5466_v45 = vpop.xlane.xlu2 %166  ;;  %v5468_v41 = vpop.xlane.xlu1 %163 }
  0x97   :  { %v5473_v35 = vpop.xlane.xlu0 %160 }
  0x9b   :  { %301 = vadd.xlane.f32.xlu2 %v300_v47  ;;  %298 = vadd.xlane.f32.xlu1 %v297_v52  ;;  %v306_v47 = vsel %vm122_vm0, %v75_v34, 0.0  ;;  %v303_v52 = vsel %vm122_vm0, %v74_v15, 0.0  ;;  %v77_v34 = vld [vmem:[%s11658_s0 + $0x1f8] sm:$0xff] }
  0x9c   :  { %295 = vadd.xlane.f32.xlu0 %v294_v63  ;;  %v79_v63 = vld [vmem:[%s11658_s0 + $0x208] sm:$0xff] }
  0x9d   :  { %v318_v15 = vsel %vm122_vm0, %v79_v63, 0.0 }
  0x9e   :  { %v5484_v33 = vpop.xlane.xlu2 %175  ;;  %v5486_v29 = vpop.xlane.xlu1 %172 }
  0x9f   :  { %v5491_v16 = vpop.xlane.xlu0 %169 }
  0xa3   :  { %310 = vadd.xlane.f32.xlu2 %v309_v23  ;;  %307 = vadd.xlane.f32.xlu1 %v306_v47  ;;  %v315_v23 = vsel %vm122_vm0, %v78_v22, 0.0  ;;  %v312_v47 = vsel %vm122_vm0, %v77_v34, 0.0  ;;  %v80_v22 = vld [vmem:[%s11658_s0 + $0x210] sm:$0xff] }
  0xa4   :  { %304 = vadd.xlane.f32.xlu0 %v303_v52  ;;  %v82_v52 = vld [vmem:[%s11658_s0 + $0x220] sm:$0xff] }
  0xa5   :  { %v327_v34 = vsel %vm122_vm0, %v82_v52, 0.0 }
  0xa6   :  { %v5502_v21 = vpop.xlane.xlu2 %184  ;;  %v5504_v17 = vpop.xlane.xlu1 %181 }
  0xa7   :  { %v5509_v11 = vpop.xlane.xlu0 %178 }
  0xab   :  { %319 = vadd.xlane.f32.xlu2 %v318_v15  ;;  %316 = vadd.xlane.f32.xlu1 %v315_v23  ;;  %v324_v15 = vsel %vm122_vm0, %v81_v10, 0.0  ;;  %v321_v23 = vsel %vm122_vm0, %v80_v22, 0.0  ;;  %v83_v10 = vld [vmem:[%s11658_s0 + $0x228] sm:$0xff] }
  0xac   :  { %313 = vadd.xlane.f32.xlu0 %v312_v47  ;;  %v85_v47 = vld [vmem:[%s11658_s0 + $0x238] sm:$0xff] }
  0xad   :  { %v336_v22 = vsel %vm122_vm0, %v85_v47, 0.0 }
  0xae   :  { %v5520_v9 = vpop.xlane.xlu2 %193  ;;  %v5522_v5 = vpop.xlane.xlu1 %190 }
  0xaf   :  { %v5527_v63 = vpop.xlane.xlu0 %187 }
  0xb3   :  { %328 = vadd.xlane.f32.xlu2 %v327_v34  ;;  %325 = vadd.xlane.f32.xlu1 %v324_v15  ;;  %v333_v34 = vsel %vm122_vm0, %v84_v62, 0.0  ;;  %v330_v15 = vsel %vm122_vm0, %v83_v10, 0.0  ;;  %v86_v62 = vld [vmem:[%s11658_s0 + $0x240] sm:$0xff] }
  0xb4   :  { %322 = vadd.xlane.f32.xlu0 %v321_v23  ;;  %v88_v23 = vld [vmem:[%s11658_s0 + $0x250] sm:$0xff] }
  0xb5   :  { %v345_v10 = vsel %vm122_vm0, %v88_v23, 0.0 }
  0xb6   :  { %v5538_v61 = vpop.xlane.xlu2 %202  ;;  %v5540_v60 = vpop.xlane.xlu1 %199 }
  0xb7   :  { %v5545_v52 = vpop.xlane.xlu0 %196 }
  0xbb   :  { %337 = vadd.xlane.f32.xlu2 %v336_v22  ;;  %334 = vadd.xlane.f32.xlu1 %v333_v34  ;;  %v342_v22 = vsel %vm122_vm0, %v87_v56, 0.0  ;;  %v339_v34 = vsel %vm122_vm0, %v86_v62, 0.0  ;;  %v89_v56 = vld [vmem:[%s11658_s0 + $0x258] sm:$0xff] }
  0xbc   :  { %331 = vadd.xlane.f32.xlu0 %v330_v15  ;;  %v91_v15 = vld [vmem:[%s11658_s0 + $0x268] sm:$0xff] }
  0xbd   :  { %v354_v62 = vsel %vm122_vm0, %v91_v15, 0.0 }
  0xbe   :  { %v5556_v55 = vpop.xlane.xlu2 %211  ;;  %v5558_v54 = vpop.xlane.xlu1 %208 }
  0xbf   :  { %11878 = vst [vmem:[#allocation19_spill] sm:$0xff] %v5556_v55  ;;  %v5563_v47 = vpop.xlane.xlu0 %205 }
  0xc0   :  { %11879 = vst [vmem:[#allocation20_spill] sm:$0xff] %v5558_v54  ;;  %v90_v54 = vld [vmem:[%s11658_s0 + $0x260] sm:$0xff] }
  0xc1   :  { %11880 = vst [vmem:[#allocation21_spill] sm:$0xff] %v5563_v47 }
  0xc3   :  { %346 = vadd.xlane.f32.xlu2 %v345_v10  ;;  %343 = vadd.xlane.f32.xlu1 %v342_v22  ;;  %v351_v10 = vsel %vm122_vm0, %v90_v54, 0.0  ;;  %v348_v22 = vsel %vm122_vm0, %v89_v56, 0.0  ;;  %v92_v54 = vld [vmem:[%s11658_s0 + $0x270] sm:$0xff] }
  0xc4   :  { %340 = vadd.xlane.f32.xlu0 %v339_v34  ;;  %v94_v34 = vld [vmem:[%s11658_s0 + $0x280] sm:$0xff] }
  0xc5   :  { %v363_v56 = vsel %vm122_vm0, %v94_v34, 0.0 }
  0xc6   :  { %v5574_v55 = vpop.xlane.xlu2 %220  ;;  %v5576_v47 = vpop.xlane.xlu1 %217 }
  0xc7   :  { %11881 = vst [vmem:[#allocation22_spill] sm:$0xff] %v5574_v55  ;;  %v5581_v23 = vpop.xlane.xlu0 %214 }
  0xc8   :  { %11882 = vst [vmem:[#allocation23_spill] sm:$0xff] %v5576_v47  ;;  %v93_v47 = vld [vmem:[%s11658_s0 + $0x278] sm:$0xff] }
  0xc9   :  { %11883 = vst [vmem:[#allocation24_spill] sm:$0xff] %v5581_v23 }
  0xcb   :  { %355 = vadd.xlane.f32.xlu2 %v354_v62  ;;  %352 = vadd.xlane.f32.xlu1 %v351_v10  ;;  %v360_v62 = vsel %vm122_vm0, %v93_v47, 0.0  ;;  %v357_v10 = vsel %vm122_vm0, %v92_v54, 0.0  ;;  %v95_v47 = vld [vmem:[%s11658_s0 + $0x288] sm:$0xff] }
  0xcc   :  { %349 = vadd.xlane.f32.xlu0 %v348_v22  ;;  %v97_v22 = vld [vmem:[%s11658_s0 + $0x298] sm:$0xff] }
  0xcd   :  { %v372_v54 = vsel %vm122_vm0, %v97_v22, 0.0 }
  0xce   :  { %v5592_v55 = vpop.xlane.xlu2 %229  ;;  %v5594_v23 = vpop.xlane.xlu1 %226 }
  0xcf   :  { %11884 = vst [vmem:[#allocation25_spill] sm:$0xff] %v5592_v55  ;;  %v5599_v15 = vpop.xlane.xlu0 %223 }
  0xd0   :  { %11885 = vst [vmem:[#allocation26_spill] sm:$0xff] %v5594_v23  ;;  %v96_v23 = vld [vmem:[%s11658_s0 + $0x290] sm:$0xff] }
  0xd1   :  { %11886 = vst [vmem:[#allocation27_spill] sm:$0xff] %v5599_v15 }
  0xd3   :  { %364 = vadd.xlane.f32.xlu2 %v363_v56  ;;  %361 = vadd.xlane.f32.xlu1 %v360_v62  ;;  %v369_v56 = vsel %vm122_vm0, %v96_v23, 0.0  ;;  %v366_v62 = vsel %vm122_vm0, %v95_v47, 0.0  ;;  %v98_v23 = vld [vmem:[%s11658_s0 + $0x2a0] sm:$0xff] }
  0xd4   :  { %358 = vadd.xlane.f32.xlu0 %v357_v10  ;;  %v100_v10 = vld [vmem:[%s11658_s0 + $0x2b0] sm:$0xff] }
  0xd5   :  { %v381_v47 = vsel %vm122_vm0, %v100_v10, 0.0 }
  0xd6   :  { %v5610_v55 = vpop.xlane.xlu2 %238  ;;  %v5612_v15 = vpop.xlane.xlu1 %235 }
  0xd7   :  { %11887 = vst [vmem:[#allocation28_spill] sm:$0xff] %v5610_v55  ;;  %v5617_v34 = vpop.xlane.xlu0 %232 }
  0xd8   :  { %11888 = vst [vmem:[#allocation29_spill] sm:$0xff] %v5612_v15  ;;  %v99_v15 = vld [vmem:[%s11658_s0 + $0x2a8] sm:$0xff] }
  0xd9   :  { %11889 = vst [vmem:[#allocation30_spill] sm:$0xff] %v5617_v34 }
  0xdb   :  { %373 = vadd.xlane.f32.xlu2 %v372_v54  ;;  %370 = vadd.xlane.f32.xlu1 %v369_v56  ;;  %v378_v54 = vsel %vm122_vm0, %v99_v15, 0.0  ;;  %v375_v56 = vsel %vm122_vm0, %v98_v23, 0.0  ;;  %v101_v15 = vld [vmem:[%s11658_s0 + $0x2b8] sm:$0xff] }
  0xdc   :  { %367 = vadd.xlane.f32.xlu0 %v366_v62  ;;  %v103_v62 = vld [vmem:[%s11658_s0 + $0x2c8] sm:$0xff] }
  0xdd   :  { %v390_v23 = vsel %vm122_vm0, %v103_v62, 0.0 }
  0xde   :  { %v5628_v55 = vpop.xlane.xlu2 %247  ;;  %v5630_v34 = vpop.xlane.xlu1 %244 }
  0xdf   :  { %11890 = vst [vmem:[#allocation31_spill] sm:$0xff] %v5628_v55  ;;  %v5635_v22 = vpop.xlane.xlu0 %241 }
  0xe0   :  { %11891 = vst [vmem:[#allocation32_spill] sm:$0xff] %v5630_v34  ;;  %v102_v34 = vld [vmem:[%s11658_s0 + $0x2c0] sm:$0xff] }
  0xe1   :  { %11892 = vst [vmem:[#allocation33_spill] sm:$0xff] %v5635_v22 }
  0xe3   :  { %382 = vadd.xlane.f32.xlu2 %v381_v47  ;;  %379 = vadd.xlane.f32.xlu1 %v378_v54  ;;  %v387_v47 = vsel %vm122_vm0, %v102_v34, 0.0  ;;  %v384_v54 = vsel %vm122_vm0, %v101_v15, 0.0  ;;  %v104_v34 = vld [vmem:[%s11658_s0 + $0x2d0] sm:$0xff] }
  0xe4   :  { %376 = vadd.xlane.f32.xlu0 %v375_v56  ;;  %v106_v56 = vld [vmem:[%s11658_s0 + $0x2e0] sm:$0xff] }
  0xe5   :  { %v399_v15 = vsel %vm122_vm0, %v106_v56, 0.0 }
  0xe6   :  { %v5646_v55 = vpop.xlane.xlu2 %256  ;;  %v5648_v22 = vpop.xlane.xlu1 %253 }
  0xe7   :  { %11893 = vst [vmem:[#allocation34_spill] sm:$0xff] %v5646_v55  ;;  %v5653_v10 = vpop.xlane.xlu0 %250 }
  0xe8   :  { %11894 = vst [vmem:[#allocation35_spill] sm:$0xff] %v5648_v22  ;;  %v105_v22 = vld [vmem:[%s11658_s0 + $0x2d8] sm:$0xff] }
  0xe9   :  { %11895 = vst [vmem:[#allocation36_spill] sm:$0xff] %v5653_v10 }
  0xeb   :  { %391 = vadd.xlane.f32.xlu2 %v390_v23  ;;  %388 = vadd.xlane.f32.xlu1 %v387_v47  ;;  %v396_v23 = vsel %vm122_vm0, %v105_v22, 0.0  ;;  %v393_v47 = vsel %vm122_vm0, %v104_v34, 0.0  ;;  %v107_v22 = vld [vmem:[%s11658_s0 + $0x2e8] sm:$0xff] }
  0xec   :  { %385 = vadd.xlane.f32.xlu0 %v384_v54  ;;  %v109_v54 = vld [vmem:[%s11658_s0 + $0x2f8] sm:$0xff] }
  0xed   :  { %v408_v34 = vsel %vm122_vm0, %v109_v54, 0.0 }
  0xee   :  { %v5664_v55 = vpop.xlane.xlu2 %265  ;;  %v5666_v10 = vpop.xlane.xlu1 %262 }
  0xef   :  { %11896 = vst [vmem:[#allocation37_spill] sm:$0xff] %v5664_v55  ;;  %v5671_v62 = vpop.xlane.xlu0 %259 }
  0xf0   :  { %11897 = vst [vmem:[#allocation38_spill] sm:$0xff] %v5666_v10  ;;  %v108_v10 = vld [vmem:[%s11658_s0 + $0x2f0] sm:$0xff] }
  0xf1   :  { %11898 = vst [vmem:[#allocation39_spill] sm:$0xff] %v5671_v62 }
  0xf3   :  { %400 = vadd.xlane.f32.xlu2 %v399_v15  ;;  %397 = vadd.xlane.f32.xlu1 %v396_v23  ;;  %v405_v15 = vsel %vm122_vm0, %v108_v10, 0.0  ;;  %v402_v23 = vsel %vm122_vm0, %v107_v22, 0.0  ;;  %v110_v10 = vld [vmem:[%s11658_s0 + $0x300] sm:$0xff] }
  0xf4   :  { %394 = vadd.xlane.f32.xlu0 %v393_v47  ;;  %v112_v47 = vld [vmem:[%s11658_s0 + $0x310] sm:$0xff] }
  0xf5   :  { %v417_v22 = vsel %vm122_vm0, %v112_v47, 0.0 }
  0xf6   :  { %v5682_v55 = vpop.xlane.xlu2 %274  ;;  %v5684_v62 = vpop.xlane.xlu1 %271 }
  0xf7   :  { %11899 = vst [vmem:[#allocation40_spill] sm:$0xff] %v5682_v55  ;;  %v5689_v56 = vpop.xlane.xlu0 %268 }
  0xf8   :  { %11900 = vst [vmem:[#allocation41_spill] sm:$0xff] %v5684_v62  ;;  %v111_v62 = vld [vmem:[%s11658_s0 + $0x308] sm:$0xff] }
  0xf9   :  { %11901 = vst [vmem:[#allocation42_spill] sm:$0xff] %v5689_v56 }
  0xfb   :  { %409 = vadd.xlane.f32.xlu2 %v408_v34  ;;  %406 = vadd.xlane.f32.xlu1 %v405_v15  ;;  %v414_v34 = vsel %vm122_vm0, %v111_v62, 0.0  ;;  %v411_v15 = vsel %vm122_vm0, %v110_v10, 0.0  ;;  %v113_v62 = vld [vmem:[%s11658_s0 + $0x318] sm:$0xff] }
  0xfc   :  { %403 = vadd.xlane.f32.xlu0 %v402_v23  ;;  %v115_v23 = vld [vmem:[%s11658_s0 + $0x328] sm:$0xff] }
  0xfd   :  { %v426_v10 = vsel %vm122_vm0, %v115_v23, 0.0 }
  0xfe   :  { %v5700_v55 = vpop.xlane.xlu2 %283  ;;  %v5702_v56 = vpop.xlane.xlu1 %280 }
  0xff   :  { %11902 = vst [vmem:[#allocation43_spill] sm:$0xff] %v5700_v55  ;;  %v5707_v54 = vpop.xlane.xlu0 %277 }
 0x100   :  { %11903 = vst [vmem:[#allocation44_spill] sm:$0xff] %v5702_v56  ;;  %v114_v56 = vld [vmem:[%s11658_s0 + $0x320] sm:$0xff] }
 0x101   :  { %11904 = vst [vmem:[#allocation45_spill] sm:$0xff] %v5707_v54 }
 0x103   :  { %418 = vadd.xlane.f32.xlu2 %v417_v22  ;;  %415 = vadd.xlane.f32.xlu1 %v414_v34  ;;  %v423_v22 = vsel %vm122_vm0, %v114_v56, 0.0  ;;  %v420_v34 = vsel %vm122_vm0, %v113_v62, 0.0  ;;  %v116_v56 = vld [vmem:[%s11658_s0 + $0x330] sm:$0xff] }
 0x104   :  { %412 = vadd.xlane.f32.xlu0 %v411_v15  ;;  %v118_v15 = vld [vmem:[%s11658_s0 + $0x340] sm:$0xff] }
 0x105   :  { %v435_v62 = vsel %vm122_vm0, %v118_v15, 0.0  ;;  %v5758_v15 = vmul.f32 0.020408163, %v5419_v39 }
 0x106   :  { %v5718_v55 = vpop.xlane.xlu2 %292  ;;  %v5720_v54 = vpop.xlane.xlu1 %289 }
 0x107   :  { %11905 = vst [vmem:[#allocation46_spill] sm:$0xff] %v5718_v55  ;;  %v5725_v47 = vpop.xlane.xlu0 %286 }
 0x108   :  { %11906 = vst [vmem:[#allocation47_spill] sm:$0xff] %v5720_v54  ;;  %v117_v54 = vld [vmem:[%s11658_s0 + $0x338] sm:$0xff] }
 0x109   :  { %11907 = vst [vmem:[#allocation48_spill] sm:$0xff] %v5725_v47 }
 0x10a   :  { %11912 = vst [vmem:[#allocation53_spill] sm:$0xff] %v5758_v15 }
 0x10b   :  { %427 = vadd.xlane.f32.xlu2 %v426_v10  ;;  %424 = vadd.xlane.f32.xlu1 %v423_v22  ;;  %v432_v10 = vsel %vm122_vm0, %v117_v54, 0.0  ;;  %v429_v22 = vsel %vm122_vm0, %v116_v56, 0.0 }
 0x10c   :  { %421 = vadd.xlane.f32.xlu0 %v420_v34  ;;  %v121_v34 = vld [vmem:[%s11658_s0 + $0x358] sm:$0xff] }
 0x10e   :  { %v5736_v55 = vpop.xlane.xlu2 %301  ;;  %v5738_v47 = vpop.xlane.xlu1 %298 }
 0x10f   :  { %11908 = vst [vmem:[#allocation49_spill] sm:$0xff] %v5736_v55  ;;  %v5743_v23 = vpop.xlane.xlu0 %295  ;;  %v5755_v55 = vmul.f32 0.020408163, %v5396_v59 }
 0x110   :  { %11909 = vst [vmem:[#allocation50_spill] sm:$0xff] %v5738_v47  ;;  %v120_v47 = vld [vmem:[%s11658_s0 + $0x350] sm:$0xff] }
 0x111   :  { %11910 = vst [vmem:[#allocation51_spill] sm:$0xff] %v5743_v23  ;;  %v444_v23 = vsel %vm122_vm0, %v121_v34, 0.0  ;;  %v441_v59 = vsel %vm122_vm0, %v120_v47, 0.0  ;;  %v5785_v34 = vmul.f32 0.020408163, %v5412_v27 }
 0x112   :  { %11911 = vst [vmem:[#allocation52_spill] sm:$0xff] %v5755_v55 }
 0x113   :  { %436 = vadd.xlane.f32.xlu2 %v435_v62  ;;  %433 = vadd.xlane.f32.xlu1 %v432_v10  ;;  %v119_v62 = vld [vmem:[%s11658_s0 + $0x348] sm:$0xff]  ;;  %v5768_v10 = vmul.f32 0.020408163, %v5401_v3  ;;  %11918 = vst [vmem:[#allocation59_spill] sm:$0xff] %v5785_v34  ;;  %v668_v27 = vsub.f32 %v5100_v6, %v5785_v34 }
 0x114   :  { %430 = vadd.xlane.f32.xlu0 %v429_v22  ;;  %v438_v39 = vsel %vm122_vm0, %v119_v62, 0.0 }
 0x115   :  { %11915 = vst [vmem:[#allocation56_spill] sm:$0xff] %v5768_v10  ;;  %v663_v3 = vsub.f32 %v5089_v2, %v5768_v10 }
 0x116   :  { %v5760_v54 = vpop.xlane.xlu2 %310  ;;  %v5762_v56 = vpop.xlane.xlu1 %307 }
 0x117   :  { %11913 = vst [vmem:[#allocation54_spill] sm:$0xff] %v5760_v54  ;;  %v5770_v22 = vpop.xlane.xlu0 %304  ;;  %v665_v54 = vsub.f32 %v5084_v1, %v5755_v55 }
 0x118   :  { %11914 = vst [vmem:[#allocation55_spill] sm:$0xff] %v5762_v56  ;;  %v664_v56 = vsub.f32 %v5110_v8, %v5758_v15  ;;  %v5792_v8 = vmul.f32 0.020408163, %v5414_v28 }
 0x119   :  { %11916 = vst [vmem:[#allocation57_spill] sm:$0xff] %v5770_v22  ;;  %v5782_v22 = vmul.f32 0.020408163, %v5394_v58  ;;  %v773_v1 = vmul.f32 %v665_v54, %v665_v54 }
 0x11a   :  { %v772_v55 = vmul.f32 %v664_v56, %v664_v56  ;;  %11919 = vst [vmem:[#allocation60_spill] sm:$0xff] %v5792_v8  ;;  %v666_v28 = vsub.f32 %v5105_v7, %v5792_v8  ;;  %v5806_v56 = vmul.f32 0.020408163, %v5430_v53  ;;  %v12000_v8 = vld [vmem:[#allocation39_spill] sm:$0xff] }
 0x11b   :  { %445 = vadd.xlane.f32.xlu2 %v444_v23  ;;  %442 = vadd.xlane.f32.xlu1 %v441_v59  ;;  %11917 = vst [vmem:[#allocation58_spill] sm:$0xff] %v5782_v22  ;;  %v771_v59 = vmul.f32 %v663_v3, %v663_v3  ;;  %v885_v2 = vsel %vm122_vm0, %v773_v1, 0.0  ;;  %v5809_v3 = vmul.f32 0.020408163, %v5432_v57  ;;  %v776_v1 = vmul.f32 %v668_v27, %v668_v27 }
 0x11c   :  { %439 = vadd.xlane.f32.xlu0 %v438_v39  ;;  %v882_v58 = vsel %vm122_vm0, %v772_v55, 0.0  ;;  %v667_v39 = vsub.f32 %v5079_v0, %v5782_v22  ;;  %11920 = vst [vmem:[#allocation61_spill] sm:$0xff] %v5806_v56  ;;  %v671_v57 = vsub.f32 %v5121_v12, %v5806_v56  ;;  %v12007_v22 = vld [vmem:[#allocation42_spill] sm:$0xff] }
 0x11d   :  { %v879_v54 = vsel %vm122_vm0, %v771_v59, 0.0  ;;  %11921 = vst [vmem:[#allocation62_spill] sm:$0xff] %v5809_v3  ;;  %v894_v7 = vsel %vm122_vm0, %v776_v1, 0.0  ;;  %v6160_v15 = vmul.f32 0.020408163, %v12007_v22 }
 0x11e   :  { %v5787_v47 = vpop.xlane.xlu2 %319  ;;  %v5789_v62 = vpop.xlane.xlu1 %316  ;;  %v775_v0 = vmul.f32 %v667_v39, %v667_v39  ;;  %v5830_v39 = vmul.f32 0.020408163, %v5448_v40 }
 0x11f   :  { %v5794_v23 = vpop.xlane.xlu0 %313 }
 0x120   :  { %v891_v53 = vsel %vm122_vm0, %v775_v0, 0.0  ;;  %11923 = vst [vmem:[#allocation64_spill] sm:$0xff] %v5830_v39  ;;  %v779_v0 = vmul.f32 %v671_v57, %v671_v57 }
 0x123   :  { %886 = vadd.xlane.f32.xlu2 %v885_v2  ;;  %883 = vadd.xlane.f32.xlu1 %v882_v58  ;;  %v5816_v2 = vmul.f32 0.020408163, %v5437_v4  ;;  %v774_v58 = vmul.f32 %v666_v28, %v666_v28  ;;  %v5833_v28 = vmul.f32 0.020408163, %v5450_v46  ;;  %v674_v46 = vsub.f32 %v5142_v18, %v5830_v39 }
 0x124   :  { %880 = vadd.xlane.f32.xlu0 %v879_v54  ;;  %v670_v54 = vsub.f32 %v5126_v13, %v5809_v3  ;;  %v6130_v3 = vmul.f32 0.020408163, %v12000_v8 }
 0x125   :  { %11922 = vst [vmem:[#allocation63_spill] sm:$0xff] %v5816_v2  ;;  %v888_v27 = vsel %vm122_vm0, %v774_v58, 0.0  ;;  %v669_v4 = vsub.f32 %v5131_v14, %v5816_v2  ;;  %v903_v14 = vsel %vm122_vm0, %v779_v0, 0.0  ;;  %v11988_v2 = vld [vmem:[#allocation35_spill] sm:$0xff] }
 0x126   :  { %v5811_v55 = vpop.xlane.xlu2 %328  ;;  %v5813_v6 = vpop.xlane.xlu1 %325  ;;  %11924 = vst [vmem:[#allocation65_spill] sm:$0xff] %v5833_v28  ;;  %v778_v13 = vmul.f32 %v670_v54, %v670_v54  ;;  %v5854_v54 = vmul.f32 0.020408163, %v5466_v45 }
 0x127   :  { %v5818_v59 = vpop.xlane.xlu0 %322 }
 0x128   :  { %v900_v40 = vsel %vm122_vm0, %v778_v13, 0.0  ;;  %11926 = vst [vmem:[#allocation67_spill] sm:$0xff] %v5854_v54  ;;  %v782_v13 = vmul.f32 %v674_v46, %v674_v46 }
 0x12b   :  { %895 = vadd.xlane.f32.xlu2 %v894_v7  ;;  %892 = vadd.xlane.f32.xlu1 %v891_v53  ;;  %v5840_v7 = vmul.f32 0.020408163, %v5455_v51  ;;  %v777_v53 = vmul.f32 %v669_v4, %v669_v4  ;;  %v5857_v4 = vmul.f32 0.020408163, %v5468_v41  ;;  %v677_v41 = vsub.f32 %v5163_v24, %v5854_v54 }
 0x12c   :  { %889 = vadd.xlane.f32.xlu0 %v888_v27  ;;  %v673_v27 = vsub.f32 %v5147_v19, %v5833_v28 }
 0x12d   :  { %11925 = vst [vmem:[#allocation66_spill] sm:$0xff] %v5840_v7  ;;  %v897_v57 = vsel %vm122_vm0, %v777_v53, 0.0  ;;  %v672_v51 = vsub.f32 %v5152_v20, %v5840_v7  ;;  %v912_v20 = vsel %vm122_vm0, %v782_v13, 0.0 }
 0x12e   :  { %v5835_v1 = vpop.xlane.xlu2 %337  ;;  %v5837_v12 = vpop.xlane.xlu1 %334  ;;  %11927 = vst [vmem:[#allocation68_spill] sm:$0xff] %v5857_v4  ;;  %v781_v19 = vmul.f32 %v673_v27, %v673_v27  ;;  %v5878_v27 = vmul.f32 0.020408163, %v5484_v33 }
 0x12f   :  { %v5842_v58 = vpop.xlane.xlu0 %331 }
 0x130   :  { %v909_v45 = vsel %vm122_vm0, %v781_v19, 0.0  ;;  %11929 = vst [vmem:[#allocation70_spill] sm:$0xff] %v5878_v27  ;;  %v785_v19 = vmul.f32 %v677_v41, %v677_v41 }
 0x133   :  { %904 = vadd.xlane.f32.xlu2 %v903_v14  ;;  %901 = vadd.xlane.f32.xlu1 %v900_v40  ;;  %v5864_v14 = vmul.f32 0.020408163, %v5473_v35  ;;  %v780_v40 = vmul.f32 %v672_v51, %v672_v51  ;;  %v5881_v51 = vmul.f32 0.020408163, %v5486_v29  ;;  %v680_v29 = vsub.f32 %v5184_v30, %v5878_v27 }
 0x134   :  { %898 = vadd.xlane.f32.xlu0 %v897_v57  ;;  %v676_v57 = vsub.f32 %v5168_v25, %v5857_v4  ;;  %v11985_v4 = vld [vmem:[#allocation16_spill] sm:$0xff] }
 0x135   :  { %11928 = vst [vmem:[#allocation69_spill] sm:$0xff] %v5864_v14  ;;  %v906_v46 = vsel %vm122_vm0, %v780_v40, 0.0  ;;  %v675_v35 = vsub.f32 %v5173_v26, %v5864_v14  ;;  %v921_v26 = vsel %vm122_vm0, %v785_v19, 0.0 }
 0x136   :  { %v5859_v0 = vpop.xlane.xlu2 %346  ;;  %v5861_v18 = vpop.xlane.xlu1 %343  ;;  %11930 = vst [vmem:[#allocation71_spill] sm:$0xff] %v5881_v51  ;;  %v784_v25 = vmul.f32 %v676_v57, %v676_v57  ;;  %v5902_v57 = vmul.f32 0.020408163, %v5502_v21 }
 0x137   :  { %v5866_v53 = vpop.xlane.xlu0 %340 }
 0x138   :  { %v918_v33 = vsel %vm122_vm0, %v784_v25, 0.0  ;;  %11932 = vst [vmem:[#allocation73_spill] sm:$0xff] %v5902_v57  ;;  %v788_v25 = vmul.f32 %v680_v29, %v680_v29 }
 0x13b   :  { %913 = vadd.xlane.f32.xlu2 %v912_v20  ;;  %910 = vadd.xlane.f32.xlu1 %v909_v45  ;;  %v5888_v20 = vmul.f32 0.020408163, %v5491_v16  ;;  %v783_v45 = vmul.f32 %v675_v35, %v675_v35  ;;  %v5905_v35 = vmul.f32 0.020408163, %v5504_v17  ;;  %v683_v17 = vsub.f32 %v5205_v36, %v5902_v57 }
 0x13c   :  { %907 = vadd.xlane.f32.xlu0 %v906_v46  ;;  %v679_v46 = vsub.f32 %v5189_v31, %v5881_v51  ;;  %v11977_v51 = vld [vmem:[#allocation31_spill] sm:$0xff] }
 0x13d   :  { %11931 = vst [vmem:[#allocation72_spill] sm:$0xff] %v5888_v20  ;;  %v915_v41 = vsel %vm122_vm0, %v783_v45, 0.0  ;;  %v678_v16 = vsub.f32 %v5194_v32, %v5888_v20  ;;  %v930_v32 = vsel %vm122_vm0, %v788_v25, 0.0 }
 0x13e   :  { %v5883_v13 = vpop.xlane.xlu2 %355  ;;  %v5885_v24 = vpop.xlane.xlu1 %352  ;;  %11933 = vst [vmem:[#allocation74_spill] sm:$0xff] %v5905_v35  ;;  %v787_v31 = vmul.f32 %v679_v46, %v679_v46  ;;  %v5926_v46 = vmul.f32 0.020408163, %v5520_v9 }
 0x13f   :  { %v5890_v40 = vpop.xlane.xlu0 %349 }
 0x140   :  { %v927_v21 = vsel %vm122_vm0, %v787_v31, 0.0  ;;  %11935 = vst [vmem:[#allocation76_spill] sm:$0xff] %v5926_v46  ;;  %v791_v31 = vmul.f32 %v683_v17, %v683_v17 }
 0x143   :  { %922 = vadd.xlane.f32.xlu2 %v921_v26  ;;  %919 = vadd.xlane.f32.xlu1 %v918_v33  ;;  %v5912_v26 = vmul.f32 0.020408163, %v5509_v11  ;;  %v786_v33 = vmul.f32 %v678_v16, %v678_v16  ;;  %v5929_v16 = vmul.f32 0.020408163, %v5522_v5  ;;  %v686_v5 = vsub.f32 %v5226_v42, %v5926_v46 }
 0x144   :  { %916 = vadd.xlane.f32.xlu0 %v915_v41  ;;  %v682_v41 = vsub.f32 %v5210_v37, %v5905_v35  ;;  %v11968_v35 = vld [vmem:[#allocation28_spill] sm:$0xff] }
 0x145   :  { %11934 = vst [vmem:[#allocation75_spill] sm:$0xff] %v5912_v26  ;;  %v924_v29 = vsel %vm122_vm0, %v786_v33, 0.0  ;;  %v681_v11 = vsub.f32 %v5215_v38, %v5912_v26  ;;  %v939_v38 = vsel %vm122_vm0, %v791_v31, 0.0 }
 0x146   :  { %v5907_v19 = vpop.xlane.xlu2 %364  ;;  %v5909_v30 = vpop.xlane.xlu1 %361  ;;  %11936 = vst [vmem:[#allocation77_spill] sm:$0xff] %v5929_v16  ;;  %v790_v37 = vmul.f32 %v682_v41, %v682_v41  ;;  %v5950_v41 = vmul.f32 0.020408163, %v5538_v61 }
 0x147   :  { %v5914_v45 = vpop.xlane.xlu0 %358 }
 0x148   :  { %v936_v9 = vsel %vm122_vm0, %v790_v37, 0.0  ;;  %11938 = vst [vmem:[#allocation79_spill] sm:$0xff] %v5950_v41  ;;  %v794_v37 = vmul.f32 %v686_v5, %v686_v5 }
 0x14b   :  { %931 = vadd.xlane.f32.xlu2 %v930_v32  ;;  %928 = vadd.xlane.f32.xlu1 %v927_v21  ;;  %v5936_v32 = vmul.f32 0.020408163, %v5527_v63  ;;  %v789_v21 = vmul.f32 %v681_v11, %v681_v11  ;;  %v5953_v11 = vmul.f32 0.020408163, %v5540_v60  ;;  %v689_v60 = vsub.f32 %v5247_v48, %v5950_v41 }
 0x14c   :  { %925 = vadd.xlane.f32.xlu0 %v924_v29  ;;  %v685_v29 = vsub.f32 %v5231_v43, %v5929_v16  ;;  %v11959_v16 = vld [vmem:[#allocation25_spill] sm:$0xff] }
 0x14d   :  { %11937 = vst [vmem:[#allocation78_spill] sm:$0xff] %v5936_v32  ;;  %v933_v17 = vsel %vm122_vm0, %v789_v21, 0.0  ;;  %v684_v63 = vsub.f32 %v5236_v44, %v5936_v32  ;;  %v948_v44 = vsel %vm122_vm0, %v794_v37, 0.0  ;;  %v11943_v37 = vld [vmem:[#allocation20_spill] sm:$0xff]  ;;  %v797_v41 = vmul.f32 %v689_v60, %v689_v60 }
 0x14e   :  { %v5931_v25 = vpop.xlane.xlu2 %373  ;;  %v5933_v36 = vpop.xlane.xlu1 %370  ;;  %11939 = vst [vmem:[#allocation80_spill] sm:$0xff] %v5953_v11  ;;  %v793_v43 = vmul.f32 %v685_v29, %v685_v29  ;;  %v11941_v29 = vld [vmem:[#allocation19_spill] sm:$0xff]  ;;  %v5977_v46 = vmul.f32 0.020408163, %v11943_v37 }
 0x14f   :  { %v5938_v33 = vpop.xlane.xlu0 %367 }
 0x150   :  { %v945_v61 = vsel %vm122_vm0, %v793_v43, 0.0  ;;  %11944 = vst [vmem:[#allocation20_spill] sm:$0xff] %v5977_v46 }
 0x153   :  { %940 = vadd.xlane.f32.xlu2 %v939_v38  ;;  %937 = vadd.xlane.f32.xlu1 %v936_v9  ;;  %v5960_v38 = vmul.f32 0.020408163, %v5545_v52  ;;  %v792_v9 = vmul.f32 %v684_v63, %v684_v63  ;;  %v5974_v63 = vmul.f32 0.020408163, %v11941_v29  ;;  %v11947_v29 = vld [vmem:[#allocation2_spill] sm:$0xff] }
 0x154   :  { %934 = vadd.xlane.f32.xlu0 %v933_v17  ;;  %v688_v17 = vsub.f32 %v5252_v49, %v5953_v11  ;;  %v11950_v11 = vld [vmem:[#allocation22_spill] sm:$0xff] }
 0x155   :  { %11940 = vst [vmem:[#allocation81_spill] sm:$0xff] %v5960_v38  ;;  %v942_v5 = vsel %vm122_vm0, %v792_v9, 0.0  ;;  %v687_v52 = vsub.f32 %v5257_v50, %v5960_v38  ;;  %v957_v50 = vsel %vm122_vm0, %v797_v41, 0.0  ;;  %v692_v37 = vsub.f32 %v11947_v29, %v5974_v63  ;;  %v11948_v38 = vld [vmem:[#allocation3_spill] sm:$0xff] }
 0x156   :  { %v5955_v31 = vpop.xlane.xlu2 %382  ;;  %v5957_v42 = vpop.xlane.xlu1 %379  ;;  %11942 = vst [vmem:[#allocation19_spill] sm:$0xff] %v5974_v63  ;;  %v796_v49 = vmul.f32 %v688_v17, %v688_v17  ;;  %v691_v57 = vsub.f32 %v11948_v38, %v5977_v46  ;;  %v11949_v17 = vld [vmem:[#allocation4_spill] sm:$0xff]  ;;  %v11952_v41 = vld [vmem:[#allocation23_spill] sm:$0xff] }
 0x157   :  { %v5962_v21 = vpop.xlane.xlu0 %376  ;;  %v795_v32 = vmul.f32 %v687_v52, %v687_v52  ;;  %v5998_v52 = vmul.f32 0.020408163, %v11950_v11  ;;  %v6001_v26 = vmul.f32 0.020408163, %v11952_v41  ;;  %v800_v63 = vmul.f32 %v692_v37, %v692_v37  ;;  %v11958_v37 = vld [vmem:[#allocation7_spill] sm:$0xff] }
 0x158   :  { %v799_v38 = vmul.f32 %v691_v57, %v691_v57 }
 0x159   :  { %v951_v60 = vsel %vm122_vm0, %v795_v32, 0.0  ;;  %11951 = vst [vmem:[#allocation2_spill] sm:$0xff] %v5998_v52 }
 0x15a   :  { %11953 = vst [vmem:[#allocation3_spill] sm:$0xff] %v6001_v26  ;;  %v963_v11 = vsel %vm122_vm0, %v799_v38, 0.0 }
 0x15b   :  { %949 = vadd.xlane.f32.xlu2 %v948_v44  ;;  %946 = vadd.xlane.f32.xlu1 %v945_v61  ;;  %v11945_v44 = vld [vmem:[#allocation21_spill] sm:$0xff] }
 0x15c   :  { %943 = vadd.xlane.f32.xlu0 %v942_v5  ;;  %v5984_v61 = vmul.f32 0.020408163, %v11945_v44  ;;  %v954_v5 = vsel %vm122_vm0, %v796_v49, 0.0 }
 0x15e   :  { %v5979_v43 = vpop.xlane.xlu2 %391  ;;  %v5981_v48 = vpop.xlane.xlu1 %388  ;;  %11946 = vst [vmem:[#allocation21_spill] sm:$0xff] %v5984_v61  ;;  %v690_v44 = vsub.f32 %v11949_v17, %v5984_v61  ;;  %v11956_v17 = vld [vmem:[#allocation5_spill] sm:$0xff]  ;;  %v11957_v61 = vld [vmem:[#allocation6_spill] sm:$0xff] }
 0x15f   :  { %v5986_v9 = vpop.xlane.xlu0 %385  ;;  %v695_v41 = vsub.f32 %v11956_v17, %v5998_v52  ;;  %v694_v27 = vsub.f32 %v11957_v61, %v6001_v26 }
 0x160   :  { %v798_v46 = vmul.f32 %v690_v44, %v690_v44  ;;  %v6022_v44 = vmul.f32 0.020408163, %v11959_v16 }
 0x161   :  { %v803_v52 = vmul.f32 %v695_v41, %v695_v41  ;;  %v802_v61 = vmul.f32 %v694_v27, %v694_v27  ;;  %v11967_v41 = vld [vmem:[#allocation10_spill] sm:$0xff] }
 0x162   :  { %v960_v57 = vsel %vm122_vm0, %v798_v46, 0.0  ;;  %11960 = vst [vmem:[#allocation22_spill] sm:$0xff] %v6022_v44 }
 0x163   :  { %958 = vadd.xlane.f32.xlu2 %v957_v50  ;;  %955 = vadd.xlane.f32.xlu1 %v954_v5  ;;  %v11954_v50 = vld [vmem:[#allocation24_spill] sm:$0xff]  ;;  %v972_v16 = vsel %vm122_vm0, %v802_v61, 0.0 }
 0x164   :  { %952 = vadd.xlane.f32.xlu0 %v951_v60  ;;  %v6008_v5 = vmul.f32 0.020408163, %v11954_v50  ;;  %v966_v60 = vsel %vm122_vm0, %v800_v63, 0.0  ;;  %v11961_v63 = vld [vmem:[#allocation26_spill] sm:$0xff] }
 0x165   :  { %v6025_v20 = vmul.f32 0.020408163, %v11961_v63 }
 0x166   :  { %v6003_v49 = vpop.xlane.xlu2 %400  ;;  %v6005_v29 = vpop.xlane.xlu1 %397  ;;  %11955 = vst [vmem:[#allocation4_spill] sm:$0xff] %v6008_v5  ;;  %v693_v50 = vsub.f32 %v11958_v37, %v6008_v5  ;;  %v11965_v37 = vld [vmem:[#allocation8_spill] sm:$0xff]  ;;  %v11966_v5 = vld [vmem:[#allocation9_spill] sm:$0xff] }
 0x167   :  { %v6010_v32 = vpop.xlane.xlu0 %394  ;;  %11962 = vst [vmem:[#allocation23_spill] sm:$0xff] %v6025_v20  ;;  %v698_v63 = vsub.f32 %v11965_v37, %v6022_v44  ;;  %v697_v54 = vsub.f32 %v11966_v5, %v6025_v20 }
 0x168   :  { %v801_v26 = vmul.f32 %v693_v50, %v693_v50  ;;  %v6046_v50 = vmul.f32 0.020408163, %v11968_v35 }
 0x169   :  { %v806_v44 = vmul.f32 %v698_v63, %v698_v63  ;;  %v805_v5 = vmul.f32 %v697_v54, %v697_v54  ;;  %v11976_v63 = vld [vmem:[#allocation13_spill] sm:$0xff] }
 0x16a   :  { %v969_v27 = vsel %vm122_vm0, %v801_v26, 0.0  ;;  %11969 = vst [vmem:[#allocation5_spill] sm:$0xff] %v6046_v50 }
 0x16b   :  { %967 = vadd.xlane.f32.xlu2 %v966_v60  ;;  %964 = vadd.xlane.f32.xlu1 %v963_v11  ;;  %v11963_v60 = vld [vmem:[#allocation27_spill] sm:$0xff]  ;;  %v981_v35 = vsel %vm122_vm0, %v805_v5, 0.0 }
 0x16c   :  { %961 = vadd.xlane.f32.xlu0 %v960_v57  ;;  %v6032_v11 = vmul.f32 0.020408163, %v11963_v60  ;;  %v975_v57 = vsel %vm122_vm0, %v803_v52, 0.0  ;;  %v11970_v52 = vld [vmem:[#allocation29_spill] sm:$0xff] }
 0x16d   :  { %v6049_v14 = vmul.f32 0.020408163, %v11970_v52 }
 0x16e   :  { %v6027_v38 = vpop.xlane.xlu2 %409  ;;  %v6029_v17 = vpop.xlane.xlu1 %406  ;;  %11964 = vst [vmem:[#allocation24_spill] sm:$0xff] %v6032_v11  ;;  %v696_v60 = vsub.f32 %v11967_v41, %v6032_v11  ;;  %v11974_v41 = vld [vmem:[#allocation11_spill] sm:$0xff]  ;;  %v11975_v11 = vld [vmem:[#allocation12_spill] sm:$0xff] }
 0x16f   :  { %v6034_v46 = vpop.xlane.xlu0 %403  ;;  %11971 = vst [vmem:[#allocation6_spill] sm:$0xff] %v6049_v14  ;;  %v701_v52 = vsub.f32 %v11974_v41, %v6046_v50  ;;  %v700_v39 = vsub.f32 %v11975_v11, %v6049_v14 }
 0x170   :  { %v804_v20 = vmul.f32 %v696_v60, %v696_v60  ;;  %v6070_v60 = vmul.f32 0.020408163, %v11977_v51  ;;  %v11984_v51 = vld [vmem:[#allocation15_spill] sm:$0xff]  ;;  %12001 = vst [vmem:[#allocation12_spill] sm:$0xff] %v6130_v3 }
 0x171   :  { %v809_v50 = vmul.f32 %v701_v52, %v701_v52  ;;  %v808_v11 = vmul.f32 %v700_v39, %v700_v39 }
 0x172   :  { %v978_v54 = vsel %vm122_vm0, %v804_v20, 0.0  ;;  %11978 = vst [vmem:[#allocation25_spill] sm:$0xff] %v6070_v60 }
 0x173   :  { %976 = vadd.xlane.f32.xlu2 %v975_v57  ;;  %973 = vadd.xlane.f32.xlu1 %v972_v16  ;;  %v11972_v57 = vld [vmem:[#allocation30_spill] sm:$0xff]  ;;  %v990_v56 = vsel %vm122_vm0, %v808_v11, 0.0 }
 0x174   :  { %970 = vadd.xlane.f32.xlu0 %v969_v27  ;;  %v6056_v16 = vmul.f32 0.020408163, %v11972_v57  ;;  %v984_v27 = vsel %vm122_vm0, %v806_v44, 0.0  ;;  %v11979_v44 = vld [vmem:[#allocation32_spill] sm:$0xff] }
 0x175   :  { %v6073_v7 = vmul.f32 0.020408163, %v11979_v44  ;;  %v993_v44 = vsel %vm122_vm0, %v809_v50, 0.0 }
 0x176   :  { %v6051_v61 = vpop.xlane.xlu2 %418  ;;  %v6053_v37 = vpop.xlane.xlu1 %415  ;;  %11973 = vst [vmem:[#allocation7_spill] sm:$0xff] %v6056_v16  ;;  %v699_v57 = vsub.f32 %v11976_v63, %v6056_v16 }
 0x177   :  { %v6058_v26 = vpop.xlane.xlu0 %412  ;;  %11980 = vst [vmem:[#allocation26_spill] sm:$0xff] %v6073_v7  ;;  %v703_v16 = vsub.f32 %v11984_v51, %v6073_v7  ;;  %v11990_v7 = vld [vmem:[#allocation36_spill] sm:$0xff] }
 0x178   :  { %v807_v14 = vmul.f32 %v699_v57, %v699_v57  ;;  %v6104_v34 = vmul.f32 0.020408163, %v11990_v7 }
 0x179   :  { %v811_v11 = vmul.f32 %v703_v16, %v703_v16  ;;  %v4883_v16 = vld [vmem:[%s11658_s0 + $0x150] sm:$0xff] }
 0x17a   :  { %v987_v39 = vsel %vm122_vm0, %v807_v14, 0.0  ;;  %11991 = vst [vmem:[#allocation10_spill] sm:$0xff] %v6104_v34  ;;  %v11992_v14 = vld [vmem:[#allocation17_spill] sm:$0xff]  ;;  %v705_v7 = vsub.f32 %v4883_v16, %v6104_v34 }
 0x17b   :  { %985 = vadd.xlane.f32.xlu2 %v984_v27  ;;  %982 = vadd.xlane.f32.xlu1 %v981_v35  ;;  %v11981_v27 = vld [vmem:[#allocation33_spill] sm:$0xff] }
 0x17c   :  { %979 = vadd.xlane.f32.xlu0 %v978_v54  ;;  %v6080_v35 = vmul.f32 0.020408163, %v11981_v27  ;;  %v11983_v54 = vld [vmem:[#allocation14_spill] sm:$0xff]  ;;  %v12005_v34 = vld [vmem:[#allocation41_spill] sm:$0xff]  ;;  %12008 = vst [vmem:[#allocation33_spill] sm:$0xff] %v6160_v15 }
 0x17d   :  { %v704_v63 = vsub.f32 %v11983_v54, %v6070_v60  ;;  %v11986_v27 = vld [vmem:[#allocation34_spill] sm:$0xff]  ;;  %v6097_v54 = vmul.f32 0.020408163, %v11988_v2 }
 0x17e   :  { %v6075_v5 = vpop.xlane.xlu2 %427  ;;  %v6077_v41 = vpop.xlane.xlu1 %424  ;;  %11982 = vst [vmem:[#allocation27_spill] sm:$0xff] %v6080_v35  ;;  %v702_v52 = vsub.f32 %v11985_v4, %v6080_v35  ;;  %v6094_v57 = vmul.f32 0.020408163, %v11986_v27  ;;  %v999_v35 = vsel %vm122_vm0, %v811_v11, 0.0 }
 0x17f   :  { %v6082_v20 = vpop.xlane.xlu0 %421  ;;  %11989 = vst [vmem:[#allocation9_spill] sm:$0xff] %v6097_v54  ;;  %v812_v50 = vmul.f32 %v704_v63, %v704_v63 }
 0x180   :  { %11987 = vst [vmem:[#allocation8_spill] sm:$0xff] %v6094_v57 }
 0x181   :  { %v1002_v2 = vsel %vm122_vm0, %v812_v50, 0.0 }
 0x183   :  { %994 = vadd.xlane.f32.xlu2 %v993_v44  ;;  %991 = vadd.xlane.f32.xlu1 %v990_v56  ;;  %v810_v56 = vmul.f32 %v702_v52, %v702_v52  ;;  %v707_v44 = vsub.f32 %v11992_v14, %v6094_v57  ;;  %v11994_v52 = vld [vmem:[#allocation37_spill] sm:$0xff]  ;;  %v11996_v57 = vld [vmem:[#allocation38_spill] sm:$0xff] }
 0x184   :  { %988 = vadd.xlane.f32.xlu0 %v987_v39  ;;  %v11993_v39 = vld [vmem:[#allocation18_spill] sm:$0xff]  ;;  %v6120_v14 = vmul.f32 0.020408163, %v11994_v52 }
 0x185   :  { %v706_v27 = vsub.f32 %v11993_v39, %v6097_v54  ;;  %v996_v63 = vsel %vm122_vm0, %v810_v56, 0.0  ;;  %v6123_v39 = vmul.f32 0.020408163, %v11996_v57  ;;  %v815_v54 = vmul.f32 %v707_v44, %v707_v44  ;;  %v4884_v56 = vld [vmem:[%s11658_s0 + $0x178] sm:$0xff]  ;;  %v4885_v57 = vld [vmem:[%s11658_s0 + $0x170] sm:$0xff] }
 0x186   :  { %v6099_v60 = vpop.xlane.xlu2 %436  ;;  %v6101_v51 = vpop.xlane.xlu1 %433  ;;  %11995 = vst [vmem:[#allocation28_spill] sm:$0xff] %v6120_v14  ;;  %v710_v16 = vsub.f32 %v4884_v56, %v6120_v14  ;;  %v12003_v56 = vld [vmem:[#allocation40_spill] sm:$0xff] }
 0x187   :  { %v6106_v4 = vpop.xlane.xlu0 %430  ;;  %11997 = vst [vmem:[#allocation29_spill] sm:$0xff] %v6123_v39  ;;  %v814_v28 = vmul.f32 %v706_v27, %v706_v27  ;;  %v1011_v44 = vsel %vm122_vm0, %v815_v54, 0.0  ;;  %v4886_v27 = vld [vmem:[%s11658_s0 + $0x168] sm:$0xff]  ;;  %v6150_v14 = vmul.f32 0.020408163, %v12003_v56 }
 0x189   :  { %v1008_v8 = vsel %vm122_vm0, %v814_v28, 0.0  ;;  %12004 = vst [vmem:[#allocation31_spill] sm:$0xff] %v6150_v14 }
 0x18b   :  { %1003 = vadd.xlane.f32.xlu2 %v1002_v2  ;;  %1000 = vadd.xlane.f32.xlu1 %v999_v35  ;;  %v813_v35 = vmul.f32 %v705_v7, %v705_v7  ;;  %v708_v7 = vsub.f32 %v4886_v27, %v6130_v3  ;;  %v12011_v3 = vld [vmem:[#allocation44_spill] sm:$0xff] }
 0x18c   :  { %997 = vadd.xlane.f32.xlu0 %v996_v63  ;;  %v709_v63 = vsub.f32 %v4885_v57, %v6123_v39  ;;  %v6153_v57 = vmul.f32 0.020408163, %v12005_v34  ;;  %v818_v39 = vmul.f32 %v710_v16, %v710_v16  ;;  %v4888_v34 = vld [vmem:[%s11658_s0 + $0x188] sm:$0xff] }
 0x18d   :  { %v1005_v52 = vsel %vm122_vm0, %v813_v35, 0.0  ;;  %v4887_v35 = vld [vmem:[%s11658_s0 + $0x190] sm:$0xff] }
 0x18e   :  { %v6125_v50 = vpop.xlane.xlu2 %445  ;;  %v6127_v11 = vpop.xlane.xlu1 %442  ;;  %12006 = vst [vmem:[#allocation32_spill] sm:$0xff] %v6153_v57  ;;  %v817_v10 = vmul.f32 %v709_v63, %v709_v63  ;;  %v713_v27 = vsub.f32 %v4887_v35, %v6150_v14  ;;  %v1020_v16 = vsel %vm122_vm0, %v818_v39, 0.0  ;;  %v4889_v63 = vld [vmem:[%s11658_s0 + $0x180] sm:$0xff]  ;;  %v12009_v35 = vld [vmem:[#allocation43_spill] sm:$0xff] }
 0x18f   :  { %11998 = vst [vmem:[#allocation30_spill] sm:$0xff] %v6125_v50  ;;  %v6132_v2 = vpop.xlane.xlu0 %439  ;;  %v6180_v14 = vmul.f32 0.020408163, %v12009_v35 }
 0x190   :  { %11999 = vst [vmem:[#allocation11_spill] sm:$0xff] %v6127_v11  ;;  %v1017_v22 = vsel %vm122_vm0, %v817_v10, 0.0  ;;  %v12015_v11 = vld [vmem:[#allocation45_spill] sm:$0xff] }
 0x191   :  { %12002 = vst [vmem:[#allocation13_spill] sm:$0xff] %v6132_v2  ;;  %v6190_v50 = vmul.f32 0.020408163, %v12015_v11 }
 0x192   :  { %12010 = vst [vmem:[#allocation14_spill] sm:$0xff] %v6180_v14 }
 0x193   :  { %1012 = vadd.xlane.f32.xlu2 %v1011_v44  ;;  %1009 = vadd.xlane.f32.xlu1 %v1008_v8  ;;  %v816_v8 = vmul.f32 %v708_v7, %v708_v7  ;;  %v711_v7 = vsub.f32 %v4889_v63, %v6160_v15  ;;  %12016 = vst [vmem:[#allocation35_spill] sm:$0xff] %v6190_v50  ;;  %v12020_v15 = vld [vmem:[#allocation47_spill] sm:$0xff] }
 0x194   :  { %1006 = vadd.xlane.f32.xlu0 %v1005_v52  ;;  %v712_v52 = vsub.f32 %v4888_v34, %v6153_v57  ;;  %v6183_v34 = vmul.f32 0.020408163, %v12011_v3  ;;  %v821_v57 = vmul.f32 %v713_v27, %v713_v27  ;;  %v4891_v3 = vld [vmem:[%s11658_s0 + $0x1a0] sm:$0xff] }
 0x195   :  { %v1014_v56 = vsel %vm122_vm0, %v816_v8, 0.0  ;;  %v4890_v8 = vld [vmem:[%s11658_s0 + $0x1a8] sm:$0xff] }
 0x196   :  { %v6155_v54 = vpop.xlane.xlu2 %886  ;;  %v6157_v28 = vpop.xlane.xlu1 %883  ;;  %12012 = vst [vmem:[#allocation15_spill] sm:$0xff] %v6183_v34  ;;  %v820_v2 = vmul.f32 %v712_v52, %v712_v52  ;;  %v716_v63 = vsub.f32 %v4890_v8, %v6180_v14  ;;  %v1029_v27 = vsel %vm122_vm0, %v821_v57, 0.0  ;;  %v4892_v52 = vld [vmem:[%s11658_s0 + $0x198] sm:$0xff]  ;;  %v12018_v8 = vld [vmem:[#allocation46_spill] sm:$0xff] }
 0x197   :  { %v6162_v44 = vpop.xlane.xlu0 %880  ;;  %v6210_v14 = vmul.f32 0.020408163, %v12018_v8 }
 0x198   :  { %v1026_v11 = vsel %vm122_vm0, %v820_v2, 0.0 }
 0x199   :  { %12019 = vst [vmem:[#allocation17_spill] sm:$0xff] %v6210_v14 }
 0x19b   :  { %1021 = vadd.xlane.f32.xlu2 %v1020_v16  ;;  %1018 = vadd.xlane.f32.xlu1 %v1017_v22  ;;  %v819_v22 = vmul.f32 %v711_v7, %v711_v7  ;;  %v714_v7 = vsub.f32 %v4892_v52, %v6190_v50  ;;  %v12029_v50 = vld [vmem:[#allocation50_spill] sm:$0xff] }
 0x19c   :  { %1015 = vadd.xlane.f32.xlu0 %v1014_v56  ;;  %v715_v56 = vsub.f32 %v4891_v3, %v6183_v34  ;;  %v6213_v3 = vmul.f32 0.020408163, %v12020_v15  ;;  %v824_v34 = vmul.f32 %v716_v63, %v716_v63  ;;  %v4894_v15 = vld [vmem:[%s11658_s0 + $0x1b8] sm:$0xff] }
 0x19d   :  { %v1023_v35 = vsel %vm122_vm0, %v819_v22, 0.0  ;;  %v4893_v22 = vld [vmem:[%s11658_s0 + $0x1c0] sm:$0xff] }
 0x19e   :  { %v6185_v39 = vpop.xlane.xlu2 %895  ;;  %v6187_v10 = vpop.xlane.xlu1 %892  ;;  %12021 = vst [vmem:[#allocation18_spill] sm:$0xff] %v6213_v3  ;;  %v719_v52 = vsub.f32 %v4893_v22, %v6210_v14  ;;  %v1038_v63 = vsel %vm122_vm0, %v824_v34, 0.0  ;;  %v12027_v22 = vld [vmem:[#allocation49_spill] sm:$0xff] }
 0x19f   :  { %12013 = vst [vmem:[#allocation16_spill] sm:$0xff] %v6185_v39  ;;  %v6192_v16 = vpop.xlane.xlu0 %889  ;;  %v823_v39 = vmul.f32 %v715_v56, %v715_v56  ;;  %v4895_v56 = vld [vmem:[%s11658_s0 + $0x1b0] sm:$0xff]  ;;  %v6240_v14 = vmul.f32 0.020408163, %v12027_v22 }
 0x1a0   :  { %12014 = vst [vmem:[#allocation34_spill] sm:$0xff] %v6187_v10  ;;  %v12024_v10 = vld [vmem:[#allocation48_spill] sm:$0xff] }
 0x1a1   :  { %12017 = vst [vmem:[#allocation36_spill] sm:$0xff] %v6192_v16  ;;  %v6220_v16 = vmul.f32 0.020408163, %v12024_v10  ;;  %v1035_v10 = vsel %vm122_vm0, %v823_v39, 0.0 }
 0x1a2   :  { %12028 = vst [vmem:[#allocation41_spill] sm:$0xff] %v6240_v14 }
 0x1a3   :  { %1030 = vadd.xlane.f32.xlu2 %v1029_v27  ;;  %1027 = vadd.xlane.f32.xlu1 %v1026_v11  ;;  %12025 = vst [vmem:[#allocation39_spill] sm:$0xff] %v6220_v16  ;;  %v822_v11 = vmul.f32 %v714_v7, %v714_v7  ;;  %v717_v7 = vsub.f32 %v4895_v56, %v6220_v16  ;;  %v12038_v16 = vld [vmem:[#allocation55_spill] sm:$0xff] }
 0x1a4   :  { %1024 = vadd.xlane.f32.xlu0 %v1023_v35  ;;  %v718_v35 = vsub.f32 %v4894_v15, %v6213_v3  ;;  %v6243_v15 = vmul.f32 0.020408163, %v12029_v50  ;;  %v827_v3 = vmul.f32 %v719_v52, %v719_v52  ;;  %v4897_v50 = vld [vmem:[%s11658_s0 + $0x1d0] sm:$0xff] }
 0x1a5   :  { %v1032_v8 = vsel %vm122_vm0, %v822_v11, 0.0  ;;  %v4896_v11 = vld [vmem:[%s11658_s0 + $0x1d8] sm:$0xff] }
 0x1a6   :  { %v6215_v57 = vpop.xlane.xlu2 %904  ;;  %v6217_v2 = vpop.xlane.xlu1 %901  ;;  %12030 = vst [vmem:[#allocation42_spill] sm:$0xff] %v6243_v15  ;;  %v722_v56 = vsub.f32 %v4896_v11, %v6240_v14  ;;  %v1047_v52 = vsel %vm122_vm0, %v827_v3, 0.0  ;;  %v12036_v11 = vld [vmem:[#allocation54_spill] sm:$0xff] }
 0x1a7   :  { %12022 = vst [vmem:[#allocation37_spill] sm:$0xff] %v6215_v57  ;;  %v6222_v27 = vpop.xlane.xlu0 %898  ;;  %v12033_v57 = vld [vmem:[#allocation51_spill] sm:$0xff]  ;;  %v6270_v14 = vmul.f32 0.020408163, %v12036_v11 }
 0x1a8   :  { %12023 = vst [vmem:[#allocation38_spill] sm:$0xff] %v6217_v2  ;;  %v6250_v2 = vmul.f32 0.020408163, %v12033_v57 }
 0x1a9   :  { %12026 = vst [vmem:[#allocation40_spill] sm:$0xff] %v6222_v27  ;;  %v826_v27 = vmul.f32 %v718_v35, %v718_v35  ;;  %v4898_v35 = vld [vmem:[%s11658_s0 + $0x1c8] sm:$0xff] }
 0x1aa   :  { %12034 = vst [vmem:[#allocation45_spill] sm:$0xff] %v6250_v2 }
 0x1ab   :  { %1039 = vadd.xlane.f32.xlu2 %v1038_v63  ;;  %1036 = vadd.xlane.f32.xlu1 %v1035_v10  ;;  %v825_v10 = vmul.f32 %v717_v7, %v717_v7  ;;  %v1044_v57 = vsel %vm122_vm0, %v826_v27, 0.0  ;;  %v720_v7 = vsub.f32 %v4898_v35, %v6250_v2  ;;  %12037 = vst [vmem:[#allocation47_spill] sm:$0xff] %v6270_v14 }
 0x1ac   :  { %1033 = vadd.xlane.f32.xlu0 %v1032_v8  ;;  %v721_v8 = vsub.f32 %v4897_v50, %v6243_v15  ;;  %v6273_v50 = vmul.f32 0.020408163, %v12038_v16  ;;  %v830_v15 = vmul.f32 %v722_v56, %v722_v56  ;;  %v4900_v16 = vld [vmem:[%s11658_s0 + $0x1e8] sm:$0xff] }
 0x1ad   :  { %v1041_v22 = vsel %vm122_vm0, %v825_v10, 0.0  ;;  %v4899_v10 = vld [vmem:[%s11658_s0 + $0x1f0] sm:$0xff] }
 0x1ae   :  { %v6245_v34 = vpop.xlane.xlu2 %913  ;;  %v6247_v39 = vpop.xlane.xlu1 %910  ;;  %12039 = vst [vmem:[#allocation48_spill] sm:$0xff] %v6273_v50  ;;  %v725_v35 = vsub.f32 %v4899_v10, %v6270_v14  ;;  %v1056_v56 = vsel %vm122_vm0, %v830_v15, 0.0  ;;  %v6300_v10 = vmul.f32 0.020408163, %v5787_v47  ;;  %v4902_v47 = vld [vmem:[%s11658_s0 + $0x208] sm:$0xff] }
 0x1af   :  { %12031 = vst [vmem:[#allocation43_spill] sm:$0xff] %v6245_v34  ;;  %v6252_v63 = vpop.xlane.xlu0 %907  ;;  %v12040_v34 = vld [vmem:[#allocation57_spill] sm:$0xff] }
 0x1b0   :  { %12032 = vst [vmem:[#allocation44_spill] sm:$0xff] %v6247_v39  ;;  %v6280_v39 = vmul.f32 0.020408163, %v12040_v34  ;;  %v833_v14 = vmul.f32 %v725_v35, %v725_v35 }
 0x1b1   :  { %12035 = vst [vmem:[#allocation46_spill] sm:$0xff] %v6252_v63  ;;  %v829_v63 = vmul.f32 %v721_v8, %v721_v8  ;;  %v4901_v8 = vld [vmem:[%s11658_s0 + $0x1e0] sm:$0xff] }
 0x1b2   :  { %12041 = vst [vmem:[#allocation49_spill] sm:$0xff] %v6280_v39  ;;  %v1065_v35 = vsel %vm122_vm0, %v833_v14, 0.0 }
 0x1b3   :  { %1048 = vadd.xlane.f32.xlu2 %v1047_v52  ;;  %1045 = vadd.xlane.f32.xlu1 %v1044_v57  ;;  %v828_v57 = vmul.f32 %v720_v7, %v720_v7  ;;  %v1053_v34 = vsel %vm122_vm0, %v829_v63, 0.0  ;;  %v723_v7 = vsub.f32 %v4901_v8, %v6280_v39  ;;  %12042 = vst [vmem:[#allocation50_spill] sm:$0xff] %v6300_v10 }
 0x1b4   :  { %1042 = vadd.xlane.f32.xlu0 %v1041_v22  ;;  %v724_v22 = vsub.f32 %v4900_v16, %v6273_v50  ;;  %v6303_v16 = vmul.f32 0.020408163, %v5789_v62  ;;  %v6310_v50 = vmul.f32 0.020408163, %v5794_v23  ;;  %v4903_v62 = vld [vmem:[%s11658_s0 + $0x200] sm:$0xff] }
 0x1b5   :  { %v1050_v11 = vsel %vm122_vm0, %v828_v57, 0.0  ;;  %v728_v57 = vsub.f32 %v4902_v47, %v6300_v10  ;;  %v6330_v47 = vmul.f32 0.020408163, %v5811_v55  ;;  %v4905_v55 = vld [vmem:[%s11658_s0 + $0x220] sm:$0xff] }
 0x1b6   :  { %v6275_v3 = vpop.xlane.xlu2 %922  ;;  %v6277_v27 = vpop.xlane.xlu1 %919  ;;  %12043 = vst [vmem:[#allocation51_spill] sm:$0xff] %v6303_v16  ;;  %v832_v2 = vmul.f32 %v724_v22, %v724_v22  ;;  %v727_v8 = vsub.f32 %v4903_v62, %v6303_v16  ;;  %v4904_v22 = vld [vmem:[%s11658_s0 + $0x1f8] sm:$0xff]  ;;  %v6333_v62 = vmul.f32 0.020408163, %v5813_v6  ;;  %v6340_v16 = vmul.f32 0.020408163, %v5818_v59 }
 0x1b7   :  { %v6282_v52 = vpop.xlane.xlu0 %916  ;;  %12044 = vst [vmem:[#allocation54_spill] sm:$0xff] %v6310_v50  ;;  %v836_v10 = vmul.f32 %v728_v57, %v728_v57  ;;  %v4906_v6 = vld [vmem:[%s11658_s0 + $0x218] sm:$0xff] }
 0x1b8   :  { %v1062_v23 = vsel %vm122_vm0, %v832_v2, 0.0  ;;  %12045 = vst [vmem:[#allocation55_spill] sm:$0xff] %v6330_v47  ;;  %v835_v39 = vmul.f32 %v727_v8, %v727_v8  ;;  %v4907_v8 = vld [vmem:[%s11658_s0 + $0x210] sm:$0xff] }
 0x1b9   :  { %12046 = vst [vmem:[#allocation57_spill] sm:$0xff] %v6333_v62  ;;  %v1074_v57 = vsel %vm122_vm0, %v836_v10, 0.0 }
 0x1ba   :  { %12047 = vst [vmem:[#allocation82_spill] sm:$0xff] %v6340_v16  ;;  %v1071_v59 = vsel %vm122_vm0, %v835_v39, 0.0 }
 0x1bb   :  { %1057 = vadd.xlane.f32.xlu2 %v1056_v56  ;;  %1054 = vadd.xlane.f32.xlu1 %v1053_v34  ;;  %v831_v34 = vmul.f32 %v723_v7, %v723_v7  ;;  %v726_v7 = vsub.f32 %v4904_v22, %v6310_v50  ;;  %v730_v22 = vsub.f32 %v4906_v6, %v6333_v62  ;;  %v6363_v6 = vmul.f32 0.020408163, %v5837_v12  ;;  %v4909_v12 = vld [vmem:[%s11658_s0 + $0x230] sm:$0xff] }
 0x1bc   :  { %1051 = vadd.xlane.f32.xlu0 %v1050_v11  ;;  %v6370_v62 = vmul.f32 0.020408163, %v5842_v58 }
 0x1bd   :  { %v1059_v11 = vsel %vm122_vm0, %v831_v34, 0.0  ;;  %v731_v34 = vsub.f32 %v4905_v55, %v6330_v47  ;;  %v6360_v55 = vmul.f32 0.020408163, %v5835_v1  ;;  %12049 = vst [vmem:[#allocation84_spill] sm:$0xff] %v6363_v6  ;;  %v838_v50 = vmul.f32 %v730_v22, %v730_v22  ;;  %v4908_v1 = vld [vmem:[%s11658_s0 + $0x238] sm:$0xff]  ;;  %v4910_v22 = vld [vmem:[%s11658_s0 + $0x228] sm:$0xff] }
 0x1be   :  { %v6305_v15 = vpop.xlane.xlu2 %931  ;;  %v6307_v63 = vpop.xlane.xlu1 %928  ;;  %12050 = vst [vmem:[#allocation85_spill] sm:$0xff] %v6370_v62 }
 0x1bf   :  { %v6312_v56 = vpop.xlane.xlu0 %925  ;;  %12048 = vst [vmem:[#allocation83_spill] sm:$0xff] %v6360_v55  ;;  %v839_v47 = vmul.f32 %v731_v34, %v731_v34  ;;  %v1080_v58 = vsel %vm122_vm0, %v838_v50, 0.0 }
 0x1c1   :  { %v1083_v34 = vsel %vm122_vm0, %v839_v47, 0.0 }
 0x1c3   :  { %1066 = vadd.xlane.f32.xlu2 %v1065_v35  ;;  %1063 = vadd.xlane.f32.xlu1 %v1062_v23  ;;  %v834_v23 = vmul.f32 %v726_v7, %v726_v7  ;;  %v729_v7 = vsub.f32 %v4907_v8, %v6340_v16  ;;  %v733_v8 = vsub.f32 %v4909_v12, %v6363_v6  ;;  %v6393_v12 = vmul.f32 0.020408163, %v5861_v18  ;;  %v4912_v18 = vld [vmem:[%s11658_s0 + $0x248] sm:$0xff] }
 0x1c4   :  { %1060 = vadd.xlane.f32.xlu0 %v1059_v11  ;;  %v6400_v6 = vmul.f32 0.020408163, %v5866_v53 }
 0x1c5   :  { %v1068_v11 = vsel %vm122_vm0, %v834_v23, 0.0  ;;  %v734_v23 = vsub.f32 %v4908_v1, %v6360_v55  ;;  %v6390_v1 = vmul.f32 0.020408163, %v5859_v0  ;;  %12052 = vst [vmem:[#allocation87_spill] sm:$0xff] %v6393_v12  ;;  %v841_v16 = vmul.f32 %v733_v8, %v733_v8  ;;  %v4911_v0 = vld [vmem:[%s11658_s0 + $0x250] sm:$0xff]  ;;  %v4913_v8 = vld [vmem:[%s11658_s0 + $0x240] sm:$0xff] }
 0x1c6   :  { %v6335_v14 = vpop.xlane.xlu2 %940  ;;  %v6337_v2 = vpop.xlane.xlu1 %937  ;;  %12053 = vst [vmem:[#allocation88_spill] sm:$0xff] %v6400_v6 }
 0x1c7   :  { %v6342_v35 = vpop.xlane.xlu0 %934  ;;  %12051 = vst [vmem:[#allocation86_spill] sm:$0xff] %v6390_v1  ;;  %v842_v55 = vmul.f32 %v734_v23, %v734_v23  ;;  %v1089_v53 = vsel %vm122_vm0, %v841_v16, 0.0 }
 0x1c9   :  { %v1092_v23 = vsel %vm122_vm0, %v842_v55, 0.0 }
 0x1cb   :  { %1075 = vadd.xlane.f32.xlu2 %v1074_v57  ;;  %1072 = vadd.xlane.f32.xlu1 %v1071_v59  ;;  %v837_v59 = vmul.f32 %v729_v7, %v729_v7  ;;  %v732_v7 = vsub.f32 %v4910_v22, %v6370_v62  ;;  %v736_v22 = vsub.f32 %v4912_v18, %v6393_v12  ;;  %v6423_v18 = vmul.f32 0.020408163, %v5885_v24  ;;  %v4915_v24 = vld [vmem:[%s11658_s0 + $0x260] sm:$0xff] }
 0x1cc   :  { %1069 = vadd.xlane.f32.xlu0 %v1068_v11  ;;  %v6430_v12 = vmul.f32 0.020408163, %v5890_v40 }
 0x1cd   :  { %v1077_v11 = vsel %vm122_vm0, %v837_v59, 0.0  ;;  %v737_v59 = vsub.f32 %v4911_v0, %v6390_v1  ;;  %v6420_v0 = vmul.f32 0.020408163, %v5883_v13  ;;  %12055 = vst [vmem:[#allocation90_spill] sm:$0xff] %v6423_v18  ;;  %v844_v62 = vmul.f32 %v736_v22, %v736_v22  ;;  %v4914_v13 = vld [vmem:[%s11658_s0 + $0x268] sm:$0xff]  ;;  %v4916_v22 = vld [vmem:[%s11658_s0 + $0x258] sm:$0xff] }
 0x1ce   :  { %v6365_v10 = vpop.xlane.xlu2 %949  ;;  %v6367_v39 = vpop.xlane.xlu1 %946  ;;  %12056 = vst [vmem:[#allocation91_spill] sm:$0xff] %v6430_v12 }
 0x1cf   :  { %v6372_v57 = vpop.xlane.xlu0 %943  ;;  %12054 = vst [vmem:[#allocation89_spill] sm:$0xff] %v6420_v0  ;;  %v845_v1 = vmul.f32 %v737_v59, %v737_v59  ;;  %v1098_v40 = vsel %vm122_vm0, %v844_v62, 0.0 }
 0x1d1   :  { %v1101_v59 = vsel %vm122_vm0, %v845_v1, 0.0 }
 0x1d3   :  { %1084 = vadd.xlane.f32.xlu2 %v1083_v34  ;;  %1081 = vadd.xlane.f32.xlu1 %v1080_v58  ;;  %v840_v58 = vmul.f32 %v732_v7, %v732_v7  ;;  %v735_v7 = vsub.f32 %v4913_v8, %v6400_v6  ;;  %v739_v8 = vsub.f32 %v4915_v24, %v6423_v18  ;;  %v6453_v24 = vmul.f32 0.020408163, %v5909_v30  ;;  %v4918_v30 = vld [vmem:[%s11658_s0 + $0x278] sm:$0xff] }
 0x1d4   :  { %1078 = vadd.xlane.f32.xlu0 %v1077_v11  ;;  %v6460_v18 = vmul.f32 0.020408163, %v5914_v45 }
 0x1d5   :  { %v1086_v11 = vsel %vm122_vm0, %v840_v58, 0.0  ;;  %v740_v58 = vsub.f32 %v4914_v13, %v6420_v0  ;;  %v6450_v13 = vmul.f32 0.020408163, %v5907_v19  ;;  %12058 = vst [vmem:[#allocation93_spill] sm:$0xff] %v6453_v24  ;;  %v847_v6 = vmul.f32 %v739_v8, %v739_v8  ;;  %v4917_v19 = vld [vmem:[%s11658_s0 + $0x280] sm:$0xff]  ;;  %v4919_v8 = vld [vmem:[%s11658_s0 + $0x270] sm:$0xff] }
 0x1d6   :  { %v6395_v47 = vpop.xlane.xlu2 %958  ;;  %v6397_v50 = vpop.xlane.xlu1 %955  ;;  %12059 = vst [vmem:[#allocation94_spill] sm:$0xff] %v6460_v18 }
 0x1d7   :  { %v6402_v34 = vpop.xlane.xlu0 %952  ;;  %12057 = vst [vmem:[#allocation92_spill] sm:$0xff] %v6450_v13  ;;  %v848_v0 = vmul.f32 %v740_v58, %v740_v58  ;;  %v1107_v45 = vsel %vm122_vm0, %v847_v6, 0.0 }
 0x1d9   :  { %v1110_v58 = vsel %vm122_vm0, %v848_v0, 0.0 }
 0x1db   :  { %1093 = vadd.xlane.f32.xlu2 %v1092_v23  ;;  %1090 = vadd.xlane.f32.xlu1 %v1089_v53  ;;  %v843_v53 = vmul.f32 %v735_v7, %v735_v7  ;;  %v738_v7 = vsub.f32 %v4916_v22, %v6430_v12  ;;  %v742_v22 = vsub.f32 %v4918_v30, %v6453_v24  ;;  %v6483_v30 = vmul.f32 0.020408163, %v5933_v36  ;;  %v4921_v36 = vld [vmem:[%s11658_s0 + $0x290] sm:$0xff] }
 0x1dc   :  { %1087 = vadd.xlane.f32.xlu0 %v1086_v11  ;;  %v6490_v24 = vmul.f32 0.020408163, %v5938_v33 }
 0x1dd   :  { %v1095_v11 = vsel %vm122_vm0, %v843_v53, 0.0  ;;  %v743_v53 = vsub.f32 %v4917_v19, %v6450_v13  ;;  %v6480_v19 = vmul.f32 0.020408163, %v5931_v25  ;;  %12061 = vst [vmem:[#allocation96_spill] sm:$0xff] %v6483_v30  ;;  %v850_v12 = vmul.f32 %v742_v22, %v742_v22  ;;  %v4920_v25 = vld [vmem:[%s11658_s0 + $0x298] sm:$0xff]  ;;  %v4922_v22 = vld [vmem:[%s11658_s0 + $0x288] sm:$0xff] }
 0x1de   :  { %v6425_v55 = vpop.xlane.xlu2 %967  ;;  %v6427_v16 = vpop.xlane.xlu1 %964  ;;  %12062 = vst [vmem:[#allocation97_spill] sm:$0xff] %v6490_v24 }
 0x1df   :  { %v6432_v23 = vpop.xlane.xlu0 %961  ;;  %12060 = vst [vmem:[#allocation95_spill] sm:$0xff] %v6480_v19  ;;  %v851_v13 = vmul.f32 %v743_v53, %v743_v53  ;;  %v1116_v33 = vsel %vm122_vm0, %v850_v12, 0.0 }
 0x1e1   :  { %v1119_v53 = vsel %vm122_vm0, %v851_v13, 0.0 }
 0x1e3   :  { %1102 = vadd.xlane.f32.xlu2 %v1101_v59  ;;  %1099 = vadd.xlane.f32.xlu1 %v1098_v40  ;;  %v846_v40 = vmul.f32 %v738_v7, %v738_v7  ;;  %v741_v7 = vsub.f32 %v4919_v8, %v6460_v18  ;;  %v745_v8 = vsub.f32 %v4921_v36, %v6483_v30  ;;  %v6513_v36 = vmul.f32 0.020408163, %v5957_v42  ;;  %v4924_v42 = vld [vmem:[%s11658_s0 + $0x2a8] sm:$0xff] }
 0x1e4   :  { %1096 = vadd.xlane.f32.xlu0 %v1095_v11  ;;  %v6520_v30 = vmul.f32 0.020408163, %v5962_v21 }
 0x1e5   :  { %v1104_v11 = vsel %vm122_vm0, %v846_v40, 0.0  ;;  %v746_v40 = vsub.f32 %v4920_v25, %v6480_v19  ;;  %v6510_v25 = vmul.f32 0.020408163, %v5955_v31  ;;  %12065 = vst [vmem:[#allocation100_spill] sm:$0xff] %v6513_v36  ;;  %v853_v18 = vmul.f32 %v745_v8, %v745_v8  ;;  %v4923_v31 = vld [vmem:[%s11658_s0 + $0x2b0] sm:$0xff]  ;;  %v4925_v8 = vld [vmem:[%s11658_s0 + $0x2a0] sm:$0xff] }
 0x1e6   :  { %v6455_v1 = vpop.xlane.xlu2 %976  ;;  %v6457_v62 = vpop.xlane.xlu1 %973  ;;  %12067 = vst [vmem:[#allocation102_spill] sm:$0xff] %v6520_v30 }
 0x1e7   :  { %v6462_v59 = vpop.xlane.xlu0 %970  ;;  %12064 = vst [vmem:[#allocation99_spill] sm:$0xff] %v6510_v25  ;;  %v854_v19 = vmul.f32 %v746_v40, %v746_v40  ;;  %v1125_v21 = vsel %vm122_vm0, %v853_v18, 0.0 }
 0x1e9   :  { %v1128_v40 = vsel %vm122_vm0, %v854_v19, 0.0 }
 0x1eb   :  { %1111 = vadd.xlane.f32.xlu2 %v1110_v58  ;;  %1108 = vadd.xlane.f32.xlu1 %v1107_v45  ;;  %v849_v45 = vmul.f32 %v741_v7, %v741_v7  ;;  %v744_v7 = vsub.f32 %v4922_v22, %v6490_v24  ;;  %v748_v22 = vsub.f32 %v4924_v42, %v6513_v36  ;;  %v6543_v42 = vmul.f32 0.020408163, %v5981_v48  ;;  %v4927_v48 = vld [vmem:[%s11658_s0 + $0x2c0] sm:$0xff] }
 0x1ec   :  { %1105 = vadd.xlane.f32.xlu0 %v1104_v11  ;;  %v6550_v36 = vmul.f32 0.020408163, %v5986_v9 }
 0x1ed   :  { %v1113_v11 = vsel %vm122_vm0, %v849_v45, 0.0  ;;  %v749_v45 = vsub.f32 %v4923_v31, %v6510_v25  ;;  %v6540_v31 = vmul.f32 0.020408163, %v5979_v43  ;;  %12070 = vst [vmem:[#allocation105_spill] sm:$0xff] %v6543_v42  ;;  %v856_v24 = vmul.f32 %v748_v22, %v748_v22  ;;  %v4926_v43 = vld [vmem:[%s11658_s0 + $0x2c8] sm:$0xff]  ;;  %v4928_v22 = vld [vmem:[%s11658_s0 + $0x2b8] sm:$0xff] }
 0x1ee   :  { %v6485_v0 = vpop.xlane.xlu2 %985  ;;  %v6487_v6 = vpop.xlane.xlu1 %982  ;;  %12073 = vst [vmem:[#allocation108_spill] sm:$0xff] %v6550_v36 }
 0x1ef   :  { %v6492_v58 = vpop.xlane.xlu0 %979  ;;  %12069 = vst [vmem:[#allocation104_spill] sm:$0xff] %v6540_v31  ;;  %v857_v25 = vmul.f32 %v749_v45, %v749_v45  ;;  %v1134_v9 = vsel %vm122_vm0, %v856_v24, 0.0 }
 0x1f0   :  { %12063 = vst [vmem:[#allocation98_spill] sm:$0xff] %v6492_v58 }
 0x1f1   :  { %v1137_v45 = vsel %vm122_vm0, %v857_v25, 0.0 }
 0x1f3   :  { %1120 = vadd.xlane.f32.xlu2 %v1119_v53  ;;  %1117 = vadd.xlane.f32.xlu1 %v1116_v33  ;;  %v852_v33 = vmul.f32 %v744_v7, %v744_v7  ;;  %v747_v7 = vsub.f32 %v4925_v8, %v6520_v30  ;;  %v751_v8 = vsub.f32 %v4927_v48, %v6543_v42  ;;  %v6573_v48 = vmul.f32 0.020408163, %v6005_v29  ;;  %v4930_v29 = vld [vmem:[%s11658_s0 + $0x2d8] sm:$0xff] }
 0x1f4   :  { %1114 = vadd.xlane.f32.xlu0 %v1113_v11  ;;  %v6580_v42 = vmul.f32 0.020408163, %v6010_v32 }
 0x1f5   :  { %v1122_v11 = vsel %vm122_vm0, %v852_v33, 0.0  ;;  %v752_v33 = vsub.f32 %v4926_v43, %v6540_v31  ;;  %v6570_v43 = vmul.f32 0.020408163, %v6003_v49  ;;  %12076 = vst [vmem:[#allocation111_spill] sm:$0xff] %v6573_v48  ;;  %v859_v30 = vmul.f32 %v751_v8, %v751_v8  ;;  %v4929_v49 = vld [vmem:[%s11658_s0 + $0x2e0] sm:$0xff]  ;;  %v4931_v8 = vld [vmem:[%s11658_s0 + $0x2d0] sm:$0xff] }
 0x1f6   :  { %v6515_v13 = vpop.xlane.xlu2 %994  ;;  %v6517_v12 = vpop.xlane.xlu1 %991  ;;  %12079 = vst [vmem:[#allocation114_spill] sm:$0xff] %v6580_v42 }
 0x1f7   :  { %12066 = vst [vmem:[#allocation101_spill] sm:$0xff] %v6515_v13  ;;  %v6522_v53 = vpop.xlane.xlu0 %988  ;;  %v860_v31 = vmul.f32 %v752_v33, %v752_v33  ;;  %v1143_v32 = vsel %vm122_vm0, %v859_v30, 0.0 }
 0x1f8   :  { %12068 = vst [vmem:[#allocation103_spill] sm:$0xff] %v6522_v53  ;;  %v2607_v53 = vld [vmem:[%s11659_s1] sm:$0xff] }
 0x1f9   :  { %12075 = vst [vmem:[#allocation110_spill] sm:$0xff] %v6570_v43  ;;  %v1146_v33 = vsel %vm122_vm0, %v860_v31, 0.0 }
 0x1fb   :  { %1129 = vadd.xlane.f32.xlu2 %v1128_v40  ;;  %1126 = vadd.xlane.f32.xlu1 %v1125_v21  ;;  %v855_v21 = vmul.f32 %v747_v7, %v747_v7  ;;  %v750_v7 = vsub.f32 %v4928_v22, %v6550_v36  ;;  %v754_v22 = vsub.f32 %v4930_v29, %v6573_v48  ;;  %v6603_v29 = vmul.f32 0.020408163, %v6029_v17  ;;  %v4933_v17 = vld [vmem:[%s11658_s0 + $0x2f0] sm:$0xff] }
 0x1fc   :  { %1123 = vadd.xlane.f32.xlu0 %v1122_v11  ;;  %v6610_v48 = vmul.f32 0.020408163, %v6034_v46 }
 0x1fd   :  { %v1131_v11 = vsel %vm122_vm0, %v855_v21, 0.0  ;;  %v755_v21 = vsub.f32 %v4929_v49, %v6570_v43  ;;  %v6600_v49 = vmul.f32 0.020408163, %v6027_v38  ;;  %12082 = vst [vmem:[#allocation117_spill] sm:$0xff] %v6603_v29  ;;  %v862_v36 = vmul.f32 %v754_v22, %v754_v22  ;;  %v4932_v38 = vld [vmem:[%s11658_s0 + $0x2f8] sm:$0xff]  ;;  %v4934_v22 = vld [vmem:[%s11658_s0 + $0x2e8] sm:$0xff] }
 0x1fe   :  { %v6545_v19 = vpop.xlane.xlu2 %1003  ;;  %v6547_v18 = vpop.xlane.xlu1 %1000  ;;  %12085 = vst [vmem:[#allocation120_spill] sm:$0xff] %v6610_v48 }
 0x1ff   :  { %12071 = vst [vmem:[#allocation106_spill] sm:$0xff] %v6545_v19  ;;  %v6552_v40 = vpop.xlane.xlu0 %997  ;;  %v863_v43 = vmul.f32 %v755_v21, %v755_v21  ;;  %v1152_v46 = vsel %vm122_vm0, %v862_v36, 0.0 }
 0x200   :  { %12072 = vst [vmem:[#allocation107_spill] sm:$0xff] %v6547_v18 }
 0x201   :  { %12074 = vst [vmem:[#allocation109_spill] sm:$0xff] %v6552_v40  ;;  %v1155_v21 = vsel %vm122_vm0, %v863_v43, 0.0  ;;  %v1327_v40 = vmul.f32 0.020408163, %v6307_v63 }
 0x202   :  { %12081 = vst [vmem:[#allocation116_spill] sm:$0xff] %v6600_v49 }
 0x203   :  { %1138 = vadd.xlane.f32.xlu2 %v1137_v45  ;;  %1135 = vadd.xlane.f32.xlu1 %v1134_v9  ;;  %v858_v9 = vmul.f32 %v750_v7, %v750_v7  ;;  %v753_v7 = vsub.f32 %v4931_v8, %v6580_v42  ;;  %v757_v8 = vsub.f32 %v4933_v17, %v6603_v29  ;;  %v6633_v17 = vmul.f32 0.020408163, %v6053_v37  ;;  %v4936_v37 = vld [vmem:[%s11658_s0 + $0x308] sm:$0xff] }
 0x204   :  { %1132 = vadd.xlane.f32.xlu0 %v1131_v11  ;;  %v6640_v29 = vmul.f32 0.020408163, %v6058_v26 }
 0x205   :  { %v1140_v11 = vsel %vm122_vm0, %v858_v9, 0.0  ;;  %v758_v9 = vsub.f32 %v4932_v38, %v6600_v49  ;;  %v6630_v38 = vmul.f32 0.020408163, %v6051_v61  ;;  %12088 = vst [vmem:[#allocation123_spill] sm:$0xff] %v6633_v17  ;;  %v865_v42 = vmul.f32 %v757_v8, %v757_v8  ;;  %v4935_v61 = vld [vmem:[%s11658_s0 + $0x310] sm:$0xff]  ;;  %v4937_v8 = vld [vmem:[%s11658_s0 + $0x300] sm:$0xff] }
 0x206   :  { %v6575_v25 = vpop.xlane.xlu2 %1012  ;;  %v6577_v24 = vpop.xlane.xlu1 %1009  ;;  %12091 = vst [vmem:[#allocation126_spill] sm:$0xff] %v6640_v29 }
 0x207   :  { %12077 = vst [vmem:[#allocation112_spill] sm:$0xff] %v6575_v25  ;;  %v6582_v45 = vpop.xlane.xlu0 %1006  ;;  %v866_v49 = vmul.f32 %v758_v9, %v758_v9  ;;  %v1161_v26 = vsel %vm122_vm0, %v865_v42, 0.0 }
 0x208   :  { %12078 = vst [vmem:[#allocation113_spill] sm:$0xff] %v6577_v24 }
 0x209   :  { %12080 = vst [vmem:[#allocation115_spill] sm:$0xff] %v6582_v45  ;;  %v1164_v9 = vsel %vm122_vm0, %v866_v49, 0.0 }
 0x20a   :  { %12087 = vst [vmem:[#allocation122_spill] sm:$0xff] %v6630_v38 }
 0x20b   :  { %1147 = vadd.xlane.f32.xlu2 %v1146_v33  ;;  %1144 = vadd.xlane.f32.xlu1 %v1143_v32  ;;  %v861_v32 = vmul.f32 %v753_v7, %v753_v7  ;;  %v756_v7 = vsub.f32 %v4934_v22, %v6610_v48  ;;  %v760_v22 = vsub.f32 %v4936_v37, %v6633_v17  ;;  %v6663_v37 = vmul.f32 0.020408163, %v6077_v41  ;;  %v4939_v41 = vld [vmem:[%s11658_s0 + $0x320] sm:$0xff] }
 0x20c   :  { %1141 = vadd.xlane.f32.xlu0 %v1140_v11  ;;  %v6670_v17 = vmul.f32 0.020408163, %v6082_v20 }
 0x20d   :  { %v1149_v11 = vsel %vm122_vm0, %v861_v32, 0.0  ;;  %v761_v32 = vsub.f32 %v4935_v61, %v6630_v38  ;;  %v6660_v61 = vmul.f32 0.020408163, %v6075_v5  ;;  %12094 = vst [vmem:[#allocation129_spill] sm:$0xff] %v6663_v37  ;;  %v868_v48 = vmul.f32 %v760_v22, %v760_v22  ;;  %v4938_v5 = vld [vmem:[%s11658_s0 + $0x328] sm:$0xff]  ;;  %v4940_v22 = vld [vmem:[%s11658_s0 + $0x318] sm:$0xff] }
 0x20e   :  { %v6605_v31 = vpop.xlane.xlu2 %1021  ;;  %v6607_v30 = vpop.xlane.xlu1 %1018  ;;  %12097 = vst [vmem:[#allocation132_spill] sm:$0xff] %v6670_v17 }
 0x20f   :  { %12083 = vst [vmem:[#allocation118_spill] sm:$0xff] %v6605_v31  ;;  %v6612_v33 = vpop.xlane.xlu0 %1015  ;;  %v869_v38 = vmul.f32 %v761_v32, %v761_v32  ;;  %v1170_v20 = vsel %vm122_vm0, %v868_v48, 0.0 }
 0x210   :  { %12084 = vst [vmem:[#allocation119_spill] sm:$0xff] %v6607_v30 }
 0x211   :  { %12086 = vst [vmem:[#allocation121_spill] sm:$0xff] %v6612_v33  ;;  %v1173_v32 = vsel %vm122_vm0, %v869_v38, 0.0  ;;  %v6694_v38 = vmul.f32 0.020408163, %v6101_v51 }
 0x212   :  { %12093 = vst [vmem:[#allocation128_spill] sm:$0xff] %v6660_v61 }
 0x213   :  { %1156 = vadd.xlane.f32.xlu2 %v1155_v21  ;;  %1153 = vadd.xlane.f32.xlu1 %v1152_v46  ;;  %v864_v46 = vmul.f32 %v756_v7, %v756_v7  ;;  %v759_v7 = vsub.f32 %v4937_v8, %v6640_v29  ;;  %v763_v8 = vsub.f32 %v4939_v41, %v6663_v37 }
 0x214   :  { %1150 = vadd.xlane.f32.xlu0 %v1149_v11  ;;  %12100 = vst [vmem:[#allocation135_spill] sm:$0xff] %v6694_v38 }
 0x215   :  { %v1158_v11 = vsel %vm122_vm0, %v864_v46, 0.0  ;;  %v764_v46 = vsub.f32 %v4938_v5, %v6660_v61  ;;  %v1311_v5 = vmul.f32 0.020408163, %v6162_v44  ;;  %v6691_v61 = vmul.f32 0.020408163, %v6099_v60  ;;  %v4941_v60 = vld [vmem:[%s11658_s0 + $0x340] sm:$0xff] }
 0x216   :  { %v6635_v43 = vpop.xlane.xlu2 %1030  ;;  %v6637_v36 = vpop.xlane.xlu1 %1027  ;;  %v871_v37 = vmul.f32 %v763_v8, %v763_v8  ;;  %v1313_v44 = vmul.f32 0.020408163, %v6155_v54 }
 0x217   :  { %12089 = vst [vmem:[#allocation124_spill] sm:$0xff] %v6635_v43  ;;  %v6642_v21 = vpop.xlane.xlu0 %1024  ;;  %v872_v29 = vmul.f32 %v764_v46, %v764_v46  ;;  %v767_v51 = vsub.f32 %v4941_v60, %v6691_v61 }
 0x218   :  { %12090 = vst [vmem:[#allocation125_spill] sm:$0xff] %v6637_v36  ;;  %v1179_v54 = vsel %vm122_vm0, %v871_v37, 0.0  ;;  %v6724_v60 = vadd.f32 1e-05, %v1313_v44  ;;  %v12112_v44 = vld [vmem:[#allocation13_spill] sm:$0xff] }
 0x219   :  { %12092 = vst [vmem:[#allocation127_spill] sm:$0xff] %v6642_v21  ;;  %v1182_v8 = vsel %vm122_vm0, %v872_v29, 0.0  ;;  %v875_v29 = vmul.f32 %v767_v51, %v767_v51 }
 0x21a   :  { %12099 = vst [vmem:[#allocation134_spill] sm:$0xff] %v6691_v61  ;;  %v12105_v61 = vld [vmem:[#allocation30_spill] sm:$0xff]  ;;  %vm1553_vm1 = vweird.f32 %v6724_v60 }
 0x21b   :  { %1165 = vadd.xlane.f32.xlu2 %v1164_v9  ;;  %1162 = vadd.xlane.f32.xlu1 %v1161_v26  ;;  %v867_v26 = vmul.f32 %v759_v7, %v759_v7  ;;  %v762_v7 = vsub.f32 %v4940_v22, %v6670_v17  ;;  %v6706_v22 = vadd.f32 1e-05, %v1311_v5  ;;  %v6730_v37 = vmul.f32 0.020408163, %v12105_v61  ;;  %v12107_v17 = vld [vmem:[#allocation11_spill] sm:$0xff]  ;;  %v12116_v61 = vld [vmem:[#allocation34_spill] sm:$0xff] }
 0x21c   :  { %1159 = vadd.xlane.f32.xlu0 %v1158_v11 }
 0x21d   :  { %v1167_v11 = vsel %vm122_vm0, %v867_v26, 0.0  ;;  %v870_v26 = vmul.f32 %v762_v7, %v762_v7  ;;  %v4943_v7 = vld [vmem:[%s11658_s0 + $0x330] sm:$0xff]  ;;  %4667 = vrsqrt.f32 %v6706_v22  ;;  %12106 = vst [vmem:[#allocation30_spill] sm:$0xff] %v6730_v37  ;;  %vm1533_vm2 = vweird.f32 %v6706_v22 }
 0x21e   :  { %v6665_v49 = vpop.xlane.xlu2 %1039  ;;  %v6667_v42 = vpop.xlane.xlu1 %1036  ;;  %4669 = vrsqrt.f32 %v6724_v60 }
 0x21f   :  { %12095 = vst [vmem:[#allocation130_spill] sm:$0xff] %v6665_v49  ;;  %v6672_v9 = vpop.xlane.xlu0 %1033 }
 0x220   :  { %12096 = vst [vmem:[#allocation131_spill] sm:$0xff] %v6667_v42 }
 0x221   :  { %12098 = vst [vmem:[#allocation133_spill] sm:$0xff] %v6672_v9 }
 0x223   :  { %1174 = vadd.xlane.f32.xlu2 %v1173_v32  ;;  %1171 = vadd.xlane.f32.xlu1 %v1170_v20  ;;  %v6701_v32 = vmul.f32 0.020408163, %v6106_v4  ;;  %v4942_v4 = vld [vmem:[%s11658_s0 + $0x338] sm:$0xff] }
 0x224   :  { %1168 = vadd.xlane.f32.xlu0 %v1167_v11  ;;  %v1312_v11 = vmul.f32 0.020408163, %v6157_v28  ;;  %v766_v46 = vsub.f32 %v4942_v4, %v6694_v38  ;;  %v1176_v28 = vsel %vm122_vm0, %v870_v26, 0.0  ;;  %v6733_v38 = vmul.f32 0.020408163, %v12107_v17 }
 0x225   :  { %12103 = vst [vmem:[#allocation138_spill] sm:$0xff] %v6701_v32  ;;  %v765_v5 = vsub.f32 %v4943_v7, %v6701_v32  ;;  %v6741_v32 = vmul.f32 0.020408163, %v12112_v44  ;;  %v1315_v17 = vmul.f32 0.020408163, %v12116_v61 }
 0x226   :  { %v6696_v48 = vpop.xlane.xlu2 %1048  ;;  %v6698_v41 = vpop.xlane.xlu1 %1045  ;;  %v6727_v4 = vadd.f32 1e-05, %v1312_v11  ;;  %12108 = vst [vmem:[#allocation11_spill] sm:$0xff] %v6733_v38  ;;  %v874_v26 = vmul.f32 %v766_v46, %v766_v46  ;;  %v4944_v46 = vld [vmem:[%s11658_s0 + $0x358] sm:$0xff] }
 0x227   :  { %12101 = vst [vmem:[#allocation136_spill] sm:$0xff] %v6696_v48  ;;  %v6703_v20 = vpop.xlane.xlu0 %1042  ;;  %v873_v51 = vmul.f32 %v765_v5, %v765_v5  ;;  %v770_v44 = vsub.f32 %v4944_v46, %v6730_v37  ;;  %v4945_v5 = vld [vmem:[%s11658_s0 + $0x350] sm:$0xff]  ;;  %v6771_v37 = vadd.f32 1e-05, %v1315_v17 }
 0x228   :  { %12102 = vst [vmem:[#allocation137_spill] sm:$0xff] %v6698_v41  ;;  %4671 = vrsqrt.f32 %v6727_v4  ;;  %v1188_v61 = vsel %vm122_vm0, %v874_v26, 0.0  ;;  %v12117_v41 = vld [vmem:[#allocation16_spill] sm:$0xff]  ;;  %vm1543_vm4 = vweird.f32 %v6727_v4 }
 0x229   :  { %12104 = vst [vmem:[#allocation139_spill] sm:$0xff] %v6703_v20  ;;  %v12109_v20 = vld [vmem:[#allocation38_spill] sm:$0xff]  ;;  %v1316_v9 = vmul.f32 0.020408163, %v12117_v41  ;;  %v1185_v46 = vsel %vm122_vm0, %v873_v51, 0.0  ;;  %vm1573_vm13 = vweird.f32 %v6771_v37 }
 0x22a   :  { %v1318_v7 = vmul.f32 0.020408163, %v12109_v20  ;;  %12113 = vst [vmem:[#allocation13_spill] sm:$0xff] %v6741_v32  ;;  %v1191_v20 = vsel %vm122_vm0, %v875_v29, 0.0  ;;  %v4946_v29 = vld [vmem:[%s11658_s0 + $0x348] sm:$0xff] }
 0x22b   :  { %1183 = vadd.xlane.f32.xlu2 %v1182_v8  ;;  %1180 = vadd.xlane.f32.xlu1 %v1179_v54  ;;  %v6785_v51 = vadd.f32 1e-05, %v1316_v9 }
 0x22c   :  { %1177 = vadd.xlane.f32.xlu0 %v1176_v28  ;;  %v12114_v28 = vld [vmem:[#allocation36_spill] sm:$0xff] }
 0x22d   :  { %v1314_v11 = vmul.f32 0.020408163, %v12114_v28  ;;  %v769_v28 = vsub.f32 %v4945_v5, %v6733_v38  ;;  %v12118_v5 = vld [vmem:[#allocation44_spill] sm:$0xff]  ;;  %v12122_v38 = vld [vmem:[#allocation37_spill] sm:$0xff] }
 0x22e   :  { %v6736_v8 = vpop.xlane.xlu2 %1057  ;;  %v6738_v54 = vpop.xlane.xlu1 %1054  ;;  %v1319_v42 = vmul.f32 0.020408163, %v12122_v38 }
 0x22f   :  { %12110 = vst [vmem:[#allocation38_spill] sm:$0xff] %v6736_v8  ;;  %v6744_v48 = vpop.xlane.xlu0 %1051  ;;  %v6750_v8 = vpop.eup %4667  ;;  %v6768_v49 = vadd.f32 1e-05, %v1314_v11  ;;  %v878_v11 = vmul.f32 %v770_v44, %v770_v44  ;;  %v12123_v44 = vld [vmem:[#allocation40_spill] sm:$0xff] }
 0x230   :  { %12111 = vst [vmem:[#allocation140_spill] sm:$0xff] %v6738_v54  ;;  %v768_v54 = vsub.f32 %v4946_v29, %v6741_v32  ;;  %v6775_v26 = vpop.eup %4669  ;;  %v1321_v29 = vmul.f32 0.020408163, %v12118_v5  ;;  %vm1534_vm5 = vweird.f32 %v6750_v8 }
 0x231   :  { %12115 = vst [vmem:[#allocation36_spill] sm:$0xff] %v6744_v48  ;;  %v6760_v48 = vadd.f32 1e-05, %v1318_v7  ;;  %v1528_v7 = vmul.f32 %v6750_v8, %v6706_v22  ;;  %v1548_v5 = vmul.f32 %v6775_v26, %v6724_v60  ;;  %v1200_v21 = vsel %vm122_vm0, %v878_v11, 0.0  ;;  %vm6876_vm7 = vmor %vm1533_vm2, %vm1534_vm5 }
 0x232   :  { %vm1554_vm3 = vweird.f32 %v6775_v26  ;;  %vm1563_vm8 = vweird.f32 %v6768_v49 }
 0x233   :  { %1192 = vadd.xlane.f32.xlu2 %v1191_v20  ;;  %1189 = vadd.xlane.f32.xlu1 %v1188_v61  ;;  %4673 = vrsqrt.f32 %v6760_v48  ;;  %v877_v20 = vmul.f32 %v769_v28, %v769_v28  ;;  %v6783_v61 = vpop.eup %4671  ;;  %v1317_v28 = vmul.f32 0.020408163, %v12123_v44  ;;  %v6806_v44 = vadd.f32 1e-05, %v1319_v42  ;;  %vm6909_vm11 = vmor %vm1553_vm1, %vm1554_vm3 }
 0x234   :  { %1186 = vadd.xlane.f32.xlu0 %v1185_v46  ;;  %4675 = vrsqrt.f32 %v6768_v49  ;;  %v876_v46 = vmul.f32 %v768_v54, %v768_v54  ;;  %v1538_v9 = vmul.f32 %v6783_v61, %v6727_v4  ;;  %v1549_v11 = vmul.f32 %v6775_v26, %v1548_v5 }
 0x235   :  { %4677 = vrsqrt.f32 %v6771_v37  ;;  %v1197_v54 = vsel %vm122_vm0, %v877_v20, 0.0  ;;  %v6811_v43 = vadd.f32 1e-05, %v1317_v28  ;;  %vm1544_vm6 = vweird.f32 %v6783_v61 }
 0x236   :  { %v6779_v32 = vpop.xlane.xlu2 %1066  ;;  %v6781_v41 = vpop.xlane.xlu1 %1063  ;;  %4679 = vrsqrt.f32 %v6785_v51  ;;  %v1194_v38 = vsel %vm122_vm0, %v876_v46, 0.0  ;;  %v1324_v46 = vmul.f32 0.020408163, %v6277_v27  ;;  %v1550_v27 = vmul.f32 0.5, %v1549_v11  ;;  %vm6923_vm12 = vmor %vm1543_vm4, %vm1544_vm6 }
 0x237   :  { %12119 = vst [vmem:[#allocation34_spill] sm:$0xff] %v6779_v32  ;;  %v6788_v17 = vpop.xlane.xlu0 %1060  ;;  %v1529_v32 = vmul.f32 %v6750_v8, %v1528_v7  ;;  %vm1603_vm10 = vweird.f32 %v6760_v48  ;;  %v1330_v4 = vmul.f32 0.020408163, %v6337_v2  ;;  %vm1583_vm4 = vweird.f32 %v6785_v51 }
 0x238   :  { %12120 = vst [vmem:[#allocation16_spill] sm:$0xff] %v6781_v41  ;;  %v6798_v41 = vadd.f32 1e-05, %v1321_v29  ;;  %vm1593_vm5 = vweird.f32 %v6811_v43 }
 0x239   :  { %12121 = vst [vmem:[#allocation44_spill] sm:$0xff] %v6788_v17  ;;  %v5055_v17 = vmov 0   ;;  %v6804_v7 = vpop.eup %4673  ;;  %v1530_v20 = vmul.f32 0.5, %v1529_v32 }
 0x23a   :  { %4664 = vset.pattern.permute.xlu0 %v5055_v17  ;;  %4666 = vset.pattern.permute.xlu2 %v5055_v17  ;;  %v6808_v29 = vpop.eup %4675  ;;  %4681 = vrsqrt.f32 %v6798_v41  ;;  %vm1604_vm14 = vweird.f32 %v6804_v7 }
 0x23b   :  { %1201 = vadd.xlane.f32.xlu2 %v1200_v21  ;;  %1198 = vadd.xlane.f32.xlu1 %v1197_v54  ;;  %v6813_v36 = vpop.eup %4677  ;;  %v1539_v21 = vmul.f32 %v6783_v61, %v1538_v9  ;;  %v1558_v28 = vmul.f32 %v6808_v29, %v6768_v49  ;;  %4683 = vrsqrt.f32 %v6806_v44  ;;  %v12128_v9 = vld [vmem:[#allocation46_spill] sm:$0xff]  ;;  %vm1564_vm9 = vweird.f32 %v6808_v29  ;;  %vm6973_vm2 = vmor %vm1603_vm10, %vm1604_vm14 }
 0x23c   :  { %1195 = vadd.xlane.f32.xlu0 %v1194_v38  ;;  %4665 = vset.pattern.permute.xlu1 %v5055_v17  ;;  %v1598_v17 = vmul.f32 %v6804_v7, %v6760_v48  ;;  %v12126_v38 = vld [vmem:[#allocation43_spill] sm:$0xff]  ;;  %v1320_v33 = vmul.f32 0.020408163, %v12128_v9  ;;  %v6831_v31 = vpop.eup %4679  ;;  %4685 = vrsqrt.f32 %v6811_v43  ;;  %vm1574_vm1 = vweird.f32 %v6813_v36  ;;  %vm6986_vm3 = vmor %vm1563_vm8, %vm1564_vm9 }
 0x23d   :  { %v1322_v5 = vmul.f32 0.020408163, %v12126_v38  ;;  %v1540_v30 = vmul.f32 0.5, %v1539_v21  ;;  %v6836_v38 = vadd.f32 1e-05, %v1324_v46  ;;  %v1578_v11 = vmul.f32 %v6831_v31, %v6785_v51 }
 0x23e   :  { %v6818_v54 = vpop.xlane.xlu2 %1075  ;;  %v6820_v42 = vpop.xlane.xlu1 %1072  ;;  %v6850_v21 = vadd.f32 1e-05, %v1320_v33  ;;  %v1551_v46 = vsub.f32 1.5, %v1550_v27  ;;  %vm1584_vm15 = vweird.f32 %v6831_v31  ;;  %vm1633_vm8 = vweird.f32 %v6798_v41 }
 0x23f   :  { %12124 = vst [vmem:[#allocation37_spill] sm:$0xff] %v6818_v54  ;;  %v6825_v32 = vpop.xlane.xlu0 %1069  ;;  %v1531_v54 = vsub.f32 1.5, %v1530_v20  ;;  %v6841_v45 = vadd.f32 1e-05, %v1322_v5  ;;  %v1559_v20 = vmul.f32 %v6808_v29, %v1558_v28  ;;  %v1541_v24 = vsub.f32 1.5, %v1540_v30 }
 0x240   :  { %12125 = vst [vmem:[#allocation40_spill] sm:$0xff] %v6820_v42  ;;  %v1568_v42 = vmul.f32 %v6813_v36, %v6771_v37  ;;  %v6843_v9 = vpop.eup %4681  ;;  %4687 = vrsqrt.f32 %v6836_v38  ;;  %v1325_v30 = vmul.f32 0.020408163, %v6275_v3  ;;  %v1552_v18 = vmul.f32 %v6775_v26, %v1551_v46 }
 0x241   :  { %12127 = vst [vmem:[#allocation43_spill] sm:$0xff] %v6825_v32  ;;  %v1599_v32 = vmul.f32 %v6804_v7, %v1598_v17  ;;  %v1532_v25 = vmul.f32 %v6750_v8, %v1531_v54  ;;  %v6855_v5 = vpop.eup %4683  ;;  %4689 = vrsqrt.f32 %v6841_v45  ;;  %vm1634_vm6 = vweird.f32 %v6843_v9 }
 0x242   :  { %v1569_v17 = vmul.f32 %v6813_v36, %v1568_v42  ;;  %v6864_v28 = vpop.eup %4685  ;;  %v1628_v42 = vmul.f32 %v6843_v9, %v6798_v41  ;;  %4691 = vrsqrt.f32 %v6850_v21  ;;  %vm1614_vm9 = vweird.f32 %v6855_v5 }
 0x243   :  { %v1600_v54 = vmul.f32 0.5, %v1599_v32  ;;  %v1560_v32 = vmul.f32 0.5, %v1559_v20  ;;  %v1536_v22 = vsel %vm6876_vm7, %v6750_v8, %v1532_v25  ;;  %v6897_v20 = vadd.f32 1e-05, %v1327_v40  ;;  %vm7023_vm7 = vmor %vm1573_vm13, %vm1574_vm1 }
 0x244   :  { %v1570_v3 = vmul.f32 0.5, %v1569_v17  ;;  %v1629_v25 = vmul.f32 %v6843_v9, %v1628_v42  ;;  %v6901_v8 = vadd.f32 1e-05, %v1325_v30  ;;  %vm1594_vm10 = vweird.f32 %v6864_v28  ;;  %vm7099_vm13 = vmor %vm1583_vm4, %vm1584_vm15 }
 0x245   :  { %v1601_v46 = vsub.f32 1.5, %v1600_v54  ;;  %v1561_v40 = vsub.f32 1.5, %v1560_v32  ;;  %v6915_v54 = vmul.f32 %v2607_v53, %v1536_v22  ;;  %v1556_v53 = vsel %vm6909_vm11, %v6775_v26, %v1552_v18  ;;  %vm7068_vm11 = vmor %vm1633_vm8, %vm1634_vm6 }
 0x246   :  { %v6860_v19 = vpop.xlane.xlu2 %1084  ;;  %v6862_v33 = vpop.xlane.xlu1 %1081  ;;  %v1571_v60 = vsub.f32 1.5, %v1570_v3  ;;  %4693 = vrsqrt.f32 %v6897_v20  ;;  %v1630_v22 = vmul.f32 0.5, %v1629_v25  ;;  %vm1623_vm14 = vweird.f32 %v6850_v21 }
 0x247   :  { %12129 = vst [vmem:[#allocation46_spill] sm:$0xff] %v6860_v19  ;;  %v6870_v27 = vpop.xlane.xlu0 %1078  ;;  %v1579_v19 = vmul.f32 %v6831_v31, %v1578_v11  ;;  %v1542_v11 = vmul.f32 %v6783_v61, %v1541_v24  ;;  %v6903_v17 = vpop.eup %4687  ;;  %v1602_v26 = vmul.f32 %v6804_v7, %v1601_v46  ;;  %4695 = vrsqrt.f32 %v6901_v8  ;;  %v2608_v24 = vld [vmem:[%s11659_s1 + $0x8] sm:$0xff] }
 0x248   :  { %12130 = vst [vmem:[#allocation141_spill] sm:$0xff] %v6862_v33  ;;  %v1323_v33 = vmul.f32 0.020408163, %v6282_v52  ;;  %v1588_v52 = vmul.f32 %v6864_v28, %v6811_v43  ;;  %v6917_v58 = vpop.eup %4689  ;;  %v1658_v2 = vmul.f32 %v6903_v17, %v6836_v38  ;;  %v1631_v48 = vsub.f32 1.5, %v1630_v22  ;;  %v2612_v43 = vld [vmem:[%s11659_s1 + $0x28] sm:$0xff] }
 0x249   :  { %12131 = vst [vmem:[#allocation142_spill] sm:$0xff] %v6870_v27  ;;  %v1608_v27 = vmul.f32 %v6855_v5, %v6806_v44  ;;  %v1580_v63 = vmul.f32 0.5, %v1579_v19  ;;  %v1546_v18 = vsel %vm6923_vm12, %v6783_v61, %v1542_v11  ;;  %v1326_v61 = vmul.f32 0.020408163, %v6312_v56  ;;  %v2610_v56 = vld [vmem:[%s11659_s1 + $0x18] sm:$0xff] }
 0x24a   :  { %v6913_v13 = vadd.f32 1e-05, %v1323_v33  ;;  %12136 = vst [vmem:[#allocation143_spill] sm:$0xff] %v6915_v54  ;;  %v6933_v33 = vpop.eup %4691  ;;  %v1589_v30 = vmul.f32 %v6864_v28, %v1588_v52  ;;  %v1638_v46 = vmul.f32 %v6917_v58, %v6841_v45  ;;  %v1632_v37 = vmul.f32 %v6843_v9, %v1631_v48 }
 0x24b   :  { %v1609_v19 = vmul.f32 %v6855_v5, %v1608_v27  ;;  %v2609_v27 = vld [vmem:[%s11659_s1 + $0x10] sm:$0xff]  ;;  %v1618_v25 = vmul.f32 %v6933_v33, %v6850_v21  ;;  %v7005_v22 = vadd.f32 1e-05, %v1326_v61  ;;  %vm1613_vm12 = vweird.f32 %v6806_v44  ;;  %v2615_v21 = vld [vmem:[%s11659_s1 + $0x40] sm:$0xff] }
 0x24c   :  { %4697 = vrsqrt.f32 %v6913_v13  ;;  %v6965_v42 = vmul.f32 %v2609_v27, %v1556_v53  ;;  %v1572_v53 = vmul.f32 %v6813_v36, %v1571_v60  ;;  %v2614_v60 = vld [vmem:[%s11659_s1 + $0x38] sm:$0xff]  ;;  %vm1664_vm1 = vweird.f32 %v6903_v17  ;;  %vm7192_vm8 = vmor %vm1613_vm12, %vm1614_vm9 }
 0x24d   :  { %v1610_v11 = vmul.f32 0.5, %v1609_v19  ;;  %v6979_v19 = vmul.f32 %v2608_v24, %v1546_v18  ;;  %v1328_v18 = vmul.f32 0.020408163, %v6305_v15  ;;  %v1619_v24 = vmul.f32 %v6933_v33, %v1618_v25 }
 0x24e   :  { %v6938_v32 = vpop.xlane.xlu2 %1093  ;;  %v6940_v3 = vpop.xlane.xlu1 %1090  ;;  %12141 = vst [vmem:[#allocation146_spill] sm:$0xff] %v6965_v42  ;;  %vm1663_vm15 = vweird.f32 %v6836_v38  ;;  %vm1624_vm4 = vweird.f32 %v6933_v33  ;;  %vm1643_vm6 = vweird.f32 %v6841_v45 }
 0x24f   :  { %12139 = vst [vmem:[#allocation144_spill] sm:$0xff] %v6938_v32  ;;  %v6952_v52 = vpop.xlane.xlu0 %1087  ;;  %v1581_v32 = vsub.f32 1.5, %v1580_v63  ;;  %v1590_v63 = vmul.f32 0.5, %v1589_v30  ;;  %v1606_v30 = vsel %vm6973_vm2, %v6804_v7, %v1602_v26  ;;  %v1620_v48 = vmul.f32 0.5, %v1619_v24  ;;  %vm7113_vm2 = vmor %vm1593_vm5, %vm1594_vm10 }
 0x250   :  { %12140 = vst [vmem:[#allocation145_spill] sm:$0xff] %v6940_v3  ;;  %v1562_v3 = vmul.f32 %v6808_v29, %v1561_v40  ;;  %3149 = vperm.xlu0 %4664, %v6915_v54   ;;  %v6977_v40 = vadd.f32 1e-05, %v1330_v4  ;;  %v1659_v54 = vmul.f32 %v6903_v17, %v1658_v2  ;;  %v6998_v4 = vpop.eup %4693  ;;  %v1611_v2 = vsub.f32 1.5, %v1610_v11  ;;  %vm7162_vm5 = vmor %vm1663_vm15, %vm1664_vm1 }
 0x251   :  { %12144 = vst [vmem:[#allocation147_spill] sm:$0xff] %v6979_v19  ;;  %v7001_v49 = vmul.f32 %v6831_v31, %v1581_v32  ;;  %v7011_v26 = vpop.eup %4695  ;;  %v1639_v32 = vmul.f32 %v6917_v58, %v1638_v46  ;;  %v7033_v25 = vmul.f32 %v2614_v60, %v1606_v30  ;;  %v2611_v30 = vld [vmem:[%s11659_s1 + $0x20] sm:$0xff]  ;;  %vm1653_vm10 = vweird.f32 %v6913_v13 }
 0x252   :  { %v1566_v7 = vsel %vm6986_vm3, %v6808_v29, %v1562_v3  ;;  %v7017_v15 = vpop.eup %4697  ;;  %v1591_v29 = vsub.f32 1.5, %v1590_v63  ;;  %4699 = vrsqrt.f32 %v6977_v40  ;;  %v1333_v3 = vmul.f32 0.020408163, %v6367_v39 }
 0x253   :  { %3159 = vperm.xlu2 %4666, %v6965_v42   ;;  %12149 = vst [vmem:[#allocation148_spill] sm:$0xff] %v7033_v25  ;;  %v1660_v27 = vmul.f32 0.5, %v1659_v54  ;;  %v1688_v63 = vmul.f32 %v6998_v4, %v6897_v20  ;;  %v1576_v39 = vsel %vm7023_vm7, %v6813_v36, %v1572_v53  ;;  %v1668_v60 = vmul.f32 %v7011_v26, %v6901_v8 }
 0x254   :  { %3154 = vperm.xlu1 %4665, %v6979_v19   ;;  %v7051_v19 = vadd.f32 1e-05, %v1328_v18  ;;  %4701 = vrsqrt.f32 %v7005_v22  ;;  %v1329_v54 = vmul.f32 0.020408163, %v6342_v35  ;;  %v1648_v36 = vmul.f32 %v7017_v15, %v6913_v13  ;;  %v2618_v13 = vld [vmem:[%s11659_s1 + $0x58] sm:$0xff] }
 0x255   :  { %v7059_v53 = vmul.f32 %v2610_v56, %v1566_v7  ;;  %v7062_v61 = vmul.f32 %v6855_v5, %v1611_v2  ;;  %v7072_v41 = vadd.f32 1e-05, %v1333_v3  ;;  %v7074_v18 = vmul.f32 %v2611_v30, %v1576_v39 }
 0x256   :  { %v7029_v11 = vpop.xlane.xlu2 %1102  ;;  %v7031_v46 = vpop.xlane.xlu1 %1099  ;;  %v1592_v7 = vmul.f32 %v6864_v28, %v1591_v29  ;;  %v1661_v24 = vsub.f32 1.5, %v1660_v27  ;;  %v1689_v2 = vmul.f32 %v6998_v4, %v1688_v63  ;;  %v1636_v56 = vsel %vm7068_vm11, %v6843_v9, %v1632_v37  ;;  %vm7206_vm11 = vmor %vm1623_vm14, %vm1624_vm4 }
 0x257   :  { %v7041_v42 = vpop.xlane.xlu0 %1096  ;;  %12151 = vst [vmem:[#allocation150_spill] sm:$0xff] %v7059_v53  ;;  %v7088_v3 = vmul.f32 0.5, %v1639_v32  ;;  %v1669_v29 = vmul.f32 %v7011_v26, %v1668_v60  ;;  %4703 = vrsqrt.f32 %v7051_v19  ;;  %v7092_v27 = vadd.f32 1e-05, %v1329_v54 }
 0x258   :  { %12150 = vst [vmem:[#allocation149_spill] sm:$0xff] %v7041_v42  ;;  %3184 = vperm.xlu0 %4664, %v7033_v25   ;;  %v2617_v25 = vld [vmem:[%s11659_s1 + $0x50] sm:$0xff]  ;;  %v7085_v42 = vpop.eup %4699  ;;  %v1621_v37 = vsub.f32 1.5, %v1620_v48  ;;  %v1649_v32 = vmul.f32 %v7017_v15, %v1648_v36  ;;  %v1331_v63 = vmul.f32 0.020408163, %v6335_v14  ;;  %4705 = vrsqrt.f32 %v7072_v41 }
 0x259   :  { %12154 = vst [vmem:[#allocation151_spill] sm:$0xff] %v7074_v18  ;;  %v1336_v30 = vmul.f32 0.020408163, %v6397_v50  ;;  %v7123_v48 = vmul.f32 %v2617_v25, %v1636_v56  ;;  %v1586_v14 = vsel %vm7099_vm13, %v6831_v31, %v7001_v49  ;;  %v1662_v36 = vmul.f32 %v6903_v17, %v1661_v24  ;;  %v2613_v31 = vld [vmem:[%s11659_s1 + $0x30] sm:$0xff] }
 0x25a   :  { %v7107_v39 = vpop.eup %4701  ;;  %v1690_v35 = vmul.f32 0.5, %v1689_v2  ;;  %v1718_v50 = vmul.f32 %v7085_v42, %v6977_v40  ;;  %v1596_v25 = vsel %vm7113_vm2, %v6864_v28, %v1592_v7  ;;  %v7143_v49 = vmul.f32 0.5, %v1669_v29 }
 0x25b   :  { %3164 = vperm.xlu2 %4666, %v7059_v53   ;;  %12159 = vst [vmem:[#allocation152_spill] sm:$0xff] %v7123_v48  ;;  %4707 = vrsqrt.f32 %v7092_v27  ;;  %v1332_v24 = vmul.f32 0.020408163, %v6372_v57  ;;  %v1650_v2 = vmul.f32 0.5, %v1649_v32  ;;  %v1678_v56 = vmul.f32 %v7107_v39, %v7005_v22 }
 0x25c   :  { %3169 = vperm.xlu1 %4665, %v7074_v18   ;;  %v7151_v9 = vadd.f32 1e-05, %v1331_v63  ;;  %v7153_v28 = vmul.f32 %v2612_v43, %v1586_v14  ;;  %v1641_v29 = vsub.f32 1.5, %v7088_v3  ;;  %vm1644_vm3 = vweird.f32 %v6917_v58  ;;  %v2620_v43 = vld [vmem:[%s11659_s1 + $0x68] sm:$0xff] }
 0x25d   :  { %v7155_v7 = vpop.eup %4703  ;;  %v7166_v38 = vadd.f32 1e-05, %v1336_v30  ;;  %v7168_v32 = vmul.f32 %v2613_v31, %v1596_v25  ;;  %v1622_v63 = vmul.f32 %v6933_v33, %v1621_v37  ;;  %v1691_v51 = vsub.f32 1.5, %v1690_v35  ;;  %vm7288_vm2 = vmor %vm1643_vm6, %vm1644_vm3  ;;  %v12250_v18 = vld [vmem:[#allocation115_spill] sm:$0xff] }
 0x25e   :  { %v7119_v60 = vpop.xlane.xlu2 %1111  ;;  %v7121_v54 = vpop.xlane.xlu1 %1108  ;;  %12160 = vst [vmem:[#allocation153_spill] sm:$0xff] %v7153_v28  ;;  %v1719_v14 = vmul.f32 %v7085_v42, %v1718_v50  ;;  %v1666_v3 = vsel %vm7162_vm5, %v6903_v17, %v1662_v36  ;;  %v1671_v30 = vsub.f32 1.5, %v7143_v49  ;;  %vm1693_vm7 = vweird.f32 %v6897_v20  ;;  %v2623_v20 = vld [vmem:[%s11659_s1 + $0x80] sm:$0xff] }
 0x25f   :  { %v7135_v53 = vpop.xlane.xlu0 %1105  ;;  %12163 = vst [vmem:[#allocation154_spill] sm:$0xff] %v7168_v32  ;;  %v7184_v37 = vadd.f32 1e-05, %v1332_v24  ;;  %v1339_v35 = vmul.f32 0.020408163, %v6427_v16  ;;  %v1651_v36 = vsub.f32 1.5, %v1650_v2  ;;  %v1679_v50 = vmul.f32 %v7107_v39, %v1678_v56 }
 0x260   :  { %3199 = vperm.xlu0 %4664, %v7123_v48   ;;  %v7179_v48 = vpop.eup %4705  ;;  %4709 = vrsqrt.f32 %v7151_v9  ;;  %v1334_v25 = vmul.f32 0.020408163, %v6365_v10  ;;  %vm1694_vm9 = vweird.f32 %v6998_v4  ;;  %v7216_v24 = vmul.f32 %v2620_v43, %v1666_v3 }
 0x261   :  { %v7200_v16 = vpop.eup %4707  ;;  %4711 = vrsqrt.f32 %v7166_v38  ;;  %v1616_v10 = vsel %vm7192_vm8, %v6855_v5, %v7062_v61  ;;  %v1692_v2 = vmul.f32 %v6998_v4, %v1691_v51  ;;  %v1720_v56 = vmul.f32 0.5, %v1719_v14  ;;  %v2616_v5 = vld [vmem:[%s11659_s1 + $0x48] sm:$0xff]  ;;  %vm7256_vm14 = vmor %vm1693_vm7, %vm1694_vm9 }
 0x262   :  { %12168 = vst [vmem:[#allocation155_spill] sm:$0xff] %v7216_v24  ;;  %v1748_v57 = vmul.f32 %v7179_v48, %v7072_v41  ;;  %v1626_v3 = vsel %vm7206_vm11, %v6933_v33, %v1622_v63  ;;  %v1698_v61 = vmul.f32 %v7155_v7, %v7051_v19  ;;  %4713 = vrsqrt.f32 %v7184_v37 }
 0x263   :  { %3174 = vperm.xlu2 %4666, %v7153_v28   ;;  %v1335_v51 = vmul.f32 0.020408163, %v6402_v34  ;;  %v7240_v14 = vadd.f32 1e-05, %v1339_v35  ;;  %v1680_v43 = vmul.f32 0.5, %v1679_v50  ;;  %v1708_v17 = vmul.f32 %v7200_v16, %v7092_v27 }
 0x264   :  { %3179 = vperm.xlu1 %4665, %v7168_v32   ;;  %v7245_v33 = vadd.f32 1e-05, %v1334_v25  ;;  %v7247_v63 = vmul.f32 %v2615_v21, %v1616_v10  ;;  %v1642_v44 = vmul.f32 %v6917_v58, %v1641_v29  ;;  %vm1674_vm12 = vweird.f32 %v7011_v26 }
 0x265   :  { %vm1654_vm13 = vweird.f32 %v7017_v15  ;;  %v7260_v35 = vmul.f32 %v2616_v5, %v1626_v3  ;;  %v1652_v25 = vmul.f32 %v7017_v15, %v1651_v36  ;;  %v1721_v10 = vsub.f32 1.5, %v1720_v56 }
 0x266   :  { %v7212_v31 = vpop.xlane.xlu2 %1120  ;;  %v7214_v49 = vpop.xlane.xlu1 %1117  ;;  %12169 = vst [vmem:[#allocation156_spill] sm:$0xff] %v7247_v63  ;;  %v1749_v29 = vmul.f32 %v7179_v48, %v1748_v57  ;;  %v1696_v21 = vsel %vm7256_vm14, %v6998_v4, %v1692_v2  ;;  %v7276_v3 = vmul.f32 %v7011_v26, %v1671_v30  ;;  %vm1673_vm1 = vweird.f32 %v6901_v8  ;;  %vm7302_vm5 = vmor %vm1653_vm10, %vm1654_vm13 }
 0x267   :  { %v7228_v32 = vpop.xlane.xlu0 %1114  ;;  %12172 = vst [vmem:[#allocation157_spill] sm:$0xff] %v7260_v35  ;;  %v7262_v50 = vpop.eup %4709  ;;  %v1699_v36 = vmul.f32 %v7155_v7, %v1698_v61  ;;  %v7280_v56 = vadd.f32 1e-05, %v1335_v51  ;;  %4715 = vrsqrt.f32 %v7240_v14  ;;  %v1681_v30 = vsub.f32 1.5, %v1680_v43  ;;  %vm7377_vm11 = vmor %vm1673_vm1, %vm1674_vm12 }
 0x268   :  { %3214 = vperm.xlu0 %4664, %v7216_v24   ;;  %v7273_v24 = vpop.eup %4711  ;;  %vm1683_vm15 = vweird.f32 %v7005_v22  ;;  %vm1723_vm4 = vweird.f32 %v6977_v40  ;;  %v1709_v2 = vmul.f32 %v7200_v16, %v1708_v17  ;;  %4717 = vrsqrt.f32 %v7245_v33  ;;  %v2621_v22 = vld [vmem:[%s11659_s1 + $0x70] sm:$0xff] }
 0x269   :  { %v7296_v57 = vpop.eup %4713  ;;  %vm1724_vm3 = vweird.f32 %v7085_v42  ;;  %v1342_v5 = vmul.f32 0.020408163, %v6457_v62  ;;  %v7312_v43 = vmul.f32 %v2623_v20, %v1696_v21  ;;  %v1646_v17 = vsel %vm7288_vm2, %v6917_v58, %v1642_v44  ;;  %v2619_v58 = vld [vmem:[%s11659_s1 + $0x60] sm:$0xff] }
 0x26a   :  { %v1722_v34 = vmul.f32 %v7085_v42, %v1721_v10  ;;  %v1778_v62 = vmul.f32 %v7273_v24, %v7166_v38  ;;  %v1656_v21 = vsel %vm7302_vm5, %v7017_v15, %v1652_v25  ;;  %v1700_v44 = vmul.f32 0.5, %v1699_v36  ;;  %vm7349_vm8 = vmor %vm1723_vm4, %vm1724_vm3 }
 0x26b   :  { %3189 = vperm.xlu2 %4666, %v7247_v63   ;;  %12177 = vst [vmem:[#allocation158_spill] sm:$0xff] %v7312_v43  ;;  %v1728_v20 = vmul.f32 %v7262_v50, %v7151_v9  ;;  %v1337_v10 = vmul.f32 0.020408163, %v6395_v47  ;;  %4719 = vrsqrt.f32 %v7280_v56  ;;  %v1738_v4 = vmul.f32 %v7296_v57, %v7184_v37 }
 0x26c   :  { %3194 = vperm.xlu1 %4665, %v7260_v35   ;;  %v1750_v35 = vmul.f32 0.5, %v1749_v29  ;;  %v1710_v29 = vmul.f32 0.5, %v1709_v2  ;;  %v1338_v15 = vmul.f32 0.020408163, %v6432_v23  ;;  %v7339_v25 = vmul.f32 %v2618_v13, %v1646_v17 }
 0x26d   :  { %v7341_v45 = vpop.eup %4715  ;;  %vm1704_vm6 = vweird.f32 %v7155_v7  ;;  %vm1684_vm7 = vweird.f32 %v7107_v39  ;;  %v7353_v36 = vadd.f32 1e-05, %v1342_v5  ;;  %v7355_v2 = vmul.f32 %v2619_v58, %v1656_v21  ;;  %v2626_v5 = vld [vmem:[%s11659_s1 + $0x98] sm:$0xff] }
 0x26e   :  { %v7308_v61 = vpop.xlane.xlu2 %1129  ;;  %v7310_v51 = vpop.xlane.xlu1 %1126  ;;  %12179 = vst [vmem:[#allocation160_spill] sm:$0xff] %v7339_v25  ;;  %v1682_v17 = vmul.f32 %v7107_v39, %v1681_v30  ;;  %v1751_v13 = vsub.f32 1.5, %v1750_v35  ;;  %v1726_v40 = vsel %vm7349_vm8, %v7085_v42, %v1722_v34  ;;  %v1701_v28 = vsub.f32 1.5, %v1700_v44  ;;  %vm7392_vm9 = vmor %vm1683_vm15, %vm1684_vm7 }
 0x26f   :  { %v7323_v63 = vpop.xlane.xlu0 %1123  ;;  %12182 = vst [vmem:[#allocation161_spill] sm:$0xff] %v7355_v2  ;;  %v7357_v23 = vpop.eup %4717  ;;  %v1729_v21 = vmul.f32 %v7262_v50, %v1728_v20  ;;  %vm1753_vm10 = vweird.f32 %v7072_v41  ;;  %v7370_v58 = vadd.f32 1e-05, %v1337_v10  ;;  %v1711_v42 = vsub.f32 1.5, %v1710_v29 }
 0x270   :  { %12178 = vst [vmem:[#allocation159_spill] sm:$0xff] %v7323_v63  ;;  %3229 = vperm.xlu0 %4664, %v7312_v43   ;;  %v1779_v43 = vmul.f32 %v7273_v24, %v1778_v62  ;;  %v1739_v30 = vmul.f32 %v7296_v57, %v1738_v4  ;;  %v1808_v34 = vmul.f32 %v7341_v45, %v7240_v14  ;;  %v7384_v62 = vadd.f32 1e-05, %v1338_v15 }
 0x271   :  { %v7386_v44 = vpop.eup %4719  ;;  %4721 = vrsqrt.f32 %v7353_v36  ;;  %v1345_v20 = vmul.f32 0.020408163, %v6487_v6  ;;  %v7400_v29 = vmul.f32 %v2626_v5, %v1726_v40  ;;  %v1676_v4 = vsel %vm7377_vm11, %v7011_v26, %v7276_v3  ;;  %v2622_v40 = vld [vmem:[%s11659_s1 + $0x78] sm:$0xff] }
 0x272   :  { %v1752_v15 = vmul.f32 %v7179_v48, %v1751_v13  ;;  %vm1754_vm12 = vweird.f32 %v7179_v48  ;;  %v1780_v47 = vmul.f32 0.5, %v1779_v43  ;;  %v1686_v6 = vsel %vm7392_vm9, %v7107_v39, %v1682_v17 }
 0x273   :  { %3204 = vperm.xlu2 %4666, %v7339_v25   ;;  %12188 = vst [vmem:[#allocation163_spill] sm:$0xff] %v7400_v29  ;;  %v1730_v26 = vmul.f32 0.5, %v1729_v21  ;;  %v1758_v3 = vmul.f32 %v7357_v23, %v7245_v33  ;;  %4723 = vrsqrt.f32 %v7370_v58  ;;  %v1340_v13 = vmul.f32 0.020408163, %v6425_v55  ;;  %vm7436_vm13 = vmor %vm1753_vm10, %vm1754_vm12 }
 0x274   :  { %3209 = vperm.xlu1 %4665, %v7355_v2   ;;  %v1740_v43 = vmul.f32 0.5, %v1739_v30  ;;  %v1768_v39 = vmul.f32 %v7386_v44, %v7280_v56  ;;  %4725 = vrsqrt.f32 %v7384_v62  ;;  %v7429_v17 = vmul.f32 %v2621_v22, %v1676_v4 }
 0x275   :  { %v1702_v21 = vmul.f32 %v7155_v7, %v1701_v28  ;;  %v1809_v35 = vmul.f32 %v7341_v45, %v1808_v34  ;;  %v7441_v30 = vadd.f32 1e-05, %v1345_v20  ;;  %v7443_v8 = vmul.f32 %v2622_v40, %v1686_v6  ;;  %v2629_v28 = vld [vmem:[%s11659_s1 + $0xb0] sm:$0xff] }
 0x276   :  { %v7398_v10 = vpop.xlane.xlu2 %1138  ;;  %v7423_v5 = vpop.xlane.xlu1 %1135  ;;  %12191 = vst [vmem:[#allocation166_spill] sm:$0xff] %v7429_v17  ;;  %vm1714_vm14 = vweird.f32 %v7200_v16  ;;  %v1781_v4 = vsub.f32 1.5, %v1780_v47  ;;  %v1756_v41 = vsel %vm7436_vm13, %v7179_v48, %v1752_v15  ;;  %vm1703_vm1 = vweird.f32 %v7051_v19 }
 0x277   :  { %12187 = vst [vmem:[#allocation162_spill] sm:$0xff] %v7398_v10  ;;  %v7411_v2 = vpop.xlane.xlu0 %1132  ;;  %v7454_v34 = vpop.eup %4721  ;;  %v1731_v20 = vsub.f32 1.5, %v1730_v26  ;;  %vm1733_vm2 = vweird.f32 %v7151_v9  ;;  %vm7462_vm15 = vmor %vm1703_vm1, %vm1704_vm6  ;;  %vm1713_vm4 = vweird.f32 %v7092_v27  ;;  %v1741_v48 = vsub.f32 1.5, %v1740_v43 }
 0x278   :  { %12189 = vst [vmem:[#allocation164_spill] sm:$0xff] %v7411_v2  ;;  %3244 = vperm.xlu0 %4664, %v7400_v29   ;;  %v1712_v29 = vmul.f32 %v7200_v16, %v1711_v42  ;;  %v1759_v42 = vmul.f32 %v7357_v23, %v1758_v3  ;;  %v1769_v15 = vmul.f32 %v7386_v44, %v1768_v39  ;;  %v7468_v47 = vadd.f32 1e-05, %v1340_v13  ;;  %vm7474_vm5 = vmor %vm1713_vm4, %vm1714_vm14  ;;  %v2624_v13 = vld [vmem:[%s11659_s1 + $0x88] sm:$0xff] }
 0x279   :  { %12190 = vst [vmem:[#allocation165_spill] sm:$0xff] %v7423_v5  ;;  %v7470_v19 = vpop.eup %4723  ;;  %v1810_v40 = vmul.f32 0.5, %v1809_v35  ;;  %4727 = vrsqrt.f32 %v7441_v30  ;;  %v7481_v3 = vmul.f32 %v2629_v28, %v1756_v41  ;;  %v1706_v27 = vsel %vm7462_vm15, %v7155_v7, %v1702_v21  ;;  %v2625_v7 = vld [vmem:[%s11659_s1 + $0x90] sm:$0xff] }
 0x27a   :  { %12194 = vst [vmem:[#allocation167_spill] sm:$0xff] %v7443_v8  ;;  %v7489_v43 = vpop.eup %4725  ;;  %v1782_v39 = vmul.f32 %v7273_v24, %v1781_v4  ;;  %vm1784_vm3 = vweird.f32 %v7273_v24  ;;  %v1838_v55 = vmul.f32 %v7454_v34, %v7353_v36  ;;  %v1716_v41 = vsel %vm7474_vm5, %v7200_v16, %v1712_v29 }
 0x27b   :  { %3219 = vperm.xlu2 %4666, %v7429_v17   ;;  %12200 = vst [vmem:[#allocation169_spill] sm:$0xff] %v7481_v3  ;;  %v1732_v21 = vmul.f32 %v7262_v50, %v1731_v20  ;;  %vm1734_vm6 = vweird.f32 %v7262_v50  ;;  %v1760_v4 = vmul.f32 0.5, %v1759_v42  ;;  %v1341_v28 = vmul.f32 0.020408163, %v6462_v59  ;;  %v12249_v17 = vld [vmem:[#allocation112_spill] sm:$0xff] }
 0x27c   :  { %3224 = vperm.xlu1 %4665, %v7443_v8   ;;  %v1788_v22 = vmul.f32 %v7470_v19, %v7370_v58  ;;  %vm1783_vm7 = vweird.f32 %v7166_v38  ;;  %v1770_v6 = vmul.f32 0.5, %v1769_v15  ;;  %v7510_v16 = vmul.f32 %v2624_v13, %v1706_v27  ;;  %vm7546_vm12 = vmor %vm1733_vm2, %vm1734_vm6 }
 0x27d   :  { %vm1744_vm8 = vweird.f32 %v7296_v57  ;;  %vm7515_vm10 = vmor %vm1783_vm7, %vm1784_vm3  ;;  %v1811_v20 = vsub.f32 1.5, %v1810_v40  ;;  %v1798_v59 = vmul.f32 %v7489_v43, %v7384_v62  ;;  %v1742_v38 = vmul.f32 %v7296_v57, %v1741_v48  ;;  %v2632_v40 = vld [vmem:[%s11659_s1 + $0xc8] sm:$0xff] }
 0x27e   :  { %v7479_v26 = vpop.xlane.xlu2 %1147  ;;  %12202 = vst [vmem:[#allocation171_spill] sm:$0xff] %v7510_v16  ;;  %v7521_v42 = vpop.xlane.xlu1 %1144  ;;  %4729 = vrsqrt.f32 %v7468_v47  ;;  %v1839_v15 = vmul.f32 %v7454_v34, %v1838_v55  ;;  %v1786_v27 = vsel %vm7515_vm10, %v7273_v24, %v1782_v39  ;;  %vm1764_vm11 = vweird.f32 %v7357_v23 }
 0x27f   :  { %12199 = vst [vmem:[#allocation168_spill] sm:$0xff] %v7479_v26  ;;  %v7495_v35 = vpop.xlane.xlu0 %1141  ;;  %v7535_v13 = vpop.eup %4727  ;;  %vm1743_vm9 = vweird.f32 %v7184_v37  ;;  %v7539_v48 = vadd.f32 1e-05, %v1341_v28  ;;  %v1789_v39 = vmul.f32 %v7470_v19, %v1788_v22  ;;  %v1771_v55 = vsub.f32 1.5, %v1770_v6 }
 0x280   :  { %12201 = vst [vmem:[#allocation170_spill] sm:$0xff] %v7495_v35  ;;  %3259 = vperm.xlu0 %4664, %v7481_v3   ;;  %v7523_v3 = vmul.f32 %v2625_v7, %v1716_v41  ;;  %v1761_v41 = vsub.f32 1.5, %v1760_v4  ;;  %vm1814_vm13 = vweird.f32 %v7341_v45  ;;  %v1343_v7 = vmul.f32 0.020408163, %v6455_v1  ;;  %vm7555_vm14 = vmor %vm1743_vm9, %vm1744_vm8  ;;  %v2627_v1 = vld [vmem:[%s11659_s1 + $0xa0] sm:$0xff] }
 0x281   :  { %12205 = vst [vmem:[#allocation172_spill] sm:$0xff] %v7521_v42  ;;  %v1812_v4 = vmul.f32 %v7341_v45, %v1811_v20  ;;  %v1799_v9 = vmul.f32 %v7489_v43, %v1798_v59  ;;  %v7563_v29 = vmul.f32 %v2632_v40, %v1786_v27  ;;  %v1736_v22 = vsel %vm7546_vm12, %v7262_v50, %v1732_v21  ;;  %v2628_v27 = vld [vmem:[%s11659_s1 + $0xa8] sm:$0xff] }
 0x282   :  { %12206 = vst [vmem:[#allocation173_spill] sm:$0xff] %v7523_v3  ;;  %v1840_v6 = vmul.f32 0.5, %v1839_v15  ;;  %v1348_v20 = vmul.f32 0.020408163, %v6517_v12  ;;  %v1746_v59 = vsel %vm7555_vm14, %v7296_v57, %v1742_v38  ;;  %v1762_v50 = vmul.f32 %v7357_v23, %v1761_v41  ;;  %v12214_v38 = vld [vmem:[#allocation98_spill] sm:$0xff]  ;;  %v2640_v42 = vld [vmem:[%s11659_s1 + $0x108] sm:$0xff] }
 0x283   :  { %3234 = vperm.xlu2 %4666, %v7510_v16   ;;  %12212 = vst [vmem:[#allocation175_spill] sm:$0xff] %v7563_v29  ;;  %vm1813_vm1 = vweird.f32 %v7240_v14  ;;  %4731 = vrsqrt.f32 %v7539_v48  ;;  %v1346_v21 = vmul.f32 0.020408163, %v6485_v0  ;;  %v1790_v40 = vmul.f32 0.5, %v1789_v39 }
 0x284   :  { %3239 = vperm.xlu1 %4665, %v7523_v3   ;;  %v1868_v3 = vmul.f32 %v7535_v13, %v7441_v30  ;;  %v7587_v12 = vpop.eup %4729  ;;  %v7589_v57 = vadd.f32 1e-05, %v1343_v7  ;;  %v1344_v24 = vmul.f32 0.020408163, %v12214_v38  ;;  %v7592_v37 = vmul.f32 %v2627_v1, %v1736_v22  ;;  %vm7598_vm15 = vmor %vm1813_vm1, %vm1814_vm13  ;;  %v2635_v22 = vld [vmem:[%s11659_s1 + $0xe0] sm:$0xff] }
 0x285   :  { %v1772_v41 = vmul.f32 %v7386_v44, %v1771_v55  ;;  %vm1774_vm2 = vweird.f32 %v7386_v44  ;;  %v1800_v14 = vmul.f32 0.5, %v1799_v9  ;;  %v1841_v39 = vsub.f32 1.5, %v1840_v6 }
 0x286   :  { %v7561_v28 = vpop.xlane.xlu2 %1156  ;;  %12215 = vst [vmem:[#allocation98_spill] sm:$0xff] %v7592_v37  ;;  %v1869_v7 = vmul.f32 %v7535_v13, %v1868_v3  ;;  %v7605_v16 = vadd.f32 1e-05, %v1348_v20  ;;  %v1816_v55 = vsel %vm7598_vm15, %v7341_v45, %v1812_v4  ;;  %vm1763_vm4 = vweird.f32 %v7245_v33  ;;  %v12219_v3 = vld [vmem:[#allocation101_spill] sm:$0xff]  ;;  %v7620_v20 = vpop.xlane.xlu1 %1153 }
 0x287   :  { %12211 = vst [vmem:[#allocation174_spill] sm:$0xff] %v7561_v28  ;;  %v7584_v15 = vpop.xlane.xlu0 %1150  ;;  %v1818_v9 = vmul.f32 %v7587_v12, %v7468_v47  ;;  %v7617_v1 = vadd.f32 1e-05, %v1346_v21  ;;  %v1349_v6 = vmul.f32 0.020408163, %v12219_v3  ;;  %vm7625_vm5 = vmor %vm1763_vm4, %vm1764_vm11  ;;  %v1791_v4 = vsub.f32 1.5, %v1790_v40 }
 0x288   :  { %12213 = vst [vmem:[#allocation176_spill] sm:$0xff] %v7584_v15  ;;  %3274 = vperm.xlu0 %4664, %v7563_v29   ;;  %v7602_v29 = vmul.f32 %v2628_v27, %v1746_v59  ;;  %vm1773_vm3 = vweird.f32 %v7280_v56  ;;  %4733 = vrsqrt.f32 %v7589_v57  ;;  %v7631_v33 = vadd.f32 1e-05, %v1344_v24  ;;  %v2630_v24 = vld [vmem:[%s11659_s1 + $0xb8] sm:$0xff] }
 0x289   :  { %12220 = vst [vmem:[#allocation101_spill] sm:$0xff] %v7620_v20  ;;  %v7633_v59 = vpop.eup %4731  ;;  %vm7637_vm6 = vmor %vm1773_vm3, %vm1774_vm2  ;;  %v1801_v21 = vsub.f32 1.5, %v1800_v14  ;;  %vm1844_vm7 = vweird.f32 %v7454_v34  ;;  %v7644_v40 = vmul.f32 %v2635_v22, %v1816_v55  ;;  %v1766_v56 = vsel %vm7625_vm5, %v7357_v23, %v1762_v50  ;;  %v2631_v55 = vld [vmem:[%s11659_s1 + $0xc0] sm:$0xff]  ;;  %v12230_v22 = vld [vmem:[#allocation103_spill] sm:$0xff] }
 0x28a   :  { %12218 = vst [vmem:[#allocation177_spill] sm:$0xff] %v7602_v29  ;;  %v1842_v0 = vmul.f32 %v7454_v34, %v1841_v39  ;;  %v1870_v3 = vmul.f32 0.5, %v1869_v7  ;;  %4735 = vrsqrt.f32 %v7605_v16  ;;  %v1776_v14 = vsel %vm7637_vm6, %v7386_v44, %v1772_v41 }
 0x28b   :  { %3249 = vperm.xlu2 %4666, %v7592_v37   ;;  %12226 = vst [vmem:[#allocation179_spill] sm:$0xff] %v7644_v40  ;;  %vm1794_vm8 = vweird.f32 %v7470_v19  ;;  %v1819_v23 = vmul.f32 %v7587_v12, %v1818_v9  ;;  %4737 = vrsqrt.f32 %v7617_v1  ;;  %v7663_v50 = vadd.f32 1e-05, %v1349_v6 }
 0x28c   :  { %3254 = vperm.xlu1 %4665, %v7602_v29   ;;  %vm1843_vm10 = vweird.f32 %v7353_v36  ;;  %v1828_v39 = vmul.f32 %v7633_v59, %v7539_v48  ;;  %4739 = vrsqrt.f32 %v7631_v33  ;;  %v7670_v44 = vmul.f32 %v2630_v24, %v1766_v56 }
 0x28d   :  { %v1792_v41 = vmul.f32 %v7470_v19, %v1791_v4  ;;  %vm1804_vm11 = vweird.f32 %v7489_v43  ;;  %vm7676_vm9 = vmor %vm1843_vm10, %vm1844_vm7  ;;  %v1347_v9 = vmul.f32 0.020408163, %v12230_v22  ;;  %v7683_v6 = vmul.f32 %v2631_v55, %v1776_v14  ;;  %v12233_v4 = vld [vmem:[#allocation107_spill] sm:$0xff]  ;;  %v2638_v22 = vld [vmem:[%s11659_s1 + $0xf8] sm:$0xff] }
 0x28e   :  { %v7642_v38 = vpop.xlane.xlu2 %1165  ;;  %12227 = vst [vmem:[#allocation180_spill] sm:$0xff] %v7670_v44  ;;  %v7685_v45 = vpop.eup %4733  ;;  %v1802_v27 = vmul.f32 %v7489_v43, %v1801_v21  ;;  %v1871_v56 = vsub.f32 1.5, %v1870_v3  ;;  %v1351_v24 = vmul.f32 0.020408163, %v12233_v4  ;;  %vm1793_vm12 = vweird.f32 %v7370_v58  ;;  %v12242_v3 = vld [vmem:[#allocation109_spill] sm:$0xff] }
 0x28f   :  { %12225 = vst [vmem:[#allocation178_spill] sm:$0xff] %v7642_v38  ;;  %v7681_v36 = vpop.xlane.xlu0 %1159  ;;  %4741 = vrsqrt.f32 %v7663_v50  ;;  %vm7703_vm13 = vmor %vm1793_vm12, %vm1794_vm8  ;;  %v1820_v14 = vmul.f32 0.5, %v1819_v23  ;;  %vm1803_vm14 = vweird.f32 %v7384_v62  ;;  %vm1874_vm2 = vweird.f32 %v7535_v13  ;;  %v7720_v7 = vpop.xlane.xlu1 %1162 }
 0x290   :  { %3289 = vperm.xlu0 %4664, %v7644_v40   ;;  %12231 = vst [vmem:[#allocation103_spill] sm:$0xff] %v7681_v36  ;;  %v1846_v40 = vsel %vm7676_vm9, %v7454_v34, %v1842_v0  ;;  %v7699_v21 = vpop.eup %4735  ;;  %v1829_v34 = vmul.f32 %v7633_v59, %v1828_v39  ;;  %vm7713_vm1 = vmor %vm1803_vm14, %vm1804_vm11  ;;  %v7718_v55 = vadd.f32 1e-05, %v1347_v9  ;;  %v1796_v62 = vsel %vm7703_vm13, %v7470_v19, %v1792_v41  ;;  %v2633_v39 = vld [vmem:[%s11659_s1 + $0xd0] sm:$0xff]  ;;  %v12241_v9 = vld [vmem:[#allocation106_spill] sm:$0xff] }
 0x291   :  { %12232 = vst [vmem:[#allocation181_spill] sm:$0xff] %v7683_v6  ;;  %v7709_v0 = vpop.eup %4737  ;;  %v7724_v23 = vmul.f32 %v2638_v22, %v1846_v40  ;;  %v1352_v29 = vmul.f32 0.020408163, %v12241_v9  ;;  %v7736_v37 = vadd.f32 1e-05, %v1351_v24  ;;  %v1806_v40 = vsel %vm7713_vm1, %v7489_v43, %v1802_v27  ;;  %v2634_v19 = vld [vmem:[%s11659_s1 + $0xd8] sm:$0xff] }
 0x292   :  { %12238 = vst [vmem:[#allocation107_spill] sm:$0xff] %v7720_v7  ;;  %v1848_v41 = vmul.f32 %v7685_v45, %v7589_v57  ;;  %v1898_v22 = vmul.f32 %v7699_v21, %v7605_v16  ;;  %v1830_v24 = vmul.f32 0.5, %v1829_v34  ;;  %vm1873_vm15 = vweird.f32 %v7441_v30  ;;  %v12243_v9 = vld [vmem:[#allocation113_spill] sm:$0xff] }
 0x293   :  { %3264 = vperm.xlu2 %4666, %v7670_v44   ;;  %12240 = vst [vmem:[#allocation183_spill] sm:$0xff] %v7724_v23  ;;  %v1872_v44 = vmul.f32 %v7535_v13, %v1871_v56  ;;  %v1350_v56 = vmul.f32 0.020408163, %v12242_v3  ;;  %v1354_v58 = vmul.f32 0.020408163, %v12243_v9  ;;  %v7752_v43 = vmul.f32 %v2633_v39, %v1796_v62  ;;  %vm7760_vm4 = vmor %vm1873_vm15, %vm1874_vm2  ;;  %v2641_v9 = vld [vmem:[%s11659_s1 + $0x110] sm:$0xff] }
 0x294   :  { %3269 = vperm.xlu1 %4665, %v7683_v6   ;;  %v7732_v6 = vpop.eup %4739  ;;  %v1878_v8 = vmul.f32 %v7709_v0, %v7617_v1  ;;  %4743 = vrsqrt.f32 %v7718_v55  ;;  %v7767_v30 = vmul.f32 %v2634_v19, %v1806_v40  ;;  %v1821_v62 = vsub.f32 1.5, %v1820_v14 }
 0x295   :  { %12244 = vst [vmem:[#allocation106_spill] sm:$0xff] %v7752_v43  ;;  %v7754_v27 = vpop.eup %4741  ;;  %v1858_v34 = vmul.f32 %v7732_v6, %v7631_v33  ;;  %v7769_v39 = vadd.f32 1e-05, %v1352_v29  ;;  %4745 = vrsqrt.f32 %v7736_v37  ;;  %v1876_v3 = vsel %vm7760_vm4, %v7535_v13, %v1872_v44 }
 0x296   :  { %v7722_v4 = vpop.xlane.xlu2 %1174  ;;  %12247 = vst [vmem:[#allocation109_spill] sm:$0xff] %v7767_v30  ;;  %v1899_v40 = vmul.f32 %v7699_v21, %v1898_v22  ;;  %v7781_v19 = vadd.f32 1e-05, %v1350_v56  ;;  %v1831_v14 = vsub.f32 1.5, %v1830_v24  ;;  %v1355_v13 = vmul.f32 0.020408163, %v12249_v17 }
 0x297   :  { %12239 = vst [vmem:[#allocation182_spill] sm:$0xff] %v7722_v4  ;;  %v7783_v29 = vpop.xlane.xlu0 %1168  ;;  %v7789_v44 = vadd.f32 1e-05, %v1354_v58  ;;  %v1879_v25 = vmul.f32 %v7709_v0, %v1878_v8  ;;  %v1353_v22 = vmul.f32 0.020408163, %v12250_v18  ;;  %v7796_v4 = vmul.f32 %v2641_v9, %v1876_v3  ;;  %v12253_v24 = vld [vmem:[#allocation119_spill] sm:$0xff]  ;;  %v7806_v18 = vpop.xlane.xlu1 %1171 }
 0x298   :  { %3304 = vperm.xlu0 %4664, %v7724_v23   ;;  %v1849_v23 = vmul.f32 %v7685_v45, %v1848_v41  ;;  %12248 = vst [vmem:[#allocation113_spill] sm:$0xff] %v7783_v29  ;;  %v1859_v41 = vmul.f32 %v7732_v6, %v1858_v34  ;;  %vm1824_vm5 = vweird.f32 %v7587_v12  ;;  %4747 = vrsqrt.f32 %v7769_v39 }
 0x299   :  { %12252 = vst [vmem:[#allocation115_spill] sm:$0xff] %v7796_v4  ;;  %v1357_v17 = vmul.f32 0.020408163, %v12253_v24  ;;  %vm1834_vm3 = vweird.f32 %v7633_v59  ;;  %v1900_v8 = vmul.f32 0.5, %v1899_v40  ;;  %4749 = vrsqrt.f32 %v7781_v19 }
 0x29a   :  { %v7802_v58 = vpop.eup %4743  ;;  %v1850_v29 = vmul.f32 0.5, %v1849_v23  ;;  %12254 = vst [vmem:[#allocation119_spill] sm:$0xff] %v7806_v18  ;;  %v7813_v9 = vadd.f32 1e-05, %v1355_v13  ;;  %4751 = vrsqrt.f32 %v7789_v44  ;;  %vm1823_vm6 = vweird.f32 %v7468_v47 }
 0x29b   :  { %3279 = vperm.xlu2 %4666, %v7752_v43   ;;  %v1908_v43 = vmul.f32 %v7754_v27, %v7663_v50  ;;  %v7809_v34 = vpop.eup %4745  ;;  %v1880_v23 = vmul.f32 0.5, %v1879_v25  ;;  %v1860_v40 = vmul.f32 0.5, %v1859_v41  ;;  %v7817_v24 = vadd.f32 1e-05, %v1353_v22  ;;  %vm7821_vm7 = vmor %vm1823_vm6, %vm1824_vm5 }
 0x29c   :  { %3284 = vperm.xlu1 %4665, %v7767_v30   ;;  %v1822_v30 = vmul.f32 %v7587_v12, %v1821_v62  ;;  %v1832_v62 = vmul.f32 %v7633_v59, %v1831_v14  ;;  %vm1833_vm8 = vweird.f32 %v7539_v48  ;;  %v7828_v14 = vadd.f32 1e-05, %v1357_v17 }
 0x29d   :  { %v1909_v3 = vmul.f32 %v7754_v27, %v1908_v43  ;;  %v1888_v43 = vmul.f32 %v7802_v58, %v7718_v55  ;;  %v1851_v13 = vsub.f32 1.5, %v1850_v29  ;;  %vm1854_vm10 = vweird.f32 %v7685_v45  ;;  %vm7833_vm11 = vmor %vm1833_vm8, %vm1834_vm3  ;;  %v2636_v29 = vld [vmem:[%s11659_s1 + $0xe8] sm:$0xff] }
 0x29e   :  { %v7794_v56 = vpop.xlane.xlu2 %1183  ;;  %v1901_v47 = vsub.f32 1.5, %v1900_v8  ;;  %v1928_v41 = vmul.f32 %v7809_v34, %v7736_v37  ;;  %v1826_v48 = vsel %vm7821_vm7, %v7587_v12, %v1822_v30  ;;  %v7845_v22 = vpop.eup %4747  ;;  %4753 = vrsqrt.f32 %v7813_v9 }
 0x29f   :  { %12251 = vst [vmem:[#allocation112_spill] sm:$0xff] %v7794_v56  ;;  %v1910_v17 = vmul.f32 0.5, %v1909_v3  ;;  %v12259_v56 = vld [vmem:[#allocation118_spill] sm:$0xff]  ;;  %v1836_v8 = vsel %vm7833_vm11, %v7633_v59, %v1832_v62  ;;  %v7855_v12 = vpop.eup %4749  ;;  %vm1853_vm9 = vweird.f32 %v7589_v57  ;;  %v1881_v30 = vsub.f32 1.5, %v1880_v23  ;;  %v12260_v3 = vld [vmem:[#allocation121_spill] sm:$0xff]  ;;  %v7860_v15 = vpop.xlane.xlu0 %1177 }
 0x2a0   :  { %3319 = vperm.xlu0 %4664, %v7796_v4   ;;  %v1358_v36 = vmul.f32 0.020408163, %v12259_v56  ;;  %v2637_v4 = vld [vmem:[%s11659_s1 + $0xf0] sm:$0xff]  ;;  %v1861_v18 = vsub.f32 1.5, %v1860_v40  ;;  %4755 = vrsqrt.f32 %v7817_v24  ;;  %v1356_v38 = vmul.f32 0.020408163, %v12260_v3  ;;  %v7864_v25 = vpop.eup %4751  ;;  %vm7939_vm6 = vmor %vm1853_vm9, %vm1854_vm10 }
 0x2a1   :  { %12261 = vst [vmem:[#allocation118_spill] sm:$0xff] %v7860_v15  ;;  %vm1863_vm12 = vweird.f32 %v7631_v33  ;;  %vm1904_vm13 = vweird.f32 %v7699_v21  ;;  %v1889_v59 = vmul.f32 %v7802_v58, %v1888_v43  ;;  %4757 = vrsqrt.f32 %v7828_v14  ;;  %v12265_v43 = vld [vmem:[#allocation125_spill] sm:$0xff] }
 0x2a2   :  { %v7870_v62 = vmul.f32 %v2636_v29, %v1826_v48  ;;  %v1902_v23 = vmul.f32 %v7699_v21, %v1901_v47  ;;  %v1938_v40 = vmul.f32 %v7845_v22, %v7769_v39  ;;  %v1929_v3 = vmul.f32 %v7809_v34, %v1928_v41  ;;  %v7890_v29 = vpop.xlane.xlu1 %1180 }
 0x2a3   :  { %v1911_v15 = vsub.f32 1.5, %v1910_v17  ;;  %v1918_v7 = vmul.f32 %v7855_v12, %v7781_v19  ;;  %v7880_v28 = vadd.f32 1e-05, %v1358_v36  ;;  %v1360_v35 = vmul.f32 0.020408163, %v12265_v43  ;;  %12266 = vst [vmem:[#allocation125_spill] sm:$0xff] %v7890_v29 }
 0x2a4   :  { %12263 = vst [vmem:[#allocation184_spill] sm:$0xff] %v7870_v62  ;;  %3294 = vperm.xlu2 %4666, %v7870_v62   ;;  %v1852_v48 = vmul.f32 %v7685_v45, %v1851_v13  ;;  %vm1903_vm14 = vweird.f32 %v7605_v16  ;;  %v1958_v47 = vmul.f32 %v7864_v25, %v7789_v44  ;;  %v7888_v41 = vadd.f32 1e-05, %v1356_v38  ;;  %v7893_v17 = vpop.eup %4753  ;;  %v12273_v29 = vld [vmem:[#allocation127_spill] sm:$0xff] }
 0x2a5   :  { %v7896_v36 = vmul.f32 %v7709_v0, %v1881_v30  ;;  %vm1884_vm1 = vweird.f32 %v7709_v0  ;;  %vm1864_vm2 = vweird.f32 %v7732_v6  ;;  %vm7902_vm15 = vmor %vm1903_vm14, %vm1904_vm13  ;;  %v1890_v38 = vmul.f32 0.5, %v1889_v59 }
 0x2a6   :  { %v7862_v56 = vpop.xlane.xlu2 %1192  ;;  %v7906_v13 = vpop.eup %4755  ;;  %v1930_v43 = vmul.f32 0.5, %v1929_v3  ;;  %v1906_v30 = vsel %vm7902_vm15, %v7699_v21, %v1902_v23  ;;  %vm1883_vm4 = vweird.f32 %v7617_v1  ;;  %v7920_v59 = vmul.f32 %v7754_v27, %v1911_v15  ;;  %v12269_v3 = vld [vmem:[#allocation124_spill] sm:$0xff]  ;;  %vm7956_vm8 = vmor %vm1863_vm12, %vm1864_vm2 }
 0x2a7   :  { %12262 = vst [vmem:[#allocation121_spill] sm:$0xff] %v7862_v56  ;;  %v7876_v56 = vmul.f32 %v2637_v4, %v1836_v8  ;;  %v1862_v8 = vmul.f32 %v7732_v6, %v1861_v18  ;;  %v1939_v4 = vmul.f32 %v7845_v22, %v1938_v40  ;;  %v7916_v62 = vpop.eup %4757  ;;  %vm1894_vm5 = vweird.f32 %v7802_v58  ;;  %v7965_v2 = vpop.xlane.xlu0 %1186  ;;  %vm8012_vm2 = vmor %vm1883_vm4, %vm1884_vm1 }
 0x2a8   :  { %v1919_v18 = vmul.f32 %v7855_v12, %v1918_v7  ;;  %4759 = vrsqrt.f32 %v7880_v28  ;;  %v7925_v40 = vadd.f32 1e-05, %v1360_v35  ;;  %vm1933_vm3 = vweird.f32 %v7736_v37 }
 0x2a9   :  { %12264 = vst [vmem:[#allocation185_spill] sm:$0xff] %v7876_v56  ;;  %3299 = vperm.xlu1 %4665, %v7876_v56   ;;  %v2644_v56 = vld [vmem:[%s11659_s1 + $0x128] sm:$0xff]  ;;  %v1968_v21 = vmul.f32 %v7893_v17, %v7813_v9  ;;  %v1959_v23 = vmul.f32 %v7864_v25, %v1958_v47  ;;  %4761 = vrsqrt.f32 %v7888_v41  ;;  %v1361_v15 = vmul.f32 0.020408163, %v12269_v3  ;;  %v2639_v3 = vld [vmem:[%s11659_s1 + $0x100] sm:$0xff] }
 0x2aa   :  { %v1891_v7 = vsub.f32 1.5, %v1890_v38  ;;  %vm1893_vm7 = vweird.f32 %v7718_v55  ;;  %v1948_v47 = vmul.f32 %v7906_v13, %v7817_v24  ;;  %v1359_v20 = vmul.f32 0.020408163, %v12273_v29 }
 0x2ab   :  { %v7947_v26 = vmul.f32 %v2644_v56, %v1906_v30  ;;  %v7960_v38 = vmul.f32 0.5, %v1939_v4  ;;  %v1988_v29 = vmul.f32 %v7916_v62, %v7828_v14  ;;  %v12277_v56 = vld [vmem:[#allocation131_spill] sm:$0xff]  ;;  %v1920_v10 = vmul.f32 0.5, %v1919_v18  ;;  %vm8046_vm4 = vmor %vm1893_vm7, %vm1894_vm5 }
 0x2ac   :  { %v1363_v30 = vmul.f32 0.020408163, %v12277_v56  ;;  %12278 = vst [vmem:[#allocation131_spill] sm:$0xff] %v7965_v2  ;;  %4763 = vrsqrt.f32 %v7925_v40  ;;  %v1856_v33 = vsel %vm7939_vm6, %v7685_v45, %v1852_v48  ;;  %v1866_v4 = vsel %vm7956_vm8, %v7732_v6, %v1862_v8 }
 0x2ad   :  { %12274 = vst [vmem:[#allocation127_spill] sm:$0xff] %v7947_v26  ;;  %3334 = vperm.xlu0 %4664, %v7947_v26   ;;  %v1960_v56 = vmul.f32 0.5, %v1959_v23  ;;  %v7979_v2 = vadd.f32 1e-05, %v1361_v15  ;;  %v7981_v5 = vmul.f32 %v2639_v3, %v1856_v33  ;;  %vm1914_vm10 = vweird.f32 %v7754_v27  ;;  %v8000_v3 = vpop.xlane.xlu1 %1189 }
 0x2ae   :  { %v7933_v16 = vpop.xlane.xlu2 %1201  ;;  %v7983_v18 = vpop.eup %4759  ;;  %vm1934_vm11 = vweird.f32 %v7809_v34  ;;  %v1949_v35 = vmul.f32 %v7906_v13, %v1948_v47  ;;  %v7988_v45 = vadd.f32 1e-05, %v1359_v20  ;;  %v7990_v48 = vmul.f32 %v2640_v42, %v1866_v4  ;;  %12281 = vst [vmem:[#allocation188_spill] sm:$0xff] %v8000_v3 }
 0x2af   :  { %12270 = vst [vmem:[#allocation124_spill] sm:$0xff] %v7933_v16  ;;  %v1931_v16 = vsub.f32 1.5, %v1930_v43  ;;  %v1969_v43 = vmul.f32 %v7893_v17, %v1968_v21  ;;  %v7992_v6 = vpop.eup %4761  ;;  %v1892_v8 = vmul.f32 %v7802_v58, %v1891_v7  ;;  %vm1963_vm9 = vweird.f32 %v7789_v44  ;;  %3309 = vperm.xlu2 %4666, %v7981_v5   ;;  %vm1935_vm1 = vmor %vm1933_vm3, %vm1934_vm11  ;;  %v8071_v63 = vpop.xlane.xlu0 %1195  ;;  %v2646_v44 = vld [vmem:[%s11659_s1 + $0x138] sm:$0xff] }
 0x2b0   :  { %12279 = vst [vmem:[#allocation186_spill] sm:$0xff] %v7981_v5  ;;  %v1989_v23 = vmul.f32 %v7916_v62, %v1988_v29  ;;  %v7998_v15 = vadd.f32 1e-05, %v1363_v30  ;;  %vm1913_vm12 = vweird.f32 %v7663_v50  ;;  %v1941_v42 = vsub.f32 1.5, %v7960_v38  ;;  %v2647_v38 = vld [vmem:[%s11659_s1 + $0x140] sm:$0xff]  ;;  %v12289_v5 = vld [vmem:[#allocation137_spill] sm:$0xff] }
 0x2b1   :  { %12280 = vst [vmem:[#allocation187_spill] sm:$0xff] %v7990_v48  ;;  %v1932_v21 = vmul.f32 %v7809_v34, %v1931_v16  ;;  %v1921_v20 = vsub.f32 1.5, %v1920_v10  ;;  %vm1924_vm13 = vweird.f32 %v7855_v12  ;;  %vm1964_vm14 = vweird.f32 %v7864_v25  ;;  %3314 = vperm.xlu1 %4665, %v7990_v48   ;;  %v12284_v10 = vld [vmem:[#allocation130_spill] sm:$0xff]  ;;  %v2650_v50 = vld [vmem:[%s11659_s1 + $0x158] sm:$0xff] }
 0x2b2   :  { %vm1923_vm15 = vweird.f32 %v7781_v19  ;;  %v8017_v7 = vmul.f32 0.5, %v1969_v43  ;;  %v1961_v47 = vsub.f32 1.5, %v1960_v56  ;;  %4765 = vrsqrt.f32 %v7979_v2  ;;  %v8026_v1 = vpop.eup %4763  ;;  %v2642_v43 = vld [vmem:[%s11659_s1 + $0x118] sm:$0xff]  ;;  %v2643_v48 = vld [vmem:[%s11659_s1 + $0x120] sm:$0xff]  ;;  %vm8100_vm8 = vmor %vm1963_vm9, %vm1964_vm14 }
 0x2b3   :  { %v1364_v57 = vmul.f32 0.020408163, %v12284_v10  ;;  %v8032_v30 = vmul.f32 0.5, %v1949_v35  ;;  %v1998_v33 = vmul.f32 %v7983_v18, %v7880_v28  ;;  %v1978_v4 = vmul.f32 %v7992_v6, %v7888_v41  ;;  %v12288_v35 = vld [vmem:[#allocation133_spill] sm:$0xff]  ;;  %v2645_v19 = vld [vmem:[%s11659_s1 + $0x130] sm:$0xff] }
 0x2b4   :  { %4767 = vrsqrt.f32 %v7988_v45  ;;  %v1990_v56 = vmul.f32 0.5, %v1989_v23  ;;  %v1362_v10 = vmul.f32 0.020408163, %v12288_v35  ;;  %v1366_v26 = vmul.f32 0.020408163, %v12289_v5 }
 0x2b5   :  { %4769 = vrsqrt.f32 %v7998_v15  ;;  %v1886_v55 = vsel %vm8012_vm2, %v7709_v0, %v7896_v36  ;;  %v1896_v23 = vsel %vm8046_vm4, %v7802_v58, %v1892_v8  ;;  %v1962_v35 = vmul.f32 %v7864_v25, %v1961_v47  ;;  %vm8115_vm2 = vmor %vm1913_vm12, %vm1914_vm10 }
 0x2b6   :  { %v8024_v29 = vpop.permute.xlu2 %3159  ;;  %v8073_v5 = vmul.f32 %v2642_v43, %v1886_v55  ;;  %vm1944_vm5 = vweird.f32 %v7845_v22  ;;  %v1922_v0 = vmul.f32 %v7855_v12, %v1921_v20  ;;  %v1999_v58 = vmul.f32 %v7983_v18, %v1998_v33  ;;  %v8123_v43 = vpop.xlane.xlu1 %1198  ;;  %vm8137_vm10 = vmor %vm1923_vm15, %vm1924_vm13 }
 0x2b7   :  { %12285 = vst [vmem:[#allocation130_spill] sm:$0xff] %v8024_v29  ;;  %v1936_v29 = vsel %vm1935_vm1, %v7809_v34, %v1932_v21  ;;  %v2018_v34 = vmul.f32 %v8026_v1, %v7925_v40  ;;  %v8069_v21 = vadd.f32 1e-05, %v1364_v57  ;;  %v8082_v36 = vmul.f32 %v2643_v48, %v1896_v23 }
 0x2b8   :  { %v8057_v3 = vmul.f32 %v2647_v38, %v1936_v29  ;;  %12291 = vst [vmem:[#allocation137_spill] sm:$0xff] %v8073_v5  ;;  %v8076_v38 = vmul.f32 %v7845_v22, %v1941_v42  ;;  %v8084_v8 = vpop.eup %4765  ;;  %v1971_v16 = vsub.f32 1.5, %v8017_v7  ;;  %v1951_v47 = vsub.f32 1.5, %v8032_v30  ;;  %3324 = vperm.xlu2 %4666, %v8073_v5  }
 0x2b9   :  { %12292 = vst [vmem:[#allocation189_spill] sm:$0xff] %v8082_v36  ;;  %vm1954_vm3 = vweird.f32 %v7906_v13  ;;  %vm1993_vm6 = vweird.f32 %v7828_v14  ;;  %v8090_v42 = vadd.f32 1e-05, %v1362_v10  ;;  %vm1943_vm7 = vweird.f32 %v7769_v39  ;;  %3329 = vperm.xlu1 %4665, %v8082_v36  }
 0x2ba   :  { %12290 = vst [vmem:[#allocation133_spill] sm:$0xff] %v8057_v3  ;;  %3349 = vperm.xlu0 %4664, %v8057_v3   ;;  %v8093_v20 = vpop.eup %4767  ;;  %v1991_v7 = vsub.f32 1.5, %v1990_v56  ;;  %vm1994_vm11 = vweird.f32 %v7916_v62  ;;  %v1979_v57 = vmul.f32 %v7992_v6, %v1978_v4  ;;  %v8106_v29 = vadd.f32 1e-05, %v1366_v26  ;;  %v12297_v26 = vld [vmem:[#allocation136_spill] sm:$0xff] }
 0x2bb   :  { %v8109_v30 = vpop.eup %4769  ;;  %vm1953_vm9 = vweird.f32 %v7817_v24  ;;  %v2019_v33 = vmul.f32 %v8026_v1, %v2018_v34  ;;  %4771 = vrsqrt.f32 %v8069_v21  ;;  %v1367_v4 = vmul.f32 0.020408163, %v12297_v26  ;;  %vm8202_vm1 = vmor %vm1993_vm6, %vm1994_vm11  ;;  %v2648_v24 = vld [vmem:[%s11659_s1 + $0x148] sm:$0xff] }
 0x2bc   :  { %v1966_v37 = vsel %vm8100_vm8, %v7864_v25, %v1962_v35  ;;  %v8141_v55 = vmul.f32 0.5, %v1999_v58  ;;  %v2028_v23 = vmul.f32 %v8084_v8, %v7979_v2  ;;  %v12301_v25 = vld [vmem:[#allocation140_spill] sm:$0xff]  ;;  %v1916_v34 = vsel %vm8115_vm2, %v7754_v27, %v7920_v59  ;;  %v12302_v58 = vld [vmem:[#allocation139_spill] sm:$0xff]  ;;  %vm8216_vm8 = vmor %vm1943_vm7, %vm1944_vm5 }
 0x2bd   :  { %v1369_v35 = vmul.f32 0.020408163, %v12301_v25  ;;  %v2008_v48 = vmul.f32 %v8093_v20, %v7988_v45  ;;  %4773 = vrsqrt.f32 %v8090_v42  ;;  %v1365_v26 = vmul.f32 0.020408163, %v12302_v58  ;;  %vm8239_vm5 = vmor %vm1953_vm9, %vm1954_vm3 }
 0x2be   :  { %v8131_v56 = vpop.permute.xlu2 %3164  ;;  %v1926_v25 = vsel %vm8137_vm10, %v7855_v12, %v1922_v0  ;;  %v8163_v27 = vmul.f32 0.5, %v1979_v57  ;;  %v2048_v59 = vmul.f32 %v8109_v30, %v7998_v15  ;;  %4775 = vrsqrt.f32 %v8106_v29 }
 0x2bf   :  { %12298 = vst [vmem:[#allocation136_spill] sm:$0xff] %v8131_v56  ;;  %v8168_v56 = vmul.f32 %v2650_v50, %v1966_v37  ;;  %v1992_v36 = vmul.f32 %v7916_v62, %v1991_v7  ;;  %v2020_v58 = vmul.f32 0.5, %v2019_v33  ;;  %v8171_v5 = vadd.f32 1e-05, %v1367_v4 }
 0x2c0   :  { %v8173_v10 = vmul.f32 %v2645_v19, %v1916_v34  ;;  %v8178_v0 = vmul.f32 %v7893_v17, %v1971_v16  ;;  %vm1974_vm12 = vweird.f32 %v7893_v17  ;;  %v1952_v57 = vmul.f32 %v7906_v13, %v1951_v47  ;;  %v12310_v19 = vld [vmem:[#allocation38_spill] sm:$0xff] }
 0x2c1   :  { %v8182_v3 = vadd.f32 1e-05, %v1369_v35  ;;  %v8185_v37 = vmul.f32 %v2646_v44, %v1926_v25  ;;  %v8187_v7 = vpop.eup %4771  ;;  %vm1984_vm13 = vweird.f32 %v7992_v6  ;;  %v2029_v33 = vmul.f32 %v8084_v8, %v2028_v23  ;;  %v2653_v25 = vld [vmem:[%s11659_s1 + $0x170] sm:$0xff] }
 0x2c2   :  { %12303 = vst [vmem:[#allocation140_spill] sm:$0xff] %v8173_v10  ;;  %v8175_v12 = vpop.permute.xlu0 %3149  ;;  %3364 = vperm.xlu0 %4664, %v8168_v56   ;;  %vm2023_vm14 = vweird.f32 %v7925_v40  ;;  %v2009_v16 = vmul.f32 %v8093_v20, %v2008_v48  ;;  %v8193_v4 = vadd.f32 1e-05, %v1365_v26  ;;  %3339 = vperm.xlu2 %4666, %v8173_v10   ;;  %vm1973_vm15 = vweird.f32 %v7813_v9  ;;  %v2656_v9 = vld [vmem:[%s11659_s1 + $0x188] sm:$0xff] }
 0x2c3   :  { %12304 = vst [vmem:[#allocation139_spill] sm:$0xff] %v8175_v12  ;;  %v2001_v47 = vsub.f32 1.5, %v8141_v55  ;;  %v1981_v23 = vsub.f32 1.5, %v8163_v27  ;;  %vm2024_vm4 = vweird.f32 %v8026_v1  ;;  %v2049_v35 = vmul.f32 %v8109_v30, %v2048_v59  ;;  %3344 = vperm.xlu1 %4665, %v8185_v37   ;;  %v8210_v34 = vpop.eup %4773  ;;  %vm8319_vm10 = vmor %vm1973_vm15, %vm1974_vm12  ;;  %v2652_v40 = vld [vmem:[%s11659_s1 + $0x168] sm:$0xff] }
 0x2c4   :  { %12305 = vst [vmem:[#allocation190_spill] sm:$0xff] %v8185_v37  ;;  %vm1983_vm6 = vweird.f32 %v7888_v41  ;;  %v2021_v55 = vsub.f32 1.5, %v2020_v58  ;;  %4777 = vrsqrt.f32 %v8171_v5  ;;  %v1370_v48 = vmul.f32 0.020408163, %v12310_v19  ;;  %v8233_v27 = vpop.eup %4775  ;;  %vm8304_vm2 = vmor %vm2023_vm14, %vm2024_vm4  ;;  %v2651_v41 = vld [vmem:[%s11659_s1 + $0x160] sm:$0xff] }
 0x2c5   :  { %v1996_v26 = vsel %vm8202_vm1, %v7916_v62, %v1992_v36  ;;  %v2058_v62 = vmul.f32 %v8187_v7, %v8069_v21  ;;  %4779 = vrsqrt.f32 %v8182_v3  ;;  %v12315_v36 = vld [vmem:[#allocation36_spill] sm:$0xff]  ;;  %v1946_v50 = vsel %vm8216_vm8, %v7845_v22, %v8076_v38  ;;  %vm8341_vm12 = vmor %vm1983_vm6, %vm1984_vm13 }
 0x2c6   :  { %v8229_v39 = vpop.permute.xlu1 %3154  ;;  %v8231_v44 = vpop.permute.xlu2 %3174  ;;  %v1368_v58 = vmul.f32 0.020408163, %v12315_v36  ;;  %v8254_v19 = vmul.f32 0.5, %v2029_v33  ;;  %v8256_v12 = vmul.f32 0.5, %v2009_v16  ;;  %4781 = vrsqrt.f32 %v8193_v4  ;;  %v2649_v36 = vld [vmem:[%s11659_s1 + $0x150] sm:$0xff] }
 0x2c7   :  { %12311 = vst [vmem:[#allocation38_spill] sm:$0xff] %v8229_v39  ;;  %v2050_v14 = vmul.f32 0.5, %v2049_v35  ;;  %v2038_v22 = vmul.f32 %v8210_v34, %v8090_v42  ;;  %v12316_v38 = vld [vmem:[#allocation16_spill] sm:$0xff]  ;;  %v8268_v33 = vmul.f32 %v2653_v25, %v1996_v26  ;;  %v2022_v16 = vmul.f32 %v8026_v1, %v2021_v55 }
 0x2c8   :  { %12312 = vst [vmem:[#allocation191_spill] sm:$0xff] %v8231_v44  ;;  %v1956_v44 = vsel %vm8239_vm5, %v7906_v13, %v1952_v57  ;;  %v1372_v39 = vmul.f32 0.020408163, %v12316_v38  ;;  %v2078_v37 = vmul.f32 %v8233_v27, %v8106_v29  ;;  %v8273_v10 = vadd.f32 1e-05, %v1370_v48 }
 0x2c9   :  { %12317 = vst [vmem:[#allocation36_spill] sm:$0xff] %v8268_v33  ;;  %v8275_v13 = vmul.f32 %v2648_v24, %v1946_v50  ;;  %v8280_v35 = vmul.f32 %v7983_v18, %v2001_v47  ;;  %vm2004_vm3 = vweird.f32 %v7983_v18  ;;  %v2059_v59 = vmul.f32 %v8187_v7, %v2058_v62  ;;  %v12321_v47 = vld [vmem:[#allocation34_spill] sm:$0xff] }
 0x2ca   :  { %v8277_v57 = vpop.permute.xlu0 %3184  ;;  %v8284_v26 = vadd.f32 1e-05, %v1368_v58  ;;  %3379 = vperm.xlu0 %4664, %v8268_v33   ;;  %v8287_v55 = vmul.f32 %v2649_v36, %v1956_v44  ;;  %v8289_v25 = vpop.eup %4777  ;;  %v1982_v48 = vmul.f32 %v7992_v6, %v1981_v23  ;;  %v2031_v50 = vsub.f32 1.5, %v8254_v19 }
 0x2cb   :  { %12318 = vst [vmem:[#allocation16_spill] sm:$0xff] %v8275_v13  ;;  %v2011_v24 = vsub.f32 1.5, %v8256_v12  ;;  %vm2053_vm7 = vweird.f32 %v7998_v15  ;;  %v1373_v38 = vmul.f32 0.020408163, %v12321_v47  ;;  %3354 = vperm.xlu2 %4666, %v8275_v13   ;;  %v8297_v62 = vpop.eup %4779  ;;  %vm2003_vm11 = vweird.f32 %v7880_v28 }
 0x2cc   :  { %12319 = vst [vmem:[#allocation192_spill] sm:$0xff] %v8277_v57  ;;  %v2051_v44 = vsub.f32 1.5, %v2050_v14  ;;  %vm2054_vm9 = vweird.f32 %v8109_v30  ;;  %v2039_v12 = vmul.f32 %v8210_v34, %v2038_v22  ;;  %v8310_v58 = vadd.f32 1e-05, %v1372_v39  ;;  %3359 = vperm.xlu1 %4665, %v8287_v55   ;;  %v8313_v19 = vpop.eup %4781  ;;  %v12326_v39 = vld [vmem:[#allocation44_spill] sm:$0xff]  ;;  %vm8420_vm5 = vmor %vm2003_vm11, %vm2004_vm3 }
 0x2cd   :  { %12320 = vst [vmem:[#allocation193_spill] sm:$0xff] %v8287_v55  ;;  %vm2013_vm14 = vweird.f32 %v7988_v45  ;;  %v2079_v36 = vmul.f32 %v8233_v27, %v2078_v37  ;;  %4783 = vrsqrt.f32 %v8273_v10  ;;  %v1371_v14 = vmul.f32 0.020408163, %v12326_v39  ;;  %vm8408_vm8 = vmor %vm2053_vm7, %vm2054_vm9  ;;  %v2654_v45 = vld [vmem:[%s11659_s1 + $0x178] sm:$0xff] }
 0x2ce   :  { %v2026_v22 = vsel %vm8304_vm2, %v8026_v1, %v2022_v16  ;;  %v8333_v47 = vpop.permute.xlu1 %3169  ;;  %v8335_v57 = vpop.permute.xlu2 %3189  ;;  %v8345_v39 = vmul.f32 0.5, %v2059_v59  ;;  %v2088_v1 = vmul.f32 %v8289_v25, %v8171_v5  ;;  %4785 = vrsqrt.f32 %v8284_v26  ;;  %v12331_v59 = vld [vmem:[#allocation40_spill] sm:$0xff] }
 0x2cf   :  { %12327 = vst [vmem:[#allocation34_spill] sm:$0xff] %v8333_v47  ;;  %v1976_v16 = vsel %vm8319_vm10, %v7893_v17, %v8178_v0  ;;  %v2108_v23 = vmul.f32 %v8297_v62, %v8182_v3  ;;  %v1375_v47 = vmul.f32 0.020408163, %v12331_v59  ;;  %v1986_v55 = vsel %vm8341_vm12, %v7992_v6, %v1982_v48 }
 0x2d0   :  { %12328 = vst [vmem:[#allocation44_spill] sm:$0xff] %v8335_v57  ;;  %v8359_v57 = vadd.f32 1e-05, %v1373_v38  ;;  %v8368_v17 = vmul.f32 0.5, %v2039_v12  ;;  %v2068_v0 = vmul.f32 %v8313_v19, %v8193_v4  ;;  %4787 = vrsqrt.f32 %v8310_v58 }
 0x2d1   :  { %v8373_v13 = vmul.f32 %v2656_v9, %v2026_v22  ;;  %v2052_v38 = vmul.f32 %v8109_v30, %v2051_v44  ;;  %v2080_v59 = vmul.f32 0.5, %v2079_v36  ;;  %v8376_v33 = vadd.f32 1e-05, %v1371_v14 }
 0x2d2   :  { %v8378_v37 = vmul.f32 %v2651_v41, %v1976_v16  ;;  %v8380_v6 = vpop.permute.xlu0 %3199  ;;  %v8383_v48 = vmul.f32 %v8084_v8, %v2031_v50  ;;  %vm2034_vm13 = vweird.f32 %v8084_v8  ;;  %vm2014_vm15 = vweird.f32 %v8093_v20  ;;  %v12340_v16 = vld [vmem:[#allocation37_spill] sm:$0xff] }
 0x2d3   :  { %12332 = vst [vmem:[#allocation40_spill] sm:$0xff] %v8373_v13  ;;  %v2089_v12 = vmul.f32 %v8289_v25, %v2088_v1  ;;  %3394 = vperm.xlu0 %4664, %v8373_v13   ;;  %v8389_v22 = vmul.f32 %v2652_v40, %v1986_v55  ;;  %v8391_v44 = vpop.eup %4783  ;;  %v2012_v36 = vmul.f32 %v8093_v20, %v2011_v24  ;;  %vm2083_vm1 = vweird.f32 %v8106_v29  ;;  %v2659_v40 = vld [vmem:[%s11659_s1 + $0x1a0] sm:$0xff]  ;;  %vm8443_vm3 = vmor %vm2013_vm14, %vm2014_vm15 }
 0x2d4   :  { %12333 = vst [vmem:[#allocation194_spill] sm:$0xff] %v8378_v37  ;;  %v2109_v14 = vmul.f32 %v8297_v62, %v2108_v23  ;;  %4789 = vrsqrt.f32 %v8359_v57  ;;  %v8397_v50 = vadd.f32 1e-05, %v1375_v47  ;;  %3369 = vperm.xlu2 %4666, %v8378_v37   ;;  %v8400_v9 = vpop.eup %4785  ;;  %vm2033_vm4 = vweird.f32 %v7979_v2  ;;  %v2662_v2 = vld [vmem:[%s11659_s1 + $0x1b8] sm:$0xff] }
 0x2d5   :  { %12334 = vst [vmem:[#allocation195_spill] sm:$0xff] %v8380_v6  ;;  %v2061_v55 = vsub.f32 1.5, %v8345_v39  ;;  %v2041_v1 = vsub.f32 1.5, %v8368_v17  ;;  %vm2044_vm6 = vweird.f32 %v8210_v34  ;;  %v2069_v47 = vmul.f32 %v8313_v19, %v2068_v0  ;;  %3374 = vperm.xlu1 %4665, %v8389_v22   ;;  %vm8524_vm15 = vmor %vm2033_vm4, %vm2034_vm13 }
 0x2d6   :  { %12335 = vst [vmem:[#allocation196_spill] sm:$0xff] %v8389_v22  ;;  %vm2043_vm7 = vweird.f32 %v8090_v42  ;;  %v2081_v15 = vsub.f32 1.5, %v2080_v59  ;;  %4791 = vrsqrt.f32 %v8376_v33  ;;  %v1376_v41 = vmul.f32 0.020408163, %v12340_v16  ;;  %v8433_v28 = vpop.permute.xlu2 %3204  ;;  %v8435_v17 = vpop.permute.xlu1 %3179  ;;  %v2657_v42 = vld [vmem:[%s11659_s1 + $0x190] sm:$0xff] }
 0x2d7   :  { %v2056_v23 = vsel %vm8408_vm8, %v8109_v30, %v2052_v38  ;;  %12341 = vst [vmem:[#allocation37_spill] sm:$0xff] %v8433_v28  ;;  %v8437_v0 = vpop.eup %4787  ;;  %v8447_v24 = vmul.f32 0.5, %v2089_v12  ;;  %v2118_v30 = vmul.f32 %v8391_v44, %v8273_v10  ;;  %v12345_v38 = vld [vmem:[#allocation43_spill] sm:$0xff]  ;;  %v2110_v6 = vmul.f32 0.5, %v2109_v14  ;;  %vm8546_vm13 = vmor %vm2043_vm7, %vm2044_vm6 }
 0x2d8   :  { %12342 = vst [vmem:[#allocation197_spill] sm:$0xff] %v8435_v17  ;;  %v1374_v16 = vmul.f32 0.020408163, %v12345_v38  ;;  %v2006_v17 = vsel %vm8420_vm5, %v7983_v18, %v8280_v35  ;;  %v2098_v28 = vmul.f32 %v8400_v9, %v8284_v26  ;;  %4793 = vrsqrt.f32 %v8397_v50  ;;  %v2655_v38 = vld [vmem:[%s11659_s1 + $0x180] sm:$0xff]  ;;  %v12346_v35 = vld [vmem:[#allocation141_spill] sm:$0xff] }
 0x2d9   :  { %v2016_v12 = vsel %vm8443_vm3, %v8093_v20, %v2012_v36  ;;  %vm2084_vm11 = vweird.f32 %v8233_v27  ;;  %v8469_v18 = vmul.f32 0.5, %v2069_v47  ;;  %v1378_v39 = vmul.f32 0.020408163, %v12346_v35 }
 0x2da   :  { %v8472_v14 = vmul.f32 %v2659_v40, %v2056_v23  ;;  %v8474_v22 = vpop.eup %4789  ;;  %v2082_v37 = vmul.f32 %v8233_v27, %v2081_v15  ;;  %v2138_v59 = vmul.f32 %v8437_v0, %v8310_v58  ;;  %v8479_v20 = vadd.f32 1e-05, %v1376_v41  ;;  %v8483_v13 = vpop.permute.xlu0 %3214  ;;  %vm8507_vm14 = vmor %vm2083_vm1, %vm2084_vm11 }
 0x2db   :  { %v8481_v36 = vmul.f32 %v2654_v45, %v2006_v17  ;;  %12349 = vst [vmem:[#allocation198_spill] sm:$0xff] %v8483_v13  ;;  %v8486_v47 = vmul.f32 %v8187_v7, %v2061_v55  ;;  %vm2064_vm2 = vweird.f32 %v8187_v7  ;;  %v2119_v23 = vmul.f32 %v8391_v44, %v2118_v30 }
 0x2dc   :  { %12347 = vst [vmem:[#allocation43_spill] sm:$0xff] %v8472_v14  ;;  %v8490_v40 = vadd.f32 1e-05, %v1374_v16  ;;  %3409 = vperm.xlu0 %4664, %v8472_v14   ;;  %v8493_v15 = vmul.f32 %v2655_v38, %v2016_v12  ;;  %v8495_v35 = vpop.eup %4791  ;;  %v2042_v41 = vmul.f32 %v8210_v34, %v2041_v1  ;;  %v2091_v17 = vsub.f32 1.5, %v8447_v24  ;;  %v12355_v12 = vld [vmem:[#allocation46_spill] sm:$0xff] }
 0x2dd   :  { %12348 = vst [vmem:[#allocation141_spill] sm:$0xff] %v8481_v36  ;;  %v2111_v45 = vsub.f32 1.5, %v2110_v6  ;;  %vm2113_vm9 = vweird.f32 %v8182_v3  ;;  %v2099_v55 = vmul.f32 %v8400_v9, %v2098_v28  ;;  %3384 = vperm.xlu2 %4666, %v8481_v36   ;;  %vm2063_vm10 = vweird.f32 %v8069_v21  ;;  %v2658_v36 = vld [vmem:[%s11659_s1 + $0x198] sm:$0xff] }
 0x2de   :  { %12350 = vst [vmem:[#allocation199_spill] sm:$0xff] %v8493_v15  ;;  %v2071_v1 = vsub.f32 1.5, %v8469_v18  ;;  %vm2114_vm12 = vweird.f32 %v8297_v62  ;;  %v2148_v6 = vmul.f32 %v8474_v22, %v8359_v57  ;;  %v8515_v28 = vadd.f32 1e-05, %v1378_v39  ;;  %3389 = vperm.xlu1 %4665, %v8493_v15   ;;  %v8518_v24 = vpop.eup %4793  ;;  %v8538_v39 = vpop.permute.xlu2 %3219  ;;  %vm8624_vm11 = vmor %vm2063_vm10, %vm2064_vm2 }
 0x2df   :  { %vm2073_vm1 = vweird.f32 %v8193_v4  ;;  %v2139_v16 = vmul.f32 %v8437_v0, %v2138_v59  ;;  %4795 = vrsqrt.f32 %v8479_v20  ;;  %v1379_v38 = vmul.f32 0.020408163, %v12355_v12  ;;  %12356 = vst [vmem:[#allocation46_spill] sm:$0xff] %v8538_v39  ;;  %v8540_v13 = vpop.permute.xlu1 %3194  ;;  %vm8611_vm3 = vmor %vm2113_vm9, %vm2114_vm12  ;;  %v2660_v4 = vld [vmem:[%s11659_s1 + $0x1a8] sm:$0xff] }
 0x2e0   :  { %v2086_v18 = vsel %vm8507_vm14, %v8233_v27, %v2082_v37  ;;  %12357 = vst [vmem:[#allocation200_spill] sm:$0xff] %v8540_v13  ;;  %v8550_v12 = vmul.f32 0.5, %v2119_v23  ;;  %v2128_v27 = vmul.f32 %v8495_v35, %v8376_v33  ;;  %4797 = vrsqrt.f32 %v8490_v40  ;;  %v12360_v23 = vld [vmem:[#allocation142_spill] sm:$0xff] }
 0x2e1   :  { %v2036_v37 = vsel %vm8524_vm15, %v8084_v8, %v8383_v48  ;;  %v2112_v30 = vmul.f32 %v8297_v62, %v2111_v45  ;;  %v8563_v13 = vmul.f32 0.5, %v2099_v55  ;;  %v1377_v39 = vmul.f32 0.020408163, %v12360_v23  ;;  %v12361_v48 = vld [vmem:[#allocation145_spill] sm:$0xff] }
 0x2e2   :  { %v2046_v15 = vsel %vm8546_vm13, %v8210_v34, %v2042_v41  ;;  %v2168_v8 = vmul.f32 %v8518_v24, %v8397_v50  ;;  %4799 = vrsqrt.f32 %v8515_v28  ;;  %v1381_v29 = vmul.f32 0.020408163, %v12361_v48  ;;  %v8583_v34 = vpop.permute.xlu0 %3229 }
 0x2e3   :  { %v8576_v45 = vmul.f32 %v2662_v2, %v2086_v18  ;;  %v2149_v55 = vmul.f32 %v8474_v22, %v2148_v6  ;;  %v2140_v23 = vmul.f32 0.5, %v2139_v16  ;;  %v8579_v14 = vadd.f32 1e-05, %v1379_v38  ;;  %12362 = vst [vmem:[#allocation142_spill] sm:$0xff] %v8583_v34  ;;  %v12363_v38 = vld [vmem:[#allocation144_spill] sm:$0xff] }
 0x2e4   :  { %v8581_v59 = vmul.f32 %v2657_v42, %v2036_v37  ;;  %v8586_v41 = vmul.f32 %v8289_v25, %v2091_v17  ;;  %vm2094_vm4 = vweird.f32 %v8289_v25  ;;  %vm2074_vm8 = vweird.f32 %v8313_v19 }
 0x2e5   :  { %v2129_v48 = vmul.f32 %v8495_v35, %v2128_v27  ;;  %3424 = vperm.xlu0 %4664, %v8576_v45   ;;  %v8592_v18 = vmul.f32 %v2658_v36, %v2046_v15  ;;  %v8594_v6 = vpop.eup %4795  ;;  %v2072_v16 = vmul.f32 %v8313_v19, %v2071_v1  ;;  %vm2104_vm6 = vweird.f32 %v8400_v9  ;;  %vm8648_vm2 = vmor %vm2073_vm1, %vm2074_vm8 }
 0x2e6   :  { %vm2143_vm5 = vweird.f32 %v8310_v58  ;;  %v8599_v17 = vadd.f32 1e-05, %v1377_v39  ;;  %v1382_v2 = vmul.f32 0.020408163, %v12363_v38  ;;  %3399 = vperm.xlu2 %4666, %v8581_v59   ;;  %v8603_v37 = vpop.eup %4797  ;;  %vm2093_vm7 = vweird.f32 %v8171_v5  ;;  %v8638_v21 = vpop.permute.xlu2 %3234  ;;  %v2668_v5 = vld [vmem:[%s11659_s1 + $0x1e8] sm:$0xff] }
 0x2e7   :  { %v2121_v36 = vsub.f32 1.5, %v8550_v12  ;;  %v2101_v1 = vsub.f32 1.5, %v8563_v13  ;;  %v2169_v39 = vmul.f32 %v8518_v24, %v2168_v8  ;;  %v8617_v27 = vadd.f32 1e-05, %v1381_v29  ;;  %3404 = vperm.xlu1 %4665, %v8592_v18   ;;  %v2665_v8 = vld [vmem:[%s11659_s1 + $0x1d0] sm:$0xff]  ;;  %12368 = vst [vmem:[#allocation145_spill] sm:$0xff] %v8638_v21  ;;  %v8640_v29 = vpop.permute.xlu1 %3209  ;;  %vm8725_vm8 = vmor %vm2093_vm7, %vm2094_vm4 }
 0x2e8   :  { %vm2103_vm9 = vweird.f32 %v8284_v26  ;;  %v8629_v3 = vmul.f32 0.5, %v2149_v55  ;;  %v2141_v42 = vsub.f32 1.5, %v2140_v23  ;;  %4801 = vrsqrt.f32 %v8579_v14  ;;  %12369 = vst [vmem:[#allocation144_spill] sm:$0xff] %v8640_v29  ;;  %v8642_v38 = vpop.eup %4799  ;;  %v2661_v12 = vld [vmem:[%s11659_s1 + $0x1b0] sm:$0xff]  ;;  %v2663_v26 = vld [vmem:[%s11659_s1 + $0x1c0] sm:$0xff] }
 0x2e9   :  { %v2116_v13 = vsel %vm8611_vm3, %v8297_v62, %v2112_v30  ;;  %v8652_v23 = vmul.f32 0.5, %v2129_v48  ;;  %v2178_v62 = vmul.f32 %v8594_v6, %v8479_v20  ;;  %v1380_v30 = vmul.f32 0.020408163, %v6952_v52  ;;  %vm8749_vm4 = vmor %vm2103_vm9, %vm2104_vm6 }
 0x2ea   :  { %v2066_v15 = vsel %vm8624_vm11, %v8187_v7, %v8486_v47  ;;  %v2158_v29 = vmul.f32 %v8603_v37, %v8490_v40  ;;  %4803 = vrsqrt.f32 %v8599_v17  ;;  %v8667_v48 = vadd.f32 1e-05, %v1382_v2 }
 0x2eb   :  { %v2076_v52 = vsel %vm8648_vm2, %v8313_v19, %v2072_v16  ;;  %v2170_v7 = vmul.f32 0.5, %v2169_v39  ;;  %4805 = vrsqrt.f32 %v8617_v27  ;;  %v1384_v47 = vmul.f32 0.020408163, %v7031_v46  ;;  %v8685_v19 = vpop.permute.xlu0 %3244 }
 0x2ec   :  { %v8677_v34 = vmul.f32 %v2665_v8, %v2116_v13  ;;  %v2142_v21 = vmul.f32 %v8437_v0, %v2141_v42  ;;  %vm2144_vm10 = vweird.f32 %v8437_v0  ;;  %v2198_v2 = vmul.f32 %v8642_v38, %v8515_v28  ;;  %12372 = vst [vmem:[#allocation201_spill] sm:$0xff] %v8685_v19 }
 0x2ed   :  { %v8683_v55 = vmul.f32 %v2660_v4, %v2066_v15  ;;  %v8688_v16 = vmul.f32 %v8391_v44, %v2121_v36  ;;  %vm2124_vm14 = vweird.f32 %v8391_v44  ;;  %v2102_v46 = vmul.f32 %v8400_v9, %v2101_v1  ;;  %vm8711_vm13 = vmor %vm2143_vm5, %vm2144_vm10 }
 0x2ee   :  { %v8692_v39 = vadd.f32 1e-05, %v1380_v30  ;;  %3439 = vperm.xlu0 %4664, %v8677_v34   ;;  %v8695_v42 = vmul.f32 %v2661_v12, %v2076_v52  ;;  %v8697_v13 = vpop.eup %4801  ;;  %vm2134_vm12 = vweird.f32 %v8495_v35  ;;  %v2179_v8 = vmul.f32 %v8594_v6, %v2178_v62  ;;  %v8739_v12 = vpop.permute.xlu2 %3249 }
 0x2ef   :  { %vm2173_vm15 = vweird.f32 %v8397_v50  ;;  %v2159_v36 = vmul.f32 %v8603_v37, %v2158_v29  ;;  %4807 = vrsqrt.f32 %v8667_v48  ;;  %3414 = vperm.xlu2 %4666, %v8683_v55   ;;  %vm2123_vm1 = vweird.f32 %v8273_v10  ;;  %12378 = vst [vmem:[#allocation203_spill] sm:$0xff] %v8739_v12  ;;  %v2667_v50 = vld [vmem:[%s11659_s1 + $0x1e0] sm:$0xff] }
 0x2f0   :  { %12373 = vst [vmem:[#allocation202_spill] sm:$0xff] %v8695_v42  ;;  %v2151_v1 = vsub.f32 1.5, %v8629_v3  ;;  %v2131_v62 = vsub.f32 1.5, %v8652_v23  ;;  %v2171_v15 = vsub.f32 1.5, %v2170_v7  ;;  %v8716_v29 = vadd.f32 1e-05, %v1384_v47  ;;  %3419 = vperm.xlu1 %4665, %v8695_v42   ;;  %v8719_v4 = vpop.eup %4803  ;;  %v8741_v7 = vpop.permute.xlu1 %3224  ;;  %vm8828_vm10 = vmor %vm2123_vm1, %vm2124_vm14 }
 0x2f1   :  { %vm2133_vm5 = vweird.f32 %v8376_v33  ;;  %vm2174_vm3 = vweird.f32 %v8518_v24  ;;  %v2199_v58 = vmul.f32 %v8642_v38, %v2198_v2  ;;  %v1385_v23 = vmul.f32 0.020408163, %v7029_v11  ;;  %12379 = vst [vmem:[#allocation204_spill] sm:$0xff] %v8741_v7  ;;  %v8743_v47 = vpop.eup %4805 }
 0x2f2   :  { %v2146_v52 = vsel %vm8711_vm13, %v8437_v0, %v2142_v21  ;;  %v2208_v0 = vmul.f32 %v8697_v13, %v8579_v14  ;;  %4809 = vrsqrt.f32 %v8692_v39  ;;  %v12382_v21 = vld [vmem:[#allocation149_spill] sm:$0xff]  ;;  %v2096_v30 = vsel %vm8725_vm8, %v8289_v25, %v8586_v41  ;;  %vm8814_vm9 = vmor %vm2173_vm15, %vm2174_vm3 }
 0x2f3   :  { %v1383_v2 = vmul.f32 0.020408163, %v12382_v21  ;;  %v8764_v7 = vmul.f32 0.5, %v2179_v8  ;;  %v8766_v19 = vmul.f32 0.5, %v2159_v36  ;;  %v1387_v12 = vmul.f32 0.020408163, %v7121_v54  ;;  %v8789_v11 = vpop.permute.xlu0 %3259  ;;  %vm8851_vm14 = vmor %vm2133_vm5, %vm2134_vm12 }
 0x2f4   :  { %v2106_v42 = vsel %vm8749_vm4, %v8400_v9, %v2102_v46  ;;  %v2664_v21 = vld [vmem:[%s11659_s1 + $0x1c8] sm:$0xff]  ;;  %v2172_v25 = vmul.f32 %v8518_v24, %v2171_v15  ;;  %v2188_v41 = vmul.f32 %v8719_v4, %v8599_v17  ;;  %4811 = vrsqrt.f32 %v8716_v29  ;;  %12384 = vst [vmem:[#allocation205_spill] sm:$0xff] %v8789_v11 }
 0x2f5   :  { %v8779_v8 = vmul.f32 %v2668_v5, %v2146_v52  ;;  %v8781_v36 = vpop.eup %4807  ;;  %v2200_v54 = vmul.f32 0.5, %v2199_v58  ;;  %v2228_v3 = vmul.f32 %v8743_v47, %v8617_v27  ;;  %v8785_v9 = vadd.f32 1e-05, %v1385_v23 }
 0x2f6   :  { %v8787_v46 = vmul.f32 %v2663_v26, %v2096_v30  ;;  %v8792_v15 = vmul.f32 %v8474_v22, %v2151_v1  ;;  %vm2154_vm6 = vweird.f32 %v8474_v22  ;;  %v2209_v52 = vmul.f32 %v8697_v13, %v2208_v0  ;;  %v8841_v10 = vpop.permute.xlu2 %3264 }
 0x2f7   :  { %v8796_v5 = vadd.f32 1e-05, %v1383_v2  ;;  %3454 = vperm.xlu0 %4664, %v8779_v8   ;;  %v8799_v58 = vmul.f32 %v2664_v21, %v2106_v42  ;;  %v2132_v23 = vmul.f32 %v8495_v35, %v2131_v62  ;;  %v2181_v30 = vsub.f32 1.5, %v8764_v7  ;;  %v2671_v21 = vld [vmem:[%s11659_s1 + $0x200] sm:$0xff]  ;;  %12390 = vst [vmem:[#allocation207_spill] sm:$0xff] %v8841_v10  ;;  %v2666_v42 = vld [vmem:[%s11659_s1 + $0x1d8] sm:$0xff] }
 0x2f8   :  { %12383 = vst [vmem:[#allocation149_spill] sm:$0xff] %v8787_v46  ;;  %vm2203_vm7 = vweird.f32 %v8515_v28  ;;  %v8804_v26 = vadd.f32 1e-05, %v1387_v12  ;;  %3429 = vperm.xlu2 %4666, %v8787_v46   ;;  %v8807_v1 = vpop.eup %4809  ;;  %vm2153_vm11 = vweird.f32 %v8359_v57  ;;  %v2161_v62 = vsub.f32 1.5, %v8766_v19 }
 0x2f9   :  { %12385 = vst [vmem:[#allocation206_spill] sm:$0xff] %v8799_v58  ;;  %vm2204_vm2 = vweird.f32 %v8642_v38  ;;  %v2189_v12 = vmul.f32 %v8719_v4, %v2188_v41  ;;  %v2238_v7 = vmul.f32 %v8781_v36, %v8667_v48  ;;  %3434 = vperm.xlu1 %4665, %v8799_v58   ;;  %vm2163_vm15 = vweird.f32 %v8490_v40  ;;  %v8843_v41 = vpop.permute.xlu1 %3239  ;;  %vm8932_vm4 = vmor %vm2153_vm11, %vm2154_vm6  ;;  %v2669_v40 = vld [vmem:[%s11659_s1 + $0x1f0] sm:$0xff] }
 0x2fa   :  { %v2201_v19 = vsub.f32 1.5, %v2200_v54  ;;  %v2229_v0 = vmul.f32 %v8743_v47, %v2228_v3  ;;  %4813 = vrsqrt.f32 %v8785_v9  ;;  %v2176_v2 = vsel %vm8814_vm9, %v8518_v24, %v2172_v25  ;;  %12391 = vst [vmem:[#allocation208_spill] sm:$0xff] %v8843_v41  ;;  %v8845_v11 = vpop.eup %4811  ;;  %vm8915_vm5 = vmor %vm2203_vm7, %vm2204_vm2 }
 0x2fb   :  { %v8855_v3 = vmul.f32 0.5, %v2209_v52  ;;  %4815 = vrsqrt.f32 %v8796_v5  ;;  %v1388_v24 = vmul.f32 0.020408163, %v7119_v60  ;;  %v2126_v25 = vsel %vm8828_vm10, %v8391_v44, %v8688_v16 }
 0x2fc   :  { %v2218_v33 = vmul.f32 %v8807_v1, %v8692_v39  ;;  %4817 = vrsqrt.f32 %v8804_v26  ;;  %v1386_v52 = vmul.f32 0.020408163, %v7135_v53  ;;  %v2136_v60 = vsel %vm8851_vm14, %v8495_v35, %v2132_v23 }
 0x2fd   :  { %v8876_v44 = vmul.f32 0.5, %v2189_v12  ;;  %v2239_v16 = vmul.f32 %v8781_v36, %v2238_v7  ;;  %v1390_v41 = vmul.f32 0.020408163, %v7214_v49  ;;  %v8880_v10 = vmul.f32 %v2671_v21, %v2176_v2  ;;  %v8897_v12 = vpop.permute.xlu0 %3274 }
 0x2fe   :  { %v2202_v58 = vmul.f32 %v8642_v38, %v2201_v19  ;;  %v2230_v46 = vmul.f32 0.5, %v2229_v0  ;;  %v2258_v53 = vmul.f32 %v8845_v11, %v8716_v29  ;;  %v8885_v54 = vmul.f32 %v2666_v42, %v2126_v25  ;;  %12394 = vst [vmem:[#allocation209_spill] sm:$0xff] %v8897_v12  ;;  %v8945_v57 = vpop.permute.xlu2 %3279 }
 0x2ff   :  { %v8888_v35 = vmul.f32 %v8594_v6, %v2181_v30  ;;  %vm2184_vm12 = vweird.f32 %v8594_v6  ;;  %vm2164_vm1 = vweird.f32 %v8603_v37  ;;  %v8892_v23 = vadd.f32 1e-05, %v1388_v24  ;;  %3469 = vperm.xlu0 %4664, %v8880_v10  }
 0x300   :  { %v8895_v49 = vmul.f32 %v2667_v50, %v2136_v60  ;;  %v8899_v7 = vpop.eup %4813  ;;  %v2162_v19 = vmul.f32 %v8603_v37, %v2161_v62  ;;  %v2211_v0 = vsub.f32 1.5, %v8855_v3  ;;  %vm2233_vm13 = vweird.f32 %v8617_v27  ;;  %3444 = vperm.xlu2 %4666, %v8885_v54   ;;  %v2674_v50 = vld [vmem:[%s11659_s1 + $0x218] sm:$0xff]  ;;  %vm8951_vm6 = vmor %vm2163_vm15, %vm2164_vm1  ;;  %v2673_v27 = vld [vmem:[%s11659_s1 + $0x210] sm:$0xff] }
 0x301   :  { %v2219_v30 = vmul.f32 %v8807_v1, %v2218_v33  ;;  %v8905_v2 = vadd.f32 1e-05, %v1386_v52  ;;  %v8908_v21 = vpop.eup %4815  ;;  %vm2183_vm8 = vweird.f32 %v8479_v20  ;;  %v2191_v3 = vsub.f32 1.5, %v8876_v44  ;;  %v8966_v44 = vpop.permute.xlu1 %3254 }
 0x302   :  { %v8920_v24 = vmul.f32 0.5, %v2239_v16  ;;  %vm2234_vm3 = vweird.f32 %v8743_v47  ;;  %v8923_v25 = vadd.f32 1e-05, %v1390_v41  ;;  %3449 = vperm.xlu1 %4665, %v8895_v49   ;;  %v8926_v42 = vpop.eup %4817  ;;  %vm2193_vm7 = vweird.f32 %v8599_v17  ;;  %12401 = vst [vmem:[#allocation210_spill] sm:$0xff] %v8966_v44  ;;  %vm9030_vm14 = vmor %vm2183_vm8, %vm2184_vm12 }
 0x303   :  { %v2231_v33 = vsub.f32 1.5, %v2230_v46  ;;  %v2259_v52 = vmul.f32 %v8845_v11, %v2258_v53  ;;  %v1391_v41 = vmul.f32 0.020408163, %v7212_v31  ;;  %v2206_v60 = vsel %vm8915_vm5, %v8642_v38, %v2202_v58  ;;  %vm9012_vm10 = vmor %vm2233_vm13, %vm2234_vm3 }
 0x304   :  { %v2268_v31 = vmul.f32 %v8899_v7, %v8785_v9  ;;  %4819 = vrsqrt.f32 %v8892_v23  ;;  %v1389_v38 = vmul.f32 0.020408163, %v7228_v32  ;;  %v2156_v58 = vsel %vm8932_vm4, %v8474_v22, %v8792_v15  ;;  %v2670_v22 = vld [vmem:[%s11659_s1 + $0x1f8] sm:$0xff] }
 0x305   :  { %v8968_v16 = vmul.f32 0.5, %v2219_v30  ;;  %v2248_v53 = vmul.f32 %v8908_v21, %v8796_v5  ;;  %4821 = vrsqrt.f32 %v8905_v2  ;;  %v2166_v32 = vsel %vm8951_vm6, %v8603_v37, %v2162_v19 }
 0x306   :  { %v2288_v15 = vmul.f32 %v8926_v42, %v8804_v26  ;;  %4823 = vrsqrt.f32 %v8923_v25  ;;  %v1393_v30 = vmul.f32 0.020408163, %v7310_v51  ;;  %v8983_v62 = vmul.f32 %v2674_v50, %v2206_v60  ;;  %v9043_v20 = vpop.permute.xlu2 %3294 }
 0x307   :  { %v2232_v28 = vmul.f32 %v8743_v47, %v2231_v33  ;;  %v2260_v44 = vmul.f32 0.5, %v2259_v52  ;;  %v8986_v12 = vadd.f32 1e-05, %v1391_v41  ;;  %v8988_v46 = vmul.f32 %v2669_v40, %v2156_v58  ;;  %12410 = vst [vmem:[#allocation215_spill] sm:$0xff] %v9043_v20 }
 0x308   :  { %12402 = vst [vmem:[#allocation211_spill] sm:$0xff] %v8983_v62  ;;  %vm2214_vm11 = vweird.f32 %v8697_v13  ;;  %vm2194_vm9 = vweird.f32 %v8719_v4  ;;  %v2269_v37 = vmul.f32 %v8899_v7, %v2268_v31  ;;  %v8993_v19 = vadd.f32 1e-05, %v1389_v38  ;;  %3484 = vperm.xlu0 %4664, %v8983_v62   ;;  %v9022_v38 = vpop.permute.xlu0 %3289 }
 0x309   :  { %12403 = vst [vmem:[#allocation212_spill] sm:$0xff] %v8988_v46  ;;  %v8996_v51 = vmul.f32 %v2670_v22, %v2166_v32  ;;  %v8999_v60 = vmul.f32 %v8697_v13, %v2211_v0  ;;  %v2192_v33 = vmul.f32 %v8719_v4, %v2191_v3  ;;  %v2241_v52 = vsub.f32 1.5, %v8920_v24  ;;  %3459 = vperm.xlu2 %4666, %v8988_v46   ;;  %v2677_v32 = vld [vmem:[%s11659_s1 + $0x230] sm:$0xff]  ;;  %vm9051_vm12 = vmor %vm2193_vm7, %vm2194_vm9  ;;  %v9082_v20 = vpop.permute.xlu1 %3269 }
 0x30a   :  { %v2249_v41 = vmul.f32 %v8908_v21, %v2248_v53  ;;  %v9005_v50 = vpop.eup %4819  ;;  %vm2213_vm2 = vweird.f32 %v8579_v14  ;;  %v2221_v0 = vsub.f32 1.5, %v8968_v16  ;;  %vm2264_vm15 = vweird.f32 %v8845_v11  ;;  %12407 = vst [vmem:[#allocation214_spill] sm:$0xff] %v9022_v38  ;;  %v2680_v14 = vld [vmem:[%s11659_s1 + $0x248] sm:$0xff]  ;;  %v12429_v46 = vld [vmem:[#allocation164_spill] sm:$0xff] }
 0x30b   :  { %12404 = vst [vmem:[#allocation213_spill] sm:$0xff] %v8996_v51  ;;  %v2289_v3 = vmul.f32 %v8926_v42, %v2288_v15  ;;  %v9019_v24 = vadd.f32 1e-05, %v1393_v30  ;;  %3464 = vperm.xlu1 %4665, %v8996_v51   ;;  %v9024_v58 = vpop.eup %4821  ;;  %vm2223_vm1 = vweird.f32 %v8692_v39  ;;  %v2261_v40 = vsub.f32 1.5, %v2260_v44  ;;  %vm9126_vm7 = vmor %vm2213_vm2, %vm2214_vm11  ;;  %v2675_v39 = vld [vmem:[%s11659_s1 + $0x220] sm:$0xff] }
 0x30c   :  { %4825 = vrsqrt.f32 %v8986_v12  ;;  %v1394_v16 = vmul.f32 0.020408163, %v7308_v61  ;;  %v2236_v53 = vsel %vm9012_vm10, %v8743_v47, %v2232_v28  ;;  %v9045_v22 = vpop.eup %4823  ;;  %v9055_v61 = vmul.f32 0.5, %v2269_v37  ;;  %v12413_v47 = vld [vmem:[#allocation159_spill] sm:$0xff]  ;;  %v12414_v37 = vld [vmem:[#allocation165_spill] sm:$0xff] }
 0x30d   :  { %4827 = vrsqrt.f32 %v8993_v19  ;;  %v1392_v15 = vmul.f32 0.020408163, %v12413_v47  ;;  %v2186_v30 = vsel %vm9030_vm14, %v8594_v6, %v8888_v35  ;;  %v2672_v28 = vld [vmem:[%s11659_s1 + $0x208] sm:$0xff]  ;;  %v9066_v17 = vmul.f32 0.5, %v2249_v41  ;;  %12416 = vst [vmem:[#allocation165_spill] sm:$0xff] %v9082_v20 }
 0x30e   :  { %v2298_v31 = vmul.f32 %v9005_v50, %v8892_v23  ;;  %v1396_v38 = vmul.f32 0.020408163, %v12414_v37  ;;  %v2196_v47 = vsel %vm9051_vm12, %v8719_v4, %v2192_v33  ;;  %v2290_v6 = vmul.f32 0.5, %v2289_v3 }
 0x30f   :  { %v2278_v35 = vmul.f32 %v9024_v58, %v8905_v2  ;;  %4829 = vrsqrt.f32 %v9019_v24  ;;  %v9080_v41 = vmul.f32 %v2677_v32, %v2236_v53  ;;  %v2262_v37 = vmul.f32 %v8845_v11, %v2261_v40 }
 0x310   :  { %v2318_v44 = vmul.f32 %v9045_v22, %v8923_v25  ;;  %v9087_v4 = vadd.f32 1e-05, %v1394_v16  ;;  %v9089_v33 = vmul.f32 %v2672_v28, %v2186_v30  ;;  %vm2244_vm13 = vweird.f32 %v8781_v36 }
 0x311   :  { %12415 = vst [vmem:[#allocation159_spill] sm:$0xff] %v9080_v41  ;;  %vm2224_vm8 = vweird.f32 %v8807_v1  ;;  %vm2263_vm5 = vweird.f32 %v8716_v29  ;;  %v9094_v3 = vadd.f32 1e-05, %v1392_v15  ;;  %3499 = vperm.xlu0 %4664, %v9080_v41   ;;  %v9097_v53 = vmul.f32 %v2673_v27, %v2196_v47  ;;  %v9140_v27 = vpop.permute.xlu2 %3309  ;;  %v9156_v47 = vpop.permute.xlu0 %3304 }
 0x312   :  { %12417 = vst [vmem:[#allocation216_spill] sm:$0xff] %v9089_v33  ;;  %v9099_v40 = vpop.eup %4825  ;;  %v9102_v32 = vmul.f32 %v8781_v36, %v2241_v52  ;;  %v2222_v16 = vmul.f32 %v8807_v1, %v2221_v0  ;;  %v2299_v30 = vmul.f32 %v9005_v50, %v2298_v31  ;;  %v9106_v28 = vadd.f32 1e-05, %v1396_v38  ;;  %3474 = vperm.xlu2 %4666, %v9089_v33   ;;  %vm9115_vm4 = vmor %vm2263_vm5, %vm2264_vm15  ;;  %v2676_v31 = vld [vmem:[%s11659_s1 + $0x228] sm:$0xff] }
 0x313   :  { %12418 = vst [vmem:[#allocation217_spill] sm:$0xff] %v9097_v53  ;;  %v9109_v29 = vpop.eup %4827  ;;  %vm2243_vm3 = vweird.f32 %v8667_v48  ;;  %v2271_v15 = vsub.f32 1.5, %v9055_v61  ;;  %v2251_v52 = vsub.f32 1.5, %v9066_v17  ;;  %v2291_v0 = vsub.f32 1.5, %v2290_v6  ;;  %3479 = vperm.xlu1 %4665, %v9097_v53   ;;  %vm9148_vm11 = vmor %vm2223_vm1, %vm2224_vm8 }
 0x314   :  { %v2279_v38 = vmul.f32 %v9024_v58, %v2278_v35  ;;  %vm2253_vm6 = vweird.f32 %v8796_v5  ;;  %vm2294_vm9 = vweird.f32 %v8926_v42  ;;  %v2319_v61 = vmul.f32 %v9045_v22, %v2318_v44  ;;  %12423 = vst [vmem:[#allocation218_spill] sm:$0xff] %v9140_v27  ;;  %vm9229_vm8 = vmor %vm2243_vm3, %vm2244_vm13 }
 0x315   :  { %4831 = vrsqrt.f32 %v9087_v4  ;;  %v2266_v17 = vsel %vm9115_vm4, %v8845_v11, %v2262_v37  ;;  %v9142_v6 = vpop.eup %4829  ;;  %v2328_v44 = vmul.f32 %v9099_v40, %v8986_v12  ;;  %v12426_v11 = vld [vmem:[#allocation162_spill] sm:$0xff]  ;;  %v2216_v20 = vsel %vm9126_vm7, %v8697_v13, %v8999_v60 }
 0x316   :  { %4833 = vrsqrt.f32 %v9094_v3  ;;  %v1397_v37 = vmul.f32 0.020408163, %v12426_v11  ;;  %12427 = vst [vmem:[#allocation162_spill] sm:$0xff] %v9156_v47  ;;  %v9165_v27 = vmul.f32 0.5, %v2299_v30  ;;  %v2308_v53 = vmul.f32 %v9109_v29, %v8993_v19  ;;  %v12428_v47 = vld [vmem:[#allocation172_spill] sm:$0xff] }
 0x317   :  { %4835 = vrsqrt.f32 %v9106_v28  ;;  %v2226_v11 = vsel %vm9148_vm11, %v8807_v1, %v2222_v16  ;;  %v2292_v13 = vmul.f32 %v8926_v42, %v2291_v0  ;;  %v9177_v60 = vmul.f32 0.5, %v2279_v38  ;;  %v9195_v38 = vpop.permute.xlu1 %3284 }
 0x318   :  { %v1399_v30 = vmul.f32 0.020408163, %v12428_v47  ;;  %v9180_v33 = vmul.f32 %v2680_v14, %v2266_v17  ;;  %v2320_v41 = vmul.f32 0.5, %v2319_v61  ;;  %v2348_v51 = vmul.f32 %v9142_v6, %v9019_v24  ;;  %12432 = vst [vmem:[#allocation219_spill] sm:$0xff] %v9195_v38 }
 0x319   :  { %v1395_v62 = vmul.f32 0.020408163, %v12429_v46  ;;  %v9185_v35 = vmul.f32 %v2675_v39, %v2216_v20  ;;  %vm2274_vm2 = vweird.f32 %v8899_v7  ;;  %vm2293_vm10 = vweird.f32 %v8804_v26  ;;  %v9243_v48 = vpop.permute.xlu2 %3324  ;;  %v9282_v38 = vpop.permute.xlu0 %3319 }
 0x31a   :  { %v2329_v1 = vmul.f32 %v9099_v40, %v2328_v44  ;;  %v9190_v16 = vadd.f32 1e-05, %v1397_v37  ;;  %3514 = vperm.xlu0 %4664, %v9180_v33   ;;  %v9193_v0 = vmul.f32 %v2676_v31, %v2226_v11  ;;  %v9200_v46 = vmul.f32 %v8899_v7, %v2271_v15  ;;  %vm9214_vm1 = vmor %vm2293_vm10, %vm2294_vm9  ;;  %v2683_v31 = vld [vmem:[%s11659_s1 + $0x260] sm:$0xff]  ;;  %12437 = vst [vmem:[#allocation220_spill] sm:$0xff] %v9243_v48 }
 0x31b   :  { %12430 = vst [vmem:[#allocation172_spill] sm:$0xff] %v9185_v35  ;;  %v9197_v61 = vpop.eup %4831  ;;  %v2252_v20 = vmul.f32 %v8908_v21, %v2251_v52  ;;  %vm2254_vm15 = vweird.f32 %v8908_v21  ;;  %v2309_v17 = vmul.f32 %v9109_v29, %v2308_v53  ;;  %3489 = vperm.xlu2 %4666, %v9185_v35   ;;  %vm2273_vm14 = vweird.f32 %v8785_v9 }
 0x31c   :  { %12431 = vst [vmem:[#allocation164_spill] sm:$0xff] %v9193_v0  ;;  %v9206_v14 = vpop.eup %4833  ;;  %v2301_v44 = vsub.f32 1.5, %v9165_v27  ;;  %v2281_v52 = vsub.f32 1.5, %v9177_v60  ;;  %vm2324_vm12 = vweird.f32 %v9045_v22  ;;  %v9220_v53 = vadd.f32 1e-05, %v1399_v30  ;;  %3494 = vperm.xlu1 %4665, %v9193_v0   ;;  %vm9249_vm13 = vmor %vm2253_vm6, %vm2254_vm15  ;;  %v2678_v60 = vld [vmem:[%s11659_s1 + $0x238] sm:$0xff] }
 0x31d   :  { %v9223_v37 = vpop.eup %4835  ;;  %vm2283_vm5 = vweird.f32 %v8905_v2  ;;  %v2321_v27 = vsub.f32 1.5, %v2320_v41  ;;  %v2349_v47 = vmul.f32 %v9142_v6, %v2348_v51  ;;  %v9235_v39 = vadd.f32 1e-05, %v1395_v62  ;;  %v12440_v51 = vld [vmem:[#allocation168_spill] sm:$0xff]  ;;  %v12444_v41 = vld [vmem:[#allocation170_spill] sm:$0xff]  ;;  %vm9324_vm11 = vmor %vm2273_vm14, %vm2274_vm2 }
 0x31e   :  { %v2296_v11 = vsel %vm9214_vm1, %v8926_v42, %v2292_v13  ;;  %v9253_v62 = vmul.f32 0.5, %v2329_v1  ;;  %4837 = vrsqrt.f32 %v9190_v16  ;;  %v1400_v42 = vmul.f32 0.020408163, %v12440_v51  ;;  %12442 = vst [vmem:[#allocation168_spill] sm:$0xff] %v9282_v38 }
 0x31f   :  { %v2246_v13 = vsel %vm9229_vm8, %v8781_v36, %v9102_v32  ;;  %v9264_v5 = vmul.f32 0.5, %v2309_v17  ;;  %v2358_v30 = vmul.f32 %v9197_v61, %v9087_v4  ;;  %v2338_v1 = vmul.f32 %v9206_v14, %v9094_v3  ;;  %v2679_v36 = vld [vmem:[%s11659_s1 + $0x240] sm:$0xff]  ;;  %v12441_v17 = vld [vmem:[#allocation101_spill] sm:$0xff] }
 0x320   :  { %v2256_v15 = vsel %vm9249_vm13, %v8908_v21, %v2252_v20  ;;  %v2378_v32 = vmul.f32 %v9223_v37, %v9106_v28  ;;  %4839 = vrsqrt.f32 %v9220_v53  ;;  %v1402_v26 = vmul.f32 0.020408163, %v12441_v17 }
 0x321   :  { %v9280_v51 = vmul.f32 %v2683_v31, %v2296_v11  ;;  %v2322_v48 = vmul.f32 %v9045_v22, %v2321_v27  ;;  %v2350_v0 = vmul.f32 0.5, %v2349_v47  ;;  %4841 = vrsqrt.f32 %v9235_v39  ;;  %v9337_v9 = vpop.permute.xlu2 %3339 }
 0x322   :  { %v9286_v21 = vmul.f32 %v2678_v60, %v2246_v13  ;;  %vm2304_vm3 = vweird.f32 %v9005_v50  ;;  %vm2323_vm4 = vweird.f32 %v8923_v25  ;;  %v9290_v20 = vadd.f32 1e-05, %v1400_v42  ;;  %12451 = vst [vmem:[#allocation222_spill] sm:$0xff] %v9337_v9 }
 0x323   :  { %v1398_v35 = vmul.f32 0.020408163, %v12444_v41  ;;  %3529 = vperm.xlu0 %4664, %v9280_v51   ;;  %v9294_v11 = vmul.f32 %v2679_v36, %v2256_v15  ;;  %v2282_v31 = vmul.f32 %v9024_v58, %v2281_v52  ;;  %vm2284_vm7 = vweird.f32 %v9024_v58  ;;  %vm9310_vm9 = vmor %vm2323_vm4, %vm2324_vm12  ;;  %v2681_v41 = vld [vmem:[%s11659_s1 + $0x250] sm:$0xff] }
 0x324   :  { %12443 = vst [vmem:[#allocation101_spill] sm:$0xff] %v9286_v21  ;;  %v2359_v27 = vmul.f32 %v9197_v61, %v2358_v30  ;;  %v2339_v47 = vmul.f32 %v9206_v14, %v2338_v1  ;;  %3504 = vperm.xlu2 %4666, %v9286_v21   ;;  %v9301_v13 = vpop.eup %4837  ;;  %v9304_v25 = vmul.f32 %v9005_v50, %v2301_v44  ;;  %vm2303_vm6 = vweird.f32 %v8892_v23  ;;  %v9318_v1 = vpop.permute.xlu1 %3299  ;;  %vm9345_vm2 = vmor %vm2283_vm5, %vm2284_vm7  ;;  %v12455_v44 = vld [vmem:[#allocation107_spill] sm:$0xff]  ;;  %v2689_v23 = vld [vmem:[%s11659_s1 + $0x290] sm:$0xff] }
 0x325   :  { %12445 = vst [vmem:[#allocation170_spill] sm:$0xff] %v9294_v11  ;;  %v2331_v42 = vsub.f32 1.5, %v9253_v62  ;;  %v2379_v60 = vmul.f32 %v9223_v37, %v2378_v32  ;;  %v9315_v30 = vadd.f32 1e-05, %v1402_v26  ;;  %3509 = vperm.xlu1 %4665, %v9294_v11   ;;  %v2311_v62 = vsub.f32 1.5, %v9264_v5  ;;  %v2686_v32 = vld [vmem:[%s11659_s1 + $0x278] sm:$0xff]  ;;  %vm9420_vm13 = vmor %vm2303_vm6, %vm2304_vm3 }
 0x326   :  { %12448 = vst [vmem:[#allocation221_spill] sm:$0xff] %v9318_v1  ;;  %vm2313_vm10 = vweird.f32 %v8993_v19  ;;  %v2351_v15 = vsub.f32 1.5, %v2350_v0  ;;  %vm2354_vm15 = vweird.f32 %v9142_v6  ;;  %v2326_v36 = vsel %vm9310_vm9, %v9045_v22, %v2322_v48  ;;  %v9339_v17 = vpop.eup %4839  ;;  %v12454_v22 = vld [vmem:[#allocation174_spill] sm:$0xff]  ;;  %v12456_v11 = vld [vmem:[#allocation176_spill] sm:$0xff]  ;;  %v2684_v19 = vld [vmem:[%s11659_s1 + $0x268] sm:$0xff] }
 0x327   :  { %4843 = vrsqrt.f32 %v9290_v20  ;;  %v9350_v5 = vadd.f32 1e-05, %v1398_v35  ;;  %v1403_v48 = vmul.f32 0.020408163, %v12454_v22  ;;  %v2276_v26 = vsel %vm9324_vm11, %v8899_v7, %v9200_v46  ;;  %v9360_v2 = vpop.eup %4841  ;;  %v2682_v7 = vld [vmem:[%s11659_s1 + $0x258] sm:$0xff] }
 0x328   :  { %v9362_v52 = vmul.f32 0.5, %v2359_v27  ;;  %v9364_v1 = vmul.f32 0.5, %v2339_v47  ;;  %v2388_v35 = vmul.f32 %v9301_v13, %v9190_v16  ;;  %v2286_v22 = vsel %vm9345_vm2, %v9024_v58, %v2282_v31 }
 0x329   :  { %v2380_v46 = vmul.f32 0.5, %v2379_v60  ;;  %4845 = vrsqrt.f32 %v9315_v30  ;;  %v1405_v9 = vmul.f32 0.020408163, %v12455_v44  ;;  %v9376_v27 = vmul.f32 %v2686_v32, %v2326_v36  ;;  %v9391_v60 = vpop.permute.xlu0 %3334 }
 0x32a   :  { %v2352_v47 = vmul.f32 %v9142_v6, %v2351_v15  ;;  %v2408_v38 = vmul.f32 %v9339_v17, %v9220_v53  ;;  %v1401_v21 = vmul.f32 0.020408163, %v12456_v11  ;;  %v9382_v0 = vmul.f32 %v2681_v41, %v2276_v26  ;;  %12457 = vst [vmem:[#allocation174_spill] sm:$0xff] %v9391_v60 }
 0x32b   :  { %vm2334_vm14 = vweird.f32 %v9099_v40  ;;  %v2368_v58 = vmul.f32 %v9360_v2, %v9235_v39  ;;  %4847 = vrsqrt.f32 %v9350_v5  ;;  %v9388_v31 = vadd.f32 1e-05, %v1403_v48  ;;  %3544 = vperm.xlu0 %4664, %v9376_v27  }
 0x32c   :  { %v9393_v15 = vmul.f32 %v2682_v7, %v2286_v22  ;;  %v2312_v36 = vmul.f32 %v9109_v29, %v2311_v62  ;;  %vm2314_vm1 = vweird.f32 %v9109_v29  ;;  %vm2353_vm12 = vweird.f32 %v9019_v24  ;;  %3519 = vperm.xlu2 %4666, %v9382_v0   ;;  %v9435_v7 = vpop.permute.xlu2 %3354  ;;  %v12467_v62 = vld [vmem:[#allocation178_spill] sm:$0xff] }
 0x32d   :  { %v2389_v11 = vmul.f32 %v9301_v13, %v2388_v35  ;;  %v9400_v32 = vpop.eup %4843  ;;  %v9403_v48 = vmul.f32 %v9099_v40, %v2331_v42  ;;  %vm2333_vm8 = vweird.f32 %v8986_v12  ;;  %v2361_v26 = vsub.f32 1.5, %v9362_v52  ;;  %vm9409_vm5 = vmor %vm2353_vm12, %vm2354_vm15  ;;  %12463 = vst [vmem:[#allocation176_spill] sm:$0xff] %v9435_v7  ;;  %v2685_v42 = vld [vmem:[%s11659_s1 + $0x270] sm:$0xff] }
 0x32e   :  { %12458 = vst [vmem:[#allocation107_spill] sm:$0xff] %v9393_v15  ;;  %v2381_v24 = vsub.f32 1.5, %v2380_v46  ;;  %v9413_v41 = vadd.f32 1e-05, %v1405_v9  ;;  %3524 = vperm.xlu1 %4665, %v9393_v15   ;;  %v2341_v52 = vsub.f32 1.5, %v9364_v1  ;;  %vm2343_vm4 = vweird.f32 %v9094_v3  ;;  %vm9443_vm3 = vmor %vm2313_vm10, %vm2314_vm1  ;;  %v2687_v3 = vld [vmem:[%s11659_s1 + $0x280] sm:$0xff] }
 0x32f   :  { %v2409_v35 = vmul.f32 %v9339_v17, %v2408_v38  ;;  %v9427_v22 = vadd.f32 1e-05, %v1401_v21  ;;  %v2356_v9 = vsel %vm9409_vm5, %v9142_v6, %v2352_v47  ;;  %v9437_v46 = vpop.eup %4845  ;;  %vm2384_vm7 = vweird.f32 %v9223_v37  ;;  %v9450_v21 = vpop.permute.xlu1 %3314  ;;  %vm9518_vm1 = vmor %vm2333_vm8, %vm2334_vm14 }
 0x330   :  { %v2369_v6 = vmul.f32 %v9360_v2, %v2368_v58  ;;  %4849 = vrsqrt.f32 %v9388_v31  ;;  %12466 = vst [vmem:[#allocation223_spill] sm:$0xff] %v9450_v21  ;;  %v2306_v1 = vsel %vm9420_vm13, %v9005_v50, %v9304_v25  ;;  %v9459_v44 = vmul.f32 0.5, %v2389_v11  ;;  %v12468_v11 = vld [vmem:[#allocation119_spill] sm:$0xff] }
 0x331   :  { %v2418_v47 = vmul.f32 %v9400_v32, %v9290_v20  ;;  %v1406_v58 = vmul.f32 0.020408163, %v12467_v62  ;;  %v2316_v21 = vsel %vm9443_vm3, %v9109_v29, %v2312_v36  ;;  %v9470_v50 = vpop.eup %4847  ;;  %v2382_v25 = vmul.f32 %v9223_v37, %v2381_v24  ;;  %v12471_v24 = vld [vmem:[#allocation103_spill] sm:$0xff] }
 0x332   :  { %4851 = vrsqrt.f32 %v9413_v41  ;;  %v1408_v7 = vmul.f32 0.020408163, %v12468_v11  ;;  %v9475_v60 = vmul.f32 %v2689_v23, %v2356_v9  ;;  %v2410_v15 = vmul.f32 0.5, %v2409_v35 }
 0x333   :  { %v2438_v62 = vmul.f32 %v9437_v46, %v9315_v30  ;;  %4853 = vrsqrt.f32 %v9427_v22  ;;  %v9480_v29 = vmul.f32 %v2684_v19, %v2306_v1  ;;  %vm2364_vm6 = vweird.f32 %v9197_v61  ;;  %v9511_v19 = vpop.permute.xlu0 %3349 }
 0x334   :  { %12469 = vst [vmem:[#allocation178_spill] sm:$0xff] %v9475_v60  ;;  %vm2383_vm9 = vweird.f32 %v9106_v28  ;;  %v2370_v36 = vmul.f32 0.5, %v2369_v6  ;;  %v1404_v38 = vmul.f32 0.020408163, %v12471_v24  ;;  %3559 = vperm.xlu0 %4664, %v9475_v60   ;;  %v9486_v11 = vmul.f32 %v2685_v42, %v2316_v21  ;;  %v2692_v24 = vld [vmem:[%s11659_s1 + $0x2a8] sm:$0xff]  ;;  %v9531_v12 = vpop.permute.xlu2 %3369 }
 0x335   :  { %12470 = vst [vmem:[#allocation119_spill] sm:$0xff] %v9480_v29  ;;  %v2342_v35 = vmul.f32 %v9206_v14, %v2341_v52  ;;  %vm2344_vm11 = vweird.f32 %v9206_v14  ;;  %v2398_v9 = vmul.f32 %v9470_v50, %v9350_v5  ;;  %v9492_v23 = vadd.f32 1e-05, %v1406_v58  ;;  %3534 = vperm.xlu2 %4666, %v9480_v29   ;;  %vm9503_vm15 = vmor %vm2383_vm9, %vm2384_vm7 }
 0x336   :  { %12472 = vst [vmem:[#allocation103_spill] sm:$0xff] %v9486_v11  ;;  %v9495_v1 = vpop.eup %4849  ;;  %v9498_v28 = vmul.f32 %v9197_v61, %v2361_v26  ;;  %vm2363_vm10 = vweird.f32 %v9087_v4  ;;  %v2419_v6 = vmul.f32 %v9400_v32, %v2418_v47  ;;  %vm2413_vm2 = vweird.f32 %v9220_v53  ;;  %3539 = vperm.xlu1 %4665, %v9486_v11   ;;  %vm9539_vm14 = vmor %vm2343_vm4, %vm2344_vm11  ;;  %v12482_v26 = vld [vmem:[#allocation125_spill] sm:$0xff] }
 0x337   :  { %v9509_v21 = vadd.f32 1e-05, %v1408_v7  ;;  %12475 = vst [vmem:[#allocation224_spill] sm:$0xff] %v9511_v19  ;;  %v2391_v58 = vsub.f32 1.5, %v9459_v44  ;;  %vm2373_vm12 = vweird.f32 %v9235_v39  ;;  %v2411_v47 = vsub.f32 1.5, %v2410_v15  ;;  %vm9614_vm7 = vmor %vm2363_vm10, %vm2364_vm6  ;;  %v2690_v39 = vld [vmem:[%s11659_s1 + $0x298] sm:$0xff] }
 0x338   :  { %v2439_v7 = vmul.f32 %v9437_v46, %v2438_v62  ;;  %v2386_v42 = vsel %vm9503_vm15, %v9223_v37, %v2382_v25  ;;  %12478 = vst [vmem:[#allocation225_spill] sm:$0xff] %v9531_v12  ;;  %v9533_v19 = vpop.eup %4851  ;;  %v2371_v44 = vsub.f32 1.5, %v2370_v36  ;;  %vm2414_vm8 = vweird.f32 %v9339_v17  ;;  %v9546_v25 = vpop.permute.xlu1 %3329 }
 0x339   :  { %v9544_v37 = vadd.f32 1e-05, %v1404_v38  ;;  %12481 = vst [vmem:[#allocation226_spill] sm:$0xff] %v9546_v25  ;;  %v2336_v62 = vsel %vm9518_vm1, %v9099_v40, %v9403_v48  ;;  %v9555_v52 = vpop.eup %4853  ;;  %v2399_v12 = vmul.f32 %v9470_v50, %v2398_v9  ;;  %v2448_v36 = vmul.f32 %v9495_v1, %v9388_v31  ;;  %v2688_v40 = vld [vmem:[%s11659_s1 + $0x288] sm:$0xff]  ;;  %vm9598_vm3 = vmor %vm2413_vm2, %vm2414_vm8 }
 0x33a   :  { %4855 = vrsqrt.f32 %v9492_v23  ;;  %v2346_v38 = vsel %vm9539_vm14, %v9206_v14, %v2342_v35  ;;  %v9567_v48 = vmul.f32 0.5, %v2419_v6  ;;  %v1411_v25 = vmul.f32 0.020408163, %v12482_v26  ;;  %v12485_v35 = vld [vmem:[#allocation113_spill] sm:$0xff] }
 0x33b   :  { %4857 = vrsqrt.f32 %v9509_v21  ;;  %v9571_v9 = vmul.f32 %v2692_v24, %v2386_v42  ;;  %v2412_v11 = vmul.f32 %v9339_v17, %v2411_v47  ;;  %v2440_v29 = vmul.f32 0.5, %v2439_v7 }
 0x33c   :  { %v2468_v60 = vmul.f32 %v9533_v19, %v9413_v41  ;;  %v9576_v15 = vmul.f32 %v2687_v3, %v2336_v62  ;;  %v2428_v14 = vmul.f32 %v9555_v52, %v9427_v22  ;;  %4859 = vrsqrt.f32 %v9544_v37  ;;  %v9627_v4 = vpop.permute.xlu2 %3384 }
 0x33d   :  { %12483 = vst [vmem:[#allocation125_spill] sm:$0xff] %v9571_v9  ;;  %v1407_v6 = vmul.f32 0.020408163, %v12485_v35  ;;  %3574 = vperm.xlu0 %4664, %v9571_v9   ;;  %v9583_v26 = vmul.f32 %v2688_v40, %v2346_v38  ;;  %v2372_v42 = vmul.f32 %v9360_v2, %v2371_v44  ;;  %vm2374_vm5 = vweird.f32 %v9360_v2  ;;  %v2695_v35 = vld [vmem:[%s11659_s1 + $0x2c0] sm:$0xff] }
 0x33e   :  { %12484 = vst [vmem:[#allocation227_spill] sm:$0xff] %v9576_v15  ;;  %v2400_v47 = vmul.f32 0.5, %v2399_v12  ;;  %v2449_v7 = vmul.f32 %v9495_v1, %v2448_v36  ;;  %3549 = vperm.xlu2 %4666, %v9576_v15   ;;  %v9590_v24 = vmul.f32 %v9301_v13, %v2391_v58  ;;  %vm2393_vm13 = vweird.f32 %v9190_v16  ;;  %v12489_v12 = vld [vmem:[#allocation182_spill] sm:$0xff]  ;;  %v9605_v36 = vpop.permute.xlu0 %3364  ;;  %vm9635_vm6 = vmor %vm2373_vm12, %vm2374_vm5 }
 0x33f   :  { %12486 = vst [vmem:[#allocation113_spill] sm:$0xff] %v9583_v26  ;;  %vm2394_vm4 = vweird.f32 %v9301_v13  ;;  %v1409_v62 = vmul.f32 0.020408163, %v12489_v12  ;;  %v9603_v3 = vadd.f32 1e-05, %v1411_v25  ;;  %3554 = vperm.xlu1 %4665, %v9583_v26   ;;  %vm2403_vm9 = vweird.f32 %v9350_v5  ;;  %v12498_v15 = vld [vmem:[#allocation118_spill] sm:$0xff] }
 0x340   :  { %12490 = vst [vmem:[#allocation182_spill] sm:$0xff] %v9605_v36  ;;  %v9608_v58 = vpop.eup %4855  ;;  %v2441_v38 = vsub.f32 1.5, %v2440_v29  ;;  %vm2443_vm11 = vweird.f32 %v9315_v30  ;;  %v2469_v25 = vmul.f32 %v9533_v19, %v2468_v60  ;;  %v2416_v40 = vsel %vm9598_vm3, %v9339_v17, %v2412_v11  ;;  %v9643_v44 = vpop.permute.xlu1 %3344  ;;  %vm9709_vm8 = vmor %vm2393_vm13, %vm2394_vm4  ;;  %v2693_v5 = vld [vmem:[%s11659_s1 + $0x2b0] sm:$0xff] }
 0x341   :  { %12493 = vst [vmem:[#allocation228_spill] sm:$0xff] %v9627_v4  ;;  %v9629_v12 = vpop.eup %4857  ;;  %v2421_v60 = vsub.f32 1.5, %v9567_v48  ;;  %v2429_v17 = vmul.f32 %v9555_v52, %v2428_v14  ;;  %v9641_v11 = vadd.f32 1e-05, %v1407_v6  ;;  %v2366_v4 = vsel %vm9614_vm7, %v9197_v61, %v9498_v28  ;;  %v2691_v14 = vld [vmem:[%s11659_s1 + $0x2a0] sm:$0xff]  ;;  %v12497_v28 = vld [vmem:[#allocation188_spill] sm:$0xff] }
 0x342   :  { %12496 = vst [vmem:[#allocation229_spill] sm:$0xff] %v9643_v44  ;;  %v2401_v36 = vsub.f32 1.5, %v2400_v47  ;;  %v9652_v26 = vmul.f32 0.5, %v2449_v7  ;;  %vm2444_vm10 = vweird.f32 %v9437_v46  ;;  %v2376_v48 = vsel %vm9635_vm6, %v9360_v2, %v2372_v42  ;;  %v9661_v6 = vpop.eup %4859 }
 0x343   :  { %v9663_v61 = vadd.f32 1e-05, %v1409_v62  ;;  %4861 = vrsqrt.f32 %v9603_v3  ;;  %v1414_v47 = vmul.f32 0.020408163, %v12497_v28  ;;  %v9667_v7 = vmul.f32 %v2695_v35, %v2416_v40  ;;  %vm9695_vm12 = vmor %vm2443_vm11, %vm2444_vm10 }
 0x344   :  { %v2442_v53 = vmul.f32 %v9437_v46, %v2441_v38  ;;  %v2470_v44 = vmul.f32 0.5, %v2469_v25  ;;  %v2498_v2 = vmul.f32 %v9629_v12, %v9509_v21  ;;  %v9672_v42 = vmul.f32 %v2690_v39, %v2366_v4  ;;  %v9722_v16 = vpop.permute.xlu2 %3399 }
 0x345   :  { %v2430_v29 = vmul.f32 0.5, %v2429_v17  ;;  %4863 = vrsqrt.f32 %v9641_v11  ;;  %v1410_v62 = vmul.f32 0.020408163, %v12498_v15  ;;  %3589 = vperm.xlu0 %4664, %v9667_v7   ;;  %v9677_v9 = vmul.f32 %v2691_v14, %v2376_v48  ;;  %v2698_v48 = vld [vmem:[%s11659_s1 + $0x2d8] sm:$0xff]  ;;  %12504 = vst [vmem:[#allocation118_spill] sm:$0xff] %v9722_v16 }
 0x346   :  { %v2402_v40 = vmul.f32 %v9470_v50, %v2401_v36  ;;  %vm2404_vm15 = vweird.f32 %v9470_v50  ;;  %v2478_v38 = vmul.f32 %v9608_v58, %v9492_v23  ;;  %v2458_v25 = vmul.f32 %v9661_v6, %v9544_v37  ;;  %3564 = vperm.xlu2 %4666, %v9672_v42   ;;  %v9702_v4 = vpop.permute.xlu0 %3379 }
 0x347   :  { %v9687_v35 = vmul.f32 %v9400_v32, %v2421_v60  ;;  %vm2423_vm2 = vweird.f32 %v9290_v20  ;;  %vm2424_vm1 = vweird.f32 %v9400_v32  ;;  %vm2473_vm14 = vweird.f32 %v9413_v41  ;;  %12501 = vst [vmem:[#allocation188_spill] sm:$0xff] %v9702_v4  ;;  %3569 = vperm.xlu1 %4665, %v9677_v9   ;;  %vm9730_vm13 = vmor %vm2403_vm9, %vm2404_vm15  ;;  %v12508_v4 = vld [vmem:[#allocation112_spill] sm:$0xff] }
 0x348   :  { %v9700_v36 = vadd.f32 1e-05, %v1414_v47  ;;  %vm2433_vm5 = vweird.f32 %v9427_v22  ;;  %v2471_v30 = vsub.f32 1.5, %v2470_v44  ;;  %4865 = vrsqrt.f32 %v9663_v61  ;;  %vm9803_vm6 = vmor %vm2423_vm2, %vm2424_vm1  ;;  %v2696_v22 = vld [vmem:[%s11659_s1 + $0x2c8] sm:$0xff] }
 0x349   :  { %v2499_v17 = vmul.f32 %v9629_v12, %v2498_v2  ;;  %v2446_v39 = vsel %vm9695_vm12, %v9437_v46, %v2442_v53  ;;  %v9724_v14 = vpop.eup %4861  ;;  %v2451_v28 = vsub.f32 1.5, %v9652_v26  ;;  %v2431_v47 = vsub.f32 1.5, %v2430_v29  ;;  %v9737_v53 = vpop.permute.xlu1 %3359 }
 0x34a   :  { %v9735_v46 = vadd.f32 1e-05, %v1410_v62  ;;  %12507 = vst [vmem:[#allocation230_spill] sm:$0xff] %v9737_v53  ;;  %v2396_v2 = vsel %vm9709_vm8, %v9301_v13, %v9590_v24  ;;  %v2479_v15 = vmul.f32 %v9608_v58, %v2478_v38  ;;  %v2459_v16 = vmul.f32 %v9661_v6, %v2458_v25  ;;  %v2694_v62 = vld [vmem:[%s11659_s1 + $0x2b8] sm:$0xff] }
 0x34b   :  { %v1412_v26 = vmul.f32 0.020408163, %v12508_v4  ;;  %v2406_v29 = vsel %vm9730_vm13, %v9470_v50, %v2402_v40  ;;  %v9755_v60 = vpop.eup %4863  ;;  %vm2474_vm4 = vweird.f32 %v9533_v19  ;;  %4867 = vrsqrt.f32 %v9700_v36  ;;  %v12509_v4 = vld [vmem:[#allocation131_spill] sm:$0xff] }
 0x34c   :  { %v1417_v13 = vmul.f32 0.020408163, %v8123_v43  ;;  %v9760_v24 = vmul.f32 %v2698_v48, %v2446_v39  ;;  %v2472_v38 = vmul.f32 %v9533_v19, %v2471_v30  ;;  %v2500_v25 = vmul.f32 0.5, %v2499_v17  ;;  %vm9789_vm9 = vmor %vm2473_vm14, %vm2474_vm4 }
 0x34d   :  { %v2528_v50 = vmul.f32 %v9724_v14, %v9603_v3  ;;  %v9765_v40 = vmul.f32 %v2693_v5, %v2396_v2  ;;  %vm2434_vm3 = vweird.f32 %v9555_v52  ;;  %4869 = vrsqrt.f32 %v9735_v46 }
 0x34e   :  { %v1413_v44 = vmul.f32 0.020408163, %v12509_v4  ;;  %3604 = vperm.xlu0 %4664, %v9760_v24   ;;  %v9771_v53 = vmul.f32 %v2694_v62, %v2406_v29  ;;  %v9773_v43 = vpop.eup %4865  ;;  %v2432_v30 = vmul.f32 %v9555_v52, %v2431_v47  ;;  %v2460_v17 = vmul.f32 0.5, %v2459_v16  ;;  %v9796_v47 = vpop.permute.xlu0 %3394  ;;  %vm9822_vm10 = vmor %vm2433_vm5, %vm2434_vm3 }
 0x34f   :  { %v2488_v39 = vmul.f32 %v9755_v60, %v9641_v11  ;;  %v9778_v48 = vadd.f32 1e-05, %v1412_v26  ;;  %3579 = vperm.xlu2 %4666, %v9765_v40   ;;  %v9782_v2 = vmul.f32 %v9495_v1, %v2451_v28  ;;  %vm2454_vm7 = vweird.f32 %v9495_v1  ;;  %12513 = vst [vmem:[#allocation131_spill] sm:$0xff] %v9796_v47  ;;  %v9814_v4 = vpop.permute.xlu2 %3414 }
 0x350   :  { %12510 = vst [vmem:[#allocation112_spill] sm:$0xff] %v9771_v53  ;;  %vm2503_vm11 = vweird.f32 %v9509_v21  ;;  %v9794_v16 = vadd.f32 1e-05, %v1417_v13  ;;  %3584 = vperm.xlu1 %4665, %v9771_v53   ;;  %v2480_v41 = vmul.f32 0.5, %v2479_v15  ;;  %v2501_v26 = vsub.f32 1.5, %v2500_v25  ;;  %v2701_v13 = vld [vmem:[%s11659_s1 + $0x2f0] sm:$0xff] }
 0x351   :  { %v2529_v29 = vmul.f32 %v9724_v14, %v2528_v50  ;;  %v2476_v62 = vsel %vm9789_vm9, %v9533_v19, %v2472_v38  ;;  %12516 = vst [vmem:[#allocation231_spill] sm:$0xff] %v9814_v4  ;;  %v9816_v47 = vpop.eup %4867  ;;  %vm2464_vm15 = vweird.f32 %v9661_v6  ;;  %v2508_v19 = vmul.f32 %v9773_v43, %v9663_v61  ;;  %v9831_v38 = vpop.permute.xlu1 %3374 }
 0x352   :  { %v9829_v15 = vadd.f32 1e-05, %v1413_v44  ;;  %12519 = vst [vmem:[#allocation232_spill] sm:$0xff] %v9831_v38  ;;  %v2426_v25 = vsel %vm9803_vm6, %v9400_v32, %v9687_v35  ;;  %v2461_v50 = vsub.f32 1.5, %v2460_v17  ;;  %v2489_v5 = vmul.f32 %v9755_v60, %v2488_v39  ;;  %v2697_v38 = vld [vmem:[%s11659_s1 + $0x2d0] sm:$0xff]  ;;  %v12520_v32 = vld [vmem:[#allocation121_spill] sm:$0xff] }
 0x353   :  { %4871 = vrsqrt.f32 %v9778_v48  ;;  %v2436_v44 = vsel %vm9822_vm10, %v9555_v52, %v2432_v30  ;;  %v9848_v4 = vpop.eup %4869  ;;  %vm2504_vm2 = vweird.f32 %v9629_v12  ;;  %v1415_v35 = vmul.f32 0.020408163, %v12520_v32 }
 0x354   :  { %4873 = vrsqrt.f32 %v9794_v16  ;;  %v9853_v17 = vmul.f32 %v2701_v13, %v2476_v62  ;;  %v2502_v39 = vmul.f32 %v9629_v12, %v2501_v26  ;;  %v2530_v28 = vmul.f32 0.5, %v2529_v29  ;;  %vm9875_vm12 = vmor %vm2503_vm11, %vm2504_vm2 }
 0x355   :  { %v2558_v52 = vmul.f32 %v9816_v47, %v9700_v36  ;;  %v9858_v30 = vmul.f32 %v2696_v22, %v2426_v25  ;;  %v2481_v20 = vsub.f32 1.5, %v2480_v41  ;;  %4875 = vrsqrt.f32 %v9829_v15 }
 0x356   :  { %v1416_v53 = vmul.f32 0.020408163, %v8071_v63  ;;  %3619 = vperm.xlu0 %4664, %v9853_v17   ;;  %v9863_v32 = vmul.f32 %v2697_v38, %v2436_v44  ;;  %v2462_v62 = vmul.f32 %v9661_v6, %v2461_v50  ;;  %v2509_v13 = vmul.f32 %v9773_v43, %v2508_v19  ;;  %v9881_v38 = vpop.permute.xlu0 %3409  ;;  %v2704_v50 = vld [vmem:[%s11659_s1 + $0x308] sm:$0xff] }
 0x357   :  { %v2490_v26 = vmul.f32 0.5, %v2489_v5  ;;  %v2518_v29 = vmul.f32 %v9848_v4, %v9735_v46  ;;  %3594 = vperm.xlu2 %4666, %v9858_v30   ;;  %vm2453_vm1 = vweird.f32 %v9388_v31  ;;  %v9879_v41 = vadd.f32 1e-05, %v1415_v35  ;;  %12523 = vst [vmem:[#allocation121_spill] sm:$0xff] %v9881_v38  ;;  %v9900_v5 = vpop.permute.xlu2 %3429 }
 0x358   :  { %3599 = vperm.xlu1 %4665, %v9863_v32   ;;  %vm9888_vm14 = vmor %vm2453_vm1, %vm2454_vm7  ;;  %vm2463_vm8 = vweird.f32 %v9544_v37  ;;  %v2531_v21 = vsub.f32 1.5, %v2530_v28  ;;  %v2559_v25 = vmul.f32 %v9816_v47, %v2558_v52  ;;  %v2506_v22 = vsel %vm9875_vm12, %v9629_v12, %v2502_v39  ;;  %12526 = vst [vmem:[#allocation233_spill] sm:$0xff] %v9900_v5  ;;  %v2699_v52 = vld [vmem:[%s11659_s1 + $0x2e0] sm:$0xff] }
 0x359   :  { %v9884_v19 = vpop.eup %4871  ;;  %v9905_v35 = vmul.f32 %v9608_v58, %v2481_v20  ;;  %vm2484_vm5 = vweird.f32 %v9608_v58  ;;  %vm9910_vm13 = vmor %vm2463_vm8, %vm2464_vm15  ;;  %v9914_v12 = vadd.f32 1e-05, %v1416_v53  ;;  %v9916_v39 = vpop.permute.xlu1 %3389  ;;  %v2456_v28 = vsel %vm9888_vm14, %v9495_v1, %v9782_v2  ;;  %v12530_v1 = vld [vmem:[#allocation124_spill] sm:$0xff] }
 0x35a   :  { %v9902_v44 = vpop.eup %4873  ;;  %12529 = vst [vmem:[#allocation234_spill] sm:$0xff] %v9916_v39  ;;  %v2510_v20 = vmul.f32 0.5, %v2509_v13  ;;  %v2491_v63 = vsub.f32 1.5, %v2490_v26  ;;  %v2519_v5 = vmul.f32 %v9848_v4, %v2518_v29  ;;  %v2466_v53 = vsel %vm9910_vm13, %v9661_v6, %v2462_v62  ;;  %v2700_v39 = vld [vmem:[%s11659_s1 + $0x2e8] sm:$0xff] }
 0x35b   :  { %v9932_v38 = vpop.eup %4875  ;;  %vm2534_vm4 = vweird.f32 %v9724_v14  ;;  %4877 = vrsqrt.f32 %v9879_v41  ;;  %v1418_v2 = vmul.f32 0.020408163, %v12530_v1  ;;  %v9937_v13 = vmul.f32 %v2704_v50, %v2506_v22 }
 0x35c   :  { %v2532_v26 = vmul.f32 %v9724_v14, %v2531_v21  ;;  %v2560_v29 = vmul.f32 0.5, %v2559_v25  ;;  %v2588_v6 = vmul.f32 %v9902_v44, %v9794_v16  ;;  %v9942_v62 = vmul.f32 %v2699_v52, %v2456_v28 }
 0x35d   :  { %v2538_v31 = vmul.f32 %v9884_v19, %v9778_v48  ;;  %vm2533_vm3 = vweird.f32 %v9603_v3  ;;  %4879 = vrsqrt.f32 %v9914_v12  ;;  %v9949_v37 = vmul.f32 %v2700_v39, %v2466_v53 }
 0x35e   :  { %3634 = vperm.xlu0 %4664, %v9937_v13   ;;  %v2492_v22 = vmul.f32 %v9755_v60, %v2491_v63  ;;  %vm2494_vm7 = vweird.f32 %v9755_v60  ;;  %v2520_v21 = vmul.f32 0.5, %v2519_v5  ;;  %v2548_v25 = vmul.f32 %v9932_v38, %v9829_v15  ;;  %vm9959_vm11 = vmor %vm2533_vm3, %vm2534_vm4  ;;  %v9965_v28 = vpop.permute.xlu0 %3424  ;;  %v2707_v63 = vld [vmem:[%s11659_s1 + $0x320] sm:$0xff] }
 0x35f   :  { %3609 = vperm.xlu2 %4666, %v9942_v62   ;;  %vm2483_vm9 = vweird.f32 %v9492_v23  ;;  %v2511_v50 = vsub.f32 1.5, %v2510_v20  ;;  %v9963_v39 = vadd.f32 1e-05, %v1418_v2  ;;  %vm2493_vm10 = vweird.f32 %v9641_v11  ;;  %v9982_v53 = vpop.permute.xlu2 %3444 }
 0x360   :  { %3614 = vperm.xlu1 %4665, %v9949_v37   ;;  %vm9970_vm6 = vmor %vm2483_vm9, %vm2484_vm5  ;;  %v2561_v23 = vsub.f32 1.5, %v2560_v29  ;;  %v2589_v52 = vmul.f32 %v9902_v44, %v2588_v6  ;;  %v2536_v20 = vsel %vm9959_vm11, %v9724_v14, %v2532_v26  ;;  %12535 = vst [vmem:[#allocation124_spill] sm:$0xff] %v9982_v53  ;;  %v2539_v11 = vmul.f32 %v9884_v19, %v2538_v31  ;;  %v2702_v26 = vld [vmem:[%s11659_s1 + $0x2f8] sm:$0xff]  ;;  %v2703_v31 = vld [vmem:[%s11659_s1 + $0x300] sm:$0xff] }
 0x361   :  { %v9984_v1 = vpop.eup %4877  ;;  %vm9988_vm15 = vmor %vm2493_vm10, %vm2494_vm7  ;;  %v9993_v29 = vpop.permute.xlu1 %3404  ;;  %v2486_v14 = vsel %vm9970_vm6, %v9608_v58, %v9905_v35  ;;  %v2521_v6 = vsub.f32 1.5, %v2520_v21  ;;  %v2549_v3 = vmul.f32 %v9932_v38, %v2548_v25  ;;  %v2512_v5 = vmul.f32 %v9773_v43, %v2511_v50 }
 0x362   :  { %12538 = vst [vmem:[#allocation235_spill] sm:$0xff] %v9993_v29  ;;  %v2496_v53 = vsel %vm9988_vm15, %v9755_v60, %v2492_v22  ;;  %vm2514_vm2 = vweird.f32 %v9773_v43  ;;  %4881 = vrsqrt.f32 %v9963_v39  ;;  %v10014_v58 = vmul.f32 %v2707_v63, %v2536_v20 }
 0x363   :  { %v10009_v29 = vpop.eup %4879  ;;  %v2562_v35 = vmul.f32 %v9816_v47, %v2561_v23  ;;  %vm2564_vm1 = vweird.f32 %v9816_v47  ;;  %v2590_v21 = vmul.f32 0.5, %v2589_v52  ;;  %v10018_v60 = vmul.f32 %v2702_v26, %v2486_v14 }
 0x364   :  { %v2540_v22 = vmul.f32 0.5, %v2539_v11  ;;  %v2568_v25 = vmul.f32 %v9984_v1, %v9879_v41  ;;  %vm2563_vm12 = vweird.f32 %v9700_v36  ;;  %v10024_v50 = vmul.f32 %v2703_v31, %v2496_v53  ;;  %v2710_v11 = vld [vmem:[%s11659_s1 + $0x338] sm:$0xff] }
 0x365   :  { %v2522_v20 = vmul.f32 %v9848_v4, %v2521_v6  ;;  %vm2524_vm14 = vweird.f32 %v9848_v4  ;;  %v2550_v23 = vmul.f32 0.5, %v2549_v3  ;;  %v2578_v52 = vmul.f32 %v10009_v29, %v9914_v12  ;;  %vm10032_vm5 = vmor %vm2563_vm12, %vm2564_vm1 }
 0x366   :  { %3649 = vperm.xlu0 %4664, %v10014_v58   ;;  %vm2513_vm8 = vweird.f32 %v9663_v61  ;;  %v10036_v36 = vpop.permute.xlu0 %3439  ;;  %vm2523_vm4 = vweird.f32 %v9735_v46  ;;  %v2591_v2 = vsub.f32 1.5, %v2590_v21  ;;  %v2566_v61 = vsel %vm10032_vm5, %v9816_v47, %v2562_v35  ;;  %v2705_v35 = vld [vmem:[%s11659_s1 + $0x310] sm:$0xff] }
 0x367   :  { %3624 = vperm.xlu2 %4666, %v10018_v60   ;;  %vm10041_vm13 = vmor %vm2513_vm8, %vm2514_vm2  ;;  %v10052_v14 = vpop.permute.xlu2 %3459  ;;  %v2541_v6 = vsub.f32 1.5, %v2540_v22  ;;  %v2569_v46 = vmul.f32 %v9984_v1, %v2568_v25  ;;  %v2551_v21 = vsub.f32 1.5, %v2550_v23  ;;  %v2579_v22 = vmul.f32 %v10009_v29, %v2578_v52  ;;  %v2706_v25 = vld [vmem:[%s11659_s1 + $0x318] sm:$0xff] }
 0x368   :  { %3629 = vperm.xlu1 %4665, %v10024_v50   ;;  %v10054_v26 = vpop.eup %4881  ;;  %vm10058_vm3 = vmor %vm2523_vm4, %vm2524_vm14  ;;  %v2516_v47 = vsel %vm10041_vm13, %v9773_v43, %v2512_v5  ;;  %vm2544_vm7 = vweird.f32 %v9884_v19  ;;  %v2592_v43 = vmul.f32 %v9902_v44, %v2591_v2  ;;  %vm2594_vm9 = vweird.f32 %v9902_v44 }
 0x369   :  { %v10063_v31 = vpop.permute.xlu1 %3419  ;;  %v2526_v63 = vsel %vm10058_vm3, %v9848_v4, %v2522_v20  ;;  %v10083_v5 = vmul.f32 %v2705_v35, %v2516_v47  ;;  %v2542_v23 = vmul.f32 %v9884_v19, %v2541_v6  ;;  %v2570_v52 = vmul.f32 0.5, %v2569_v46 }
 0x36a   :  { %12545 = vst [vmem:[#allocation236_spill] sm:$0xff] %v10063_v31  ;;  %v10078_v31 = vmul.f32 %v2710_v11, %v2566_v61  ;;  %v2598_v4 = vmul.f32 %v10054_v26, %v9963_v39  ;;  %v10089_v20 = vmul.f32 %v2706_v25, %v2526_v63  ;;  %v2552_v53 = vmul.f32 %v9932_v38, %v2551_v21  ;;  %v2824_v61 = vld [vmem:[%s11660_s2 + $0x8] sm:$0xff] }
 0x36b   :  { %vm2554_vm11 = vweird.f32 %v9932_v38  ;;  %vm2593_vm6 = vweird.f32 %v9794_v16  ;;  %v2580_v2 = vmul.f32 0.5, %v2579_v22  ;;  %vm2543_vm10 = vweird.f32 %v9778_v48  ;;  %v2713_v48 = vld [vmem:[%s11659_s1 + $0x350] sm:$0xff] }
 0x36c   :  { %vm10096_vm15 = vmor %vm2593_vm6, %vm2594_vm9  ;;  %vm2553_vm1 = vweird.f32 %v9829_v15  ;;  %v2571_v3 = vsub.f32 1.5, %v2570_v52  ;;  %v2599_v46 = vmul.f32 %v10054_v26, %v2598_v4  ;;  %v2708_v15 = vld [vmem:[%s11659_s1 + $0x328] sm:$0xff]  ;;  %v2709_v22 = vld [vmem:[%s11659_s1 + $0x330] sm:$0xff]  ;;  %vm2574_vm14 = vweird.f32 %v9984_v1 }
 0x36d   :  { %vm2545_vm2 = vmor %vm2543_vm10, %vm2544_vm7  ;;  %v2596_v16 = vsel %vm10096_vm15, %v9902_v44, %v2592_v43  ;;  %v2581_v21 = vsub.f32 1.5, %v2580_v2  ;;  %vm2584_vm8 = vweird.f32 %v10009_v29  ;;  %vm2573_vm5 = vweird.f32 %v9879_v41  ;;  %v12548_v4 = vld [vmem:[#allocation53_spill] sm:$0xff] }
 0x36e   :  { %3664 = vperm.xlu0 %4664, %v10078_v31   ;;  %v10100_v11 = vpop.permute.xlu0 %3454  ;;  %vm2555_vm12 = vmor %vm2553_vm1, %vm2554_vm11  ;;  %v2546_v35 = vsel %vm2545_vm2, %v9884_v19, %v2542_v23  ;;  %v10125_v63 = vmul.f32 %v2713_v48, %v2596_v16  ;;  %v2572_v43 = vmul.f32 %v9984_v1, %v2571_v3  ;;  %v2600_v19 = vmul.f32 0.5, %v2599_v46  ;;  %v2711_v46 = vld [vmem:[%s11659_s1 + $0x340] sm:$0xff] }
 0x36f   :  { %3639 = vperm.xlu2 %4666, %v10083_v5   ;;  %v10112_v6 = vpop.permute.xlu2 %3474  ;;  %v2556_v44 = vsel %vm2555_vm12, %v9932_v38, %v2552_v53  ;;  %v10127_v25 = vmul.f32 %v2708_v15, %v2546_v35  ;;  %v2582_v52 = vmul.f32 %v10009_v29, %v2581_v21  ;;  %v12549_v53 = vld [vmem:[#allocation147_spill] sm:$0xff]  ;;  %vm2575_vm13 = vmor %vm2573_vm5, %vm2574_vm14  ;;  %vm2583_vm4 = vweird.f32 %v9914_v12 }
 0x370   :  { %3644 = vperm.xlu1 %4665, %v10089_v20   ;;  %v10132_v23 = vmul.f32 %v2709_v22, %v2556_v44  ;;  %v2932_v2 = vmul.f32 %v12549_v53, %v12548_v4  ;;  %v2601_v48 = vsub.f32 1.5, %v2600_v19  ;;  %vm2585_vm3 = vmor %vm2583_vm4, %vm2584_vm8  ;;  %v2576_v41 = vsel %vm2575_vm13, %v9984_v1, %v2572_v43  ;;  %v2712_v12 = vld [vmem:[%s11659_s1 + $0x348] sm:$0xff] }
 0x371   :  { %v10115_v47 = vpop.permute.xlu1 %3434  ;;  %v2586_v35 = vsel %vm2585_vm3, %v10009_v29, %v2582_v52  ;;  %v10159_v21 = vmul.f32 %v2711_v46, %v2576_v41  ;;  %vm2604_vm7 = vweird.f32 %v10054_v26  ;;  %vm2603_vm9 = vweird.f32 %v9963_v39  ;;  %v12553_v29 = vld [vmem:[#allocation58_spill] sm:$0xff]  ;;  %v12554_v43 = vld [vmem:[#allocation151_spill] sm:$0xff]  ;;  %v2714_v39 = vld [vmem:[%s11659_s1 + $0x358] sm:$0xff] }
 0x372   :  { %v3040_v15 = vsub.f32 %v2824_v61, %v2932_v2  ;;  %v2602_v44 = vmul.f32 %v10054_v26, %v2601_v48  ;;  %v10163_v22 = vmul.f32 %v2712_v12, %v2586_v35  ;;  %v2935_v19 = vmul.f32 %v12554_v43, %v12553_v29  ;;  %vm2605_vm11 = vmor %vm2603_vm9, %vm2604_vm7  ;;  %v2827_v52 = vld [vmem:[%s11660_s2 + $0x20] sm:$0xff]  ;;  %v12557_v61 = vld [vmem:[#allocation56_spill] sm:$0xff] }
 0x373   :  { %12550 = vst [vmem:[#allocation53_spill] sm:$0xff] %v10159_v21  ;;  %v12558_v48 = vld [vmem:[#allocation143_spill] sm:$0xff]  ;;  %v2823_v46 = vld [vmem:[%s11660_s2] sm:$0xff] }
 0x374   :  { %12551 = vst [vmem:[#allocation147_spill] sm:$0xff] %v10163_v22  ;;  %v2606_v2 = vsel %vm2605_vm11, %v10054_v26, %v2602_v44  ;;  %v2931_v41 = vmul.f32 %v12558_v48, %v12557_v61  ;;  %v3043_v35 = vsub.f32 %v2827_v52, %v2935_v19  ;;  %v12561_v26 = vld [vmem:[#allocation62_spill] sm:$0xff]  ;;  %v12562_v44 = vld [vmem:[#allocation148_spill] sm:$0xff]  ;;  %v2830_v61 = vld [vmem:[%s11660_s2 + $0x38] sm:$0xff] }
 0x375   :  { %v10188_v12 = vmul.f32 %v2714_v39, %v2606_v2  ;;  %v2938_v43 = vmul.f32 %v12562_v44, %v12561_v26  ;;  %v12563_v48 = vld [vmem:[#allocation52_spill] sm:$0xff] }
 0x376   :  { %3679 = vperm.xlu0 %4664, %v10125_v63   ;;  %v10138_v38 = vpop.permute.xlu0 %3469  ;;  %v2825_v2 = vld [vmem:[%s11660_s2 + $0x10] sm:$0xff] }
 0x377   :  { %3654 = vperm.xlu2 %4666, %v10127_v25   ;;  %v10147_v16 = vpop.permute.xlu2 %3489  ;;  %12559 = vst [vmem:[#allocation56_spill] sm:$0xff] %v10188_v12  ;;  %v12567_v39 = vld [vmem:[#allocation60_spill] sm:$0xff] }
 0x378   :  { %3659 = vperm.xlu1 %4665, %v10132_v23  }
 0x379   :  { %v10149_v3 = vpop.permute.xlu1 %3449 }
 0x37e   :  { %3802 = vperm.xlu0 %4664, %v3040_v15   ;;  %v10167_v1 = vpop.permute.xlu0 %3484  ;;  %v3039_v15 = vsub.f32 %v2823_v46, %v2931_v41  ;;  %v12568_v41 = vld [vmem:[#allocation150_spill] sm:$0xff] }
 0x37f   :  { %3669 = vperm.xlu2 %4666, %v10159_v21   ;;  %12552 = vst [vmem:[#allocation237_spill] sm:$0xff] %v10167_v1  ;;  %v10175_v4 = vpop.permute.xlu2 %3504  ;;  %v2934_v46 = vmul.f32 %v12568_v41, %v12567_v39  ;;  %v12572_v39 = vld [vmem:[#allocation59_spill] sm:$0xff]  ;;  %v12573_v41 = vld [vmem:[#allocation153_spill] sm:$0xff] }
 0x380   :  { %3674 = vperm.xlu1 %4665, %v10163_v22   ;;  %12555 = vst [vmem:[#allocation58_spill] sm:$0xff] %v10175_v4 }
 0x381   :  { %v10177_v53 = vpop.permute.xlu1 %3464 }
 0x382   :  { %12556 = vst [vmem:[#allocation151_spill] sm:$0xff] %v10177_v53  ;;  %v12564_v53 = vld [vmem:[#allocation146_spill] sm:$0xff] }
 0x383   :  { %v2933_v4 = vmul.f32 %v12564_v53, %v12563_v48  ;;  %v12570_v48 = vld [vmem:[#allocation65_spill] sm:$0xff] }
 0x385   :  { %v3041_v26 = vsub.f32 %v2825_v2, %v2933_v4  ;;  %v2828_v4 = vld [vmem:[%s11660_s2 + $0x28] sm:$0xff]  ;;  %v12577_v2 = vld [vmem:[#allocation154_spill] sm:$0xff] }
 0x386   :  { %3817 = vperm.xlu0 %4664, %v3043_v35   ;;  %v10191_v29 = vpop.permute.xlu0 %3499  ;;  %v2826_v35 = vld [vmem:[%s11660_s2 + $0x18] sm:$0xff] }
 0x387   :  { %3684 = vperm.xlu2 %4666, %v10188_v12   ;;  %12560 = vst [vmem:[#allocation143_spill] sm:$0xff] %v10191_v29  ;;  %v10200_v19 = vpop.permute.xlu2 %3519  ;;  %v3042_v44 = vsub.f32 %v2826_v35, %v2934_v46  ;;  %v2833_v29 = vld [vmem:[%s11660_s2 + $0x50] sm:$0xff]  ;;  %v2936_v12 = vmul.f32 %v12573_v41, %v12572_v39  ;;  %v12580_v39 = vld [vmem:[#allocation155_spill] sm:$0xff] }
 0x388   :  { %3797 = vperm.xlu1 %4665, %v3039_v15   ;;  %12565 = vst [vmem:[#allocation62_spill] sm:$0xff] %v10200_v19  ;;  %v3046_v15 = vsub.f32 %v2830_v61, %v2938_v43  ;;  %v12576_v61 = vld [vmem:[#allocation63_spill] sm:$0xff] }
 0x389   :  { %v10202_v52 = vpop.permute.xlu1 %3479  ;;  %v2937_v46 = vmul.f32 %v12577_v2, %v12576_v61  ;;  %v12581_v61 = vld [vmem:[#allocation61_spill] sm:$0xff]  ;;  %v12582_v2 = vld [vmem:[#allocation156_spill] sm:$0xff] }
 0x38a   :  { %12566 = vst [vmem:[#allocation148_spill] sm:$0xff] %v10202_v52  ;;  %v12571_v52 = vld [vmem:[#allocation152_spill] sm:$0xff] }
 0x38b   :  { %v2941_v19 = vmul.f32 %v12571_v52, %v12570_v48  ;;  %v2829_v52 = vld [vmem:[%s11660_s2 + $0x30] sm:$0xff] }
 0x38c   :  { %v12579_v48 = vld [vmem:[#allocation68_spill] sm:$0xff] }
 0x38d   :  { %v3049_v35 = vsub.f32 %v2833_v29, %v2941_v19  ;;  %v2944_v41 = vmul.f32 %v12580_v39, %v12579_v48  ;;  %v12585_v19 = vld [vmem:[#allocation66_spill] sm:$0xff]  ;;  %v12588_v39 = vld [vmem:[#allocation71_spill] sm:$0xff] }
 0x38e   :  { %3832 = vperm.xlu0 %4664, %v3046_v15   ;;  %v10212_v53 = vpop.permute.xlu0 %3514  ;;  %v3044_v15 = vsub.f32 %v2828_v4, %v2936_v12  ;;  %v2831_v12 = vld [vmem:[%s11660_s2 + $0x40] sm:$0xff]  ;;  %v12586_v4 = vld [vmem:[#allocation157_spill] sm:$0xff] }
 0x38f   :  { %3807 = vperm.xlu2 %4666, %v3041_v26   ;;  %12569 = vst [vmem:[#allocation52_spill] sm:$0xff] %v10212_v53  ;;  %v10221_v1 = vpop.permute.xlu2 %3534  ;;  %v3045_v26 = vsub.f32 %v2829_v52, %v2937_v46  ;;  %v2940_v46 = vmul.f32 %v12586_v4, %v12585_v19  ;;  %v2832_v52 = vld [vmem:[%s11660_s2 + $0x48] sm:$0xff]  ;;  %v12590_v19 = vld [vmem:[#allocation64_spill] sm:$0xff] }
 0x390   :  { %3812 = vperm.xlu1 %4665, %v3042_v44   ;;  %12574 = vst [vmem:[#allocation146_spill] sm:$0xff] %v10221_v1  ;;  %v2939_v1 = vmul.f32 %v12582_v2, %v12581_v61  ;;  %v12589_v61 = vld [vmem:[#allocation158_spill] sm:$0xff]  ;;  %v12591_v4 = vld [vmem:[#allocation160_spill] sm:$0xff] }
 0x391   :  { %v10223_v43 = vpop.permute.xlu1 %3494  ;;  %v2947_v2 = vmul.f32 %v12589_v61, %v12588_v39  ;;  %v12597_v61 = vld [vmem:[#allocation74_spill] sm:$0xff] }
 0x392   :  { %12575 = vst [vmem:[#allocation60_spill] sm:$0xff] %v10223_v43  ;;  %v2836_v43 = vld [vmem:[%s11660_s2 + $0x68] sm:$0xff] }
 0x396   :  { %3847 = vperm.xlu0 %4664, %v3049_v35   ;;  %v10233_v44 = vpop.permute.xlu0 %3529  ;;  %v3052_v35 = vsub.f32 %v2836_v43, %v2944_v41  ;;  %v12594_v41 = vld [vmem:[#allocation69_spill] sm:$0xff] }
 0x397   :  { %3822 = vperm.xlu2 %4666, %v3044_v15   ;;  %12578 = vst [vmem:[#allocation150_spill] sm:$0xff] %v10233_v44  ;;  %v3047_v15 = vsub.f32 %v2831_v12, %v2939_v1  ;;  %v2834_v1 = vld [vmem:[%s11660_s2 + $0x58] sm:$0xff] }
 0x398   :  { %3827 = vperm.xlu1 %4665, %v3045_v26   ;;  %v10242_v53 = vpop.permute.xlu2 %3549  ;;  %v3048_v26 = vsub.f32 %v2832_v52, %v2940_v46  ;;  %v12595_v12 = vld [vmem:[#allocation161_spill] sm:$0xff]  ;;  %v2835_v52 = vld [vmem:[%s11660_s2 + $0x60] sm:$0xff] }
 0x399   :  { %12583 = vst [vmem:[#allocation65_spill] sm:$0xff] %v10242_v53  ;;  %v10244_v29 = vpop.permute.xlu1 %3509  ;;  %v2942_v53 = vmul.f32 %v12591_v4, %v12590_v19  ;;  %v2943_v46 = vmul.f32 %v12595_v12, %v12594_v41  ;;  %v12598_v19 = vld [vmem:[#allocation163_spill] sm:$0xff]  ;;  %v12600_v12 = vld [vmem:[#allocation166_spill] sm:$0xff] }
 0x39a   :  { %12584 = vst [vmem:[#allocation152_spill] sm:$0xff] %v10244_v29  ;;  %v2839_v29 = vld [vmem:[%s11660_s2 + $0x80] sm:$0xff]  ;;  %v2950_v4 = vmul.f32 %v12598_v19, %v12597_v61  ;;  %v12599_v41 = vld [vmem:[#allocation67_spill] sm:$0xff]  ;;  %v12606_v19 = vld [vmem:[#allocation77_spill] sm:$0xff] }
 0x39e   :  { %3862 = vperm.xlu0 %4664, %v3052_v35   ;;  %v10254_v48 = vpop.permute.xlu0 %3544  ;;  %v3055_v35 = vsub.f32 %v2839_v29, %v2947_v2  ;;  %v12603_v2 = vld [vmem:[#allocation72_spill] sm:$0xff] }
 0x39f   :  { %3837 = vperm.xlu2 %4666, %v3047_v15   ;;  %12587 = vst [vmem:[#allocation59_spill] sm:$0xff] %v10254_v48  ;;  %v3050_v15 = vsub.f32 %v2834_v1, %v2942_v53  ;;  %v2837_v53 = vld [vmem:[%s11660_s2 + $0x70] sm:$0xff]  ;;  %v12604_v1 = vld [vmem:[#allocation167_spill] sm:$0xff] }
 0x3a0   :  { %3842 = vperm.xlu1 %4665, %v3048_v26   ;;  %v10263_v44 = vpop.permute.xlu2 %3564  ;;  %v3051_v26 = vsub.f32 %v2835_v52, %v2943_v46  ;;  %v2946_v46 = vmul.f32 %v12604_v1, %v12603_v2  ;;  %v2838_v52 = vld [vmem:[%s11660_s2 + $0x78] sm:$0xff]  ;;  %v12608_v2 = vld [vmem:[#allocation70_spill] sm:$0xff]  ;;  %v12609_v1 = vld [vmem:[#allocation171_spill] sm:$0xff] }
 0x3a1   :  { %12592 = vst [vmem:[#allocation153_spill] sm:$0xff] %v10263_v44  ;;  %v10265_v43 = vpop.permute.xlu1 %3524  ;;  %v2945_v44 = vmul.f32 %v12600_v12, %v12599_v41  ;;  %v12607_v41 = vld [vmem:[#allocation169_spill] sm:$0xff] }
 0x3a2   :  { %12593 = vst [vmem:[#allocation63_spill] sm:$0xff] %v10265_v43  ;;  %v2842_v43 = vld [vmem:[%s11660_s2 + $0x98] sm:$0xff]  ;;  %v2953_v12 = vmul.f32 %v12607_v41, %v12606_v19  ;;  %v12615_v41 = vld [vmem:[#allocation80_spill] sm:$0xff] }
 0x3a6   :  { %3877 = vperm.xlu0 %4664, %v3055_v35   ;;  %v10275_v39 = vpop.permute.xlu0 %3559  ;;  %v3058_v35 = vsub.f32 %v2842_v43, %v2950_v4  ;;  %v12612_v4 = vld [vmem:[#allocation75_spill] sm:$0xff] }
 0x3a7   :  { %3852 = vperm.xlu2 %4666, %v3050_v15   ;;  %12596 = vst [vmem:[#allocation154_spill] sm:$0xff] %v10275_v39  ;;  %v3053_v15 = vsub.f32 %v2837_v53, %v2945_v44  ;;  %v2840_v44 = vld [vmem:[%s11660_s2 + $0x88] sm:$0xff]  ;;  %v12613_v53 = vld [vmem:[#allocation173_spill] sm:$0xff] }
 0x3a8   :  { %3857 = vperm.xlu1 %4665, %v3051_v26   ;;  %v3054_v26 = vsub.f32 %v2838_v52, %v2946_v46  ;;  %v2949_v46 = vmul.f32 %v12613_v53, %v12612_v4  ;;  %v2841_v52 = vld [vmem:[%s11660_s2 + $0x90] sm:$0xff]  ;;  %v12617_v4 = vld [vmem:[#allocation73_spill] sm:$0xff]  ;;  %v12618_v53 = vld [vmem:[#allocation98_spill] sm:$0xff] }
 0x3a9   :  { %v10284_v48 = vpop.permute.xlu2 %3579  ;;  %v10286_v29 = vpop.permute.xlu1 %3539 }
 0x3aa   :  { %12601 = vst [vmem:[#allocation68_spill] sm:$0xff] %v10284_v48  ;;  %v2948_v48 = vmul.f32 %v12609_v1, %v12608_v2  ;;  %v12616_v2 = vld [vmem:[#allocation175_spill] sm:$0xff] }
 0x3ab   :  { %12602 = vst [vmem:[#allocation155_spill] sm:$0xff] %v10286_v29  ;;  %v2845_v29 = vld [vmem:[%s11660_s2 + $0xb0] sm:$0xff]  ;;  %v2956_v1 = vmul.f32 %v12616_v2, %v12615_v41 }
 0x3ac   :  { %v12624_v2 = vld [vmem:[#allocation20_spill] sm:$0xff] }
 0x3ae   :  { %3892 = vperm.xlu0 %4664, %v3058_v35   ;;  %v3061_v35 = vsub.f32 %v2845_v29, %v2953_v12  ;;  %v12621_v12 = vld [vmem:[#allocation78_spill] sm:$0xff] }
 0x3af   :  { %3867 = vperm.xlu2 %4666, %v3053_v15   ;;  %v10296_v61 = vpop.permute.xlu0 %3574  ;;  %v3056_v15 = vsub.f32 %v2840_v44, %v2948_v48  ;;  %v2843_v48 = vld [vmem:[%s11660_s2 + $0xa0] sm:$0xff]  ;;  %v12622_v44 = vld [vmem:[#allocation177_spill] sm:$0xff] }
 0x3b0   :  { %12605 = vst [vmem:[#allocation61_spill] sm:$0xff] %v10296_v61  ;;  %3872 = vperm.xlu1 %4665, %v3054_v26   ;;  %v3057_v26 = vsub.f32 %v2841_v52, %v2949_v46  ;;  %v2952_v46 = vmul.f32 %v12622_v44, %v12621_v12  ;;  %v2844_v52 = vld [vmem:[%s11660_s2 + $0xa8] sm:$0xff]  ;;  %v12626_v12 = vld [vmem:[#allocation76_spill] sm:$0xff] }
 0x3b1   :  { %v10305_v39 = vpop.permute.xlu2 %3594  ;;  %v10307_v43 = vpop.permute.xlu1 %3554  ;;  %v12627_v44 = vld [vmem:[#allocation180_spill] sm:$0xff] }
 0x3b2   :  { %12610 = vst [vmem:[#allocation156_spill] sm:$0xff] %v10305_v39  ;;  %v2951_v39 = vmul.f32 %v12618_v53, %v12617_v4  ;;  %v12625_v4 = vld [vmem:[#allocation179_spill] sm:$0xff] }
 0x3b3   :  { %12611 = vst [vmem:[#allocation66_spill] sm:$0xff] %v10307_v43  ;;  %v2848_v43 = vld [vmem:[%s11660_s2 + $0xc8] sm:$0xff]  ;;  %v2959_v53 = vmul.f32 %v12625_v4, %v12624_v2 }
 0x3b4   :  { %v12633_v4 = vld [vmem:[#allocation3_spill] sm:$0xff] }
 0x3b6   :  { %3907 = vperm.xlu0 %4664, %v3061_v35   ;;  %v3064_v35 = vsub.f32 %v2848_v43, %v2956_v1  ;;  %v12630_v1 = vld [vmem:[#allocation81_spill] sm:$0xff] }
 0x3b7   :  { %3882 = vperm.xlu2 %4666, %v3056_v15   ;;  %v10317_v19 = vpop.permute.xlu0 %3589  ;;  %v3059_v15 = vsub.f32 %v2843_v48, %v2951_v39  ;;  %v2846_v39 = vld [vmem:[%s11660_s2 + $0xb8] sm:$0xff] }
 0x3b8   :  { %12614 = vst [vmem:[#allocation157_spill] sm:$0xff] %v10317_v19  ;;  %3887 = vperm.xlu1 %4665, %v3057_v26   ;;  %v3060_v26 = vsub.f32 %v2844_v52, %v2952_v46  ;;  %v12631_v48 = vld [vmem:[#allocation181_spill] sm:$0xff]  ;;  %v2847_v52 = vld [vmem:[%s11660_s2 + $0xc0] sm:$0xff] }
 0x3b9   :  { %v10326_v61 = vpop.permute.xlu2 %3609  ;;  %v10328_v29 = vpop.permute.xlu1 %3569  ;;  %v2955_v46 = vmul.f32 %v12631_v48, %v12630_v1  ;;  %v12635_v1 = vld [vmem:[#allocation79_spill] sm:$0xff]  ;;  %v12636_v48 = vld [vmem:[#allocation106_spill] sm:$0xff] }
 0x3ba   :  { %12619 = vst [vmem:[#allocation71_spill] sm:$0xff] %v10326_v61  ;;  %v2954_v61 = vmul.f32 %v12627_v44, %v12626_v12  ;;  %v12634_v12 = vld [vmem:[#allocation183_spill] sm:$0xff] }
 0x3bb   :  { %12620 = vst [vmem:[#allocation158_spill] sm:$0xff] %v10328_v29  ;;  %v2851_v29 = vld [vmem:[%s11660_s2 + $0xe0] sm:$0xff]  ;;  %v2962_v44 = vmul.f32 %v12634_v12, %v12633_v4  ;;  %v12642_v12 = vld [vmem:[#allocation23_spill] sm:$0xff] }
 0x3be   :  { %3922 = vperm.xlu0 %4664, %v3064_v35   ;;  %v3067_v35 = vsub.f32 %v2851_v29, %v2959_v53  ;;  %v12639_v53 = vld [vmem:[#allocation21_spill] sm:$0xff] }
 0x3bf   :  { %3897 = vperm.xlu2 %4666, %v3059_v15   ;;  %v3062_v15 = vsub.f32 %v2846_v39, %v2954_v61  ;;  %v2849_v61 = vld [vmem:[%s11660_s2 + $0xd0] sm:$0xff]  ;;  %v12640_v39 = vld [vmem:[#allocation109_spill] sm:$0xff] }
 0x3c0   :  { %v10338_v41 = vpop.permute.xlu0 %3604  ;;  %3902 = vperm.xlu1 %4665, %v3060_v26   ;;  %v3063_v26 = vsub.f32 %v2847_v52, %v2955_v46  ;;  %v2958_v46 = vmul.f32 %v12640_v39, %v12639_v53  ;;  %v2850_v52 = vld [vmem:[%s11660_s2 + $0xd8] sm:$0xff]  ;;  %v12644_v53 = vld [vmem:[#allocation19_spill] sm:$0xff]  ;;  %v12645_v39 = vld [vmem:[#allocation184_spill] sm:$0xff] }
 0x3c1   :  { %12623 = vst [vmem:[#allocation64_spill] sm:$0xff] %v10338_v41  ;;  %v10347_v19 = vpop.permute.xlu2 %3624 }
 0x3c2   :  { %12628 = vst [vmem:[#allocation160_spill] sm:$0xff] %v10347_v19  ;;  %v10349_v43 = vpop.permute.xlu1 %3584  ;;  %v2957_v19 = vmul.f32 %v12636_v48, %v12635_v1  ;;  %v12643_v1 = vld [vmem:[#allocation115_spill] sm:$0xff] }
 0x3c3   :  { %12629 = vst [vmem:[#allocation69_spill] sm:$0xff] %v10349_v43  ;;  %v2854_v43 = vld [vmem:[%s11660_s2 + $0xf8] sm:$0xff]  ;;  %v2965_v48 = vmul.f32 %v12643_v1, %v12642_v12  ;;  %v12651_v1 = vld [vmem:[#allocation6_spill] sm:$0xff] }
 0x3c6   :  { %3937 = vperm.xlu0 %4664, %v3067_v35   ;;  %v3070_v35 = vsub.f32 %v2854_v43, %v2962_v44  ;;  %v12648_v44 = vld [vmem:[#allocation4_spill] sm:$0xff] }
 0x3c7   :  { %3912 = vperm.xlu2 %4666, %v3062_v15   ;;  %v3065_v15 = vsub.f32 %v2849_v61, %v2957_v19  ;;  %v2852_v19 = vld [vmem:[%s11660_s2 + $0xe8] sm:$0xff]  ;;  %v12649_v61 = vld [vmem:[#allocation185_spill] sm:$0xff] }
 0x3c8   :  { %v10359_v2 = vpop.permute.xlu0 %3619  ;;  %3917 = vperm.xlu1 %4665, %v3063_v26   ;;  %v3066_v26 = vsub.f32 %v2850_v52, %v2958_v46  ;;  %v2961_v46 = vmul.f32 %v12649_v61, %v12648_v44  ;;  %v2853_v52 = vld [vmem:[%s11660_s2 + $0xf0] sm:$0xff]  ;;  %v12653_v44 = vld [vmem:[#allocation2_spill] sm:$0xff] }
 0x3c9   :  { %12632 = vst [vmem:[#allocation161_spill] sm:$0xff] %v10359_v2  ;;  %v10368_v41 = vpop.permute.xlu2 %3639  ;;  %v12654_v61 = vld [vmem:[#allocation186_spill] sm:$0xff] }
 0x3ca   :  { %12637 = vst [vmem:[#allocation74_spill] sm:$0xff] %v10368_v41  ;;  %v10370_v29 = vpop.permute.xlu1 %3599  ;;  %v2960_v41 = vmul.f32 %v12645_v39, %v12644_v53  ;;  %v12652_v53 = vld [vmem:[#allocation127_spill] sm:$0xff] }
 0x3cb   :  { %12638 = vst [vmem:[#allocation163_spill] sm:$0xff] %v10370_v29  ;;  %v2857_v29 = vld [vmem:[%s11660_s2 + $0x110] sm:$0xff]  ;;  %v2968_v39 = vmul.f32 %v12652_v53, %v12651_v1  ;;  %v12660_v53 = vld [vmem:[#allocation26_spill] sm:$0xff] }
 0x3ce   :  { %3952 = vperm.xlu0 %4664, %v3070_v35   ;;  %v3073_v35 = vsub.f32 %v2857_v29, %v2965_v48  ;;  %v12657_v48 = vld [vmem:[#allocation24_spill] sm:$0xff] }
 0x3cf   :  { %3927 = vperm.xlu2 %4666, %v3065_v15   ;;  %v3068_v15 = vsub.f32 %v2852_v19, %v2960_v41  ;;  %v2855_v41 = vld [vmem:[%s11660_s2 + $0x100] sm:$0xff]  ;;  %v12658_v19 = vld [vmem:[#allocation187_spill] sm:$0xff] }
 0x3d0   :  { %v10380_v4 = vpop.permute.xlu0 %3634  ;;  %3932 = vperm.xlu1 %4665, %v3066_v26   ;;  %v3069_v26 = vsub.f32 %v2853_v52, %v2961_v46  ;;  %v2964_v46 = vmul.f32 %v12658_v19, %v12657_v48  ;;  %v2856_v52 = vld [vmem:[%s11660_s2 + $0x108] sm:$0xff]  ;;  %v12662_v48 = vld [vmem:[#allocation22_spill] sm:$0xff]  ;;  %v12663_v19 = vld [vmem:[#allocation137_spill] sm:$0xff] }
 0x3d1   :  { %12641 = vst [vmem:[#allocation67_spill] sm:$0xff] %v10380_v4  ;;  %v10389_v2 = vpop.permute.xlu2 %3654 }
 0x3d2   :  { %12646 = vst [vmem:[#allocation166_spill] sm:$0xff] %v10389_v2  ;;  %v10391_v43 = vpop.permute.xlu1 %3614  ;;  %v2963_v2 = vmul.f32 %v12654_v61, %v12653_v44  ;;  %v12661_v44 = vld [vmem:[#allocation133_spill] sm:$0xff] }
 0x3d3   :  { %12647 = vst [vmem:[#allocation72_spill] sm:$0xff] %v10391_v43  ;;  %v2860_v43 = vld [vmem:[%s11660_s2 + $0x128] sm:$0xff]  ;;  %v2971_v61 = vmul.f32 %v12661_v44, %v12660_v53  ;;  %v4947_v53 = vld [vmem:[%s11658_s0 + $0x10] sm:$0xff]  ;;  %v12668_v44 = vld [vmem:[#allocation130_spill] sm:$0xff] }
 0x3d6   :  { %3967 = vperm.xlu0 %4664, %v3073_v35   ;;  %v3076_v35 = vsub.f32 %v2860_v43, %v2968_v39  ;;  %v12666_v39 = vld [vmem:[#allocation7_spill] sm:$0xff] }
 0x3d7   :  { %3942 = vperm.xlu2 %4666, %v3068_v15   ;;  %v3071_v15 = vsub.f32 %v2855_v41, %v2963_v2  ;;  %v2858_v2 = vld [vmem:[%s11660_s2 + $0x118] sm:$0xff] }
 0x3d8   :  { %v10401_v12 = vpop.permute.xlu0 %3649  ;;  %3947 = vperm.xlu1 %4665, %v3069_v26   ;;  %v3072_v26 = vsub.f32 %v2856_v52, %v2964_v46  ;;  %v12667_v41 = vld [vmem:[#allocation189_spill] sm:$0xff]  ;;  %v2859_v52 = vld [vmem:[%s11660_s2 + $0x120] sm:$0xff] }
 0x3d9   :  { %12650 = vst [vmem:[#allocation167_spill] sm:$0xff] %v10401_v12  ;;  %v10410_v4 = vpop.permute.xlu2 %3669  ;;  %v2967_v46 = vmul.f32 %v12667_v41, %v12666_v39 }
 0x3da   :  { %12655 = vst [vmem:[#allocation77_spill] sm:$0xff] %v10410_v4  ;;  %v10412_v29 = vpop.permute.xlu1 %3629  ;;  %v2966_v4 = vmul.f32 %v12663_v19, %v12662_v48  ;;  %v3689_v48 = vmul.f32 %v4947_v53, %v12668_v44 }
 0x3db   :  { %12656 = vst [vmem:[#allocation169_spill] sm:$0xff] %v10412_v29  ;;  %v2863_v29 = vld [vmem:[%s11660_s2 + $0x140] sm:$0xff] }
 0x3de   :  { %3982 = vperm.xlu0 %4664, %v3076_v35   ;;  %v3079_v35 = vsub.f32 %v2863_v29, %v2971_v61  ;;  %v2866_v29 = vld [vmem:[%s11660_s2 + $0x158] sm:$0xff]  ;;  %v12672_v61 = vld [vmem:[#allocation140_spill] sm:$0xff] }
 0x3df   :  { %3957 = vperm.xlu2 %4666, %v3071_v15   ;;  %v3074_v15 = vsub.f32 %v2858_v2, %v2966_v4  ;;  %v12671_v4 = vld [vmem:[#allocation5_spill] sm:$0xff] }
 0x3e0   :  { %v10422_v1 = vpop.permute.xlu0 %3664  ;;  %3962 = vperm.xlu1 %4665, %v3072_v26   ;;  %v3075_v26 = vsub.f32 %v2859_v52, %v2967_v46  ;;  %v2969_v2 = vmul.f32 %v12672_v61, %v12671_v4  ;;  %v2861_v52 = vld [vmem:[%s11660_s2 + $0x130] sm:$0xff]  ;;  %v4948_v61 = vld [vmem:[%s11658_s0 + $0x8] sm:$0xff] }
 0x3e1   :  { %12659 = vst [vmem:[#allocation70_spill] sm:$0xff] %v10422_v1  ;;  %v10431_v12 = vpop.permute.xlu2 %3684 }
 0x3e2   :  { %12664 = vst [vmem:[#allocation171_spill] sm:$0xff] %v10431_v12  ;;  %v10433_v43 = vpop.permute.xlu1 %3644 }
 0x3e3   :  { %12665 = vst [vmem:[#allocation75_spill] sm:$0xff] %v10433_v43  ;;  %v12670_v43 = vld [vmem:[#allocation9_spill] sm:$0xff] }
 0x3e4   :  { %v2974_v39 = vmul.f32 %v8168_v56, %v12670_v43  ;;  %v2862_v56 = vld [vmem:[%s11660_s2 + $0x138] sm:$0xff] }
 0x3e6   :  { %3997 = vperm.xlu0 %4664, %v3079_v35   ;;  %v12674_v35 = vld [vmem:[#allocation27_spill] sm:$0xff]  ;;  %v3082_v43 = vsub.f32 %v2866_v29, %v2974_v39 }
 0x3e7   :  { %3972 = vperm.xlu2 %4666, %v3074_v15   ;;  %v12675_v15 = vld [vmem:[#allocation190_spill] sm:$0xff]  ;;  %v4949_v39 = vld [vmem:[%s11658_s0 + $0x28] sm:$0xff] }
 0x3e8   :  { %v10447_v19 = vpop.permute.xlu0 %3679  ;;  %3977 = vperm.xlu1 %4665, %v3075_v26   ;;  %v2970_v26 = vmul.f32 %v12675_v15, %v12674_v35  ;;  %v12676_v35 = vld [vmem:[#allocation38_spill] sm:$0xff]  ;;  %v12677_v29 = vld [vmem:[#allocation191_spill] sm:$0xff]  ;;  %v12679_v15 = vld [vmem:[#allocation36_spill] sm:$0xff] }
 0x3e9   :  { %12669 = vst [vmem:[#allocation173_spill] sm:$0xff] %v10447_v19  ;;  %v3808_v41 = vpop.permute.xlu2 %3807  ;;  %v3077_v19 = vsub.f32 %v2861_v52, %v2969_v2  ;;  %v3692_v2 = vmul.f32 %v4949_v39, %v12677_v29  ;;  %v12678_v52 = vld [vmem:[#allocation29_spill] sm:$0xff]  ;;  %v2864_v39 = vld [vmem:[%s11660_s2 + $0x148] sm:$0xff]  ;;  %v12683_v29 = vld [vmem:[#allocation10_spill] sm:$0xff] }
 0x3ea   :  { %v10456_v46 = vpop.permute.xlu1 %3659  ;;  %v4337_v53 = vadd.f32 %v3808_v41, %v3689_v48  ;;  %v3078_v4 = vsub.f32 %v2862_v56, %v2970_v26  ;;  %v3688_v48 = vmul.f32 %v4948_v61, %v12676_v35  ;;  %v2977_v26 = vmul.f32 %v12679_v15, %v12678_v52  ;;  %v2869_v56 = vld [vmem:[%s11660_s2 + $0x170] sm:$0xff] }
 0x3eb   :  { %12673 = vst [vmem:[#allocation80_spill] sm:$0xff] %v10456_v46 }
 0x3ec   :  { %v4445_v44 = vmax.f32 %v4337_v53, 0.0 }
 0x3ee   :  { %4012 = vperm.xlu0 %4664, %v3082_v43   ;;  %4553 = vst.msk [vmem:[%s11661_s3 + $0x10] sm:$0xff] %vm122_vm0, %v4445_v44  ;;  %v12680_v43 = vld [vmem:[#allocation25_spill] sm:$0xff]  ;;  %v12681_v44 = vld [vmem:[#allocation16_spill] sm:$0xff] }
 0x3ef   :  { %3987 = vperm.xlu2 %4666, %v3077_v19   ;;  %v2972_v61 = vmul.f32 %v12681_v44, %v12680_v43 }
 0x3f0   :  { %v3803_v41 = vpop.permute.xlu0 %3802  ;;  %3992 = vperm.xlu1 %4665, %v3078_v4   ;;  %v12684_v4 = vld [vmem:[#allocation193_spill] sm:$0xff] }
 0x3f1   :  { %v4336_v53 = vadd.f32 %v3803_v41, %v3688_v48  ;;  %v3823_v19 = vpop.permute.xlu2 %3822  ;;  %v2973_v46 = vmul.f32 %v12684_v4, %v12683_v29  ;;  %v2865_v48 = vld [vmem:[%s11660_s2 + $0x150] sm:$0xff]  ;;  %v3085_v41 = vsub.f32 %v2869_v56, %v2977_v26  ;;  %v3080_v43 = vsub.f32 %v2864_v39, %v2972_v61  ;;  %v4952_v4 = vld [vmem:[%s11658_s0] sm:$0xff] }
 0x3f2   :  { %v10485_v35 = vpop.permute.xlu1 %3674  ;;  %v4340_v12 = vadd.f32 %v3823_v19, %v3692_v2  ;;  %v4950_v2 = vld [vmem:[%s11658_s0 + $0x20] sm:$0xff]  ;;  %v12686_v56 = vld [vmem:[#allocation44_spill] sm:$0xff] }
 0x3f3   :  { %12682 = vst [vmem:[#allocation175_spill] sm:$0xff] %v10485_v35  ;;  %v4444_v52 = vmax.f32 %v4336_v53, 0.0  ;;  %v3081_v44 = vsub.f32 %v2865_v48, %v2973_v46  ;;  %v12685_v53 = vld [vmem:[#allocation34_spill] sm:$0xff]  ;;  %v12687_v46 = vld [vmem:[#allocation32_spill] sm:$0xff] }
 0x3f4   :  { %v4448_v15 = vmax.f32 %v4340_v12, 0.0  ;;  %v3691_v26 = vmul.f32 %v4950_v2, %v12685_v53  ;;  %v4951_v12 = vld [vmem:[%s11658_s0 + $0x40] sm:$0xff]  ;;  %v12688_v39 = vld [vmem:[#allocation40_spill] sm:$0xff] }
 0x3f5   :  { %4552 = vst.msk [vmem:[%s11661_s3 + $0x8] sm:$0xff] %vm122_vm0, %v4444_v52  ;;  %v3695_v61 = vmul.f32 %v4951_v12, %v12686_v56  ;;  %v2980_v29 = vmul.f32 %v12688_v39, %v12687_v46  ;;  %v12689_v52 = vld [vmem:[#allocation139_spill] sm:$0xff]  ;;  %v12691_v2 = vld [vmem:[#allocation194_spill] sm:$0xff]  ;;  %v12692_v46 = vld [vmem:[#allocation12_spill] sm:$0xff] }
 0x3f6   :  { %4027 = vperm.xlu0 %4664, %v3085_v41   ;;  %4556 = vst.msk [vmem:[%s11661_s3 + $0x28] sm:$0xff] %vm122_vm0, %v4448_v15  ;;  %v3687_v48 = vmul.f32 %v4952_v4, %v12689_v52  ;;  %v2872_v15 = vld [vmem:[%s11660_s2 + $0x188] sm:$0xff]  ;;  %v12693_v39 = vld [vmem:[#allocation196_spill] sm:$0xff] }
 0x3f7   :  { %4002 = vperm.xlu2 %4666, %v3080_v43   ;;  %v12690_v43 = vld [vmem:[#allocation8_spill] sm:$0xff]  ;;  %v2976_v35 = vmul.f32 %v12693_v39, %v12692_v46 }
 0x3f8   :  { %v3818_v19 = vpop.permute.xlu0 %3817  ;;  %4007 = vperm.xlu1 %4665, %v3081_v44   ;;  %v2975_v53 = vmul.f32 %v12691_v2, %v12690_v43  ;;  %v2867_v44 = vld [vmem:[%s11660_s2 + $0x160] sm:$0xff] }
 0x3f9   :  { %v4339_v41 = vadd.f32 %v3818_v19, %v3691_v26  ;;  %v3838_v12 = vpop.permute.xlu2 %3837  ;;  %v2868_v26 = vld [vmem:[%s11660_s2 + $0x168] sm:$0xff]  ;;  %v3088_v19 = vsub.f32 %v2872_v15, %v2980_v29  ;;  %v12694_v29 = vld [vmem:[#allocation192_spill] sm:$0xff] }
 0x3fa   :  { %v3798_v56 = vpop.permute.xlu1 %3797  ;;  %v4343_v1 = vadd.f32 %v3838_v12, %v3695_v61  ;;  %v3083_v2 = vsub.f32 %v2867_v44, %v2975_v53  ;;  %v3084_v21 = vsub.f32 %v2868_v26, %v2976_v35  ;;  %v4953_v61 = vld [vmem:[%s11658_s0 + $0x38] sm:$0xff]  ;;  %v12696_v15 = vld [vmem:[#allocation15_spill] sm:$0xff]  ;;  %v12698_v44 = vld [vmem:[#allocation136_spill] sm:$0xff] }
 0x3fb   :  { %v4447_v22 = vmax.f32 %v4339_v41, 0.0  ;;  %v4335_v4 = vadd.f32 %v3798_v56, %v3687_v48  ;;  %v12695_v35 = vld [vmem:[#allocation37_spill] sm:$0xff]  ;;  %v12697_v53 = vld [vmem:[#allocation43_spill] sm:$0xff]  ;;  %v12699_v26 = vld [vmem:[#allocation28_spill] sm:$0xff] }
 0x3fc   :  { %v4451_v52 = vmax.f32 %v4343_v1, 0.0  ;;  %v3694_v1 = vmul.f32 %v4953_v61, %v12694_v29  ;;  %v2983_v12 = vmul.f32 %v12697_v53, %v12696_v15  ;;  %v4955_v56 = vld [vmem:[%s11658_s0 + $0x18] sm:$0xff]  ;;  %v12702_v29 = vld [vmem:[#allocation199_spill] sm:$0xff] }
 0x3fd   :  { %4555 = vst.msk [vmem:[%s11661_s3 + $0x20] sm:$0xff] %vm122_vm0, %v4447_v22  ;;  %v4443_v43 = vmax.f32 %v4335_v4, 0.0  ;;  %v4954_v22 = vld [vmem:[%s11658_s0 + $0x58] sm:$0xff]  ;;  %v3690_v46 = vmul.f32 %v4955_v56, %v12698_v44  ;;  %v2875_v4 = vld [vmem:[%s11660_s2 + $0x1a0] sm:$0xff] }
 0x3fe   :  { %4042 = vperm.xlu0 %4664, %v3088_v19   ;;  %4559 = vst.msk [vmem:[%s11661_s3 + $0x40] sm:$0xff] %vm122_vm0, %v4451_v52  ;;  %v3698_v48 = vmul.f32 %v4954_v22, %v12695_v35  ;;  %v12700_v19 = vld [vmem:[#allocation141_spill] sm:$0xff] }
 0x3ff   :  { %4551 = vst.msk [vmem:[%s11661_s3] sm:$0xff] %vm122_vm0, %v4443_v43  ;;  %4017 = vperm.xlu2 %4666, %v3083_v2   ;;  %v2978_v52 = vmul.f32 %v12700_v19, %v12699_v26  ;;  %v12701_v61 = vld [vmem:[#allocation33_spill] sm:$0xff] }
 0x400   :  { %v3833_v41 = vpop.permute.xlu0 %3832  ;;  %4022 = vperm.xlu1 %4665, %v3084_v21   ;;  %v2870_v21 = vld [vmem:[%s11660_s2 + $0x178] sm:$0xff]  ;;  %v2979_v22 = vmul.f32 %v12702_v29, %v12701_v61  ;;  %v4958_v61 = vld [vmem:[%s11658_s0 + $0x30] sm:$0xff] }
 0x401   :  { %v4342_v39 = vadd.f32 %v3833_v41, %v3694_v1  ;;  %v3853_v43 = vpop.permute.xlu2 %3852  ;;  %v2871_v1 = vld [vmem:[%s11660_s2 + $0x180] sm:$0xff]  ;;  %v3091_v41 = vsub.f32 %v2875_v4, %v2983_v12  ;;  %v3086_v26 = vsub.f32 %v2870_v21, %v2978_v52  ;;  %v12703_v12 = vld [vmem:[#allocation195_spill] sm:$0xff]  ;;  %v12706_v29 = vld [vmem:[#allocation197_spill] sm:$0xff] }
 0x402   :  { %v3813_v2 = vpop.permute.xlu1 %3812  ;;  %v4346_v35 = vadd.f32 %v3853_v43, %v3698_v48  ;;  %v3087_v19 = vsub.f32 %v2871_v1, %v2979_v22  ;;  %v4956_v48 = vld [vmem:[%s11658_s0 + $0x50] sm:$0xff]  ;;  %v12704_v4 = vld [vmem:[#allocation46_spill] sm:$0xff]  ;;  %v3693_v22 = vmul.f32 %v4958_v61, %v12706_v29  ;;  %v4960_v61 = vld [vmem:[%s11658_s0 + $0x88] sm:$0xff] }
 0x403   :  { %v4450_v15 = vmax.f32 %v4342_v39, 0.0  ;;  %v4338_v53 = vadd.f32 %v3813_v2, %v3690_v46  ;;  %v3697_v46 = vmul.f32 %v4956_v48, %v12703_v12  ;;  %v4957_v39 = vld [vmem:[%s11658_s0 + $0x70] sm:$0xff]  ;;  %v12705_v2 = vld [vmem:[#allocation18_spill] sm:$0xff]  ;;  %v12710_v29 = vld [vmem:[#allocation145_spill] sm:$0xff] }
 0x404   :  { %v4454_v56 = vmax.f32 %v4346_v35, 0.0  ;;  %v3701_v52 = vmul.f32 %v4957_v39, %v12704_v4  ;;  %v2986_v21 = vmul.f32 %v8576_v45, %v12705_v2  ;;  %v2873_v45 = vld [vmem:[%s11660_s2 + $0x190] sm:$0xff] }
 0x405   :  { %4558 = vst.msk [vmem:[%s11661_s3 + $0x38] sm:$0xff] %vm122_vm0, %v4450_v15  ;;  %v4446_v44 = vmax.f32 %v4338_v53, 0.0  ;;  %v2878_v15 = vld [vmem:[%s11660_s2 + $0x1b8] sm:$0xff]  ;;  %v12707_v53 = vld [vmem:[#allocation31_spill] sm:$0xff] }
 0x406   :  { %4057 = vperm.xlu0 %4664, %v3091_v41   ;;  %4562 = vst.msk [vmem:[%s11661_s3 + $0x58] sm:$0xff] %vm122_vm0, %v4454_v56  ;;  %v2981_v1 = vmul.f32 %v8581_v59, %v12707_v53  ;;  %v3094_v39 = vsub.f32 %v2878_v15, %v2986_v21  ;;  %v12711_v15 = vld [vmem:[#allocation42_spill] sm:$0xff] }
 0x407   :  { %4554 = vst.msk [vmem:[%s11661_s3 + $0x18] sm:$0xff] %vm122_vm0, %v4446_v44  ;;  %4032 = vperm.xlu2 %4666, %v3086_v26   ;;  %v12708_v44 = vld [vmem:[#allocation35_spill] sm:$0xff]  ;;  %v2989_v53 = vmul.f32 %v8677_v34, %v12711_v15 }
 0x408   :  { %v3848_v43 = vpop.permute.xlu0 %3847  ;;  %4037 = vperm.xlu1 %4665, %v3087_v19   ;;  %v2982_v26 = vmul.f32 %v8592_v18, %v12708_v44  ;;  %v4959_v18 = vld [vmem:[%s11658_s0 + $0x68] sm:$0xff]  ;;  %v2881_v44 = vld [vmem:[%s11660_s2 + $0x1d0] sm:$0xff] }
 0x409   :  { %v4345_v35 = vadd.f32 %v3848_v43, %v3697_v46  ;;  %v3868_v41 = vpop.permute.xlu2 %3867  ;;  %v2874_v46 = vld [vmem:[%s11660_s2 + $0x198] sm:$0xff]  ;;  %v3089_v43 = vsub.f32 %v2873_v45, %v2981_v1  ;;  %v4961_v1 = vld [vmem:[%s11658_s0 + $0x48] sm:$0xff] }
 0x40a   :  { %v3828_v56 = vpop.permute.xlu1 %3827  ;;  %v4349_v19 = vadd.f32 %v3868_v41, %v3701_v52  ;;  %v3090_v2 = vsub.f32 %v2874_v46, %v2982_v26  ;;  %v12709_v52 = vld [vmem:[#allocation198_spill] sm:$0xff]  ;;  %v12712_v41 = vld [vmem:[#allocation200_spill] sm:$0xff]  ;;  %v2876_v34 = vld [vmem:[%s11660_s2 + $0x1a8] sm:$0xff] }
 0x40b   :  { %v4453_v48 = vmax.f32 %v4345_v35, 0.0  ;;  %v4341_v12 = vadd.f32 %v3828_v56, %v3693_v22  ;;  %v3700_v21 = vmul.f32 %v4959_v18, %v12709_v52  ;;  %v3704_v22 = vmul.f32 %v4960_v61, %v12710_v29  ;;  %v12713_v26 = vld [vmem:[#allocation14_spill] sm:$0xff]  ;;  %v12714_v46 = vld [vmem:[#allocation39_spill] sm:$0xff]  ;;  %v2877_v18 = vld [vmem:[%s11660_s2 + $0x1b0] sm:$0xff] }
 0x40c   :  { %v4457_v4 = vmax.f32 %v4349_v19, 0.0  ;;  %v3696_v56 = vmul.f32 %v4961_v1, %v12712_v41  ;;  %v2984_v19 = vmul.f32 %v8683_v55, %v12713_v26  ;;  %v3097_v52 = vsub.f32 %v2881_v44, %v2989_v53  ;;  %v4963_v53 = vld [vmem:[%s11658_s0 + $0xa0] sm:$0xff]  ;;  %v12717_v1 = vld [vmem:[#allocation203_spill] sm:$0xff] }
 0x40d   :  { %4561 = vst.msk [vmem:[%s11661_s3 + $0x50] sm:$0xff] %vm122_vm0, %v4453_v48  ;;  %v4449_v59 = vmax.f32 %v4341_v12, 0.0  ;;  %v3707_v41 = vmul.f32 %v4963_v53, %v12717_v1  ;;  %v4964_v26 = vld [vmem:[%s11658_s0 + $0x60] sm:$0xff] }
 0x40e   :  { %4072 = vperm.xlu0 %4664, %v3094_v39   ;;  %4565 = vst.msk [vmem:[%s11661_s3 + $0x70] sm:$0xff] %vm122_vm0, %v4457_v4  ;;  %v12715_v39 = vld [vmem:[#allocation202_spill] sm:$0xff]  ;;  %v3092_v61 = vsub.f32 %v2876_v34, %v2984_v19  ;;  %v12719_v19 = vld [vmem:[#allocation144_spill] sm:$0xff]  ;;  %v2884_v34 = vld [vmem:[%s11660_s2 + $0x1e8] sm:$0xff] }
 0x40f   :  { %4557 = vst.msk [vmem:[%s11661_s3 + $0x30] sm:$0xff] %vm122_vm0, %v4449_v59  ;;  %4047 = vperm.xlu2 %4666, %v3089_v43   ;;  %v2985_v4 = vmul.f32 %v12715_v39, %v12714_v46  ;;  %v12720_v46 = vld [vmem:[#allocation17_spill] sm:$0xff] }
 0x410   :  { %v3863_v35 = vpop.permute.xlu0 %3862  ;;  %4052 = vperm.xlu1 %4665, %v3090_v2   ;;  %v12721_v39 = vld [vmem:[#allocation149_spill] sm:$0xff] }
 0x411   :  { %v4348_v45 = vadd.f32 %v3863_v35, %v3700_v21  ;;  %v3883_v48 = vpop.permute.xlu2 %3882  ;;  %v3093_v29 = vsub.f32 %v2877_v18, %v2985_v4  ;;  %v12716_v35 = vld [vmem:[#allocation142_spill] sm:$0xff]  ;;  %v2987_v4 = vmul.f32 %v12721_v39, %v12720_v46  ;;  %v4967_v46 = vld [vmem:[%s11658_s0 + $0x78] sm:$0xff]  ;;  %v12727_v39 = vld [vmem:[#allocation204_spill] sm:$0xff] }
 0x412   :  { %v3843_v12 = vpop.permute.xlu1 %3842  ;;  %v4352_v59 = vadd.f32 %v3883_v48, %v3704_v22  ;;  %v4962_v22 = vld [vmem:[%s11658_s0 + $0x80] sm:$0xff]  ;;  %v3699_v48 = vmul.f32 %v4964_v26, %v12719_v19  ;;  %v12725_v26 = vld [vmem:[#allocation207_spill] sm:$0xff] }
 0x413   :  { %v4456_v43 = vmax.f32 %v4348_v45, 0.0  ;;  %v4344_v2 = vadd.f32 %v3843_v12, %v3696_v56  ;;  %v3703_v15 = vmul.f32 %v4962_v22, %v12716_v35  ;;  %v12718_v45 = vld [vmem:[#allocation48_spill] sm:$0xff]  ;;  %v12723_v18 = vld [vmem:[#allocation206_spill] sm:$0xff] }
 0x414   :  { %v4460_v21 = vmax.f32 %v4352_v59, 0.0  ;;  %v2992_v44 = vmul.f32 %v8779_v8, %v12718_v45  ;;  %v2879_v8 = vld [vmem:[%s11660_s2 + $0x1c0] sm:$0xff] }
 0x415   :  { %4564 = vst.msk [vmem:[%s11661_s3 + $0x68] sm:$0xff] %vm122_vm0, %v4456_v43  ;;  %v4452_v55 = vmax.f32 %v4344_v2, 0.0  ;;  %v12722_v2 = vld [vmem:[#allocation45_spill] sm:$0xff]  ;;  %v3095_v53 = vsub.f32 %v2879_v8, %v2987_v4  ;;  %v3702_v4 = vmul.f32 %v4967_v46, %v12727_v39  ;;  %v4970_v46 = vld [vmem:[%s11658_s0 + $0x90] sm:$0xff] }
 0x416   :  { %4087 = vperm.xlu0 %4664, %v3097_v52   ;;  %4568 = vst.msk [vmem:[%s11661_s3 + $0x88] sm:$0xff] %vm122_vm0, %v4460_v21  ;;  %v2988_v52 = vmul.f32 %v12723_v18, %v12722_v2  ;;  %v3100_v22 = vsub.f32 %v2884_v34, %v2992_v44  ;;  %v4966_v44 = vld [vmem:[%s11658_s0 + $0xb8] sm:$0xff]  ;;  %v12733_v39 = vld [vmem:[#allocation208_spill] sm:$0xff] }
 0x417   :  { %4560 = vst.msk [vmem:[%s11661_s3 + $0x48] sm:$0xff] %vm122_vm0, %v4452_v55  ;;  %4062 = vperm.xlu2 %4666, %v3092_v61   ;;  %v3710_v19 = vmul.f32 %v4966_v44, %v12725_v26  ;;  %v12728_v8 = vld [vmem:[#allocation41_spill] sm:$0xff]  ;;  %v4969_v44 = vld [vmem:[%s11658_s0 + $0xd0] sm:$0xff] }
 0x418   :  { %v3878_v56 = vpop.permute.xlu0 %3877  ;;  %4067 = vperm.xlu1 %4665, %v3093_v29   ;;  %v2880_v29 = vld [vmem:[%s11660_s2 + $0x1c8] sm:$0xff]  ;;  %v2990_v2 = vmul.f32 %v8885_v54, %v12728_v8  ;;  %v3713_v26 = vmul.f32 %v4969_v44, %v8945_v57 }
 0x419   :  { %v4351_v12 = vadd.f32 %v3878_v56, %v3703_v15  ;;  %v3898_v59 = vpop.permute.xlu2 %3897  ;;  %v3096_v1 = vsub.f32 %v2880_v29, %v2988_v52  ;;  %v12724_v56 = vld [vmem:[#allocation201_spill] sm:$0xff]  ;;  %v12734_v8 = vld [vmem:[#allocation47_spill] sm:$0xff] }
 0x41a   :  { %v3858_v43 = vpop.permute.xlu1 %3857  ;;  %v4355_v21 = vadd.f32 %v3898_v59, %v3707_v41  ;;  %v4965_v41 = vld [vmem:[%s11658_s0 + $0x98] sm:$0xff] }
 0x41b   :  { %v4459_v55 = vmax.f32 %v4351_v12, 0.0  ;;  %v4347_v61 = vadd.f32 %v3858_v43, %v3699_v48  ;;  %v3706_v45 = vmul.f32 %v4965_v41, %v12724_v56  ;;  %v12726_v12 = vld [vmem:[#allocation51_spill] sm:$0xff]  ;;  %v2887_v43 = vld [vmem:[%s11660_s2 + $0x200] sm:$0xff]  ;;  %v12730_v56 = vld [vmem:[#allocation205_spill] sm:$0xff] }
 0x41c   :  { %v4463_v35 = vmax.f32 %v4355_v21, 0.0  ;;  %v2995_v34 = vmul.f32 %v8880_v10, %v12726_v12  ;;  %v2882_v10 = vld [vmem:[%s11660_s2 + $0x1d8] sm:$0xff]  ;;  %v12732_v12 = vld [vmem:[#allocation211_spill] sm:$0xff] }
 0x41d   :  { %4567 = vst.msk [vmem:[%s11661_s3 + $0x80] sm:$0xff] %vm122_vm0, %v4459_v55  ;;  %v4455_v15 = vmax.f32 %v4347_v61, 0.0  ;;  %v12729_v21 = vld [vmem:[#allocation49_spill] sm:$0xff] }
 0x41e   :  { %4102 = vperm.xlu0 %4664, %v3100_v22   ;;  %4571 = vst.msk [vmem:[%s11661_s3 + $0xa0] sm:$0xff] %vm122_vm0, %v4463_v35  ;;  %v2991_v55 = vmul.f32 %v8895_v49, %v12729_v21  ;;  %v2883_v35 = vld [vmem:[%s11660_s2 + $0x1e0] sm:$0xff]  ;;  %v4968_v49 = vld [vmem:[%s11658_s0 + $0xb0] sm:$0xff] }
 0x41f   :  { %4563 = vst.msk [vmem:[%s11661_s3 + $0x60] sm:$0xff] %vm122_vm0, %v4455_v15  ;;  %4077 = vperm.xlu2 %4666, %v3095_v53   ;;  %v3103_v15 = vsub.f32 %v2887_v43, %v2995_v34  ;;  %v2890_v43 = vld [vmem:[%s11660_s2 + $0x218] sm:$0xff]  ;;  %v12736_v21 = vld [vmem:[#allocation54_spill] sm:$0xff] }
 0x420   :  { %v3893_v48 = vpop.permute.xlu0 %3892  ;;  %4082 = vperm.xlu1 %4665, %v3096_v1   ;;  %v3098_v1 = vsub.f32 %v2882_v10, %v2990_v2  ;;  %v3099_v41 = vsub.f32 %v2883_v35, %v2991_v55  ;;  %v12735_v2 = vld [vmem:[#allocation212_spill] sm:$0xff]  ;;  %v12737_v55 = vld [vmem:[#allocation213_spill] sm:$0xff] }
 0x421   :  { %v4354_v59 = vadd.f32 %v3893_v48, %v3706_v45  ;;  %v3913_v18 = vpop.permute.xlu2 %3912  ;;  %v3709_v45 = vmul.f32 %v4968_v49, %v12730_v56  ;;  %v12731_v48 = vld [vmem:[#allocation57_spill] sm:$0xff]  ;;  %v2885_v10 = vld [vmem:[%s11660_s2 + $0x1f0] sm:$0xff]  ;;  %v4971_v56 = vld [vmem:[%s11658_s0 + $0xc8] sm:$0xff] }
 0x422   :  { %v3873_v52 = vpop.permute.xlu1 %3872  ;;  %v4358_v61 = vadd.f32 %v3913_v18, %v3710_v19  ;;  %v2998_v34 = vmul.f32 %v12732_v12, %v12731_v48  ;;  %v2993_v18 = vmul.f32 %v12735_v2, %v12734_v8  ;;  %v2893_v2 = vld [vmem:[%s11660_s2 + $0x230] sm:$0xff] }
 0x423   :  { %v4462_v29 = vmax.f32 %v4354_v59, 0.0  ;;  %v4350_v22 = vadd.f32 %v3873_v52, %v3702_v4  ;;  %v3705_v4 = vmul.f32 %v4970_v46, %v12733_v39  ;;  %v12741_v46 = vld [vmem:[#allocation159_spill] sm:$0xff] }
 0x424   :  { %v4466_v53 = vmax.f32 %v4358_v61, 0.0  ;;  %v2994_v61 = vmul.f32 %v12737_v55, %v12736_v21  ;;  %v2888_v55 = vld [vmem:[%s11660_s2 + $0x208] sm:$0xff] }
 0x425   :  { %4570 = vst.msk [vmem:[%s11661_s3 + $0x98] sm:$0xff] %vm122_vm0, %v4462_v29  ;;  %v4458_v54 = vmax.f32 %v4350_v22, 0.0 }
 0x426   :  { %4117 = vperm.xlu0 %4664, %v3103_v15   ;;  %4574 = vst.msk [vmem:[%s11661_s3 + $0xb8] sm:$0xff] %vm122_vm0, %v4466_v53  ;;  %v2886_v15 = vld [vmem:[%s11660_s2 + $0x1f8] sm:$0xff]  ;;  %v3106_v53 = vsub.f32 %v2890_v43, %v2998_v34  ;;  %v12740_v34 = vld [vmem:[#allocation84_spill] sm:$0xff] }
 0x427   :  { %4566 = vst.msk [vmem:[%s11661_s3 + $0x78] sm:$0xff] %vm122_vm0, %v4458_v54  ;;  %4092 = vperm.xlu2 %4666, %v3098_v1   ;;  %v3102_v49 = vsub.f32 %v2886_v15, %v2994_v61  ;;  %v3001_v39 = vmul.f32 %v12741_v46, %v12740_v34  ;;  %v12745_v61 = vld [vmem:[#allocation82_spill] sm:$0xff] }
 0x428   :  { %v3908_v19 = vpop.permute.xlu0 %3907  ;;  %4097 = vperm.xlu1 %4665, %v3099_v41   ;;  %v3101_v41 = vsub.f32 %v2885_v10, %v2993_v18  ;;  %v12743_v18 = vld [vmem:[#allocation50_spill] sm:$0xff] }
 0x429   :  { %v4357_v59 = vadd.f32 %v3908_v19, %v3709_v45  ;;  %v3928_v57 = vpop.permute.xlu2 %3927  ;;  %v12738_v45 = vld [vmem:[#allocation209_spill] sm:$0xff]  ;;  %v12739_v19 = vld [vmem:[#allocation215_spill] sm:$0xff] }
 0x42a   :  { %v3888_v52 = vpop.permute.xlu1 %3887  ;;  %v4361_v29 = vadd.f32 %v3928_v57, %v3713_v26  ;;  %v3712_v44 = vmul.f32 %v4971_v56, %v12738_v45  ;;  %v4972_v26 = vld [vmem:[%s11658_s0 + $0xe8] sm:$0xff]  ;;  %v12744_v57 = vld [vmem:[#allocation216_spill] sm:$0xff] }
 0x42b   :  { %v4465_v22 = vmax.f32 %v4357_v59, 0.0  ;;  %v4353_v35 = vadd.f32 %v3888_v52, %v3705_v4  ;;  %v3716_v48 = vmul.f32 %v4972_v26, %v12739_v19  ;;  %v4973_v4 = vld [vmem:[%s11658_s0 + $0xa8] sm:$0xff]  ;;  %v12742_v59 = vld [vmem:[#allocation210_spill] sm:$0xff]  ;;  %v2996_v52 = vmul.f32 %v12744_v57, %v12743_v18 }
 0x42c   :  { %v4469_v54 = vmax.f32 %v4361_v29, 0.0  ;;  %v3708_v43 = vmul.f32 %v4973_v4, %v12742_v59  ;;  %v12746_v29 = vld [vmem:[#allocation217_spill] sm:$0xff]  ;;  %v12747_v26 = vld [vmem:[#allocation214_spill] sm:$0xff]  ;;  %v2896_v18 = vld [vmem:[%s11660_s2 + $0x248] sm:$0xff] }
 0x42d   :  { %4573 = vst.msk [vmem:[%s11661_s3 + $0xb0] sm:$0xff] %vm122_vm0, %v4465_v22  ;;  %v4461_v1 = vmax.f32 %v4353_v35, 0.0  ;;  %v2997_v22 = vmul.f32 %v12746_v29, %v12745_v61  ;;  %v3104_v56 = vsub.f32 %v2888_v55, %v2996_v52  ;;  %v4976_v59 = vld [vmem:[%s11658_s0 + $0xc0] sm:$0xff]  ;;  %v12751_v57 = vld [vmem:[#allocation55_spill] sm:$0xff]  ;;  %v12752_v52 = vld [vmem:[#allocation172_spill] sm:$0xff] }
 0x42e   :  { %4132 = vperm.xlu0 %4664, %v3106_v53   ;;  %4577 = vst.msk [vmem:[%s11661_s3 + $0xd0] sm:$0xff] %vm122_vm0, %v4469_v54  ;;  %v2889_v54 = vld [vmem:[%s11660_s2 + $0x210] sm:$0xff]  ;;  %v12753_v61 = vld [vmem:[#allocation85_spill] sm:$0xff] }
 0x42f   :  { %4569 = vst.msk [vmem:[%s11661_s3 + $0x90] sm:$0xff] %vm122_vm0, %v4461_v1  ;;  %4107 = vperm.xlu2 %4666, %v3101_v41   ;;  %v3109_v1 = vsub.f32 %v2893_v2, %v3001_v39  ;;  %v3105_v45 = vsub.f32 %v2889_v54, %v2997_v22  ;;  %v12749_v39 = vld [vmem:[#allocation87_spill] sm:$0xff]  ;;  %v12754_v29 = vld [vmem:[#allocation164_spill] sm:$0xff] }
 0x430   :  { %v3923_v12 = vpop.permute.xlu0 %3922  ;;  %4112 = vperm.xlu1 %4665, %v3102_v49   ;;  %v3004_v4 = vmul.f32 %v9180_v33, %v12749_v39  ;;  %v2891_v33 = vld [vmem:[%s11660_s2 + $0x220] sm:$0xff]  ;;  %v3000_v22 = vmul.f32 %v12754_v29, %v12753_v61  ;;  %v2892_v54 = vld [vmem:[%s11660_s2 + $0x228] sm:$0xff] }
 0x431   :  { %v4360_v8 = vadd.f32 %v3923_v12, %v3712_v44  ;;  %v3943_v10 = vpop.permute.xlu2 %3942  ;;  %v4974_v44 = vld [vmem:[%s11658_s0 + $0xe0] sm:$0xff] }
 0x432   :  { %v3903_v21 = vpop.permute.xlu1 %3902  ;;  %v4364_v35 = vadd.f32 %v3943_v10, %v3716_v48  ;;  %v3715_v19 = vmul.f32 %v4974_v44, %v12747_v26  ;;  %v4975_v48 = vld [vmem:[%s11658_s0 + $0x100] sm:$0xff]  ;;  %v2999_v10 = vmul.f32 %v12752_v52, %v12751_v57  ;;  %v4977_v44 = vld [vmem:[%s11658_s0 + $0xf8] sm:$0xff]  ;;  %v12759_v57 = vld [vmem:[#allocation83_spill] sm:$0xff] }
 0x433   :  { %v4468_v15 = vmax.f32 %v4360_v8, 0.0  ;;  %v4356_v53 = vadd.f32 %v3903_v21, %v3708_v43  ;;  %v12748_v12 = vld [vmem:[#allocation218_spill] sm:$0xff]  ;;  %v12750_v43 = vld [vmem:[#allocation165_spill] sm:$0xff] }
 0x434   :  { %v4472_v41 = vmax.f32 %v4364_v35, 0.0  ;;  %v3719_v34 = vmul.f32 %v4975_v48, %v12748_v12  ;;  %v3711_v8 = vmul.f32 %v4976_v59, %v12750_v43  ;;  %v12755_v26 = vld [vmem:[#allocation162_spill] sm:$0xff]  ;;  %v4978_v48 = vld [vmem:[%s11658_s0 + $0x118] sm:$0xff]  ;;  %v12756_v12 = vld [vmem:[#allocation220_spill] sm:$0xff] }
 0x435   :  { %4576 = vst.msk [vmem:[%s11661_s3 + $0xc8] sm:$0xff] %vm122_vm0, %v4468_v15  ;;  %v4464_v49 = vmax.f32 %v4356_v53, 0.0  ;;  %v12757_v39 = vld [vmem:[#allocation90_spill] sm:$0xff]  ;;  %v4979_v59 = vld [vmem:[%s11658_s0 + $0xd8] sm:$0xff]  ;;  %v12758_v43 = vld [vmem:[#allocation219_spill] sm:$0xff] }
 0x436   :  { %4147 = vperm.xlu0 %4664, %v3109_v1   ;;  %4580 = vst.msk [vmem:[%s11661_s3 + $0xe8] sm:$0xff] %vm122_vm0, %v4472_v41  ;;  %v3112_v1 = vsub.f32 %v2896_v18, %v3004_v4  ;;  %v3007_v4 = vmul.f32 %v9280_v51, %v12757_v39  ;;  %v2899_v18 = vld [vmem:[%s11660_s2 + $0x260] sm:$0xff]  ;;  %v12760_v52 = vld [vmem:[#allocation101_spill] sm:$0xff] }
 0x437   :  { %4572 = vst.msk [vmem:[%s11661_s3 + $0xa8] sm:$0xff] %vm122_vm0, %v4464_v49  ;;  %4122 = vperm.xlu2 %4666, %v3104_v56   ;;  %v3107_v56 = vsub.f32 %v2891_v33, %v2999_v10  ;;  %v3002_v10 = vmul.f32 %v12760_v52, %v12759_v57  ;;  %v2894_v51 = vld [vmem:[%s11660_s2 + $0x238] sm:$0xff]  ;;  %v12761_v33 = vld [vmem:[#allocation88_spill] sm:$0xff]  ;;  %v12762_v61 = vld [vmem:[#allocation170_spill] sm:$0xff] }
 0x438   :  { %v3938_v46 = vpop.permute.xlu0 %3937  ;;  %4127 = vperm.xlu1 %4665, %v3105_v45   ;;  %v3108_v45 = vsub.f32 %v2892_v54, %v3000_v22  ;;  %v3003_v29 = vmul.f32 %v12762_v61, %v12761_v33  ;;  %v3115_v54 = vsub.f32 %v2899_v18, %v3007_v4  ;;  %v4982_v4 = vld [vmem:[%s11658_s0 + $0xf0] sm:$0xff]  ;;  %v12767_v18 = vld [vmem:[#allocation86_spill] sm:$0xff] }
 0x439   :  { %v4363_v2 = vadd.f32 %v3938_v46, %v3715_v19  ;;  %v3958_v21 = vpop.permute.xlu2 %3957  ;;  %v3718_v19 = vmul.f32 %v4977_v44, %v12755_v26  ;;  %v12763_v44 = vld [vmem:[#allocation168_spill] sm:$0xff]  ;;  %v3005_v57 = vmul.f32 %v9382_v0, %v12767_v18 }
 0x43a   :  { %v3918_v55 = vpop.permute.xlu1 %3917  ;;  %v4367_v35 = vadd.f32 %v3958_v21, %v3719_v34  ;;  %v3722_v34 = vmul.f32 %v4978_v48, %v12756_v12  ;;  %v12764_v48 = vld [vmem:[#allocation222_spill] sm:$0xff] }
 0x43b   :  { %v4471_v15 = vmax.f32 %v4363_v2, 0.0  ;;  %v4359_v53 = vadd.f32 %v3918_v55, %v3711_v8  ;;  %v3714_v8 = vmul.f32 %v4979_v59, %v12758_v43  ;;  %v12766_v59 = vld [vmem:[#allocation221_spill] sm:$0xff] }
 0x43c   :  { %v4475_v41 = vmax.f32 %v4367_v35, 0.0  ;;  %v3717_v43 = vmul.f32 %v4982_v4, %v12766_v59  ;;  %v2905_v59 = vld [vmem:[%s11660_s2 + $0x290] sm:$0xff] }
 0x43d   :  { %4579 = vst.msk [vmem:[%s11661_s3 + $0xe0] sm:$0xff] %vm122_vm0, %v4471_v15  ;;  %v4467_v49 = vmax.f32 %v4359_v53, 0.0  ;;  %v2895_v53 = vld [vmem:[%s11660_s2 + $0x240] sm:$0xff] }
 0x43e   :  { %4162 = vperm.xlu0 %4664, %v3112_v1   ;;  %4583 = vst.msk [vmem:[%s11661_s3 + $0x100] sm:$0xff] %vm122_vm0, %v4475_v41 }
 0x43f   :  { %4575 = vst.msk [vmem:[%s11661_s3 + $0xc0] sm:$0xff] %vm122_vm0, %v4467_v49  ;;  %4137 = vperm.xlu2 %4666, %v3107_v56   ;;  %v3110_v49 = vsub.f32 %v2894_v51, %v3002_v10  ;;  %v3111_v56 = vsub.f32 %v2895_v53, %v3003_v29 }
 0x440   :  { %v3953_v46 = vpop.permute.xlu0 %3952  ;;  %4142 = vperm.xlu1 %4665, %v3108_v45   ;;  %v4980_v45 = vld [vmem:[%s11658_s0 + $0x110] sm:$0xff] }
 0x441   :  { %v4366_v2 = vadd.f32 %v3953_v46, %v3718_v19  ;;  %v3973_v21 = vpop.permute.xlu2 %3972  ;;  %v3721_v26 = vmul.f32 %v4980_v45, %v12763_v44  ;;  %v4981_v19 = vld [vmem:[%s11658_s0 + $0x130] sm:$0xff]  ;;  %v12765_v46 = vld [vmem:[#allocation93_spill] sm:$0xff] }
 0x442   :  { %v3933_v55 = vpop.permute.xlu1 %3932  ;;  %v4370_v22 = vadd.f32 %v3973_v21, %v3722_v34  ;;  %v3725_v12 = vmul.f32 %v4981_v19, %v12764_v48  ;;  %v3010_v39 = vmul.f32 %v9376_v27, %v12765_v46  ;;  %v2897_v27 = vld [vmem:[%s11660_s2 + $0x250] sm:$0xff]  ;;  %v12768_v21 = vld [vmem:[#allocation91_spill] sm:$0xff]  ;;  %v12773_v48 = vld [vmem:[#allocation178_spill] sm:$0xff] }
 0x443   :  { %v4474_v35 = vmax.f32 %v4366_v2, 0.0  ;;  %v4362_v15 = vadd.f32 %v3933_v55, %v3714_v8  ;;  %v2902_v2 = vld [vmem:[%s11660_s2 + $0x278] sm:$0xff]  ;;  %v12769_v55 = vld [vmem:[#allocation107_spill] sm:$0xff]  ;;  %v3113_v53 = vsub.f32 %v2897_v27, %v3005_v57  ;;  %v12771_v45 = vld [vmem:[#allocation176_spill] sm:$0xff] }
 0x444   :  { %v4478_v1 = vmax.f32 %v4370_v22, 0.0  ;;  %v3006_v51 = vmul.f32 %v12769_v55, %v12768_v21  ;;  %v2898_v22 = vld [vmem:[%s11660_s2 + $0x258] sm:$0xff]  ;;  %v12772_v19 = vld [vmem:[#allocation96_spill] sm:$0xff]  ;;  %v12774_v46 = vld [vmem:[#allocation223_spill] sm:$0xff] }
 0x445   :  { %4582 = vst.msk [vmem:[%s11661_s3 + $0xf8] sm:$0xff] %vm122_vm0, %v4474_v35  ;;  %v4470_v41 = vmax.f32 %v4362_v15, 0.0  ;;  %v3118_v35 = vsub.f32 %v2902_v2, %v3010_v39  ;;  %v12778_v27 = vld [vmem:[#allocation103_spill] sm:$0xff] }
 0x446   :  { %4177 = vperm.xlu0 %4664, %v3115_v54   ;;  %4586 = vst.msk [vmem:[%s11661_s3 + $0x118] sm:$0xff] %vm122_vm0, %v4478_v1  ;;  %v3114_v54 = vsub.f32 %v2898_v22, %v3006_v51  ;;  %v4983_v1 = vld [vmem:[%s11658_s0 + $0x128] sm:$0xff] }
 0x447   :  { %4578 = vst.msk [vmem:[%s11661_s3 + $0xd8] sm:$0xff] %vm122_vm0, %v4470_v41  ;;  %4152 = vperm.xlu2 %4666, %v3110_v49   ;;  %v12770_v41 = vld [vmem:[#allocation174_spill] sm:$0xff] }
 0x448   :  { %v3968_v34 = vpop.permute.xlu0 %3967  ;;  %4157 = vperm.xlu1 %4665, %v3111_v56   ;;  %v3724_v49 = vmul.f32 %v4983_v1, %v12770_v41  ;;  %v4984_v56 = vld [vmem:[%s11658_s0 + $0x148] sm:$0xff]  ;;  %v4987_v41 = vld [vmem:[%s11658_s0 + $0x160] sm:$0xff] }
 0x449   :  { %v4369_v8 = vadd.f32 %v3968_v34, %v3721_v26  ;;  %v3988_v52 = vpop.permute.xlu2 %3987  ;;  %v3728_v44 = vmul.f32 %v4984_v56, %v12771_v45  ;;  %v4985_v34 = vld [vmem:[%s11658_s0 + $0x108] sm:$0xff] }
 0x44a   :  { %v3948_v10 = vpop.permute.xlu1 %3947  ;;  %v4373_v33 = vadd.f32 %v3988_v52, %v3725_v12  ;;  %v3013_v12 = vmul.f32 %v12773_v48, %v12772_v19  ;;  %v3720_v39 = vmul.f32 %v4985_v34, %v12774_v46  ;;  %v2900_v52 = vld [vmem:[%s11660_s2 + $0x268] sm:$0xff]  ;;  %v4988_v48 = vld [vmem:[%s11658_s0 + $0x120] sm:$0xff] }
 0x44b   :  { %v4477_v61 = vmax.f32 %v4369_v8, 0.0  ;;  %v4365_v29 = vadd.f32 %v3948_v10, %v3717_v43  ;;  %v12775_v43 = vld [vmem:[#allocation89_spill] sm:$0xff]  ;;  %v12776_v8 = vld [vmem:[#allocation119_spill] sm:$0xff]  ;;  %v12777_v10 = vld [vmem:[#allocation94_spill] sm:$0xff] }
 0x44c   :  { %v4481_v15 = vmax.f32 %v4373_v33, 0.0  ;;  %v3008_v2 = vmul.f32 %v12776_v8, %v12775_v43  ;;  %v3009_v21 = vmul.f32 %v12778_v27, %v12777_v10 }
 0x44d   :  { %4585 = vst.msk [vmem:[%s11661_s3 + $0x110] sm:$0xff] %vm122_vm0, %v4477_v61  ;;  %v4473_v0 = vmax.f32 %v4365_v29, 0.0  ;;  %v2901_v61 = vld [vmem:[%s11660_s2 + $0x270] sm:$0xff]  ;;  %v3121_v29 = vsub.f32 %v2905_v59, %v3013_v12  ;;  %v12783_v12 = vld [vmem:[#allocation226_spill] sm:$0xff]  ;;  %v12785_v59 = vld [vmem:[#allocation227_spill] sm:$0xff] }
 0x44e   :  { %4192 = vperm.xlu0 %4664, %v3118_v35   ;;  %4589 = vst.msk [vmem:[%s11661_s3 + $0x130] sm:$0xff] %vm122_vm0, %v4481_v15  ;;  %v3116_v15 = vsub.f32 %v2900_v52, %v3008_v2  ;;  %v3723_v34 = vmul.f32 %v4988_v48, %v12783_v12  ;;  %v12787_v52 = vld [vmem:[#allocation113_spill] sm:$0xff]  ;;  %v2911_v12 = vld [vmem:[%s11660_s2 + $0x2c0] sm:$0xff] }
 0x44f   :  { %4581 = vst.msk [vmem:[%s11661_s3 + $0xf0] sm:$0xff] %vm122_vm0, %v4473_v0  ;;  %4167 = vperm.xlu2 %4666, %v3113_v53   ;;  %v3117_v0 = vsub.f32 %v2901_v61, %v3009_v21  ;;  %v4986_v53 = vld [vmem:[%s11658_s0 + $0x140] sm:$0xff] }
 0x450   :  { %v3983_v26 = vpop.permute.xlu0 %3982  ;;  %4172 = vperm.xlu1 %4665, %v3114_v54   ;;  %v12779_v54 = vld [vmem:[#allocation224_spill] sm:$0xff] }
 0x451   :  { %v4372_v4 = vadd.f32 %v3983_v26, %v3724_v49  ;;  %v4003_v18 = vpop.permute.xlu2 %4002  ;;  %v3727_v1 = vmul.f32 %v4986_v53, %v12779_v54  ;;  %v12780_v49 = vld [vmem:[#allocation225_spill] sm:$0xff] }
 0x452   :  { %v3963_v57 = vpop.permute.xlu1 %3962  ;;  %v4376_v55 = vadd.f32 %v4003_v18, %v3728_v44  ;;  %v3731_v56 = vmul.f32 %v4987_v41, %v12780_v49  ;;  %v12781_v44 = vld [vmem:[#allocation100_spill] sm:$0xff]  ;;  %v12782_v26 = vld [vmem:[#allocation125_spill] sm:$0xff]  ;;  %v2903_v18 = vld [vmem:[%s11660_s2 + $0x280] sm:$0xff] }
 0x453   :  { %v4480_v51 = vmax.f32 %v4372_v4, 0.0  ;;  %v4368_v33 = vadd.f32 %v3963_v57, %v3720_v39  ;;  %v3016_v19 = vmul.f32 %v12782_v26, %v12781_v44  ;;  %v2908_v39 = vld [vmem:[%s11660_s2 + $0x2a8] sm:$0xff]  ;;  %v12784_v4 = vld [vmem:[#allocation92_spill] sm:$0xff]  ;;  %v12786_v57 = vld [vmem:[#allocation97_spill] sm:$0xff] }
 0x454   :  { %v4484_v22 = vmax.f32 %v4376_v55, 0.0  ;;  %v3011_v43 = vmul.f32 %v12785_v59, %v12784_v4  ;;  %v3012_v10 = vmul.f32 %v12787_v52, %v12786_v57  ;;  %v4990_v54 = vld [vmem:[%s11658_s0 + $0x178] sm:$0xff]  ;;  %v12793_v59 = vld [vmem:[#allocation102_spill] sm:$0xff] }
 0x455   :  { %4588 = vst.msk [vmem:[%s11661_s3 + $0x128] sm:$0xff] %vm122_vm0, %v4480_v51  ;;  %v4476_v35 = vmax.f32 %v4368_v33, 0.0  ;;  %v2904_v51 = vld [vmem:[%s11660_s2 + $0x288] sm:$0xff]  ;;  %v3124_v33 = vsub.f32 %v2908_v39, %v3016_v19  ;;  %v4991_v44 = vld [vmem:[%s11658_s0 + $0x138] sm:$0xff]  ;;  %v2907_v57 = vld [vmem:[%s11660_s2 + $0x2a0] sm:$0xff] }
 0x456   :  { %4207 = vperm.xlu0 %4664, %v3121_v29   ;;  %4592 = vst.msk [vmem:[%s11661_s3 + $0x148] sm:$0xff] %vm122_vm0, %v4484_v22  ;;  %v3119_v22 = vsub.f32 %v2903_v18, %v3011_v43  ;;  %v12791_v26 = vld [vmem:[#allocation229_spill] sm:$0xff]  ;;  %v3015_v43 = vmul.f32 %v9677_v9, %v12793_v59  ;;  %v4992_v9 = vld [vmem:[%s11658_s0 + $0x170] sm:$0xff] }
 0x457   :  { %4584 = vst.msk [vmem:[%s11661_s3 + $0x108] sm:$0xff] %vm122_vm0, %v4476_v35  ;;  %4182 = vperm.xlu2 %4666, %v3116_v15   ;;  %v3120_v35 = vsub.f32 %v2904_v51, %v3012_v10  ;;  %v4989_v15 = vld [vmem:[%s11658_s0 + $0x158] sm:$0xff]  ;;  %v3726_v19 = vmul.f32 %v4991_v44, %v12791_v26  ;;  %v12799_v26 = vld [vmem:[#allocation108_spill] sm:$0xff] }
 0x458   :  { %v3998_v45 = vpop.permute.xlu0 %3997  ;;  %4187 = vperm.xlu1 %4665, %v3117_v0   ;;  %v12788_v0 = vld [vmem:[#allocation182_spill] sm:$0xff] }
 0x459   :  { %v4375_v46 = vadd.f32 %v3998_v45, %v3727_v1  ;;  %v4018_v8 = vpop.permute.xlu2 %4017  ;;  %v3730_v53 = vmul.f32 %v4989_v15, %v12788_v0  ;;  %v12789_v1 = vld [vmem:[#allocation228_spill] sm:$0xff] }
 0x45a   :  { %v3978_v2 = vpop.permute.xlu1 %3977  ;;  %v4379_v27 = vadd.f32 %v4018_v8, %v3731_v56  ;;  %v3734_v41 = vmul.f32 %v4990_v54, %v12789_v1  ;;  %v12790_v56 = vld [vmem:[#allocation105_spill] sm:$0xff]  ;;  %v4994_v0 = vld [vmem:[%s11658_s0 + $0x150] sm:$0xff] }
 0x45b   :  { %v4483_v21 = vmax.f32 %v4375_v46, 0.0  ;;  %v4371_v55 = vadd.f32 %v3978_v2, %v3723_v34  ;;  %v3019_v45 = vmul.f32 %v9667_v7, %v12790_v56  ;;  %v12792_v34 = vld [vmem:[#allocation95_spill] sm:$0xff]  ;;  %v2906_v7 = vld [vmem:[%s11660_s2 + $0x298] sm:$0xff] }
 0x45c   :  { %v4487_v61 = vmax.f32 %v4379_v27, 0.0  ;;  %v3014_v46 = vmul.f32 %v9672_v42, %v12792_v34 }
 0x45d   :  { %4591 = vst.msk [vmem:[%s11661_s3 + $0x140] sm:$0xff] %vm122_vm0, %v4483_v21  ;;  %v4479_v29 = vmax.f32 %v4371_v55, 0.0  ;;  %v3127_v52 = vsub.f32 %v2911_v12, %v3019_v45  ;;  %v3123_v21 = vsub.f32 %v2907_v57, %v3015_v43  ;;  %v12794_v55 = vld [vmem:[#allocation188_spill] sm:$0xff]  ;;  %v4996_v57 = vld [vmem:[%s11658_s0 + $0x1a8] sm:$0xff] }
 0x45e   :  { %4222 = vperm.xlu0 %4664, %v3124_v33   ;;  %4595 = vst.msk [vmem:[%s11661_s3 + $0x160] sm:$0xff] %vm122_vm0, %v4487_v61  ;;  %v3122_v27 = vsub.f32 %v2906_v7, %v3014_v46  ;;  %v3733_v51 = vmul.f32 %v4992_v9, %v12794_v55  ;;  %v4993_v33 = vld [vmem:[%s11658_s0 + $0x190] sm:$0xff]  ;;  %v12795_v61 = vld [vmem:[#allocation118_spill] sm:$0xff]  ;;  %v4997_v9 = vld [vmem:[%s11658_s0 + $0x168] sm:$0xff] }
 0x45f   :  { %4587 = vst.msk [vmem:[%s11661_s3 + $0x120] sm:$0xff] %vm122_vm0, %v4479_v29  ;;  %4197 = vperm.xlu2 %4666, %v3119_v22   ;;  %v3737_v29 = vmul.f32 %v4993_v33, %v12795_v61  ;;  %v12804_v55 = vld [vmem:[#allocation232_spill] sm:$0xff] }
 0x460   :  { %v4013_v49 = vpop.permute.xlu0 %4012  ;;  %4202 = vperm.xlu1 %4665, %v3120_v35   ;;  %v12796_v35 = vld [vmem:[#allocation111_spill] sm:$0xff]  ;;  %v2917_v61 = vld [vmem:[%s11660_s2 + $0x2f0] sm:$0xff] }
 0x461   :  { %v4378_v48 = vadd.f32 %v4013_v49, %v3730_v53  ;;  %v4033_v39 = vpop.permute.xlu2 %4032  ;;  %v3022_v15 = vmul.f32 %v9760_v24, %v12796_v35  ;;  %v12797_v53 = vld [vmem:[#allocation230_spill] sm:$0xff]  ;;  %v12798_v49 = vld [vmem:[#allocation99_spill] sm:$0xff]  ;;  %v2909_v24 = vld [vmem:[%s11660_s2 + $0x2b0] sm:$0xff] }
 0x462   :  { %v3993_v4 = vpop.permute.xlu1 %3992  ;;  %v4382_v8 = vadd.f32 %v4033_v39, %v3734_v41  ;;  %v3729_v54 = vmul.f32 %v4994_v0, %v12797_v53  ;;  %v2914_v41 = vld [vmem:[%s11660_s2 + $0x2d8] sm:$0xff]  ;;  %v3017_v56 = vmul.f32 %v9765_v40, %v12798_v49  ;;  %v12806_v0 = vld [vmem:[#allocation114_spill] sm:$0xff]  ;;  %v2913_v49 = vld [vmem:[%s11660_s2 + $0x2d0] sm:$0xff] }
 0x463   :  { %v4486_v2 = vmax.f32 %v4378_v48, 0.0  ;;  %v4374_v18 = vadd.f32 %v3993_v4, %v3726_v19  ;;  %v12800_v19 = vld [vmem:[#allocation112_spill] sm:$0xff]  ;;  %v2910_v39 = vld [vmem:[%s11660_s2 + $0x2b8] sm:$0xff]  ;;  %v3130_v4 = vsub.f32 %v2914_v41, %v3022_v15  ;;  %v3021_v53 = vmul.f32 %v9863_v32, %v12806_v0  ;;  %v4998_v32 = vld [vmem:[%s11658_s0 + $0x1a0] sm:$0xff] }
 0x464   :  { %v4490_v10 = vmax.f32 %v4382_v8, 0.0  ;;  %v3018_v48 = vmul.f32 %v12800_v19, %v12799_v26  ;;  %v3125_v59 = vsub.f32 %v2909_v24, %v3017_v56  ;;  %v4995_v8 = vld [vmem:[%s11658_s0 + $0x188] sm:$0xff]  ;;  %v12807_v26 = vld [vmem:[#allocation121_spill] sm:$0xff] }
 0x465   :  { %4594 = vst.msk [vmem:[%s11661_s3 + $0x158] sm:$0xff] %vm122_vm0, %v4486_v2  ;;  %v4482_v42 = vmax.f32 %v4374_v18, 0.0  ;;  %v12801_v2 = vld [vmem:[#allocation131_spill] sm:$0xff]  ;;  %v3129_v24 = vsub.f32 %v2913_v49, %v3021_v53  ;;  %v3739_v19 = vmul.f32 %v4998_v32, %v12807_v26  ;;  %v12814_v53 = vld [vmem:[#allocation129_spill] sm:$0xff]  ;;  %v12817_v32 = vld [vmem:[#allocation126_spill] sm:$0xff] }
 0x466   :  { %4237 = vperm.xlu0 %4664, %v3127_v52   ;;  %4598 = vst.msk [vmem:[%s11661_s3 + $0x178] sm:$0xff] %vm122_vm0, %v4490_v10  ;;  %v3126_v43 = vsub.f32 %v2910_v39, %v3018_v48  ;;  %v3736_v18 = vmul.f32 %v4995_v8, %v12801_v2  ;;  %v12802_v52 = vld [vmem:[#allocation231_spill] sm:$0xff]  ;;  %v4999_v48 = vld [vmem:[%s11658_s0 + $0x1c0] sm:$0xff]  ;;  %v3027_v26 = vmul.f32 %v10024_v50, %v12817_v32  ;;  %v5004_v50 = vld [vmem:[%s11658_s0 + $0x1d0] sm:$0xff] }
 0x467   :  { %4590 = vst.msk [vmem:[%s11661_s3 + $0x138] sm:$0xff] %vm122_vm0, %v4482_v42  ;;  %4212 = vperm.xlu2 %4666, %v3122_v27   ;;  %v3740_v10 = vmul.f32 %v4996_v57, %v12802_v52  ;;  %v12803_v27 = vld [vmem:[#allocation117_spill] sm:$0xff]  ;;  %v12809_v39 = vld [vmem:[#allocation123_spill] sm:$0xff]  ;;  %v12811_v2 = vld [vmem:[#allocation110_spill] sm:$0xff] }
 0x468   :  { %v4028_v22 = vpop.permute.xlu0 %4027  ;;  %4217 = vperm.xlu1 %4665, %v3123_v21   ;;  %v3025_v21 = vmul.f32 %v9853_v17, %v12803_v27  ;;  %v2912_v17 = vld [vmem:[%s11660_s2 + $0x2c8] sm:$0xff] }
 0x469   :  { %v4381_v1 = vadd.f32 %v4028_v22, %v3733_v51  ;;  %v4048_v45 = vpop.permute.xlu2 %4047  ;;  %v3732_v51 = vmul.f32 %v4997_v9, %v12804_v55  ;;  %v2920_v8 = vld [vmem:[%s11660_s2 + $0x308] sm:$0xff] }
 0x46a   :  { %v4008_v44 = vpop.permute.xlu1 %4007  ;;  %v4385_v12 = vadd.f32 %v4048_v45, %v3737_v29  ;;  %v12805_v29 = vld [vmem:[#allocation104_spill] sm:$0xff]  ;;  %v3133_v56 = vsub.f32 %v2917_v61, %v3025_v21  ;;  %v2916_v55 = vld [vmem:[%s11660_s2 + $0x2e8] sm:$0xff] }
 0x46b   :  { %v4489_v34 = vmax.f32 %v4381_v1, 0.0  ;;  %v4377_v46 = vadd.f32 %v4008_v44, %v3729_v54  ;;  %v3020_v22 = vmul.f32 %v9858_v30, %v12805_v29 }
 0x46c   :  { %v4493_v7 = vmax.f32 %v4385_v12, 0.0  ;;  %v12808_v12 = vld [vmem:[#allocation233_spill] sm:$0xff] }
 0x46d   :  { %4597 = vst.msk [vmem:[%s11661_s3 + $0x170] sm:$0xff] %vm122_vm0, %v4489_v34  ;;  %v4485_v40 = vmax.f32 %v4377_v46, 0.0  ;;  %v3128_v44 = vsub.f32 %v2912_v17, %v3020_v22  ;;  %v3743_v34 = vmul.f32 %v4999_v48, %v12808_v12 }
 0x46e   :  { %4252 = vperm.xlu0 %4664, %v3130_v4   ;;  %4601 = vst.msk [vmem:[%s11661_s3 + $0x190] sm:$0xff] %vm122_vm0, %v4493_v7  ;;  %v3028_v4 = vmul.f32 %v9937_v13, %v12809_v39  ;;  %v5000_v7 = vld [vmem:[%s11658_s0 + $0x180] sm:$0xff] }
 0x46f   :  { %4593 = vst.msk [vmem:[%s11661_s3 + $0x150] sm:$0xff] %vm122_vm0, %v4485_v40  ;;  %4227 = vperm.xlu2 %4666, %v3125_v59   ;;  %v12810_v40 = vld [vmem:[#allocation234_spill] sm:$0xff] }
 0x470   :  { %v4043_v42 = vpop.permute.xlu0 %4042  ;;  %4232 = vperm.xlu1 %4665, %v3126_v43   ;;  %v3735_v59 = vmul.f32 %v5000_v7, %v12810_v40  ;;  %v2915_v13 = vld [vmem:[%s11660_s2 + $0x2e0] sm:$0xff]  ;;  %v3745_v40 = vmul.f32 %v5004_v50, %v10036_v36  ;;  %v5006_v36 = vld [vmem:[%s11658_s0 + $0x1b0] sm:$0xff] }
 0x471   :  { %v4384_v33 = vadd.f32 %v4043_v42, %v3736_v18  ;;  %v4063_v35 = vpop.permute.xlu2 %4062  ;;  %v3023_v18 = vmul.f32 %v9942_v62, %v12811_v2  ;;  %v12818_v2 = vld [vmem:[#allocation135_spill] sm:$0xff] }
 0x472   :  { %v4023_v15 = vpop.permute.xlu1 %4022  ;;  %v4388_v54 = vadd.f32 %v4063_v35, %v3740_v10  ;;  %v12812_v10 = vld [vmem:[#allocation120_spill] sm:$0xff]  ;;  %v5002_v35 = vld [vmem:[%s11658_s0 + $0x1d8] sm:$0xff] }
 0x473   :  { %v4492_v1 = vmax.f32 %v4384_v33, 0.0  ;;  %v4380_v41 = vadd.f32 %v4023_v15, %v3732_v51  ;;  %v3024_v42 = vmul.f32 %v9949_v37, %v12812_v10  ;;  %v3136_v51 = vsub.f32 %v2920_v8, %v3028_v4  ;;  %v5001_v37 = vld [vmem:[%s11658_s0 + $0x1b8] sm:$0xff]  ;;  %v12813_v15 = vld [vmem:[#allocation124_spill] sm:$0xff] }
 0x474   :  { %v4496_v45 = vmax.f32 %v4388_v54, 0.0  ;;  %v3131_v61 = vsub.f32 %v2915_v13, %v3023_v18  ;;  %v3742_v22 = vmul.f32 %v5001_v37, %v9965_v28  ;;  %v3746_v17 = vmul.f32 %v5002_v35, %v12813_v15  ;;  %v5003_v28 = vld [vmem:[%s11658_s0 + $0x198] sm:$0xff] }
 0x475   :  { %4600 = vst.msk [vmem:[%s11661_s3 + $0x188] sm:$0xff] %vm122_vm0, %v4492_v1  ;;  %v4488_v30 = vmax.f32 %v4380_v41, 0.0  ;;  %v3132_v29 = vsub.f32 %v2916_v55, %v3024_v42  ;;  %v3031_v54 = vmul.f32 %v10014_v58, %v12814_v53  ;;  %v12815_v1 = vld [vmem:[#allocation235_spill] sm:$0xff]  ;;  %v2918_v58 = vld [vmem:[%s11660_s2 + $0x2f8] sm:$0xff]  ;;  %v3034_v18 = vmul.f32 %v10078_v31, %v12818_v2  ;;  %v12820_v42 = vld [vmem:[#allocation122_spill] sm:$0xff] }
 0x476   :  { %4267 = vperm.xlu0 %4664, %v3133_v56   ;;  %4604 = vst.msk [vmem:[%s11661_s3 + $0x1a8] sm:$0xff] %vm122_vm0, %v4496_v45  ;;  %v3738_v41 = vmul.f32 %v5003_v28, %v12815_v1  ;;  %v2923_v56 = vld [vmem:[%s11660_s2 + $0x320] sm:$0xff]  ;;  %v12816_v45 = vld [vmem:[#allocation116_spill] sm:$0xff]  ;;  %v2926_v10 = vld [vmem:[%s11660_s2 + $0x338] sm:$0xff] }
 0x477   :  { %4596 = vst.msk [vmem:[%s11661_s3 + $0x168] sm:$0xff] %vm122_vm0, %v4488_v30  ;;  %4242 = vperm.xlu2 %4666, %v3128_v44   ;;  %v3026_v30 = vmul.f32 %v10018_v60, %v12816_v45  ;;  %v2921_v31 = vld [vmem:[%s11660_s2 + $0x310] sm:$0xff] }
 0x478   :  { %v4058_v46 = vpop.permute.xlu0 %4057  ;;  %4247 = vperm.xlu1 %4665, %v3129_v24  }
 0x479   :  { %v4387_v43 = vadd.f32 %v4058_v46, %v3739_v19  ;;  %v4078_v57 = vpop.permute.xlu2 %4077  ;;  %v3139_v46 = vsub.f32 %v2923_v56, %v3031_v54  ;;  %v3134_v4 = vsub.f32 %v2918_v58, %v3026_v30  ;;  %v12822_v54 = vld [vmem:[#allocation11_spill] sm:$0xff]  ;;  %v12823_v56 = vld [vmem:[#allocation128_spill] sm:$0xff] }
 0x47a   :  { %v4038_v52 = vpop.permute.xlu1 %4037  ;;  %v4391_v27 = vadd.f32 %v4078_v57, %v3743_v34  ;;  %v2919_v34 = vld [vmem:[%s11660_s2 + $0x300] sm:$0xff]  ;;  %v12819_v57 = vld [vmem:[#allocation236_spill] sm:$0xff]  ;;  %v3037_v28 = vmul.f32 %v10125_v63, %v12822_v54  ;;  %v3032_v45 = vmul.f32 %v10127_v25, %v12823_v56  ;;  %v2924_v63 = vld [vmem:[%s11660_s2 + $0x328] sm:$0xff] }
 0x47b   :  { %v4495_v21 = vmax.f32 %v4387_v43, 0.0  ;;  %v4383_v9 = vadd.f32 %v4038_v52, %v3735_v59  ;;  %v3135_v7 = vsub.f32 %v2919_v34, %v3027_v26  ;;  %v5005_v59 = vld [vmem:[%s11658_s0 + $0x1f0] sm:$0xff]  ;;  %v3741_v52 = vmul.f32 %v5006_v36, %v12819_v57  ;;  %v12827_v36 = vld [vmem:[#allocation13_spill] sm:$0xff] }
 0x47c   :  { %v4499_v33 = vmax.f32 %v4391_v27, 0.0  ;;  %v3749_v43 = vmul.f32 %v5005_v59, %v10052_v14  ;;  %v3029_v27 = vmul.f32 %v10083_v5, %v12820_v42  ;;  %v2925_v26 = vld [vmem:[%s11660_s2 + $0x330] sm:$0xff]  ;;  %v12826_v59 = vld [vmem:[#allocation53_spill] sm:$0xff] }
 0x47d   :  { %4603 = vst.msk [vmem:[%s11661_s3 + $0x1a0] sm:$0xff] %vm122_vm0, %v4495_v21  ;;  %v4491_v62 = vmax.f32 %v4383_v9, 0.0  ;;  %v12821_v9 = vld [vmem:[#allocation132_spill] sm:$0xff] }
 0x47e   :  { %4282 = vperm.xlu0 %4664, %v3136_v51   ;;  %4607 = vst.msk [vmem:[%s11661_s3 + $0x1c0] sm:$0xff] %vm122_vm0, %v4499_v33  ;;  %v3030_v55 = vmul.f32 %v10089_v20, %v12821_v9  ;;  %v5007_v20 = vld [vmem:[%s11658_s0 + $0x1e8] sm:$0xff]  ;;  %v12829_v9 = vld [vmem:[#allocation237_spill] sm:$0xff]  ;;  %v5016_v56 = vld [vmem:[%s11658_s0 + $0x230] sm:$0xff] }
 0x47f   :  { %4599 = vst.msk [vmem:[%s11661_s3 + $0x180] sm:$0xff] %vm122_vm0, %v4491_v62  ;;  %4257 = vperm.xlu2 %4666, %v3131_v61   ;;  %v2922_v61 = vld [vmem:[%s11660_s2 + $0x318] sm:$0xff]  ;;  %v3748_v15 = vmul.f32 %v5007_v20, %v10100_v11  ;;  %v5009_v11 = vld [vmem:[%s11658_s0 + $0x1c8] sm:$0xff]  ;;  %v12833_v20 = vld [vmem:[#allocation56_spill] sm:$0xff] }
 0x480   :  { %v4073_v0 = vpop.permute.xlu0 %4072  ;;  %4262 = vperm.xlu1 %4665, %v3132_v29   ;;  %v3142_v29 = vsub.f32 %v2926_v10, %v3034_v18  ;;  %v3138_v35 = vsub.f32 %v2922_v61, %v3030_v55  ;;  %v3744_v1 = vmul.f32 %v5009_v11, %v10115_v47  ;;  %v2927_v18 = vld [vmem:[%s11660_s2 + $0x340] sm:$0xff] }
 0x481   :  { %v4390_v49 = vadd.f32 %v4073_v0, %v3742_v22  ;;  %v4093_v44 = vpop.permute.xlu2 %4092  ;;  %v3137_v22 = vsub.f32 %v2921_v31, %v3029_v27  ;;  %v5013_v31 = vld [vmem:[%s11658_s0 + $0x218] sm:$0xff] }
 0x482   :  { %v4053_v24 = vpop.permute.xlu1 %4052  ;;  %v4394_v19 = vadd.f32 %v4093_v44, %v3746_v17  ;;  %v5008_v17 = vld [vmem:[%s11658_s0 + $0x208] sm:$0xff]  ;;  %v12824_v44 = vld [vmem:[#allocation138_spill] sm:$0xff]  ;;  %v3754_v55 = vmul.f32 %v5013_v31, %v12829_v9 }
 0x483   :  { %v4498_v48 = vmax.f32 %v4390_v49, 0.0  ;;  %v4386_v12 = vadd.f32 %v4053_v24, %v3738_v41  ;;  %v3752_v0 = vmul.f32 %v5008_v17, %v10112_v6  ;;  %v2929_v49 = vld [vmem:[%s11660_s2 + $0x350] sm:$0xff]  ;;  %v3033_v24 = vmul.f32 %v10132_v23, %v12824_v44  ;;  %v5010_v23 = vld [vmem:[%s11658_s0 + $0x200] sm:$0xff] }
 0x484   :  { %v4502_v39 = vmax.f32 %v4394_v19, 0.0  ;;  %v3145_v19 = vsub.f32 %v2929_v49, %v3037_v28 }
 0x485   :  { %4606 = vst.msk [vmem:[%s11661_s3 + $0x1b8] sm:$0xff] %vm122_vm0, %v4498_v48  ;;  %v4494_v60 = vmax.f32 %v4386_v12, 0.0  ;;  %v3140_v12 = vsub.f32 %v2924_v63, %v3032_v45  ;;  %v3141_v34 = vsub.f32 %v2925_v26, %v3033_v24  ;;  %v12834_v45 = vld [vmem:[#allocation143_spill] sm:$0xff]  ;;  %v12835_v63 = vld [vmem:[#allocation62_spill] sm:$0xff] }
 0x486   :  { %4297 = vperm.xlu0 %4664, %v3139_v46   ;;  %4610 = vst.msk [vmem:[%s11661_s3 + $0x1d8] sm:$0xff] %vm122_vm0, %v4502_v39  ;;  %v3751_v46 = vmul.f32 %v5010_v23, %v10138_v38  ;;  %v5011_v39 = vld [vmem:[%s11658_s0 + $0x220] sm:$0xff] }
 0x487   :  { %4602 = vst.msk [vmem:[%s11661_s3 + $0x198] sm:$0xff] %vm122_vm0, %v4494_v60  ;;  %4272 = vperm.xlu2 %4666, %v3134_v4   ;;  %v3755_v60 = vmul.f32 %v5011_v39, %v10147_v16  ;;  %v12828_v16 = vld [vmem:[#allocation147_spill] sm:$0xff] }
 0x488   :  { %v4088_v8 = vpop.permute.xlu0 %4087  ;;  %4277 = vperm.xlu1 %4665, %v3135_v7   ;;  %v5012_v7 = vld [vmem:[%s11658_s0 + $0x1e0] sm:$0xff]  ;;  %v3036_v57 = vmul.f32 %v12828_v16, %v12827_v36  ;;  %v5019_v39 = vld [vmem:[%s11658_s0 + $0x248] sm:$0xff] }
 0x489   :  { %v4393_v13 = vadd.f32 %v4088_v8, %v3745_v40  ;;  %v4108_v14 = vpop.permute.xlu2 %4107  ;;  %v3747_v38 = vmul.f32 %v5012_v7, %v10149_v3  ;;  %v12825_v40 = vld [vmem:[#allocation134_spill] sm:$0xff]  ;;  %v2928_v3 = vld [vmem:[%s11660_s2 + $0x348] sm:$0xff] }
 0x48a   :  { %v4068_v21 = vpop.permute.xlu1 %4067  ;;  %v4397_v51 = vadd.f32 %v4108_v14, %v3749_v43  ;;  %v3035_v43 = vmul.f32 %v12826_v59, %v12825_v40  ;;  %v5020_v7 = vld [vmem:[%s11658_s0 + $0x268] sm:$0xff] }
 0x48b   :  { %v4501_v33 = vmax.f32 %v4393_v13, 0.0  ;;  %v4389_v62 = vadd.f32 %v4068_v21, %v3741_v52  ;;  %v3144_v21 = vsub.f32 %v2928_v3, %v3036_v57  ;;  %v5021_v59 = vld [vmem:[%s11658_s0 + $0x228] sm:$0xff]  ;;  %v5022_v3 = vld [vmem:[%s11658_s0 + $0x260] sm:$0xff] }
 0x48c   :  { %v4505_v37 = vmax.f32 %v4397_v51, 0.0  ;;  %v3143_v14 = vsub.f32 %v2927_v18, %v3035_v43  ;;  %v5014_v51 = vld [vmem:[%s11658_s0 + $0x238] sm:$0xff]  ;;  %v12839_v43 = vld [vmem:[#allocation60_spill] sm:$0xff] }
 0x48d   :  { %4609 = vst.msk [vmem:[%s11661_s3 + $0x1d0] sm:$0xff] %vm122_vm0, %v4501_v33  ;;  %v4497_v5 = vmax.f32 %v4389_v62, 0.0  ;;  %v12830_v33 = vld [vmem:[#allocation58_spill] sm:$0xff] }
 0x48e   :  { %4312 = vperm.xlu0 %4664, %v3142_v29   ;;  %4613 = vst.msk [vmem:[%s11661_s3 + $0x1f0] sm:$0xff] %vm122_vm0, %v4505_v37  ;;  %v3758_v62 = vmul.f32 %v5014_v51, %v12830_v33  ;;  %v5015_v29 = vld [vmem:[%s11658_s0 + $0x1f8] sm:$0xff]  ;;  %v12831_v37 = vld [vmem:[#allocation151_spill] sm:$0xff]  ;;  %v12842_v51 = vld [vmem:[#allocation152_spill] sm:$0xff] }
 0x48f   :  { %4605 = vst.msk [vmem:[%s11661_s3 + $0x1b0] sm:$0xff] %vm122_vm0, %v4497_v5  ;;  %4287 = vperm.xlu2 %4666, %v3137_v22   ;;  %v3750_v5 = vmul.f32 %v5015_v29, %v12831_v37 }
 0x490   :  { %v4103_v53 = vpop.permute.xlu0 %4102  ;;  %4292 = vperm.xlu1 %4665, %v3138_v35   ;;  %v12832_v35 = vld [vmem:[#allocation30_spill] sm:$0xff] }
 0x491   :  { %v4396_v41 = vadd.f32 %v4103_v53, %v3748_v15  ;;  %v4123_v6 = vpop.permute.xlu2 %4122  ;;  %v3038_v15 = vmul.f32 %v12833_v20, %v12832_v35  ;;  %v2930_v53 = vld [vmem:[%s11660_s2 + $0x358] sm:$0xff] }
 0x492   :  { %v4083_v30 = vpop.permute.xlu1 %4082  ;;  %v4400_v58 = vadd.f32 %v4123_v6, %v3752_v0  ;;  %v3757_v6 = vmul.f32 %v5016_v56, %v12834_v45 }
 0x493   :  { %v4504_v32 = vmax.f32 %v4396_v41, 0.0  ;;  %v4392_v47 = vadd.f32 %v4083_v30, %v3744_v1  ;;  %v3146_v49 = vsub.f32 %v2930_v53, %v3038_v15  ;;  %v5017_v30 = vld [vmem:[%s11658_s0 + $0x250] sm:$0xff]  ;;  %v5025_v15 = vld [vmem:[%s11658_s0 + $0x278] sm:$0xff] }
 0x494   :  { %v4508_v48 = vmax.f32 %v4400_v58, 0.0  ;;  %v3761_v44 = vmul.f32 %v5017_v30, %v12835_v63  ;;  %v5018_v58 = vld [vmem:[%s11658_s0 + $0x210] sm:$0xff]  ;;  %v5026_v53 = vld [vmem:[%s11658_s0 + $0x298] sm:$0xff] }
 0x495   :  { %4612 = vst.msk [vmem:[%s11661_s3 + $0x1e8] sm:$0xff] %vm122_vm0, %v4504_v32  ;;  %v4500_v25 = vmax.f32 %v4392_v47, 0.0  ;;  %v12836_v32 = vld [vmem:[#allocation148_spill] sm:$0xff] }
 0x496   :  { %4327 = vperm.xlu0 %4664, %v3145_v19   ;;  %4616 = vst.msk [vmem:[%s11661_s3 + $0x208] sm:$0xff] %vm122_vm0, %v4508_v48  ;;  %v3753_v47 = vmul.f32 %v5018_v58, %v12836_v32  ;;  %v5028_v32 = vld [vmem:[%s11658_s0 + $0x290] sm:$0xff] }
 0x497   :  { %4608 = vst.msk [vmem:[%s11661_s3 + $0x1c8] sm:$0xff] %vm122_vm0, %v4500_v25  ;;  %4302 = vperm.xlu2 %4666, %v3140_v12  }
 0x498   :  { %v4118_v4 = vpop.permute.xlu0 %4117  ;;  %4307 = vperm.xlu1 %4665, %v3141_v34  }
 0x499   :  { %v4399_v50 = vadd.f32 %v4118_v4, %v3751_v46  ;;  %v4138_v8 = vpop.permute.xlu2 %4137 }
 0x49a   :  { %v4098_v2 = vpop.permute.xlu1 %4097  ;;  %v4403_v52 = vadd.f32 %v4138_v8, %v3755_v60  ;;  %v12837_v60 = vld [vmem:[#allocation52_spill] sm:$0xff]  ;;  %v3756_v8 = vmul.f32 %v5021_v59, %v12839_v43  ;;  %v5031_v43 = vld [vmem:[%s11658_s0 + $0x2a8] sm:$0xff] }
 0x49b   :  { %v4507_v13 = vmax.f32 %v4399_v50, 0.0  ;;  %v4395_v10 = vadd.f32 %v4098_v2, %v3747_v38  ;;  %v3760_v4 = vmul.f32 %v5019_v39, %v12837_v60  ;;  %v12838_v38 = vld [vmem:[#allocation146_spill] sm:$0xff] }
 0x49c   :  { %v4511_v42 = vmax.f32 %v4403_v52, 0.0  ;;  %v3764_v50 = vmul.f32 %v5020_v7, %v12838_v38 }
 0x49d   :  { %4615 = vst.msk [vmem:[%s11661_s3 + $0x200] sm:$0xff] %vm122_vm0, %v4507_v13  ;;  %v4503_v27 = vmax.f32 %v4395_v10, 0.0 }
 0x49e   :  { %4619 = vst.msk [vmem:[%s11661_s3 + $0x220] sm:$0xff] %vm122_vm0, %v4511_v42  ;;  %v12840_v42 = vld [vmem:[#allocation150_spill] sm:$0xff] }
 0x49f   :  { %4611 = vst.msk [vmem:[%s11661_s3 + $0x1e0] sm:$0xff] %vm122_vm0, %v4503_v27  ;;  %4317 = vperm.xlu2 %4666, %v3143_v14   ;;  %v3763_v27 = vmul.f32 %v5022_v3, %v12840_v42  ;;  %v5023_v14 = vld [vmem:[%s11658_s0 + $0x280] sm:$0xff] }
 0x4a0   :  { %v4133_v61 = vpop.permute.xlu0 %4132  ;;  %4322 = vperm.xlu1 %4665, %v3144_v21   ;;  %v12841_v21 = vld [vmem:[#allocation65_spill] sm:$0xff] }
 0x4a1   :  { %v4402_v22 = vadd.f32 %v4133_v61, %v3754_v55  ;;  %v4153_v17 = vpop.permute.xlu2 %4152  ;;  %v3767_v31 = vmul.f32 %v5023_v14, %v12841_v21  ;;  %v5024_v55 = vld [vmem:[%s11658_s0 + $0x240] sm:$0xff] }
 0x4a2   :  { %v4113_v0 = vpop.permute.xlu1 %4112  ;;  %v4406_v54 = vadd.f32 %v4153_v17, %v3758_v62  ;;  %v3759_v33 = vmul.f32 %v5024_v55, %v12842_v51  ;;  %v12843_v17 = vld [vmem:[#allocation59_spill] sm:$0xff]  ;;  %v5034_v51 = vld [vmem:[%s11658_s0 + $0x2c0] sm:$0xff] }
 0x4a3   :  { %v4510_v28 = vmax.f32 %v4402_v22, 0.0  ;;  %v4398_v11 = vadd.f32 %v4113_v0, %v3750_v5  ;;  %v3766_v0 = vmul.f32 %v5025_v15, %v12843_v17 }
 0x4a4   :  { %v4514_v1 = vmax.f32 %v4406_v54, 0.0  ;;  %v12844_v54 = vld [vmem:[#allocation153_spill] sm:$0xff] }
 0x4a5   :  { %4618 = vst.msk [vmem:[%s11661_s3 + $0x218] sm:$0xff] %vm122_vm0, %v4510_v28  ;;  %v4506_v41 = vmax.f32 %v4398_v11, 0.0  ;;  %v3770_v28 = vmul.f32 %v5026_v53, %v12844_v54 }
 0x4a6   :  { %4622 = vst.msk [vmem:[%s11661_s3 + $0x238] sm:$0xff] %vm122_vm0, %v4514_v1  ;;  %v5027_v1 = vld [vmem:[%s11658_s0 + $0x258] sm:$0xff] }
 0x4a7   :  { %4614 = vst.msk [vmem:[%s11661_s3 + $0x1f8] sm:$0xff] %vm122_vm0, %v4506_v41  ;;  %4332 = vperm.xlu2 %4666, %v3146_v49   ;;  %v12845_v41 = vld [vmem:[#allocation63_spill] sm:$0xff] }
 0x4a8   :  { %v4148_v24 = vpop.permute.xlu0 %4147  ;;  %v3762_v49 = vmul.f32 %v5027_v1, %v12845_v41  ;;  %v5037_v41 = vld [vmem:[%s11658_s0 + $0x2d8] sm:$0xff] }
 0x4a9   :  { %v4405_v26 = vadd.f32 %v4148_v24, %v3757_v6  ;;  %v4168_v19 = vpop.permute.xlu2 %4167 }
 0x4aa   :  { %v4128_v48 = vpop.permute.xlu1 %4127  ;;  %v4409_v25 = vadd.f32 %v4168_v19, %v3761_v44  ;;  %v5029_v19 = vld [vmem:[%s11658_s0 + $0x2b0] sm:$0xff] }
 0x4ab   :  { %v4513_v12 = vmax.f32 %v4405_v26, 0.0  ;;  %v4401_v34 = vadd.f32 %v4128_v48, %v3753_v47  ;;  %v12846_v47 = vld [vmem:[#allocation154_spill] sm:$0xff]  ;;  %v12847_v48 = vld [vmem:[#allocation68_spill] sm:$0xff] }
 0x4ac   :  { %v4517_v23 = vmax.f32 %v4409_v25, 0.0  ;;  %v3769_v26 = vmul.f32 %v5028_v32, %v12846_v47  ;;  %v3773_v25 = vmul.f32 %v5029_v19, %v12847_v48 }
 0x4ad   :  { %4621 = vst.msk [vmem:[%s11661_s3 + $0x230] sm:$0xff] %vm122_vm0, %v4513_v12  ;;  %v4509_v46 = vmax.f32 %v4401_v34, 0.0  ;;  %v5030_v34 = vld [vmem:[%s11658_s0 + $0x270] sm:$0xff] }
 0x4ae   :  { %4625 = vst.msk [vmem:[%s11661_s3 + $0x250] sm:$0xff] %vm122_vm0, %v4517_v23  ;;  %v12848_v23 = vld [vmem:[#allocation155_spill] sm:$0xff] }
 0x4af   :  { %4617 = vst.msk [vmem:[%s11661_s3 + $0x210] sm:$0xff] %vm122_vm0, %v4509_v46  ;;  %v3765_v46 = vmul.f32 %v5030_v34, %v12848_v23  ;;  %v5040_v23 = vld [vmem:[%s11658_s0 + $0x2f0] sm:$0xff] }
 0x4b0   :  { %v4163_v40 = vpop.permute.xlu0 %4162 }
 0x4b1   :  { %v4408_v2 = vadd.f32 %v4163_v40, %v3760_v4  ;;  %v4183_v18 = vpop.permute.xlu2 %4182 }
 0x4b2   :  { %v4143_v36 = vpop.permute.xlu1 %4142  ;;  %v4412_v16 = vadd.f32 %v4183_v18, %v3764_v50  ;;  %v5032_v18 = vld [vmem:[%s11658_s0 + $0x2c8] sm:$0xff] }
 0x4b3   :  { %v4516_v57 = vmax.f32 %v4408_v2, 0.0  ;;  %v4404_v52 = vadd.f32 %v4143_v36, %v3756_v8  ;;  %v12849_v8 = vld [vmem:[#allocation61_spill] sm:$0xff]  ;;  %v12850_v36 = vld [vmem:[#allocation156_spill] sm:$0xff] }
 0x4b4   :  { %v4520_v13 = vmax.f32 %v4412_v16, 0.0  ;;  %v3772_v2 = vmul.f32 %v5031_v43, %v12849_v8  ;;  %v3776_v16 = vmul.f32 %v5032_v18, %v12850_v36 }
 0x4b5   :  { %4624 = vst.msk [vmem:[%s11661_s3 + $0x248] sm:$0xff] %vm122_vm0, %v4516_v57  ;;  %v4512_v10 = vmax.f32 %v4404_v52, 0.0  ;;  %v5033_v52 = vld [vmem:[%s11658_s0 + $0x288] sm:$0xff] }
 0x4b6   :  { %4628 = vst.msk [vmem:[%s11661_s3 + $0x268] sm:$0xff] %vm122_vm0, %v4520_v13  ;;  %v12851_v13 = vld [vmem:[#allocation66_spill] sm:$0xff] }
 0x4b7   :  { %4620 = vst.msk [vmem:[%s11661_s3 + $0x228] sm:$0xff] %vm122_vm0, %v4512_v10  ;;  %v3768_v10 = vmul.f32 %v5033_v52, %v12851_v13  ;;  %v5043_v13 = vld [vmem:[%s11658_s0 + $0x308] sm:$0xff] }
 0x4b8   :  { %v4178_v9 = vpop.permute.xlu0 %4177 }
 0x4b9   :  { %v4411_v62 = vadd.f32 %v4178_v9, %v3763_v27  ;;  %v4198_v61 = vpop.permute.xlu2 %4197 }
 0x4ba   :  { %v4158_v29 = vpop.permute.xlu1 %4157  ;;  %v4415_v37 = vadd.f32 %v4198_v61, %v3767_v31  ;;  %v5035_v61 = vld [vmem:[%s11658_s0 + $0x2e0] sm:$0xff] }
 0x4bb   :  { %v4519_v5 = vmax.f32 %v4411_v62, 0.0  ;;  %v4407_v22 = vadd.f32 %v4158_v29, %v3759_v33  ;;  %v12852_v33 = vld [vmem:[#allocation157_spill] sm:$0xff]  ;;  %v12853_v29 = vld [vmem:[#allocation71_spill] sm:$0xff] }
 0x4bc   :  { %v4523_v35 = vmax.f32 %v4415_v37, 0.0  ;;  %v3775_v62 = vmul.f32 %v5034_v51, %v12852_v33  ;;  %v3779_v37 = vmul.f32 %v5035_v61, %v12853_v29 }
 0x4bd   :  { %4627 = vst.msk [vmem:[%s11661_s3 + $0x260] sm:$0xff] %vm122_vm0, %v4519_v5  ;;  %v4515_v20 = vmax.f32 %v4407_v22, 0.0  ;;  %v5036_v22 = vld [vmem:[%s11658_s0 + $0x2a0] sm:$0xff] }
 0x4be   :  { %4631 = vst.msk [vmem:[%s11661_s3 + $0x280] sm:$0xff] %vm122_vm0, %v4523_v35  ;;  %v12854_v35 = vld [vmem:[#allocation158_spill] sm:$0xff] }
 0x4bf   :  { %4623 = vst.msk [vmem:[%s11661_s3 + $0x240] sm:$0xff] %vm122_vm0, %v4515_v20  ;;  %v3771_v20 = vmul.f32 %v5036_v22, %v12854_v35  ;;  %v5046_v35 = vld [vmem:[%s11658_s0 + $0x320] sm:$0xff] }
 0x4c0   :  { %v4193_v11 = vpop.permute.xlu0 %4192 }
 0x4c1   :  { %v4414_v56 = vadd.f32 %v4193_v11, %v3766_v0  ;;  %v4213_v45 = vpop.permute.xlu2 %4212 }
 0x4c2   :  { %v4173_v6 = vpop.permute.xlu1 %4172  ;;  %v4418_v30 = vadd.f32 %v4213_v45, %v3770_v28  ;;  %v5038_v45 = vld [vmem:[%s11658_s0 + $0x2f8] sm:$0xff] }
 0x4c3   :  { %v4522_v63 = vmax.f32 %v4414_v56, 0.0  ;;  %v4410_v44 = vadd.f32 %v4173_v6, %v3762_v49  ;;  %v12855_v49 = vld [vmem:[#allocation64_spill] sm:$0xff] }
 0x4c4   :  { %v4526_v24 = vmax.f32 %v4418_v30, 0.0  ;;  %v3778_v56 = vmul.f32 %v5037_v41, %v12855_v49  ;;  %v12856_v6 = vld [vmem:[#allocation160_spill] sm:$0xff] }
 0x4c5   :  { %4630 = vst.msk [vmem:[%s11661_s3 + $0x278] sm:$0xff] %vm122_vm0, %v4522_v63  ;;  %v4518_v58 = vmax.f32 %v4410_v44, 0.0  ;;  %v3782_v30 = vmul.f32 %v5038_v45, %v12856_v6  ;;  %v5039_v44 = vld [vmem:[%s11658_s0 + $0x2b8] sm:$0xff] }
 0x4c6   :  { %4634 = vst.msk [vmem:[%s11661_s3 + $0x298] sm:$0xff] %vm122_vm0, %v4526_v24  ;;  %v12857_v24 = vld [vmem:[#allocation69_spill] sm:$0xff] }
 0x4c7   :  { %4626 = vst.msk [vmem:[%s11661_s3 + $0x258] sm:$0xff] %vm122_vm0, %v4518_v58  ;;  %v3774_v58 = vmul.f32 %v5039_v44, %v12857_v24  ;;  %v5049_v24 = vld [vmem:[%s11658_s0 + $0x338] sm:$0xff] }
 0x4c8   :  { %v4208_v12 = vpop.permute.xlu0 %4207 }
 0x4c9   :  { %v4417_v39 = vadd.f32 %v4208_v12, %v3769_v26  ;;  %v4228_v60 = vpop.permute.xlu2 %4227 }
 0x4ca   :  { %v4188_v4 = vpop.permute.xlu1 %4187  ;;  %v4421_v7 = vadd.f32 %v4228_v60, %v3773_v25  ;;  %v5041_v60 = vld [vmem:[%s11658_s0 + $0x310] sm:$0xff] }
 0x4cb   :  { %v4525_v38 = vmax.f32 %v4417_v39, 0.0  ;;  %v4413_v50 = vadd.f32 %v4188_v4, %v3765_v46  ;;  %v12858_v46 = vld [vmem:[#allocation161_spill] sm:$0xff]  ;;  %v12859_v4 = vld [vmem:[#allocation74_spill] sm:$0xff] }
 0x4cc   :  { %v4529_v40 = vmax.f32 %v4421_v7, 0.0  ;;  %v3781_v39 = vmul.f32 %v5040_v23, %v12858_v46  ;;  %v3785_v7 = vmul.f32 %v5041_v60, %v12859_v4 }
 0x4cd   :  { %4633 = vst.msk [vmem:[%s11661_s3 + $0x290] sm:$0xff] %vm122_vm0, %v4525_v38  ;;  %v4521_v59 = vmax.f32 %v4413_v50, 0.0  ;;  %v5042_v50 = vld [vmem:[%s11658_s0 + $0x2d0] sm:$0xff] }
 0x4ce   :  { %4637 = vst.msk [vmem:[%s11661_s3 + $0x2b0] sm:$0xff] %vm122_vm0, %v4529_v40  ;;  %v12860_v40 = vld [vmem:[#allocation163_spill] sm:$0xff] }
 0x4cf   :  { %4629 = vst.msk [vmem:[%s11661_s3 + $0x270] sm:$0xff] %vm122_vm0, %v4521_v59  ;;  %v3777_v59 = vmul.f32 %v5042_v50, %v12860_v40  ;;  %v5052_v40 = vld [vmem:[%s11658_s0 + $0x350] sm:$0xff] }
 0x4d0   :  { %v4223_v57 = vpop.permute.xlu0 %4222 }
 0x4d1   :  { %v4420_v3 = vadd.f32 %v4223_v57, %v3772_v2  ;;  %v4243_v42 = vpop.permute.xlu2 %4242 }
 0x4d2   :  { %v4203_v27 = vpop.permute.xlu1 %4202  ;;  %v4424_v14 = vadd.f32 %v4243_v42, %v3776_v16  ;;  %v5044_v42 = vld [vmem:[%s11658_s0 + $0x328] sm:$0xff] }
 0x4d3   :  { %v4528_v21 = vmax.f32 %v4420_v3, 0.0  ;;  %v4416_v31 = vadd.f32 %v4203_v27, %v3768_v10  ;;  %v12861_v10 = vld [vmem:[#allocation67_spill] sm:$0xff]  ;;  %v12862_v27 = vld [vmem:[#allocation166_spill] sm:$0xff] }
 0x4d4   :  { %v4532_v9 = vmax.f32 %v4424_v14, 0.0  ;;  %v3784_v3 = vmul.f32 %v5043_v13, %v12861_v10  ;;  %v3788_v14 = vmul.f32 %v5044_v42, %v12862_v27  ;;  %v12872_v42 = vld [vmem:[#allocation175_spill] sm:$0xff] }
 0x4d5   :  { %4636 = vst.msk [vmem:[%s11661_s3 + $0x2a8] sm:$0xff] %vm122_vm0, %v4528_v21  ;;  %v4524_v55 = vmax.f32 %v4416_v31, 0.0  ;;  %v5045_v31 = vld [vmem:[%s11658_s0 + $0x2e8] sm:$0xff] }
 0x4d6   :  { %4640 = vst.msk [vmem:[%s11661_s3 + $0x2c8] sm:$0xff] %vm122_vm0, %v4532_v9  ;;  %v12863_v9 = vld [vmem:[#allocation72_spill] sm:$0xff] }
 0x4d7   :  { %4632 = vst.msk [vmem:[%s11661_s3 + $0x288] sm:$0xff] %vm122_vm0, %v4524_v55  ;;  %v3780_v55 = vmul.f32 %v5045_v31, %v12863_v9 }
 0x4d8   :  { %v4238_v5 = vpop.permute.xlu0 %4237 }
 0x4d9   :  { %v4423_v15 = vadd.f32 %v4238_v5, %v3775_v62  ;;  %v4258_v17 = vpop.permute.xlu2 %4257 }
 0x4da   :  { %v4218_v0 = vpop.permute.xlu1 %4217  ;;  %v4427_v53 = vadd.f32 %v4258_v17, %v3779_v37  ;;  %v5047_v17 = vld [vmem:[%s11658_s0 + $0x340] sm:$0xff] }
 0x4db   :  { %v4531_v54 = vmax.f32 %v4423_v15, 0.0  ;;  %v4419_v28 = vadd.f32 %v4218_v0, %v3771_v20  ;;  %v12864_v20 = vld [vmem:[#allocation167_spill] sm:$0xff]  ;;  %v12865_v0 = vld [vmem:[#allocation77_spill] sm:$0xff] }
 0x4dc   :  { %v4535_v11 = vmax.f32 %v4427_v53, 0.0  ;;  %v3787_v15 = vmul.f32 %v5046_v35, %v12864_v20  ;;  %v3791_v53 = vmul.f32 %v5047_v17, %v12865_v0 }
 0x4dd   :  { %4639 = vst.msk [vmem:[%s11661_s3 + $0x2c0] sm:$0xff] %vm122_vm0, %v4531_v54  ;;  %v4527_v1 = vmax.f32 %v4419_v28, 0.0  ;;  %v5048_v28 = vld [vmem:[%s11658_s0 + $0x300] sm:$0xff] }
 0x4de   :  { %4643 = vst.msk [vmem:[%s11661_s3 + $0x2e0] sm:$0xff] %vm122_vm0, %v4535_v11  ;;  %v12866_v11 = vld [vmem:[#allocation169_spill] sm:$0xff] }
 0x4df   :  { %4635 = vst.msk [vmem:[%s11661_s3 + $0x2a0] sm:$0xff] %vm122_vm0, %v4527_v1  ;;  %v3783_v1 = vmul.f32 %v5048_v28, %v12866_v11 }
 0x4e0   :  { %v4253_v63 = vpop.permute.xlu0 %4252 }
 0x4e1   :  { %v4426_v32 = vadd.f32 %v4253_v63, %v3778_v56  ;;  %v4273_v47 = vpop.permute.xlu2 %4272 }
 0x4e2   :  { %v4233_v26 = vpop.permute.xlu1 %4232  ;;  %v4430_v19 = vadd.f32 %v4273_v47, %v3782_v30  ;;  %v5050_v47 = vld [vmem:[%s11658_s0 + $0x358] sm:$0xff] }
 0x4e3   :  { %v4534_v48 = vmax.f32 %v4426_v32, 0.0  ;;  %v4422_v25 = vadd.f32 %v4233_v26, %v3774_v58  ;;  %v12867_v58 = vld [vmem:[#allocation70_spill] sm:$0xff]  ;;  %v12868_v26 = vld [vmem:[#allocation171_spill] sm:$0xff] }
 0x4e4   :  { %v4538_v12 = vmax.f32 %v4430_v19, 0.0  ;;  %v3790_v32 = vmul.f32 %v5049_v24, %v12867_v58  ;;  %v3794_v19 = vmul.f32 %v5050_v47, %v12868_v26 }
 0x4e5   :  { %4642 = vst.msk [vmem:[%s11661_s3 + $0x2d8] sm:$0xff] %vm122_vm0, %v4534_v48  ;;  %v4530_v34 = vmax.f32 %v4422_v25, 0.0  ;;  %v5051_v25 = vld [vmem:[%s11658_s0 + $0x318] sm:$0xff] }
 0x4e6   :  { %4646 = vst.msk [vmem:[%s11661_s3 + $0x2f8] sm:$0xff] %vm122_vm0, %v4538_v12  ;;  %v12869_v12 = vld [vmem:[#allocation75_spill] sm:$0xff] }
 0x4e7   :  { %4638 = vst.msk [vmem:[%s11661_s3 + $0x2b8] sm:$0xff] %vm122_vm0, %v4530_v34  ;;  %v3786_v34 = vmul.f32 %v5051_v25, %v12869_v12 }
 0x4e8   :  { %v4268_v38 = vpop.permute.xlu0 %4267 }
 0x4e9   :  { %v4429_v43 = vadd.f32 %v4268_v38, %v3781_v39  ;;  %v4288_v8 = vpop.permute.xlu2 %4287 }
 0x4ea   :  { %v4248_v2 = vpop.permute.xlu1 %4247  ;;  %v4433_v18 = vadd.f32 %v4288_v8, %v3785_v7 }
 0x4eb   :  { %v4537_v36 = vmax.f32 %v4429_v43, 0.0  ;;  %v4425_v16 = vadd.f32 %v4248_v2, %v3777_v59  ;;  %v12870_v59 = vld [vmem:[#allocation173_spill] sm:$0xff]  ;;  %v5053_v2 = vld [vmem:[%s11658_s0 + $0x330] sm:$0xff] }
 0x4ec   :  { %v4541_v57 = vmax.f32 %v4433_v18, 0.0  ;;  %v3793_v43 = vmul.f32 %v5052_v40, %v12870_v59  ;;  %v12871_v18 = vld [vmem:[#allocation80_spill] sm:$0xff] }
 0x4ed   :  { %4645 = vst.msk [vmem:[%s11661_s3 + $0x2f0] sm:$0xff] %vm122_vm0, %v4537_v36  ;;  %v4533_v52 = vmax.f32 %v4425_v16, 0.0  ;;  %v3789_v36 = vmul.f32 %v5053_v2, %v12871_v18 }
 0x4ee   :  { %4649 = vst.msk [vmem:[%s11661_s3 + $0x310] sm:$0xff] %vm122_vm0, %v4541_v57 }
 0x4ef   :  { %4641 = vst.msk [vmem:[%s11661_s3 + $0x2d0] sm:$0xff] %vm122_vm0, %v4533_v52 }
 0x4f0   :  { %v4283_v21 = vpop.permute.xlu0 %4282 }
 0x4f1   :  { %v4432_v51 = vadd.f32 %v4283_v21, %v3784_v3  ;;  %v4303_v33 = vpop.permute.xlu2 %4302  ;;  %v5054_v3 = vld [vmem:[%s11658_s0 + $0x348] sm:$0xff] }
 0x4f2   :  { %v4263_v62 = vpop.permute.xlu1 %4262  ;;  %v4436_v61 = vadd.f32 %v4303_v33, %v3788_v14  ;;  %v3792_v27 = vmul.f32 %v5054_v3, %v12872_v42 }
 0x4f3   :  { %v4540_v29 = vmax.f32 %v4432_v51, 0.0  ;;  %v4428_v37 = vadd.f32 %v4263_v62, %v3780_v55 }
 0x4f4   :  { %v4544_v5 = vmax.f32 %v4436_v61, 0.0 }
 0x4f5   :  { %4648 = vst.msk [vmem:[%s11661_s3 + $0x308] sm:$0xff] %vm122_vm0, %v4540_v29  ;;  %v4536_v22 = vmax.f32 %v4428_v37, 0.0 }
 0x4f6   :  { %4652 = vst.msk [vmem:[%s11661_s3 + $0x328] sm:$0xff] %vm122_vm0, %v4544_v5 }
 0x4f7   :  { %4644 = vst.msk [vmem:[%s11661_s3 + $0x2e8] sm:$0xff] %vm122_vm0, %v4536_v22 }
 0x4f8   :  { %v4298_v54 = vpop.permute.xlu0 %4297 }
 0x4f9   :  { %v4435_v41 = vadd.f32 %v4298_v54, %v3787_v15  ;;  %v4318_v49 = vpop.permute.xlu2 %4317 }
 0x4fa   :  { %v4278_v56 = vpop.permute.xlu1 %4277  ;;  %v4439_v45 = vadd.f32 %v4318_v49, %v3791_v53 }
 0x4fb   :  { %v4543_v6 = vmax.f32 %v4435_v41, 0.0  ;;  %v4431_v30 = vadd.f32 %v4278_v56, %v3783_v1 }
 0x4fc   :  { %v4547_v63 = vmax.f32 %v4439_v45, 0.0 }
 0x4fd   :  { %4651 = vst.msk [vmem:[%s11661_s3 + $0x320] sm:$0xff] %vm122_vm0, %v4543_v6  ;;  %v4539_v44 = vmax.f32 %v4431_v30, 0.0 }
 0x4fe   :  { %4655 = vst.msk [vmem:[%s11661_s3 + $0x340] sm:$0xff] %vm122_vm0, %v4547_v63 }
 0x4ff   :  { %4647 = vst.msk [vmem:[%s11661_s3 + $0x300] sm:$0xff] %vm122_vm0, %v4539_v44 }
 0x500   :  { %v4313_v48 = vpop.permute.xlu0 %4312 }
 0x501   :  { %v4438_v23 = vadd.f32 %v4313_v48, %v3790_v32  ;;  %v4333_v46 = vpop.permute.xlu2 %4332 }
 0x502   :  { %v4293_v39 = vpop.permute.xlu1 %4292  ;;  %v4442_v60 = vadd.f32 %v4333_v46, %v3794_v19 }
 0x503   :  { %v4546_v4 = vmax.f32 %v4438_v23, 0.0  ;;  %v4434_v7 = vadd.f32 %v4293_v39, %v3786_v34 }
 0x504   :  { %v4550_v38 = vmax.f32 %v4442_v60, 0.0 }
 0x505   :  { %4654 = vst.msk [vmem:[%s11661_s3 + $0x338] sm:$0xff] %vm122_vm0, %v4546_v4  ;;  %v4542_v50 = vmax.f32 %v4434_v7, 0.0 }
 0x506   :  { %4658 = vst.msk [vmem:[%s11661_s3 + $0x358] sm:$0xff] %vm122_vm0, %v4550_v38 }
 0x507   :  { %4650 = vst.msk [vmem:[%s11661_s3 + $0x318] sm:$0xff] %vm122_vm0, %v4542_v50 }
 0x508   :  { %v4328_v8 = vpop.permute.xlu0 %4327 }
 0x509   :  { %v4441_v16 = vadd.f32 %v4328_v8, %v3793_v43 }
 0x50a   :  { %v4308_v57 = vpop.permute.xlu1 %4307 }
 0x50b   :  { %v4549_v52 = vmax.f32 %v4441_v16, 0.0  ;;  %v4437_v13 = vadd.f32 %v4308_v57, %v3789_v36 }
 0x50d   :  { %4657 = vst.msk [vmem:[%s11661_s3 + $0x350] sm:$0xff] %vm122_vm0, %v4549_v52  ;;  %v4545_v10 = vmax.f32 %v4437_v13, 0.0 }
 0x50f   :  { %4653 = vst.msk [vmem:[%s11661_s3 + $0x330] sm:$0xff] %vm122_vm0, %v4545_v10 }
 0x512   :  { %v4323_v14 = vpop.permute.xlu1 %4322 }
 0x513   :  { %v4440_v21 = vadd.f32 %v4323_v14, %v3792_v27 }
 0x515   :  { %v4548_v31 = vmax.f32 %v4440_v21, 0.0 }
 0x517   :  { %4656 = vst.msk [vmem:[%s11661_s3 + $0x348] sm:$0xff] %vm122_vm0, %v4548_v31 }

</bundles_post_ra>
